<compile_context>
chip_gen: v6e
topology: v6e:2x2x1
jax: 0.10.0
libtpu: 0.0.40
codegen_flags: <defaults>
</compile_context>

<pallas_src>
import numpy as np
import jax
import jax.numpy as jnp
from jax.experimental import pallas as pl
from jax.experimental.pallas import tpu as pltpu


# ----------------------------------------------------------------------------
# Fused kernel factory: whole network in one kernel body.
# ----------------------------------------------------------------------------
def _make_fused_kernel(T, B, H, num_layers, approx_recip):
    f32 = jnp.float32
    H3 = 3 * H

    def kernel(*refs):
        n_lstm = 6 * num_layers
        x_ref = refs[0]                                   # (T, B, D) compute dt
        lstm_refs = refs[1:1 + n_lstm]                    # 6 arrays per layer
        (wa_ref, ba_ref, w1_ref, b1_ref,
         w2_ref, b2_ref) = refs[1 + n_lstm:7 + n_lstm]
        out_ref = refs[7 + n_lstm]                        # (B, O_pad) lane-dense
        pgf_ref, pgb_ref, hf_ref, hb_ref = refs[8 + n_lstm:]

        cdt = x_ref.dtype                                 # matmul operand dtype

        for layer in range(num_layers):
            base = 6 * layer
            wihf = lstm_refs[base + 0][...]               # (D_in, 4H) cdt
            wihb = lstm_refs[base + 1][...]
            whhf = lstm_refs[base + 2][...]               # (H, 4H)   cdt
            whhb = lstm_refs[base + 3][...]
            bf = lstm_refs[base + 4][...]                 # (1, 4H)   f32
            bb = lstm_refs[base + 5][...]

            # -- (1) input projection, hoisted out of the serial recurrence:
            #        independent per-time-step dots into aligned (T, B, 4H)
            #        pre-gate scratch.  Backward pre-gates stay time-ordered;
            #        they are read time-reversed in the recurrence below.
            if layer == 0:
                for t in range(T):
                    xt = x_ref[t]                                     # (B, D)
                    pgf_ref[t] = jnp.dot(xt, wihf,
                                         preferred_element_type=f32) + bf
                    pgb_ref[t] = jnp.dot(xt, wihb,
                                         preferred_element_type=f32) + bb
            else:
                for t in range(T):
                    hft = hf_ref[t]                                   # (B, H)
                    hbt = hb_ref[t]
                    pgf_ref[t] = (jnp.dot(hft, wihf[0:H, :],
                                          preferred_element_type=f32)
                                  + jnp.dot(hbt, wihf[H:2 * H, :],
                                            preferred_element_type=f32) + bf)
                    pgb_ref[t] = (jnp.dot(hft, wihb[0:H, :],
                                          preferred_element_type=f32)
                                  + jnp.dot(hbt, wihb[H:2 * H, :],
                                            preferred_element_type=f32) + bb)

            h_f = jnp.zeros((B, H), f32)
            h_b = jnp.zeros((B, H), f32)
            c_f = jnp.zeros((B, H), f32)
            c_b = jnp.zeros((B, H), f32)

            # -- (2) recurrence, statically unrolled (T small/static).
            #        Packed per-direction gate column order is (i, f, o, g),
            #        so one contiguous sigmoid span + one tanh per direction.
            for t in range(T):
                tr = T - 1 - t
                gates_f = pgf_ref[t] + jnp.dot(h_f.astype(cdt), whhf,
                                               preferred_element_type=f32)
                gates_b = pgb_ref[tr] + jnp.dot(h_b.astype(cdt), whhb,
                                                preferred_element_type=f32)
                sig_f = jax.nn.sigmoid(gates_f[:, 0:H3])       # i, f, o
                sig_b = jax.nn.sigmoid(gates_b[:, 0:H3])
                g_f = jnp.tanh(gates_f[:, H3:4 * H])
                g_b = jnp.tanh(gates_b[:, H3:4 * H])
                c_f = sig_f[:, H:2 * H] * c_f + sig_f[:, 0:H] * g_f
                c_b = sig_b[:, H:2 * H] * c_b + sig_b[:, 0:H] * g_b
                h_f = sig_f[:, 2 * H:H3] * jnp.tanh(c_f)
                h_b = sig_b[:, 2 * H:H3] * jnp.tanh(c_b)
                hf_ref[t] = h_f.astype(cdt)        # fwd output at time t
                hb_ref[tr] = h_b.astype(cdt)       # bwd output at time T-1-t

        # -- (3) attention pooling over time + MLP head (fused, in-kernel).
        hf = hf_ref[...].astype(f32)               # (T, B, H)
        hb = hb_ref[...].astype(f32)
        wa = wa_ref[...]                           # (1, 2H)
        waf = wa[:, 0:H][None]                     # (1, 1, H)
        wab = wa[:, H:2 * H][None]
        ba = ba_ref[...]                           # (1, 1)

        # scores: lane reduction over H, then softmax over the leading T axis.
        s = (jnp.sum(hf * waf, axis=-1, keepdims=True)
             + jnp.sum(hb * wab, axis=-1, keepdims=True) + ba[None])  # (T,B,1)
        m = jnp.max(s, axis=0, keepdims=True)                         # (1,B,1)
        e = jnp.exp(s - m)
        den = jnp.sum(e, axis=0, keepdims=True)                       # (1,B,1)
        if approx_recip:
            w = e * pl.reciprocal(den, approx=True)                   # EUP slot
        else:
            w = e / den
        ctx_f = jnp.sum(w * hf, axis=0)                               # (B, H)
        ctx_b = jnp.sum(w * hb, axis=0)

        # fc1 (row-split avoids a concat) + relu, fc2 into lane-padded output.
        h1 = jnp.maximum(
            jnp.dot(ctx_f.astype(cdt), w1_ref[0:H, :],
                    preferred_element_type=f32)
            + jnp.dot(ctx_b.astype(cdt), w1_ref[H:2 * H, :],
                      preferred_element_type=f32)
            + b1_ref[...], 0.0)
        out_ref[...] = (jnp.dot(h1.astype(cdt), w2_ref[...],
                                preferred_element_type=f32)
                        + b2_ref[...])

    return kernel


# ----------------------------------------------------------------------------
# Wrapper: one pallas_call for the whole forward pass.
# ----------------------------------------------------------------------------
def attention_lstm_forward(x, params, hidden_size, num_layers, output_size):
    """x: (B, T, input_size) -> (B, output_size)."""
    B, T, D = x.shape
    H = hidden_size

    lstm_flat = []
    for p in params["lstm"]:
        lstm_flat.extend(p)
    wa, ba, w1t, b1, w2p, b2p = params["head"]
    o_pad = w2p.shape[1]
    cdt = w2p.dtype                          # matmul operand (compute) dtype
    approx_recip = (cdt == jnp.bfloat16)     # exact divide on the f32 path

    # time-major 3-D input: x_tm[t, b, :] = x[b, t, :]
    x_tm = jnp.transpose(x, (1, 0, 2)).astype(cdt)

    vmem = pl.BlockSpec(memory_space=pltpu.MemorySpace.VMEM)
    n_in = 1 + len(lstm_flat) + 6

    def nbytes(a):
        return int(a.size) * a.dtype.itemsize

    in_bytes = (nbytes(x_tm) + sum(nbytes(w) for w in lstm_flat)
                + sum(nbytes(w) for w in params["head"]))
    out_bytes = 4 * B * o_pad
    scratch_bytes = (2 * T * B * 4 * H * 4                    # pgf / pgb (f32)
                     + 2 * T * B * H * jnp.dtype(cdt).itemsize)  # hf / hb
    # explicit VMEM budget (default scoped limit is only 16-32 MiB); clamp to
    # 64 MiB so the same setting is valid on v5e/v6e/v7x.
    vmem_limit = int(min(64 << 20,
                         max(32 << 20,
                             2 * (in_bytes + out_bytes + scratch_bytes)
                             + (4 << 20))))

    # advisory cost estimate for the XLA scheduler
    flops = 0
    for layer in range(num_layers):
        d_in = D if layer == 0 else 2 * H
        flops += 2 * T * B * d_in * 8 * H        # input projection (both dirs)
        flops += 2 * T * B * H * 8 * H           # recurrent dots (both dirs)
    flops += 2 * T * B * 2 * H                   # attention scores
    flops += 2 * B * 2 * H * H + 2 * B * H * o_pad
    transcendentals = num_layers * T * B * 10 * H + T * B
    bytes_accessed = in_bytes + out_bytes

    out_pad = pl.pallas_call(
        _make_fused_kernel(T, B, H, num_layers, approx_recip),
        out_shape=jax.ShapeDtypeStruct((B, o_pad), jnp.float32),
        in_specs=[vmem] * n_in,
        out_specs=vmem,
        scratch_shapes=[
            pltpu.VMEM((T, B, 4 * H), jnp.float32),   # fwd pre-gates
            pltpu.VMEM((T, B, 4 * H), jnp.float32),   # bwd pre-gates
            pltpu.VMEM((T, B, H), cdt),               # fwd activations
            pltpu.VMEM((T, B, H), cdt),               # bwd activations
        ],
        compiler_params=pltpu.CompilerParams(vmem_limit_bytes=vmem_limit),
        cost_estimate=pl.CostEstimate(flops=int(flops),
                                      transcendentals=int(transcendentals),
                                      bytes_accessed=int(bytes_accessed)),
    )(x_tm, *lstm_flat, wa, ba, w1t, b1, w2p, b2p)

    return out_pad[:, :output_size]


# ----------------------------------------------------------------------------
# Parameter init (raw PyTorch layouts) and packing into the kernel layout.
# ----------------------------------------------------------------------------
def init_raw_params(key, input_size, hidden_size, output_size, num_layers):
    H = hidden_size

    def uniform(k, shape, bound):
        return jax.random.uniform(k, shape, jnp.float32, -bound, bound)

    keys = iter(jax.random.split(key, 8 * num_layers + 6))
    kb = 1.0 / np.sqrt(H)
    lstm = []
    for layer in range(num_layers):
        d_in = input_size if layer == 0 else 2 * H
        dirs = {}
        for name in ("fwd", "bwd"):
            w_ih = uniform(next(keys), (4 * H, d_in), kb)
            w_hh = uniform(next(keys), (4 * H, H), kb)
            b_ih = uniform(next(keys), (4 * H,), kb)
            b_hh = uniform(next(keys), (4 * H,), kb)
            dirs[name] = (w_ih, w_hh, b_ih, b_hh)
        lstm.append(dirs)

    ka = 1.0 / np.sqrt(2 * H)
    wa = uniform(next(keys), (1, 2 * H), ka)          # attention Linear(2H,1)
    ba = uniform(next(keys), (1,), ka)
    w1 = uniform(next(keys), (H, 2 * H), ka)          # fc1 Linear(2H,H)
    b1 = uniform(next(keys), (H,), ka)
    kf = 1.0 / np.sqrt(H)
    w2 = uniform(next(keys), (output_size, H), kf)    # fc2 Linear(H,O)
    b2 = uniform(next(keys), (output_size,), kf)
    return {"lstm": lstm, "head": (wa, ba, w1, b1, w2, b2)}


def _reorder_gates(a, H):
    """Reorder last-axis gate blocks from PyTorch (i, f, g, o) to (i, f, o, g)."""
    return jnp.concatenate(
        [a[..., 0:2 * H], a[..., 3 * H:4 * H], a[..., 2 * H:3 * H]], axis=-1)


def pack_params(raw, hidden_size, output_size, dtype=jnp.float32):
    """dtype: matmul operand dtype (f32 or bf16); biases stay f32."""
    H = hidden_size
    lstm_packed = []
    for layer in raw["lstm"]:
        wif, whf, bif, bhf = layer["fwd"]
        wib, whb, bib, bhb = layer["bwd"]
        wih_f = _reorder_gates(wif.T, H).astype(dtype)   # (D_in, 4H)
        wih_b = _reorder_gates(wib.T, H).astype(dtype)
        whh_f = _reorder_gates(whf.T, H).astype(dtype)   # (H, 4H)  per dir
        whh_b = _reorder_gates(whb.T, H).astype(dtype)
        b_f = _reorder_gates((bif + bhf)[None, :], H)    # (1, 4H)  f32
        b_b = _reorder_gates((bib + bhb)[None, :], H)
        lstm_packed.append((wih_f, wih_b, whh_f, whh_b, b_f, b_b))

    wa, ba, w1, b1, w2, b2 = raw["head"]
    o_pad = ((output_size + 127) // 128) * 128           # lane-dense final store
    w2p = (jnp.zeros((H, o_pad), jnp.float32)
           .at[:, :output_size].set(w2.T).astype(dtype))
    b2p = jnp.zeros((1, o_pad), jnp.float32).at[:, :output_size].set(b2[None, :])
    head = (wa, ba.reshape(1, 1), w1.T.astype(dtype), b1[None, :], w2p, b2p)
    return {"lstm": lstm_packed, "head": head}


# ----------------------------------------------------------------------------
# Pure-JAX reference (raw params, standard math) for verification.
# ----------------------------------------------------------------------------
def ref_forward(x, raw, hidden_size, num_layers):
    H = hidden_size
    B, T, _ = x.shape
    HP = jax.lax.Precision.HIGHEST

    def hdot(a, b):
        return jnp.dot(a, b, precision=HP)

    def run_dir(seq, w_ih, w_hh, b_ih, b_hh):
        wi, wh = w_ih.T, w_hh.T
        b = (b_ih + b_hh)[None, :]
        h = jnp.zeros((B, H), jnp.float32)
        c = jnp.zeros((B, H), jnp.float32)
        hs = []
        for t in range(seq.shape[1]):
            gates = hdot(seq[:, t], wi) + hdot(h, wh) + b
            i = jax.nn.sigmoid(gates[:, :H])
            f = jax.nn.sigmoid(gates[:, H:2 * H])
            g = jnp.tanh(gates[:, 2 * H:3 * H])
            o = jax.nn.sigmoid(gates[:, 3 * H:])
            c = f * c + i * g
            h = o * jnp.tanh(c)
            hs.append(h)
        return jnp.stack(hs, axis=1)

    seq = x
    for layer in range(num_layers):
        fwd = run_dir(seq, *raw["lstm"][layer]["fwd"])
        bwd = run_dir(seq[:, ::-1], *raw["lstm"][layer]["bwd"])[:, ::-1]
        seq = jnp.concatenate([fwd, bwd], axis=-1)

    wa, ba, w1, b1, w2, b2 = raw["head"]
    scores = hdot(seq, wa.T) + ba                      # (B, T, 1)
    attn = jax.nn.softmax(scores, axis=1)
    context = jnp.sum(attn * seq, axis=1)              # (B, 2H)
    hid = jax.nn.relu(hdot(context, w1.T) + b1)
    return hdot(hid, w2.T) + b2


# ----------------------------------------------------------------------------
if __name__ == "__main__":
    # Small shapes consistent with the module's forward pass.
    BATCH, SEQ = 2, 8
    INPUT_SIZE, HIDDEN_SIZE, OUTPUT_SIZE, NUM_LAYERS = 16, 32, 8, 2

    root_key = jax.random.PRNGKey(0)
    pkey, xkey = jax.random.split(root_key)
    raw_params = init_raw_params(pkey, INPUT_SIZE, HIDDEN_SIZE, OUTPUT_SIZE,
                                 NUM_LAYERS)
    x = jax.random.normal(xkey, (BATCH, SEQ, INPUT_SIZE), dtype=jnp.float32)

    ref = jax.block_until_ready(
        ref_forward(x, raw_params, HIDDEN_SIZE, NUM_LAYERS))

    fwd = jax.jit(attention_lstm_forward, static_argnums=(2, 3, 4))

    # f32 operand path: tight tolerance against the pure-JAX reference.
    params_f32 = pack_params(raw_params, HIDDEN_SIZE, OUTPUT_SIZE,
                             dtype=jnp.float32)
    out_f32 = jax.block_until_ready(
        fwd(x, params_f32, HIDDEN_SIZE, NUM_LAYERS, OUTPUT_SIZE))
    assert out_f32.shape == (BATCH, OUTPUT_SIZE), out_f32.shape
    np.testing.assert_allclose(np.asarray(out_f32), np.asarray(ref),
                               rtol=1e-3, atol=1e-3)

    # bf16 matmul-operand path (f32 accumulation, approx reciprocal):
    # the production configuration from the perf review; loose sanity check.
    params_bf16 = pack_params(raw_params, HIDDEN_SIZE, OUTPUT_SIZE,
                              dtype=jnp.bfloat16)
    out_bf16 = jax.block_until_ready(
        fwd(x, params_bf16, HIDDEN_SIZE, NUM_LAYERS, OUTPUT_SIZE))
    assert out_bf16.shape == (BATCH, OUTPUT_SIZE), out_bf16.shape
    np.testing.assert_allclose(np.asarray(out_bf16), np.asarray(ref),
                               rtol=5e-2, atol=5e-2)

    print("KERNEL_OK")
</pallas_src>

<mosaic_0001>
module attributes {stable_mosaic.version = 11 : i64} {
  func.func @kernel(%arg0: memref<8x2x16xf32, #tpu.memory_space<vmem>>, %arg1: memref<16x128xf32, #tpu.memory_space<vmem>>, %arg2: memref<16x128xf32, #tpu.memory_space<vmem>>, %arg3: memref<32x128xf32, #tpu.memory_space<vmem>>, %arg4: memref<32x128xf32, #tpu.memory_space<vmem>>, %arg5: memref<1x128xf32, #tpu.memory_space<vmem>>, %arg6: memref<1x128xf32, #tpu.memory_space<vmem>>, %arg7: memref<64x128xf32, #tpu.memory_space<vmem>>, %arg8: memref<64x128xf32, #tpu.memory_space<vmem>>, %arg9: memref<32x128xf32, #tpu.memory_space<vmem>>, %arg10: memref<32x128xf32, #tpu.memory_space<vmem>>, %arg11: memref<1x128xf32, #tpu.memory_space<vmem>>, %arg12: memref<1x128xf32, #tpu.memory_space<vmem>>, %arg13: memref<1x64xf32, #tpu.memory_space<vmem>>, %arg14: memref<1x1xf32, #tpu.memory_space<vmem>>, %arg15: memref<64x32xf32, #tpu.memory_space<vmem>>, %arg16: memref<1x32xf32, #tpu.memory_space<vmem>>, %arg17: memref<32x128xf32, #tpu.memory_space<vmem>>, %arg18: memref<1x128xf32, #tpu.memory_space<vmem>>, %arg19: memref<2x128xf32, #tpu.memory_space<vmem>>, %arg20: memref<8x2x128xf32, #tpu.memory_space<vmem>>, %arg21: memref<8x2x128xf32, #tpu.memory_space<vmem>>, %arg22: memref<8x2x32xf32, #tpu.memory_space<vmem>>, %arg23: memref<8x2x32xf32, #tpu.memory_space<vmem>>) attributes {dimension_semantics = [], scalar_prefetch = 0 : i64, scratch_operands = 4 : i64, tpu.core_type = #tpu.core_type<tc>} {
    %c0 = arith.constant 0 : index
    %c0_0 = arith.constant 0 : index
    %0 = vector.load %arg1[%c0, %c0_0] : memref<16x128xf32, #tpu.memory_space<vmem>>, vector<16x128xf32>
    %c0_1 = arith.constant 0 : index
    %c0_2 = arith.constant 0 : index
    %1 = vector.load %arg2[%c0_1, %c0_2] : memref<16x128xf32, #tpu.memory_space<vmem>>, vector<16x128xf32>
    %c0_3 = arith.constant 0 : index
    %c0_4 = arith.constant 0 : index
    %2 = vector.load %arg3[%c0_3, %c0_4] : memref<32x128xf32, #tpu.memory_space<vmem>>, vector<32x128xf32>
    %c0_5 = arith.constant 0 : index
    %c0_6 = arith.constant 0 : index
    %3 = vector.load %arg4[%c0_5, %c0_6] : memref<32x128xf32, #tpu.memory_space<vmem>>, vector<32x128xf32>
    %c0_7 = arith.constant 0 : index
    %c0_8 = arith.constant 0 : index
    %4 = vector.load %arg5[%c0_7, %c0_8] : memref<1x128xf32, #tpu.memory_space<vmem>>, vector<1x128xf32>
    %c0_9 = arith.constant 0 : index
    %c0_10 = arith.constant 0 : index
    %5 = vector.load %arg6[%c0_9, %c0_10] : memref<1x128xf32, #tpu.memory_space<vmem>>, vector<1x128xf32>
    %c0_11 = arith.constant 0 : index
    %c0_12 = arith.constant 0 : index
    %c0_13 = arith.constant 0 : index
    %6 = vector.load %arg0[%c0_11, %c0_12, %c0_13] : memref<8x2x16xf32, #tpu.memory_space<vmem>>, vector<1x2x16xf32>
    %7 = vector.shape_cast %6 : vector<1x2x16xf32> to vector<2x16xf32>
    %cst = arith.constant dense<0.000000e+00> : vector<2x128xf32>
    %8 = tpu.matmul %7, %0, %cst {dimension_numbers = #tpu.dot_dimension_numbers<[1], [0], [0], [1], [0, 0, 1, 1], [], []>} : vector<2x16xf32>, vector<16x128xf32>, vector<2x128xf32> -> vector<2x128xf32>
    %9 = vector.broadcast %4 : vector<1x128xf32> to vector<2x128xf32>
    %10 = arith.addf %8, %9 : vector<2x128xf32>
    %c0_14 = arith.constant 0 : index
    %c0_15 = arith.constant 0 : index
    %c0_16 = arith.constant 0 : index
    %11 = vector.load %arg20[%c0_14, %c0_15, %c0_16] : memref<8x2x128xf32, #tpu.memory_space<vmem>>, vector<1x2x128xf32>
    %12 = vector.shape_cast %11 : vector<1x2x128xf32> to vector<2x128xf32>
    %13 = vector.shape_cast %10 : vector<2x128xf32> to vector<1x2x128xf32>
    tpu.vector_store %arg20[%c0_14, %c0_15, %c0_16], %13 {strides = array<i32>} : memref<8x2x128xf32, #tpu.memory_space<vmem>>, vector<1x2x128xf32>,
    %cst_17 = arith.constant dense<0.000000e+00> : vector<2x128xf32>
    %14 = tpu.matmul %7, %1, %cst_17 {dimension_numbers = #tpu.dot_dimension_numbers<[1], [0], [0], [1], [0, 0, 1, 1], [], []>} : vector<2x16xf32>, vector<16x128xf32>, vector<2x128xf32> -> vector<2x128xf32>
    %15 = vector.broadcast %5 : vector<1x128xf32> to vector<2x128xf32>
    %16 = arith.addf %14, %15 : vector<2x128xf32>
    %c0_18 = arith.constant 0 : index
    %c0_19 = arith.constant 0 : index
    %c0_20 = arith.constant 0 : index
    %17 = vector.load %arg21[%c0_18, %c0_19, %c0_20] : memref<8x2x128xf32, #tpu.memory_space<vmem>>, vector<1x2x128xf32>
    %18 = vector.shape_cast %17 : vector<1x2x128xf32> to vector<2x128xf32>
    %19 = vector.shape_cast %16 : vector<2x128xf32> to vector<1x2x128xf32>
    tpu.vector_store %arg21[%c0_18, %c0_19, %c0_20], %19 {strides = array<i32>} : memref<8x2x128xf32, #tpu.memory_space<vmem>>, vector<1x2x128xf32>,
    %c1 = arith.constant 1 : index
    %c0_21 = arith.constant 0 : index
    %c0_22 = arith.constant 0 : index
    %20 = vector.load %arg0[%c1, %c0_21, %c0_22] : memref<8x2x16xf32, #tpu.memory_space<vmem>>, vector<1x2x16xf32>
    %21 = vector.shape_cast %20 : vector<1x2x16xf32> to vector<2x16xf32>
    %cst_23 = arith.constant dense<0.000000e+00> : vector<2x128xf32>
    %22 = tpu.matmul %21, %0, %cst_23 {dimension_numbers = #tpu.dot_dimension_numbers<[1], [0], [0], [1], [0, 0, 1, 1], [], []>} : vector<2x16xf32>, vector<16x128xf32>, vector<2x128xf32> -> vector<2x128xf32>
    %23 = vector.broadcast %4 : vector<1x128xf32> to vector<2x128xf32>
    %24 = arith.addf %22, %23 : vector<2x128xf32>
    %c1_24 = arith.constant 1 : index
    %c0_25 = arith.constant 0 : index
    %c0_26 = arith.constant 0 : index
    %25 = vector.load %arg20[%c1_24, %c0_25, %c0_26] : memref<8x2x128xf32, #tpu.memory_space<vmem>>, vector<1x2x128xf32>
    %26 = vector.shape_cast %25 : vector<1x2x128xf32> to vector<2x128xf32>
    %27 = vector.shape_cast %24 : vector<2x128xf32> to vector<1x2x128xf32>
    tpu.vector_store %arg20[%c1_24, %c0_25, %c0_26], %27 {strides = array<i32>} : memref<8x2x128xf32, #tpu.memory_space<vmem>>, vector<1x2x128xf32>,
    %cst_27 = arith.constant dense<0.000000e+00> : vector<2x128xf32>
    %28 = tpu.matmul %21, %1, %cst_27 {dimension_numbers = #tpu.dot_dimension_numbers<[1], [0], [0], [1], [0, 0, 1, 1], [], []>} : vector<2x16xf32>, vector<16x128xf32>, vector<2x128xf32> -> vector<2x128xf32>
    %29 = vector.broadcast %5 : vector<1x128xf32> to vector<2x128xf32>
    %30 = arith.addf %28, %29 : vector<2x128xf32>
    %c1_28 = arith.constant 1 : index
    %c0_29 = arith.constant 0 : index
    %c0_30 = arith.constant 0 : index
    %31 = vector.load %arg21[%c1_28, %c0_29, %c0_30] : memref<8x2x128xf32, #tpu.memory_space<vmem>>, vector<1x2x128xf32>
    %32 = vector.shape_cast %31 : vector<1x2x128xf32> to vector<2x128xf32>
    %33 = vector.shape_cast %30 : vector<2x128xf32> to vector<1x2x128xf32>
    tpu.vector_store %arg21[%c1_28, %c0_29, %c0_30], %33 {strides = array<i32>} : memref<8x2x128xf32, #tpu.memory_space<vmem>>, vector<1x2x128xf32>,
    %c2 = arith.constant 2 : index
    %c0_31 = arith.constant 0 : index
    %c0_32 = arith.constant 0 : index
    %34 = vector.load %arg0[%c2, %c0_31, %c0_32] : memref<8x2x16xf32, #tpu.memory_space<vmem>>, vector<1x2x16xf32>
    %35 = vector.shape_cast %34 : vector<1x2x16xf32> to vector<2x16xf32>
    %cst_33 = arith.constant dense<0.000000e+00> : vector<2x128xf32>
    %36 = tpu.matmul %35, %0, %cst_33 {dimension_numbers = #tpu.dot_dimension_numbers<[1], [0], [0], [1], [0, 0, 1, 1], [], []>} : vector<2x16xf32>, vector<16x128xf32>, vector<2x128xf32> -> vector<2x128xf32>
    %37 = vector.broadcast %4 : vector<1x128xf32> to vector<2x128xf32>
    %38 = arith.addf %36, %37 : vector<2x128xf32>
    %c2_34 = arith.constant 2 : index
    %c0_35 = arith.constant 0 : index
    %c0_36 = arith.constant 0 : index
    %39 = vector.load %arg20[%c2_34, %c0_35, %c0_36] : memref<8x2x128xf32, #tpu.memory_space<vmem>>, vector<1x2x128xf32>
    %40 = vector.shape_cast %39 : vector<1x2x128xf32> to vector<2x128xf32>
    %41 = vector.shape_cast %38 : vector<2x128xf32> to vector<1x2x128xf32>
    tpu.vector_store %arg20[%c2_34, %c0_35, %c0_36], %41 {strides = array<i32>} : memref<8x2x128xf32, #tpu.memory_space<vmem>>, vector<1x2x128xf32>,
    %cst_37 = arith.constant dense<0.000000e+00> : vector<2x128xf32>
    %42 = tpu.matmul %35, %1, %cst_37 {dimension_numbers = #tpu.dot_dimension_numbers<[1], [0], [0], [1], [0, 0, 1, 1], [], []>} : vector<2x16xf32>, vector<16x128xf32>, vector<2x128xf32> -> vector<2x128xf32>
    %43 = vector.broadcast %5 : vector<1x128xf32> to vector<2x128xf32>
    %44 = arith.addf %42, %43 : vector<2x128xf32>
    %c2_38 = arith.constant 2 : index
    %c0_39 = arith.constant 0 : index
    %c0_40 = arith.constant 0 : index
    %45 = vector.load %arg21[%c2_38, %c0_39, %c0_40] : memref<8x2x128xf32, #tpu.memory_space<vmem>>, vector<1x2x128xf32>
    %46 = vector.shape_cast %45 : vector<1x2x128xf32> to vector<2x128xf32>
    %47 = vector.shape_cast %44 : vector<2x128xf32> to vector<1x2x128xf32>
    tpu.vector_store %arg21[%c2_38, %c0_39, %c0_40], %47 {strides = array<i32>} : memref<8x2x128xf32, #tpu.memory_space<vmem>>, vector<1x2x128xf32>,
    %c3 = arith.constant 3 : index
    %c0_41 = arith.constant 0 : index
    %c0_42 = arith.constant 0 : index
    %48 = vector.load %arg0[%c3, %c0_41, %c0_42] : memref<8x2x16xf32, #tpu.memory_space<vmem>>, vector<1x2x16xf32>
    %49 = vector.shape_cast %48 : vector<1x2x16xf32> to vector<2x16xf32>
    %cst_43 = arith.constant dense<0.000000e+00> : vector<2x128xf32>
    %50 = tpu.matmul %49, %0, %cst_43 {dimension_numbers = #tpu.dot_dimension_numbers<[1], [0], [0], [1], [0, 0, 1, 1], [], []>} : vector<2x16xf32>, vector<16x128xf32>, vector<2x128xf32> -> vector<2x128xf32>
    %51 = vector.broadcast %4 : vector<1x128xf32> to vector<2x128xf32>
    %52 = arith.addf %50, %51 : vector<2x128xf32>
    %c3_44 = arith.constant 3 : index
    %c0_45 = arith.constant 0 : index
    %c0_46 = arith.constant 0 : index
    %53 = vector.load %arg20[%c3_44, %c0_45, %c0_46] : memref<8x2x128xf32, #tpu.memory_space<vmem>>, vector<1x2x128xf32>
    %54 = vector.shape_cast %53 : vector<1x2x128xf32> to vector<2x128xf32>
    %55 = vector.shape_cast %52 : vector<2x128xf32> to vector<1x2x128xf32>
    tpu.vector_store %arg20[%c3_44, %c0_45, %c0_46], %55 {strides = array<i32>} : memref<8x2x128xf32, #tpu.memory_space<vmem>>, vector<1x2x128xf32>,
    %cst_47 = arith.constant dense<0.000000e+00> : vector<2x128xf32>
    %56 = tpu.matmul %49, %1, %cst_47 {dimension_numbers = #tpu.dot_dimension_numbers<[1], [0], [0], [1], [0, 0, 1, 1], [], []>} : vector<2x16xf32>, vector<16x128xf32>, vector<2x128xf32> -> vector<2x128xf32>
    %57 = vector.broadcast %5 : vector<1x128xf32> to vector<2x128xf32>
    %58 = arith.addf %56, %57 : vector<2x128xf32>
    %c3_48 = arith.constant 3 : index
    %c0_49 = arith.constant 0 : index
    %c0_50 = arith.constant 0 : index
    %59 = vector.load %arg21[%c3_48, %c0_49, %c0_50] : memref<8x2x128xf32, #tpu.memory_space<vmem>>, vector<1x2x128xf32>
    %60 = vector.shape_cast %59 : vector<1x2x128xf32> to vector<2x128xf32>
    %61 = vector.shape_cast %58 : vector<2x128xf32> to vector<1x2x128xf32>
    tpu.vector_store %arg21[%c3_48, %c0_49, %c0_50], %61 {strides = array<i32>} : memref<8x2x128xf32, #tpu.memory_space<vmem>>, vector<1x2x128xf32>,
    %c4 = arith.constant 4 : index
    %c0_51 = arith.constant 0 : index
    %c0_52 = arith.constant 0 : index
    %62 = vector.load %arg0[%c4, %c0_51, %c0_52] : memref<8x2x16xf32, #tpu.memory_space<vmem>>, vector<1x2x16xf32>
    %63 = vector.shape_cast %62 : vector<1x2x16xf32> to vector<2x16xf32>
    %cst_53 = arith.constant dense<0.000000e+00> : vector<2x128xf32>
    %64 = tpu.matmul %63, %0, %cst_53 {dimension_numbers = #tpu.dot_dimension_numbers<[1], [0], [0], [1], [0, 0, 1, 1], [], []>} : vector<2x16xf32>, vector<16x128xf32>, vector<2x128xf32> -> vector<2x128xf32>
    %65 = vector.broadcast %4 : vector<1x128xf32> to vector<2x128xf32>
    %66 = arith.addf %64, %65 : vector<2x128xf32>
    %c4_54 = arith.constant 4 : index
    %c0_55 = arith.constant 0 : index
    %c0_56 = arith.constant 0 : index
    %67 = vector.load %arg20[%c4_54, %c0_55, %c0_56] : memref<8x2x128xf32, #tpu.memory_space<vmem>>, vector<1x2x128xf32>
    %68 = vector.shape_cast %67 : vector<1x2x128xf32> to vector<2x128xf32>
    %69 = vector.shape_cast %66 : vector<2x128xf32> to vector<1x2x128xf32>
    tpu.vector_store %arg20[%c4_54, %c0_55, %c0_56], %69 {strides = array<i32>} : memref<8x2x128xf32, #tpu.memory_space<vmem>>, vector<1x2x128xf32>,
    %cst_57 = arith.constant dense<0.000000e+00> : vector<2x128xf32>
    %70 = tpu.matmul %63, %1, %cst_57 {dimension_numbers = #tpu.dot_dimension_numbers<[1], [0], [0], [1], [0, 0, 1, 1], [], []>} : vector<2x16xf32>, vector<16x128xf32>, vector<2x128xf32> -> vector<2x128xf32>
    %71 = vector.broadcast %5 : vector<1x128xf32> to vector<2x128xf32>
    %72 = arith.addf %70, %71 : vector<2x128xf32>
    %c4_58 = arith.constant 4 : index
    %c0_59 = arith.constant 0 : index
    %c0_60 = arith.constant 0 : index
    %73 = vector.load %arg21[%c4_58, %c0_59, %c0_60] : memref<8x2x128xf32, #tpu.memory_space<vmem>>, vector<1x2x128xf32>
    %74 = vector.shape_cast %73 : vector<1x2x128xf32> to vector<2x128xf32>
    %75 = vector.shape_cast %72 : vector<2x128xf32> to vector<1x2x128xf32>
    tpu.vector_store %arg21[%c4_58, %c0_59, %c0_60], %75 {strides = array<i32>} : memref<8x2x128xf32, #tpu.memory_space<vmem>>, vector<1x2x128xf32>,
    %c5 = arith.constant 5 : index
    %c0_61 = arith.constant 0 : index
    %c0_62 = arith.constant 0 : index
    %76 = vector.load %arg0[%c5, %c0_61, %c0_62] : memref<8x2x16xf32, #tpu.memory_space<vmem>>, vector<1x2x16xf32>
    %77 = vector.shape_cast %76 : vector<1x2x16xf32> to vector<2x16xf32>
    %cst_63 = arith.constant dense<0.000000e+00> : vector<2x128xf32>
    %78 = tpu.matmul %77, %0, %cst_63 {dimension_numbers = #tpu.dot_dimension_numbers<[1], [0], [0], [1], [0, 0, 1, 1], [], []>} : vector<2x16xf32>, vector<16x128xf32>, vector<2x128xf32> -> vector<2x128xf32>
    %79 = vector.broadcast %4 : vector<1x128xf32> to vector<2x128xf32>
    %80 = arith.addf %78, %79 : vector<2x128xf32>
    %c5_64 = arith.constant 5 : index
    %c0_65 = arith.constant 0 : index
    %c0_66 = arith.constant 0 : index
    %81 = vector.load %arg20[%c5_64, %c0_65, %c0_66] : memref<8x2x128xf32, #tpu.memory_space<vmem>>, vector<1x2x128xf32>
    %82 = vector.shape_cast %81 : vector<1x2x128xf32> to vector<2x128xf32>
    %83 = vector.shape_cast %80 : vector<2x128xf32> to vector<1x2x128xf32>
    tpu.vector_store %arg20[%c5_64, %c0_65, %c0_66], %83 {strides = array<i32>} : memref<8x2x128xf32, #tpu.memory_space<vmem>>, vector<1x2x128xf32>,
    %cst_67 = arith.constant dense<0.000000e+00> : vector<2x128xf32>
    %84 = tpu.matmul %77, %1, %cst_67 {dimension_numbers = #tpu.dot_dimension_numbers<[1], [0], [0], [1], [0, 0, 1, 1], [], []>} : vector<2x16xf32>, vector<16x128xf32>, vector<2x128xf32> -> vector<2x128xf32>
    %85 = vector.broadcast %5 : vector<1x128xf32> to vector<2x128xf32>
    %86 = arith.addf %84, %85 : vector<2x128xf32>
    %c5_68 = arith.constant 5 : index
    %c0_69 = arith.constant 0 : index
    %c0_70 = arith.constant 0 : index
    %87 = vector.load %arg21[%c5_68, %c0_69, %c0_70] : memref<8x2x128xf32, #tpu.memory_space<vmem>>, vector<1x2x128xf32>
    %88 = vector.shape_cast %87 : vector<1x2x128xf32> to vector<2x128xf32>
    %89 = vector.shape_cast %86 : vector<2x128xf32> to vector<1x2x128xf32>
    tpu.vector_store %arg21[%c5_68, %c0_69, %c0_70], %89 {strides = array<i32>} : memref<8x2x128xf32, #tpu.memory_space<vmem>>, vector<1x2x128xf32>,
    %c6 = arith.constant 6 : index
    %c0_71 = arith.constant 0 : index
    %c0_72 = arith.constant 0 : index
    %90 = vector.load %arg0[%c6, %c0_71, %c0_72] : memref<8x2x16xf32, #tpu.memory_space<vmem>>, vector<1x2x16xf32>
    %91 = vector.shape_cast %90 : vector<1x2x16xf32> to vector<2x16xf32>
    %cst_73 = arith.constant dense<0.000000e+00> : vector<2x128xf32>
    %92 = tpu.matmul %91, %0, %cst_73 {dimension_numbers = #tpu.dot_dimension_numbers<[1], [0], [0], [1], [0, 0, 1, 1], [], []>} : vector<2x16xf32>, vector<16x128xf32>, vector<2x128xf32> -> vector<2x128xf32>
    %93 = vector.broadcast %4 : vector<1x128xf32> to vector<2x128xf32>
    %94 = arith.addf %92, %93 : vector<2x128xf32>
    %c6_74 = arith.constant 6 : index
    %c0_75 = arith.constant 0 : index
    %c0_76 = arith.constant 0 : index
    %95 = vector.load %arg20[%c6_74, %c0_75, %c0_76] : memref<8x2x128xf32, #tpu.memory_space<vmem>>, vector<1x2x128xf32>
    %96 = vector.shape_cast %95 : vector<1x2x128xf32> to vector<2x128xf32>
    %97 = vector.shape_cast %94 : vector<2x128xf32> to vector<1x2x128xf32>
    tpu.vector_store %arg20[%c6_74, %c0_75, %c0_76], %97 {strides = array<i32>} : memref<8x2x128xf32, #tpu.memory_space<vmem>>, vector<1x2x128xf32>,
    %cst_77 = arith.constant dense<0.000000e+00> : vector<2x128xf32>
    %98 = tpu.matmul %91, %1, %cst_77 {dimension_numbers = #tpu.dot_dimension_numbers<[1], [0], [0], [1], [0, 0, 1, 1], [], []>} : vector<2x16xf32>, vector<16x128xf32>, vector<2x128xf32> -> vector<2x128xf32>
    %99 = vector.broadcast %5 : vector<1x128xf32> to vector<2x128xf32>
    %100 = arith.addf %98, %99 : vector<2x128xf32>
    %c6_78 = arith.constant 6 : index
    %c0_79 = arith.constant 0 : index
    %c0_80 = arith.constant 0 : index
    %101 = vector.load %arg21[%c6_78, %c0_79, %c0_80] : memref<8x2x128xf32, #tpu.memory_space<vmem>>, vector<1x2x128xf32>
    %102 = vector.shape_cast %101 : vector<1x2x128xf32> to vector<2x128xf32>
    %103 = vector.shape_cast %100 : vector<2x128xf32> to vector<1x2x128xf32>
    tpu.vector_store %arg21[%c6_78, %c0_79, %c0_80], %103 {strides = array<i32>} : memref<8x2x128xf32, #tpu.memory_space<vmem>>, vector<1x2x128xf32>,
    %c7 = arith.constant 7 : index
    %c0_81 = arith.constant 0 : index
    %c0_82 = arith.constant 0 : index
    %104 = vector.load %arg0[%c7, %c0_81, %c0_82] : memref<8x2x16xf32, #tpu.memory_space<vmem>>, vector<1x2x16xf32>
    %105 = vector.shape_cast %104 : vector<1x2x16xf32> to vector<2x16xf32>
    %cst_83 = arith.constant dense<0.000000e+00> : vector<2x128xf32>
    %106 = tpu.matmul %105, %0, %cst_83 {dimension_numbers = #tpu.dot_dimension_numbers<[1], [0], [0], [1], [0, 0, 1, 1], [], []>} : vector<2x16xf32>, vector<16x128xf32>, vector<2x128xf32> -> vector<2x128xf32>
    %107 = vector.broadcast %4 : vector<1x128xf32> to vector<2x128xf32>
    %108 = arith.addf %106, %107 : vector<2x128xf32>
    %c7_84 = arith.constant 7 : index
    %c0_85 = arith.constant 0 : index
    %c0_86 = arith.constant 0 : index
    %109 = vector.load %arg20[%c7_84, %c0_85, %c0_86] : memref<8x2x128xf32, #tpu.memory_space<vmem>>, vector<1x2x128xf32>
    %110 = vector.shape_cast %109 : vector<1x2x128xf32> to vector<2x128xf32>
    %111 = vector.shape_cast %108 : vector<2x128xf32> to vector<1x2x128xf32>
    tpu.vector_store %arg20[%c7_84, %c0_85, %c0_86], %111 {strides = array<i32>} : memref<8x2x128xf32, #tpu.memory_space<vmem>>, vector<1x2x128xf32>,
    %cst_87 = arith.constant dense<0.000000e+00> : vector<2x128xf32>
    %112 = tpu.matmul %105, %1, %cst_87 {dimension_numbers = #tpu.dot_dimension_numbers<[1], [0], [0], [1], [0, 0, 1, 1], [], []>} : vector<2x16xf32>, vector<16x128xf32>, vector<2x128xf32> -> vector<2x128xf32>
    %113 = vector.broadcast %5 : vector<1x128xf32> to vector<2x128xf32>
    %114 = arith.addf %112, %113 : vector<2x128xf32>
    %c7_88 = arith.constant 7 : index
    %c0_89 = arith.constant 0 : index
    %c0_90 = arith.constant 0 : index
    %115 = vector.load %arg21[%c7_88, %c0_89, %c0_90] : memref<8x2x128xf32, #tpu.memory_space<vmem>>, vector<1x2x128xf32>
    %116 = vector.shape_cast %115 : vector<1x2x128xf32> to vector<2x128xf32>
    %117 = vector.shape_cast %114 : vector<2x128xf32> to vector<1x2x128xf32>
    tpu.vector_store %arg21[%c7_88, %c0_89, %c0_90], %117 {strides = array<i32>} : memref<8x2x128xf32, #tpu.memory_space<vmem>>, vector<1x2x128xf32>,
    %cst_91 = arith.constant 0.000000e+00 : f32
    %118 = vector.broadcast %cst_91 : f32 to vector<2x32xf32>
    %cst_92 = arith.constant 0.000000e+00 : f32
    %119 = vector.broadcast %cst_92 : f32 to vector<2x32xf32>
    %cst_93 = arith.constant 0.000000e+00 : f32
    %120 = vector.broadcast %cst_93 : f32 to vector<2x32xf32>
    %cst_94 = arith.constant 0.000000e+00 : f32
    %121 = vector.broadcast %cst_94 : f32 to vector<2x32xf32>
    %c0_95 = arith.constant 0 : index
    %c0_96 = arith.constant 0 : index
    %c0_97 = arith.constant 0 : index
    %122 = vector.load %arg20[%c0_95, %c0_96, %c0_97] : memref<8x2x128xf32, #tpu.memory_space<vmem>>, vector<1x2x128xf32>
    %123 = vector.shape_cast %122 : vector<1x2x128xf32> to vector<2x128xf32>
    %cst_98 = arith.constant dense<0.000000e+00> : vector<2x128xf32>
    %124 = tpu.matmul %118, %2, %cst_98 {dimension_numbers = #tpu.dot_dimension_numbers<[1], [0], [0], [1], [0, 0, 1, 1], [], []>} : vector<2x32xf32>, vector<32x128xf32>, vector<2x128xf32> -> vector<2x128xf32>
    %125 = arith.addf %123, %124 : vector<2x128xf32>
    %c7_99 = arith.constant 7 : index
    %c0_100 = arith.constant 0 : index
    %c0_101 = arith.constant 0 : index
    %126 = vector.load %arg21[%c7_99, %c0_100, %c0_101] : memref<8x2x128xf32, #tpu.memory_space<vmem>>, vector<1x2x128xf32>
    %127 = vector.shape_cast %126 : vector<1x2x128xf32> to vector<2x128xf32>
    %cst_102 = arith.constant dense<0.000000e+00> : vector<2x128xf32>
    %128 = tpu.matmul %119, %3, %cst_102 {dimension_numbers = #tpu.dot_dimension_numbers<[1], [0], [0], [1], [0, 0, 1, 1], [], []>} : vector<2x32xf32>, vector<32x128xf32>, vector<2x128xf32> -> vector<2x128xf32>
    %129 = arith.addf %127, %128 : vector<2x128xf32>
    %130 = vector.extract_strided_slice %125 {offsets = [0, 0], sizes = [2, 96], strides = [1, 1]} : vector<2x128xf32> to vector<2x96xf32>
    %131 = arith.negf %130 : vector<2x96xf32>
    %132 = math.exp %131 : vector<2x96xf32>
    %cst_103 = arith.constant 1.000000e+00 : f32
    %133 = vector.broadcast %cst_103 : f32 to vector<2x96xf32>
    %134 = arith.addf %133, %132 : vector<2x96xf32>
    %135 = arith.divf %133, %134 : vector<2x96xf32>
    %136 = vector.extract_strided_slice %129 {offsets = [0, 0], sizes = [2, 96], strides = [1, 1]} : vector<2x128xf32> to vector<2x96xf32>
    %137 = arith.negf %136 : vector<2x96xf32>
    %138 = math.exp %137 : vector<2x96xf32>
    %cst_104 = arith.constant 1.000000e+00 : f32
    %139 = vector.broadcast %cst_104 : f32 to vector<2x96xf32>
    %140 = arith.addf %139, %138 : vector<2x96xf32>
    %141 = arith.divf %139, %140 : vector<2x96xf32>
    %142 = vector.extract_strided_slice %125 {offsets = [0, 96], sizes = [2, 32], strides = [1, 1]} : vector<2x128xf32> to vector<2x32xf32>
    %143 = math.tanh %142 : vector<2x32xf32>
    %144 = vector.extract_strided_slice %129 {offsets = [0, 96], sizes = [2, 32], strides = [1, 1]} : vector<2x128xf32> to vector<2x32xf32>
    %145 = math.tanh %144 : vector<2x32xf32>
    %146 = vector.extract_strided_slice %135 {offsets = [0, 32], sizes = [2, 32], strides = [1, 1]} : vector<2x96xf32> to vector<2x32xf32>
    %147 = arith.mulf %146, %120 : vector<2x32xf32>
    %148 = vector.extract_strided_slice %135 {offsets = [0, 0], sizes = [2, 32], strides = [1, 1]} : vector<2x96xf32> to vector<2x32xf32>
    %149 = arith.mulf %148, %143 : vector<2x32xf32>
    %150 = arith.addf %147, %149 : vector<2x32xf32>
    %151 = vector.extract_strided_slice %141 {offsets = [0, 32], sizes = [2, 32], strides = [1, 1]} : vector<2x96xf32> to vector<2x32xf32>
    %152 = arith.mulf %151, %121 : vector<2x32xf32>
    %153 = vector.extract_strided_slice %141 {offsets = [0, 0], sizes = [2, 32], strides = [1, 1]} : vector<2x96xf32> to vector<2x32xf32>
    %154 = arith.mulf %153, %145 : vector<2x32xf32>
    %155 = arith.addf %152, %154 : vector<2x32xf32>
    %156 = vector.extract_strided_slice %135 {offsets = [0, 64], sizes = [2, 32], strides = [1, 1]} : vector<2x96xf32> to vector<2x32xf32>
    %157 = math.tanh %150 : vector<2x32xf32>
    %158 = arith.mulf %156, %157 : vector<2x32xf32>
    %159 = vector.extract_strided_slice %141 {offsets = [0, 64], sizes = [2, 32], strides = [1, 1]} : vector<2x96xf32> to vector<2x32xf32>
    %160 = math.tanh %155 : vector<2x32xf32>
    %161 = arith.mulf %159, %160 : vector<2x32xf32>
    %c0_105 = arith.constant 0 : index
    %c0_106 = arith.constant 0 : index
    %c0_107 = arith.constant 0 : index
    %162 = vector.load %arg22[%c0_105, %c0_106, %c0_107] : memref<8x2x32xf32, #tpu.memory_space<vmem>>, vector<1x2x32xf32>
    %163 = vector.shape_cast %162 : vector<1x2x32xf32> to vector<2x32xf32>
    %164 = vector.shape_cast %158 : vector<2x32xf32> to vector<1x2x32xf32>
    tpu.vector_store %arg22[%c0_105, %c0_106, %c0_107], %164 {strides = array<i32>} : memref<8x2x32xf32, #tpu.memory_space<vmem>>, vector<1x2x32xf32>,
    %c7_108 = arith.constant 7 : index
    %c0_109 = arith.constant 0 : index
    %c0_110 = arith.constant 0 : index
    %165 = vector.load %arg23[%c7_108, %c0_109, %c0_110] : memref<8x2x32xf32, #tpu.memory_space<vmem>>, vector<1x2x32xf32>
    %166 = vector.shape_cast %165 : vector<1x2x32xf32> to vector<2x32xf32>
    %167 = vector.shape_cast %161 : vector<2x32xf32> to vector<1x2x32xf32>
    tpu.vector_store %arg23[%c7_108, %c0_109, %c0_110], %167 {strides = array<i32>} : memref<8x2x32xf32, #tpu.memory_space<vmem>>, vector<1x2x32xf32>,
    %c1_111 = arith.constant 1 : index
    %c0_112 = arith.constant 0 : index
    %c0_113 = arith.constant 0 : index
    %168 = vector.load %arg20[%c1_111, %c0_112, %c0_113] : memref<8x2x128xf32, #tpu.memory_space<vmem>>, vector<1x2x128xf32>
    %169 = vector.shape_cast %168 : vector<1x2x128xf32> to vector<2x128xf32>
    %cst_114 = arith.constant dense<0.000000e+00> : vector<2x128xf32>
    %170 = tpu.matmul %158, %2, %cst_114 {dimension_numbers = #tpu.dot_dimension_numbers<[1], [0], [0], [1], [0, 0, 1, 1], [], []>} : vector<2x32xf32>, vector<32x128xf32>, vector<2x128xf32> -> vector<2x128xf32>
    %171 = arith.addf %169, %170 : vector<2x128xf32>
    %c6_115 = arith.constant 6 : index
    %c0_116 = arith.constant 0 : index
    %c0_117 = arith.constant 0 : index
    %172 = vector.load %arg21[%c6_115, %c0_116, %c0_117] : memref<8x2x128xf32, #tpu.memory_space<vmem>>, vector<1x2x128xf32>
    %173 = vector.shape_cast %172 : vector<1x2x128xf32> to vector<2x128xf32>
    %cst_118 = arith.constant dense<0.000000e+00> : vector<2x128xf32>
    %174 = tpu.matmul %161, %3, %cst_118 {dimension_numbers = #tpu.dot_dimension_numbers<[1], [0], [0], [1], [0, 0, 1, 1], [], []>} : vector<2x32xf32>, vector<32x128xf32>, vector<2x128xf32> -> vector<2x128xf32>
    %175 = arith.addf %173, %174 : vector<2x128xf32>
    %176 = vector.extract_strided_slice %171 {offsets = [0, 0], sizes = [2, 96], strides = [1, 1]} : vector<2x128xf32> to vector<2x96xf32>
    %177 = arith.negf %176 : vector<2x96xf32>
    %178 = math.exp %177 : vector<2x96xf32>
    %cst_119 = arith.constant 1.000000e+00 : f32
    %179 = vector.broadcast %cst_119 : f32 to vector<2x96xf32>
    %180 = arith.addf %179, %178 : vector<2x96xf32>
    %181 = arith.divf %179, %180 : vector<2x96xf32>
    %182 = vector.extract_strided_slice %175 {offsets = [0, 0], sizes = [2, 96], strides = [1, 1]} : vector<2x128xf32> to vector<2x96xf32>
    %183 = arith.negf %182 : vector<2x96xf32>
    %184 = math.exp %183 : vector<2x96xf32>
    %cst_120 = arith.constant 1.000000e+00 : f32
    %185 = vector.broadcast %cst_120 : f32 to vector<2x96xf32>
    %186 = arith.addf %185, %184 : vector<2x96xf32>
    %187 = arith.divf %185, %186 : vector<2x96xf32>
    %188 = vector.extract_strided_slice %171 {offsets = [0, 96], sizes = [2, 32], strides = [1, 1]} : vector<2x128xf32> to vector<2x32xf32>
    %189 = math.tanh %188 : vector<2x32xf32>
    %190 = vector.extract_strided_slice %175 {offsets = [0, 96], sizes = [2, 32], strides = [1, 1]} : vector<2x128xf32> to vector<2x32xf32>
    %191 = math.tanh %190 : vector<2x32xf32>
    %192 = vector.extract_strided_slice %181 {offsets = [0, 32], sizes = [2, 32], strides = [1, 1]} : vector<2x96xf32> to vector<2x32xf32>
    %193 = arith.mulf %192, %150 : vector<2x32xf32>
    %194 = vector.extract_strided_slice %181 {offsets = [0, 0], sizes = [2, 32], strides = [1, 1]} : vector<2x96xf32> to vector<2x32xf32>
    %195 = arith.mulf %194, %189 : vector<2x32xf32>
    %196 = arith.addf %193, %195 : vector<2x32xf32>
    %197 = vector.extract_strided_slice %187 {offsets = [0, 32], sizes = [2, 32], strides = [1, 1]} : vector<2x96xf32> to vector<2x32xf32>
    %198 = arith.mulf %197, %155 : vector<2x32xf32>
    %199 = vector.extract_strided_slice %187 {offsets = [0, 0], sizes = [2, 32], strides = [1, 1]} : vector<2x96xf32> to vector<2x32xf32>
    %200 = arith.mulf %199, %191 : vector<2x32xf32>
    %201 = arith.addf %198, %200 : vector<2x32xf32>
    %202 = vector.extract_strided_slice %181 {offsets = [0, 64], sizes = [2, 32], strides = [1, 1]} : vector<2x96xf32> to vector<2x32xf32>
    %203 = math.tanh %196 : vector<2x32xf32>
    %204 = arith.mulf %202, %203 : vector<2x32xf32>
    %205 = vector.extract_strided_slice %187 {offsets = [0, 64], sizes = [2, 32], strides = [1, 1]} : vector<2x96xf32> to vector<2x32xf32>
    %206 = math.tanh %201 : vector<2x32xf32>
    %207 = arith.mulf %205, %206 : vector<2x32xf32>
    %c1_121 = arith.constant 1 : index
    %c0_122 = arith.constant 0 : index
    %c0_123 = arith.constant 0 : index
    %208 = vector.load %arg22[%c1_121, %c0_122, %c0_123] : memref<8x2x32xf32, #tpu.memory_space<vmem>>, vector<1x2x32xf32>
    %209 = vector.shape_cast %208 : vector<1x2x32xf32> to vector<2x32xf32>
    %210 = vector.shape_cast %204 : vector<2x32xf32> to vector<1x2x32xf32>
    tpu.vector_store %arg22[%c1_121, %c0_122, %c0_123], %210 {strides = array<i32>} : memref<8x2x32xf32, #tpu.memory_space<vmem>>, vector<1x2x32xf32>,
    %c6_124 = arith.constant 6 : index
    %c0_125 = arith.constant 0 : index
    %c0_126 = arith.constant 0 : index
    %211 = vector.load %arg23[%c6_124, %c0_125, %c0_126] : memref<8x2x32xf32, #tpu.memory_space<vmem>>, vector<1x2x32xf32>
    %212 = vector.shape_cast %211 : vector<1x2x32xf32> to vector<2x32xf32>
    %213 = vector.shape_cast %207 : vector<2x32xf32> to vector<1x2x32xf32>
    tpu.vector_store %arg23[%c6_124, %c0_125, %c0_126], %213 {strides = array<i32>} : memref<8x2x32xf32, #tpu.memory_space<vmem>>, vector<1x2x32xf32>,
    %c2_127 = arith.constant 2 : index
    %c0_128 = arith.constant 0 : index
    %c0_129 = arith.constant 0 : index
    %214 = vector.load %arg20[%c2_127, %c0_128, %c0_129] : memref<8x2x128xf32, #tpu.memory_space<vmem>>, vector<1x2x128xf32>
    %215 = vector.shape_cast %214 : vector<1x2x128xf32> to vector<2x128xf32>
    %cst_130 = arith.constant dense<0.000000e+00> : vector<2x128xf32>
    %216 = tpu.matmul %204, %2, %cst_130 {dimension_numbers = #tpu.dot_dimension_numbers<[1], [0], [0], [1], [0, 0, 1, 1], [], []>} : vector<2x32xf32>, vector<32x128xf32>, vector<2x128xf32> -> vector<2x128xf32>
    %217 = arith.addf %215, %216 : vector<2x128xf32>
    %c5_131 = arith.constant 5 : index
    %c0_132 = arith.constant 0 : index
    %c0_133 = arith.constant 0 : index
    %218 = vector.load %arg21[%c5_131, %c0_132, %c0_133] : memref<8x2x128xf32, #tpu.memory_space<vmem>>, vector<1x2x128xf32>
    %219 = vector.shape_cast %218 : vector<1x2x128xf32> to vector<2x128xf32>
    %cst_134 = arith.constant dense<0.000000e+00> : vector<2x128xf32>
    %220 = tpu.matmul %207, %3, %cst_134 {dimension_numbers = #tpu.dot_dimension_numbers<[1], [0], [0], [1], [0, 0, 1, 1], [], []>} : vector<2x32xf32>, vector<32x128xf32>, vector<2x128xf32> -> vector<2x128xf32>
    %221 = arith.addf %219, %220 : vector<2x128xf32>
    %222 = vector.extract_strided_slice %217 {offsets = [0, 0], sizes = [2, 96], strides = [1, 1]} : vector<2x128xf32> to vector<2x96xf32>
    %223 = arith.negf %222 : vector<2x96xf32>
    %224 = math.exp %223 : vector<2x96xf32>
    %cst_135 = arith.constant 1.000000e+00 : f32
    %225 = vector.broadcast %cst_135 : f32 to vector<2x96xf32>
    %226 = arith.addf %225, %224 : vector<2x96xf32>
    %227 = arith.divf %225, %226 : vector<2x96xf32>
    %228 = vector.extract_strided_slice %221 {offsets = [0, 0], sizes = [2, 96], strides = [1, 1]} : vector<2x128xf32> to vector<2x96xf32>
    %229 = arith.negf %228 : vector<2x96xf32>
    %230 = math.exp %229 : vector<2x96xf32>
    %cst_136 = arith.constant 1.000000e+00 : f32
    %231 = vector.broadcast %cst_136 : f32 to vector<2x96xf32>
    %232 = arith.addf %231, %230 : vector<2x96xf32>
    %233 = arith.divf %231, %232 : vector<2x96xf32>
    %234 = vector.extract_strided_slice %217 {offsets = [0, 96], sizes = [2, 32], strides = [1, 1]} : vector<2x128xf32> to vector<2x32xf32>
    %235 = math.tanh %234 : vector<2x32xf32>
    %236 = vector.extract_strided_slice %221 {offsets = [0, 96], sizes = [2, 32], strides = [1, 1]} : vector<2x128xf32> to vector<2x32xf32>
    %237 = math.tanh %236 : vector<2x32xf32>
    %238 = vector.extract_strided_slice %227 {offsets = [0, 32], sizes = [2, 32], strides = [1, 1]} : vector<2x96xf32> to vector<2x32xf32>
    %239 = arith.mulf %238, %196 : vector<2x32xf32>
    %240 = vector.extract_strided_slice %227 {offsets = [0, 0], sizes = [2, 32], strides = [1, 1]} : vector<2x96xf32> to vector<2x32xf32>
    %241 = arith.mulf %240, %235 : vector<2x32xf32>
    %242 = arith.addf %239, %241 : vector<2x32xf32>
    %243 = vector.extract_strided_slice %233 {offsets = [0, 32], sizes = [2, 32], strides = [1, 1]} : vector<2x96xf32> to vector<2x32xf32>
    %244 = arith.mulf %243, %201 : vector<2x32xf32>
    %245 = vector.extract_strided_slice %233 {offsets = [0, 0], sizes = [2, 32], strides = [1, 1]} : vector<2x96xf32> to vector<2x32xf32>
    %246 = arith.mulf %245, %237 : vector<2x32xf32>
    %247 = arith.addf %244, %246 : vector<2x32xf32>
    %248 = vector.extract_strided_slice %227 {offsets = [0, 64], sizes = [2, 32], strides = [1, 1]} : vector<2x96xf32> to vector<2x32xf32>
    %249 = math.tanh %242 : vector<2x32xf32>
    %250 = arith.mulf %248, %249 : vector<2x32xf32>
    %251 = vector.extract_strided_slice %233 {offsets = [0, 64], sizes = [2, 32], strides = [1, 1]} : vector<2x96xf32> to vector<2x32xf32>
    %252 = math.tanh %247 : vector<2x32xf32>
    %253 = arith.mulf %251, %252 : vector<2x32xf32>
    %c2_137 = arith.constant 2 : index
    %c0_138 = arith.constant 0 : index
    %c0_139 = arith.constant 0 : index
    %254 = vector.load %arg22[%c2_137, %c0_138, %c0_139] : memref<8x2x32xf32, #tpu.memory_space<vmem>>, vector<1x2x32xf32>
    %255 = vector.shape_cast %254 : vector<1x2x32xf32> to vector<2x32xf32>
    %256 = vector.shape_cast %250 : vector<2x32xf32> to vector<1x2x32xf32>
    tpu.vector_store %arg22[%c2_137, %c0_138, %c0_139], %256 {strides = array<i32>} : memref<8x2x32xf32, #tpu.memory_space<vmem>>, vector<1x2x32xf32>,
    %c5_140 = arith.constant 5 : index
    %c0_141 = arith.constant 0 : index
    %c0_142 = arith.constant 0 : index
    %257 = vector.load %arg23[%c5_140, %c0_141, %c0_142] : memref<8x2x32xf32, #tpu.memory_space<vmem>>, vector<1x2x32xf32>
    %258 = vector.shape_cast %257 : vector<1x2x32xf32> to vector<2x32xf32>
    %259 = vector.shape_cast %253 : vector<2x32xf32> to vector<1x2x32xf32>
    tpu.vector_store %arg23[%c5_140, %c0_141, %c0_142], %259 {strides = array<i32>} : memref<8x2x32xf32, #tpu.memory_space<vmem>>, vector<1x2x32xf32>,
    %c3_143 = arith.constant 3 : index
    %c0_144 = arith.constant 0 : index
    %c0_145 = arith.constant 0 : index
    %260 = vector.load %arg20[%c3_143, %c0_144, %c0_145] : memref<8x2x128xf32, #tpu.memory_space<vmem>>, vector<1x2x128xf32>
    %261 = vector.shape_cast %260 : vector<1x2x128xf32> to vector<2x128xf32>
    %cst_146 = arith.constant dense<0.000000e+00> : vector<2x128xf32>
    %262 = tpu.matmul %250, %2, %cst_146 {dimension_numbers = #tpu.dot_dimension_numbers<[1], [0], [0], [1], [0, 0, 1, 1], [], []>} : vector<2x32xf32>, vector<32x128xf32>, vector<2x128xf32> -> vector<2x128xf32>
    %263 = arith.addf %261, %262 : vector<2x128xf32>
    %c4_147 = arith.constant 4 : index
    %c0_148 = arith.constant 0 : index
    %c0_149 = arith.constant 0 : index
    %264 = vector.load %arg21[%c4_147, %c0_148, %c0_149] : memref<8x2x128xf32, #tpu.memory_space<vmem>>, vector<1x2x128xf32>
    %265 = vector.shape_cast %264 : vector<1x2x128xf32> to vector<2x128xf32>
    %cst_150 = arith.constant dense<0.000000e+00> : vector<2x128xf32>
    %266 = tpu.matmul %253, %3, %cst_150 {dimension_numbers = #tpu.dot_dimension_numbers<[1], [0], [0], [1], [0, 0, 1, 1], [], []>} : vector<2x32xf32>, vector<32x128xf32>, vector<2x128xf32> -> vector<2x128xf32>
    %267 = arith.addf %265, %266 : vector<2x128xf32>
    %268 = vector.extract_strided_slice %263 {offsets = [0, 0], sizes = [2, 96], strides = [1, 1]} : vector<2x128xf32> to vector<2x96xf32>
    %269 = arith.negf %268 : vector<2x96xf32>
    %270 = math.exp %269 : vector<2x96xf32>
    %cst_151 = arith.constant 1.000000e+00 : f32
    %271 = vector.broadcast %cst_151 : f32 to vector<2x96xf32>
    %272 = arith.addf %271, %270 : vector<2x96xf32>
    %273 = arith.divf %271, %272 : vector<2x96xf32>
    %274 = vector.extract_strided_slice %267 {offsets = [0, 0], sizes = [2, 96], strides = [1, 1]} : vector<2x128xf32> to vector<2x96xf32>
    %275 = arith.negf %274 : vector<2x96xf32>
    %276 = math.exp %275 : vector<2x96xf32>
    %cst_152 = arith.constant 1.000000e+00 : f32
    %277 = vector.broadcast %cst_152 : f32 to vector<2x96xf32>
    %278 = arith.addf %277, %276 : vector<2x96xf32>
    %279 = arith.divf %277, %278 : vector<2x96xf32>
    %280 = vector.extract_strided_slice %263 {offsets = [0, 96], sizes = [2, 32], strides = [1, 1]} : vector<2x128xf32> to vector<2x32xf32>
    %281 = math.tanh %280 : vector<2x32xf32>
    %282 = vector.extract_strided_slice %267 {offsets = [0, 96], sizes = [2, 32], strides = [1, 1]} : vector<2x128xf32> to vector<2x32xf32>
    %283 = math.tanh %282 : vector<2x32xf32>
    %284 = vector.extract_strided_slice %273 {offsets = [0, 32], sizes = [2, 32], strides = [1, 1]} : vector<2x96xf32> to vector<2x32xf32>
    %285 = arith.mulf %284, %242 : vector<2x32xf32>
    %286 = vector.extract_strided_slice %273 {offsets = [0, 0], sizes = [2, 32], strides = [1, 1]} : vector<2x96xf32> to vector<2x32xf32>
    %287 = arith.mulf %286, %281 : vector<2x32xf32>
    %288 = arith.addf %285, %287 : vector<2x32xf32>
    %289 = vector.extract_strided_slice %279 {offsets = [0, 32], sizes = [2, 32], strides = [1, 1]} : vector<2x96xf32> to vector<2x32xf32>
    %290 = arith.mulf %289, %247 : vector<2x32xf32>
    %291 = vector.extract_strided_slice %279 {offsets = [0, 0], sizes = [2, 32], strides = [1, 1]} : vector<2x96xf32> to vector<2x32xf32>
    %292 = arith.mulf %291, %283 : vector<2x32xf32>
    %293 = arith.addf %290, %292 : vector<2x32xf32>
    %294 = vector.extract_strided_slice %273 {offsets = [0, 64], sizes = [2, 32], strides = [1, 1]} : vector<2x96xf32> to vector<2x32xf32>
    %295 = math.tanh %288 : vector<2x32xf32>
    %296 = arith.mulf %294, %295 : vector<2x32xf32>
    %297 = vector.extract_strided_slice %279 {offsets = [0, 64], sizes = [2, 32], strides = [1, 1]} : vector<2x96xf32> to vector<2x32xf32>
    %298 = math.tanh %293 : vector<2x32xf32>
    %299 = arith.mulf %297, %298 : vector<2x32xf32>
    %c3_153 = arith.constant 3 : index
    %c0_154 = arith.constant 0 : index
    %c0_155 = arith.constant 0 : index
    %300 = vector.load %arg22[%c3_153, %c0_154, %c0_155] : memref<8x2x32xf32, #tpu.memory_space<vmem>>, vector<1x2x32xf32>
    %301 = vector.shape_cast %300 : vector<1x2x32xf32> to vector<2x32xf32>
    %302 = vector.shape_cast %296 : vector<2x32xf32> to vector<1x2x32xf32>
    tpu.vector_store %arg22[%c3_153, %c0_154, %c0_155], %302 {strides = array<i32>} : memref<8x2x32xf32, #tpu.memory_space<vmem>>, vector<1x2x32xf32>,
    %c4_156 = arith.constant 4 : index
    %c0_157 = arith.constant 0 : index
    %c0_158 = arith.constant 0 : index
    %303 = vector.load %arg23[%c4_156, %c0_157, %c0_158] : memref<8x2x32xf32, #tpu.memory_space<vmem>>, vector<1x2x32xf32>
    %304 = vector.shape_cast %303 : vector<1x2x32xf32> to vector<2x32xf32>
    %305 = vector.shape_cast %299 : vector<2x32xf32> to vector<1x2x32xf32>
    tpu.vector_store %arg23[%c4_156, %c0_157, %c0_158], %305 {strides = array<i32>} : memref<8x2x32xf32, #tpu.memory_space<vmem>>, vector<1x2x32xf32>,
    %c4_159 = arith.constant 4 : index
    %c0_160 = arith.constant 0 : index
    %c0_161 = arith.constant 0 : index
    %306 = vector.load %arg20[%c4_159, %c0_160, %c0_161] : memref<8x2x128xf32, #tpu.memory_space<vmem>>, vector<1x2x128xf32>
    %307 = vector.shape_cast %306 : vector<1x2x128xf32> to vector<2x128xf32>
    %cst_162 = arith.constant dense<0.000000e+00> : vector<2x128xf32>
    %308 = tpu.matmul %296, %2, %cst_162 {dimension_numbers = #tpu.dot_dimension_numbers<[1], [0], [0], [1], [0, 0, 1, 1], [], []>} : vector<2x32xf32>, vector<32x128xf32>, vector<2x128xf32> -> vector<2x128xf32>
    %309 = arith.addf %307, %308 : vector<2x128xf32>
    %c3_163 = arith.constant 3 : index
    %c0_164 = arith.constant 0 : index
    %c0_165 = arith.constant 0 : index
    %310 = vector.load %arg21[%c3_163, %c0_164, %c0_165] : memref<8x2x128xf32, #tpu.memory_space<vmem>>, vector<1x2x128xf32>
    %311 = vector.shape_cast %310 : vector<1x2x128xf32> to vector<2x128xf32>
    %cst_166 = arith.constant dense<0.000000e+00> : vector<2x128xf32>
    %312 = tpu.matmul %299, %3, %cst_166 {dimension_numbers = #tpu.dot_dimension_numbers<[1], [0], [0], [1], [0, 0, 1, 1], [], []>} : vector<2x32xf32>, vector<32x128xf32>, vector<2x128xf32> -> vector<2x128xf32>
    %313 = arith.addf %311, %312 : vector<2x128xf32>
    %314 = vector.extract_strided_slice %309 {offsets = [0, 0], sizes = [2, 96], strides = [1, 1]} : vector<2x128xf32> to vector<2x96xf32>
    %315 = arith.negf %314 : vector<2x96xf32>
    %316 = math.exp %315 : vector<2x96xf32>
    %cst_167 = arith.constant 1.000000e+00 : f32
    %317 = vector.broadcast %cst_167 : f32 to vector<2x96xf32>
    %318 = arith.addf %317, %316 : vector<2x96xf32>
    %319 = arith.divf %317, %318 : vector<2x96xf32>
    %320 = vector.extract_strided_slice %313 {offsets = [0, 0], sizes = [2, 96], strides = [1, 1]} : vector<2x128xf32> to vector<2x96xf32>
    %321 = arith.negf %320 : vector<2x96xf32>
    %322 = math.exp %321 : vector<2x96xf32>
    %cst_168 = arith.constant 1.000000e+00 : f32
    %323 = vector.broadcast %cst_168 : f32 to vector<2x96xf32>
    %324 = arith.addf %323, %322 : vector<2x96xf32>
    %325 = arith.divf %323, %324 : vector<2x96xf32>
    %326 = vector.extract_strided_slice %309 {offsets = [0, 96], sizes = [2, 32], strides = [1, 1]} : vector<2x128xf32> to vector<2x32xf32>
    %327 = math.tanh %326 : vector<2x32xf32>
    %328 = vector.extract_strided_slice %313 {offsets = [0, 96], sizes = [2, 32], strides = [1, 1]} : vector<2x128xf32> to vector<2x32xf32>
    %329 = math.tanh %328 : vector<2x32xf32>
    %330 = vector.extract_strided_slice %319 {offsets = [0, 32], sizes = [2, 32], strides = [1, 1]} : vector<2x96xf32> to vector<2x32xf32>
    %331 = arith.mulf %330, %288 : vector<2x32xf32>
    %332 = vector.extract_strided_slice %319 {offsets = [0, 0], sizes = [2, 32], strides = [1, 1]} : vector<2x96xf32> to vector<2x32xf32>
    %333 = arith.mulf %332, %327 : vector<2x32xf32>
    %334 = arith.addf %331, %333 : vector<2x32xf32>
    %335 = vector.extract_strided_slice %325 {offsets = [0, 32], sizes = [2, 32], strides = [1, 1]} : vector<2x96xf32> to vector<2x32xf32>
    %336 = arith.mulf %335, %293 : vector<2x32xf32>
    %337 = vector.extract_strided_slice %325 {offsets = [0, 0], sizes = [2, 32], strides = [1, 1]} : vector<2x96xf32> to vector<2x32xf32>
    %338 = arith.mulf %337, %329 : vector<2x32xf32>
    %339 = arith.addf %336, %338 : vector<2x32xf32>
    %340 = vector.extract_strided_slice %319 {offsets = [0, 64], sizes = [2, 32], strides = [1, 1]} : vector<2x96xf32> to vector<2x32xf32>
    %341 = math.tanh %334 : vector<2x32xf32>
    %342 = arith.mulf %340, %341 : vector<2x32xf32>
    %343 = vector.extract_strided_slice %325 {offsets = [0, 64], sizes = [2, 32], strides = [1, 1]} : vector<2x96xf32> to vector<2x32xf32>
    %344 = math.tanh %339 : vector<2x32xf32>
    %345 = arith.mulf %343, %344 : vector<2x32xf32>
    %c4_169 = arith.constant 4 : index
    %c0_170 = arith.constant 0 : index
    %c0_171 = arith.constant 0 : index
    %346 = vector.load %arg22[%c4_169, %c0_170, %c0_171] : memref<8x2x32xf32, #tpu.memory_space<vmem>>, vector<1x2x32xf32>
    %347 = vector.shape_cast %346 : vector<1x2x32xf32> to vector<2x32xf32>
    %348 = vector.shape_cast %342 : vector<2x32xf32> to vector<1x2x32xf32>
    tpu.vector_store %arg22[%c4_169, %c0_170, %c0_171], %348 {strides = array<i32>} : memref<8x2x32xf32, #tpu.memory_space<vmem>>, vector<1x2x32xf32>,
    %c3_172 = arith.constant 3 : index
    %c0_173 = arith.constant 0 : index
    %c0_174 = arith.constant 0 : index
    %349 = vector.load %arg23[%c3_172, %c0_173, %c0_174] : memref<8x2x32xf32, #tpu.memory_space<vmem>>, vector<1x2x32xf32>
    %350 = vector.shape_cast %349 : vector<1x2x32xf32> to vector<2x32xf32>
    %351 = vector.shape_cast %345 : vector<2x32xf32> to vector<1x2x32xf32>
    tpu.vector_store %arg23[%c3_172, %c0_173, %c0_174], %351 {strides = array<i32>} : memref<8x2x32xf32, #tpu.memory_space<vmem>>, vector<1x2x32xf32>,
    %c5_175 = arith.constant 5 : index
    %c0_176 = arith.constant 0 : index
    %c0_177 = arith.constant 0 : index
    %352 = vector.load %arg20[%c5_175, %c0_176, %c0_177] : memref<8x2x128xf32, #tpu.memory_space<vmem>>, vector<1x2x128xf32>
    %353 = vector.shape_cast %352 : vector<1x2x128xf32> to vector<2x128xf32>
    %cst_178 = arith.constant dense<0.000000e+00> : vector<2x128xf32>
    %354 = tpu.matmul %342, %2, %cst_178 {dimension_numbers = #tpu.dot_dimension_numbers<[1], [0], [0], [1], [0, 0, 1, 1], [], []>} : vector<2x32xf32>, vector<32x128xf32>, vector<2x128xf32> -> vector<2x128xf32>
    %355 = arith.addf %353, %354 : vector<2x128xf32>
    %c2_179 = arith.constant 2 : index
    %c0_180 = arith.constant 0 : index
    %c0_181 = arith.constant 0 : index
    %356 = vector.load %arg21[%c2_179, %c0_180, %c0_181] : memref<8x2x128xf32, #tpu.memory_space<vmem>>, vector<1x2x128xf32>
    %357 = vector.shape_cast %356 : vector<1x2x128xf32> to vector<2x128xf32>
    %cst_182 = arith.constant dense<0.000000e+00> : vector<2x128xf32>
    %358 = tpu.matmul %345, %3, %cst_182 {dimension_numbers = #tpu.dot_dimension_numbers<[1], [0], [0], [1], [0, 0, 1, 1], [], []>} : vector<2x32xf32>, vector<32x128xf32>, vector<2x128xf32> -> vector<2x128xf32>
    %359 = arith.addf %357, %358 : vector<2x128xf32>
    %360 = vector.extract_strided_slice %355 {offsets = [0, 0], sizes = [2, 96], strides = [1, 1]} : vector<2x128xf32> to vector<2x96xf32>
    %361 = arith.negf %360 : vector<2x96xf32>
    %362 = math.exp %361 : vector<2x96xf32>
    %cst_183 = arith.constant 1.000000e+00 : f32
    %363 = vector.broadcast %cst_183 : f32 to vector<2x96xf32>
    %364 = arith.addf %363, %362 : vector<2x96xf32>
    %365 = arith.divf %363, %364 : vector<2x96xf32>
    %366 = vector.extract_strided_slice %359 {offsets = [0, 0], sizes = [2, 96], strides = [1, 1]} : vector<2x128xf32> to vector<2x96xf32>
    %367 = arith.negf %366 : vector<2x96xf32>
    %368 = math.exp %367 : vector<2x96xf32>
    %cst_184 = arith.constant 1.000000e+00 : f32
    %369 = vector.broadcast %cst_184 : f32 to vector<2x96xf32>
    %370 = arith.addf %369, %368 : vector<2x96xf32>
    %371 = arith.divf %369, %370 : vector<2x96xf32>
    %372 = vector.extract_strided_slice %355 {offsets = [0, 96], sizes = [2, 32], strides = [1, 1]} : vector<2x128xf32> to vector<2x32xf32>
    %373 = math.tanh %372 : vector<2x32xf32>
    %374 = vector.extract_strided_slice %359 {offsets = [0, 96], sizes = [2, 32], strides = [1, 1]} : vector<2x128xf32> to vector<2x32xf32>
    %375 = math.tanh %374 : vector<2x32xf32>
    %376 = vector.extract_strided_slice %365 {offsets = [0, 32], sizes = [2, 32], strides = [1, 1]} : vector<2x96xf32> to vector<2x32xf32>
    %377 = arith.mulf %376, %334 : vector<2x32xf32>
    %378 = vector.extract_strided_slice %365 {offsets = [0, 0], sizes = [2, 32], strides = [1, 1]} : vector<2x96xf32> to vector<2x32xf32>
    %379 = arith.mulf %378, %373 : vector<2x32xf32>
    %380 = arith.addf %377, %379 : vector<2x32xf32>
    %381 = vector.extract_strided_slice %371 {offsets = [0, 32], sizes = [2, 32], strides = [1, 1]} : vector<2x96xf32> to vector<2x32xf32>
    %382 = arith.mulf %381, %339 : vector<2x32xf32>
    %383 = vector.extract_strided_slice %371 {offsets = [0, 0], sizes = [2, 32], strides = [1, 1]} : vector<2x96xf32> to vector<2x32xf32>
    %384 = arith.mulf %383, %375 : vector<2x32xf32>
    %385 = arith.addf %382, %384 : vector<2x32xf32>
    %386 = vector.extract_strided_slice %365 {offsets = [0, 64], sizes = [2, 32], strides = [1, 1]} : vector<2x96xf32> to vector<2x32xf32>
    %387 = math.tanh %380 : vector<2x32xf32>
    %388 = arith.mulf %386, %387 : vector<2x32xf32>
    %389 = vector.extract_strided_slice %371 {offsets = [0, 64], sizes = [2, 32], strides = [1, 1]} : vector<2x96xf32> to vector<2x32xf32>
    %390 = math.tanh %385 : vector<2x32xf32>
    %391 = arith.mulf %389, %390 : vector<2x32xf32>
    %c5_185 = arith.constant 5 : index
    %c0_186 = arith.constant 0 : index
    %c0_187 = arith.constant 0 : index
    %392 = vector.load %arg22[%c5_185, %c0_186, %c0_187] : memref<8x2x32xf32, #tpu.memory_space<vmem>>, vector<1x2x32xf32>
    %393 = vector.shape_cast %392 : vector<1x2x32xf32> to vector<2x32xf32>
    %394 = vector.shape_cast %388 : vector<2x32xf32> to vector<1x2x32xf32>
    tpu.vector_store %arg22[%c5_185, %c0_186, %c0_187], %394 {strides = array<i32>} : memref<8x2x32xf32, #tpu.memory_space<vmem>>, vector<1x2x32xf32>,
    %c2_188 = arith.constant 2 : index
    %c0_189 = arith.constant 0 : index
    %c0_190 = arith.constant 0 : index
    %395 = vector.load %arg23[%c2_188, %c0_189, %c0_190] : memref<8x2x32xf32, #tpu.memory_space<vmem>>, vector<1x2x32xf32>
    %396 = vector.shape_cast %395 : vector<1x2x32xf32> to vector<2x32xf32>
    %397 = vector.shape_cast %391 : vector<2x32xf32> to vector<1x2x32xf32>
    tpu.vector_store %arg23[%c2_188, %c0_189, %c0_190], %397 {strides = array<i32>} : memref<8x2x32xf32, #tpu.memory_space<vmem>>, vector<1x2x32xf32>,
    %c6_191 = arith.constant 6 : index
    %c0_192 = arith.constant 0 : index
    %c0_193 = arith.constant 0 : index
    %398 = vector.load %arg20[%c6_191, %c0_192, %c0_193] : memref<8x2x128xf32, #tpu.memory_space<vmem>>, vector<1x2x128xf32>
    %399 = vector.shape_cast %398 : vector<1x2x128xf32> to vector<2x128xf32>
    %cst_194 = arith.constant dense<0.000000e+00> : vector<2x128xf32>
    %400 = tpu.matmul %388, %2, %cst_194 {dimension_numbers = #tpu.dot_dimension_numbers<[1], [0], [0], [1], [0, 0, 1, 1], [], []>} : vector<2x32xf32>, vector<32x128xf32>, vector<2x128xf32> -> vector<2x128xf32>
    %401 = arith.addf %399, %400 : vector<2x128xf32>
    %c1_195 = arith.constant 1 : index
    %c0_196 = arith.constant 0 : index
    %c0_197 = arith.constant 0 : index
    %402 = vector.load %arg21[%c1_195, %c0_196, %c0_197] : memref<8x2x128xf32, #tpu.memory_space<vmem>>, vector<1x2x128xf32>
    %403 = vector.shape_cast %402 : vector<1x2x128xf32> to vector<2x128xf32>
    %cst_198 = arith.constant dense<0.000000e+00> : vector<2x128xf32>
    %404 = tpu.matmul %391, %3, %cst_198 {dimension_numbers = #tpu.dot_dimension_numbers<[1], [0], [0], [1], [0, 0, 1, 1], [], []>} : vector<2x32xf32>, vector<32x128xf32>, vector<2x128xf32> -> vector<2x128xf32>
    %405 = arith.addf %403, %404 : vector<2x128xf32>
    %406 = vector.extract_strided_slice %401 {offsets = [0, 0], sizes = [2, 96], strides = [1, 1]} : vector<2x128xf32> to vector<2x96xf32>
    %407 = arith.negf %406 : vector<2x96xf32>
    %408 = math.exp %407 : vector<2x96xf32>
    %cst_199 = arith.constant 1.000000e+00 : f32
    %409 = vector.broadcast %cst_199 : f32 to vector<2x96xf32>
    %410 = arith.addf %409, %408 : vector<2x96xf32>
    %411 = arith.divf %409, %410 : vector<2x96xf32>
    %412 = vector.extract_strided_slice %405 {offsets = [0, 0], sizes = [2, 96], strides = [1, 1]} : vector<2x128xf32> to vector<2x96xf32>
    %413 = arith.negf %412 : vector<2x96xf32>
    %414 = math.exp %413 : vector<2x96xf32>
    %cst_200 = arith.constant 1.000000e+00 : f32
    %415 = vector.broadcast %cst_200 : f32 to vector<2x96xf32>
    %416 = arith.addf %415, %414 : vector<2x96xf32>
    %417 = arith.divf %415, %416 : vector<2x96xf32>
    %418 = vector.extract_strided_slice %401 {offsets = [0, 96], sizes = [2, 32], strides = [1, 1]} : vector<2x128xf32> to vector<2x32xf32>
    %419 = math.tanh %418 : vector<2x32xf32>
    %420 = vector.extract_strided_slice %405 {offsets = [0, 96], sizes = [2, 32], strides = [1, 1]} : vector<2x128xf32> to vector<2x32xf32>
    %421 = math.tanh %420 : vector<2x32xf32>
    %422 = vector.extract_strided_slice %411 {offsets = [0, 32], sizes = [2, 32], strides = [1, 1]} : vector<2x96xf32> to vector<2x32xf32>
    %423 = arith.mulf %422, %380 : vector<2x32xf32>
    %424 = vector.extract_strided_slice %411 {offsets = [0, 0], sizes = [2, 32], strides = [1, 1]} : vector<2x96xf32> to vector<2x32xf32>
    %425 = arith.mulf %424, %419 : vector<2x32xf32>
    %426 = arith.addf %423, %425 : vector<2x32xf32>
    %427 = vector.extract_strided_slice %417 {offsets = [0, 32], sizes = [2, 32], strides = [1, 1]} : vector<2x96xf32> to vector<2x32xf32>
    %428 = arith.mulf %427, %385 : vector<2x32xf32>
    %429 = vector.extract_strided_slice %417 {offsets = [0, 0], sizes = [2, 32], strides = [1, 1]} : vector<2x96xf32> to vector<2x32xf32>
    %430 = arith.mulf %429, %421 : vector<2x32xf32>
    %431 = arith.addf %428, %430 : vector<2x32xf32>
    %432 = vector.extract_strided_slice %411 {offsets = [0, 64], sizes = [2, 32], strides = [1, 1]} : vector<2x96xf32> to vector<2x32xf32>
    %433 = math.tanh %426 : vector<2x32xf32>
    %434 = arith.mulf %432, %433 : vector<2x32xf32>
    %435 = vector.extract_strided_slice %417 {offsets = [0, 64], sizes = [2, 32], strides = [1, 1]} : vector<2x96xf32> to vector<2x32xf32>
    %436 = math.tanh %431 : vector<2x32xf32>
    %437 = arith.mulf %435, %436 : vector<2x32xf32>
    %c6_201 = arith.constant 6 : index
    %c0_202 = arith.constant 0 : index
    %c0_203 = arith.constant 0 : index
    %438 = vector.load %arg22[%c6_201, %c0_202, %c0_203] : memref<8x2x32xf32, #tpu.memory_space<vmem>>, vector<1x2x32xf32>
    %439 = vector.shape_cast %438 : vector<1x2x32xf32> to vector<2x32xf32>
    %440 = vector.shape_cast %434 : vector<2x32xf32> to vector<1x2x32xf32>
    tpu.vector_store %arg22[%c6_201, %c0_202, %c0_203], %440 {strides = array<i32>} : memref<8x2x32xf32, #tpu.memory_space<vmem>>, vector<1x2x32xf32>,
    %c1_204 = arith.constant 1 : index
    %c0_205 = arith.constant 0 : index
    %c0_206 = arith.constant 0 : index
    %441 = vector.load %arg23[%c1_204, %c0_205, %c0_206] : memref<8x2x32xf32, #tpu.memory_space<vmem>>, vector<1x2x32xf32>
    %442 = vector.shape_cast %441 : vector<1x2x32xf32> to vector<2x32xf32>
    %443 = vector.shape_cast %437 : vector<2x32xf32> to vector<1x2x32xf32>
    tpu.vector_store %arg23[%c1_204, %c0_205, %c0_206], %443 {strides = array<i32>} : memref<8x2x32xf32, #tpu.memory_space<vmem>>, vector<1x2x32xf32>,
    %c7_207 = arith.constant 7 : index
    %c0_208 = arith.constant 0 : index
    %c0_209 = arith.constant 0 : index
    %444 = vector.load %arg20[%c7_207, %c0_208, %c0_209] : memref<8x2x128xf32, #tpu.memory_space<vmem>>, vector<1x2x128xf32>
    %445 = vector.shape_cast %444 : vector<1x2x128xf32> to vector<2x128xf32>
    %cst_210 = arith.constant dense<0.000000e+00> : vector<2x128xf32>
    %446 = tpu.matmul %434, %2, %cst_210 {dimension_numbers = #tpu.dot_dimension_numbers<[1], [0], [0], [1], [0, 0, 1, 1], [], []>} : vector<2x32xf32>, vector<32x128xf32>, vector<2x128xf32> -> vector<2x128xf32>
    %447 = arith.addf %445, %446 : vector<2x128xf32>
    %c0_211 = arith.constant 0 : index
    %c0_212 = arith.constant 0 : index
    %c0_213 = arith.constant 0 : index
    %448 = vector.load %arg21[%c0_211, %c0_212, %c0_213] : memref<8x2x128xf32, #tpu.memory_space<vmem>>, vector<1x2x128xf32>
    %449 = vector.shape_cast %448 : vector<1x2x128xf32> to vector<2x128xf32>
    %cst_214 = arith.constant dense<0.000000e+00> : vector<2x128xf32>
    %450 = tpu.matmul %437, %3, %cst_214 {dimension_numbers = #tpu.dot_dimension_numbers<[1], [0], [0], [1], [0, 0, 1, 1], [], []>} : vector<2x32xf32>, vector<32x128xf32>, vector<2x128xf32> -> vector<2x128xf32>
    %451 = arith.addf %449, %450 : vector<2x128xf32>
    %452 = vector.extract_strided_slice %447 {offsets = [0, 0], sizes = [2, 96], strides = [1, 1]} : vector<2x128xf32> to vector<2x96xf32>
    %453 = arith.negf %452 : vector<2x96xf32>
    %454 = math.exp %453 : vector<2x96xf32>
    %cst_215 = arith.constant 1.000000e+00 : f32
    %455 = vector.broadcast %cst_215 : f32 to vector<2x96xf32>
    %456 = arith.addf %455, %454 : vector<2x96xf32>
    %457 = arith.divf %455, %456 : vector<2x96xf32>
    %458 = vector.extract_strided_slice %451 {offsets = [0, 0], sizes = [2, 96], strides = [1, 1]} : vector<2x128xf32> to vector<2x96xf32>
    %459 = arith.negf %458 : vector<2x96xf32>
    %460 = math.exp %459 : vector<2x96xf32>
    %cst_216 = arith.constant 1.000000e+00 : f32
    %461 = vector.broadcast %cst_216 : f32 to vector<2x96xf32>
    %462 = arith.addf %461, %460 : vector<2x96xf32>
    %463 = arith.divf %461, %462 : vector<2x96xf32>
    %464 = vector.extract_strided_slice %447 {offsets = [0, 96], sizes = [2, 32], strides = [1, 1]} : vector<2x128xf32> to vector<2x32xf32>
    %465 = math.tanh %464 : vector<2x32xf32>
    %466 = vector.extract_strided_slice %451 {offsets = [0, 96], sizes = [2, 32], strides = [1, 1]} : vector<2x128xf32> to vector<2x32xf32>
    %467 = math.tanh %466 : vector<2x32xf32>
    %468 = vector.extract_strided_slice %457 {offsets = [0, 32], sizes = [2, 32], strides = [1, 1]} : vector<2x96xf32> to vector<2x32xf32>
    %469 = arith.mulf %468, %426 : vector<2x32xf32>
    %470 = vector.extract_strided_slice %457 {offsets = [0, 0], sizes = [2, 32], strides = [1, 1]} : vector<2x96xf32> to vector<2x32xf32>
    %471 = arith.mulf %470, %465 : vector<2x32xf32>
    %472 = arith.addf %469, %471 : vector<2x32xf32>
    %473 = vector.extract_strided_slice %463 {offsets = [0, 32], sizes = [2, 32], strides = [1, 1]} : vector<2x96xf32> to vector<2x32xf32>
    %474 = arith.mulf %473, %431 : vector<2x32xf32>
    %475 = vector.extract_strided_slice %463 {offsets = [0, 0], sizes = [2, 32], strides = [1, 1]} : vector<2x96xf32> to vector<2x32xf32>
    %476 = arith.mulf %475, %467 : vector<2x32xf32>
    %477 = arith.addf %474, %476 : vector<2x32xf32>
    %478 = vector.extract_strided_slice %457 {offsets = [0, 64], sizes = [2, 32], strides = [1, 1]} : vector<2x96xf32> to vector<2x32xf32>
    %479 = math.tanh %472 : vector<2x32xf32>
    %480 = arith.mulf %478, %479 : vector<2x32xf32>
    %481 = vector.extract_strided_slice %463 {offsets = [0, 64], sizes = [2, 32], strides = [1, 1]} : vector<2x96xf32> to vector<2x32xf32>
    %482 = math.tanh %477 : vector<2x32xf32>
    %483 = arith.mulf %481, %482 : vector<2x32xf32>
    %c7_217 = arith.constant 7 : index
    %c0_218 = arith.constant 0 : index
    %c0_219 = arith.constant 0 : index
    %484 = vector.load %arg22[%c7_217, %c0_218, %c0_219] : memref<8x2x32xf32, #tpu.memory_space<vmem>>, vector<1x2x32xf32>
    %485 = vector.shape_cast %484 : vector<1x2x32xf32> to vector<2x32xf32>
    %486 = vector.shape_cast %480 : vector<2x32xf32> to vector<1x2x32xf32>
    tpu.vector_store %arg22[%c7_217, %c0_218, %c0_219], %486 {strides = array<i32>} : memref<8x2x32xf32, #tpu.memory_space<vmem>>, vector<1x2x32xf32>,
    %c0_220 = arith.constant 0 : index
    %c0_221 = arith.constant 0 : index
    %c0_222 = arith.constant 0 : index
    %487 = vector.load %arg23[%c0_220, %c0_221, %c0_222] : memref<8x2x32xf32, #tpu.memory_space<vmem>>, vector<1x2x32xf32>
    %488 = vector.shape_cast %487 : vector<1x2x32xf32> to vector<2x32xf32>
    %489 = vector.shape_cast %483 : vector<2x32xf32> to vector<1x2x32xf32>
    tpu.vector_store %arg23[%c0_220, %c0_221, %c0_222], %489 {strides = array<i32>} : memref<8x2x32xf32, #tpu.memory_space<vmem>>, vector<1x2x32xf32>,
    %c0_223 = arith.constant 0 : index
    %c0_224 = arith.constant 0 : index
    %490 = vector.load %arg7[%c0_223, %c0_224] : memref<64x128xf32, #tpu.memory_space<vmem>>, vector<64x128xf32>
    %c0_225 = arith.constant 0 : index
    %c0_226 = arith.constant 0 : index
    %491 = vector.load %arg8[%c0_225, %c0_226] : memref<64x128xf32, #tpu.memory_space<vmem>>, vector<64x128xf32>
    %c0_227 = arith.constant 0 : index
    %c0_228 = arith.constant 0 : index
    %492 = vector.load %arg9[%c0_227, %c0_228] : memref<32x128xf32, #tpu.memory_space<vmem>>, vector<32x128xf32>
    %c0_229 = arith.constant 0 : index
    %c0_230 = arith.constant 0 : index
    %493 = vector.load %arg10[%c0_229, %c0_230] : memref<32x128xf32, #tpu.memory_space<vmem>>, vector<32x128xf32>
    %c0_231 = arith.constant 0 : index
    %c0_232 = arith.constant 0 : index
    %494 = vector.load %arg11[%c0_231, %c0_232] : memref<1x128xf32, #tpu.memory_space<vmem>>, vector<1x128xf32>
    %c0_233 = arith.constant 0 : index
    %c0_234 = arith.constant 0 : index
    %495 = vector.load %arg12[%c0_233, %c0_234] : memref<1x128xf32, #tpu.memory_space<vmem>>, vector<1x128xf32>
    %c0_235 = arith.constant 0 : index
    %c0_236 = arith.constant 0 : index
    %c0_237 = arith.constant 0 : index
    %496 = vector.load %arg22[%c0_235, %c0_236, %c0_237] : memref<8x2x32xf32, #tpu.memory_space<vmem>>, vector<1x2x32xf32>
    %497 = vector.shape_cast %496 : vector<1x2x32xf32> to vector<2x32xf32>
    %c0_238 = arith.constant 0 : index
    %c0_239 = arith.constant 0 : index
    %c0_240 = arith.constant 0 : index
    %498 = vector.load %arg23[%c0_238, %c0_239, %c0_240] : memref<8x2x32xf32, #tpu.memory_space<vmem>>, vector<1x2x32xf32>
    %499 = vector.shape_cast %498 : vector<1x2x32xf32> to vector<2x32xf32>
    %500 = vector.extract_strided_slice %490 {offsets = [0, 0], sizes = [32, 128], strides = [1, 1]} : vector<64x128xf32> to vector<32x128xf32>
    %cst_241 = arith.constant dense<0.000000e+00> : vector<2x128xf32>
    %501 = tpu.matmul %497, %500, %cst_241 {dimension_numbers = #tpu.dot_dimension_numbers<[1], [0], [0], [1], [0, 0, 1, 1], [], []>} : vector<2x32xf32>, vector<32x128xf32>, vector<2x128xf32> -> vector<2x128xf32>
    %502 = vector.extract_strided_slice %490 {offsets = [32, 0], sizes = [32, 128], strides = [1, 1]} : vector<64x128xf32> to vector<32x128xf32>
    %cst_242 = arith.constant dense<0.000000e+00> : vector<2x128xf32>
    %503 = tpu.matmul %499, %502, %cst_242 {dimension_numbers = #tpu.dot_dimension_numbers<[1], [0], [0], [1], [0, 0, 1, 1], [], []>} : vector<2x32xf32>, vector<32x128xf32>, vector<2x128xf32> -> vector<2x128xf32>
    %504 = arith.addf %501, %503 : vector<2x128xf32>
    %505 = vector.broadcast %494 : vector<1x128xf32> to vector<2x128xf32>
    %506 = arith.addf %504, %505 : vector<2x128xf32>
    %c0_243 = arith.constant 0 : index
    %c0_244 = arith.constant 0 : index
    %c0_245 = arith.constant 0 : index
    %507 = vector.load %arg20[%c0_243, %c0_244, %c0_245] : memref<8x2x128xf32, #tpu.memory_space<vmem>>, vector<1x2x128xf32>
    %508 = vector.shape_cast %507 : vector<1x2x128xf32> to vector<2x128xf32>
    %509 = vector.shape_cast %506 : vector<2x128xf32> to vector<1x2x128xf32>
    tpu.vector_store %arg20[%c0_243, %c0_244, %c0_245], %509 {strides = array<i32>} : memref<8x2x128xf32, #tpu.memory_space<vmem>>, vector<1x2x128xf32>,
    %510 = vector.extract_strided_slice %491 {offsets = [0, 0], sizes = [32, 128], strides = [1, 1]} : vector<64x128xf32> to vector<32x128xf32>
    %cst_246 = arith.constant dense<0.000000e+00> : vector<2x128xf32>
    %511 = tpu.matmul %497, %510, %cst_246 {dimension_numbers = #tpu.dot_dimension_numbers<[1], [0], [0], [1], [0, 0, 1, 1], [], []>} : vector<2x32xf32>, vector<32x128xf32>, vector<2x128xf32> -> vector<2x128xf32>
    %512 = vector.extract_strided_slice %491 {offsets = [32, 0], sizes = [32, 128], strides = [1, 1]} : vector<64x128xf32> to vector<32x128xf32>
    %cst_247 = arith.constant dense<0.000000e+00> : vector<2x128xf32>
    %513 = tpu.matmul %499, %512, %cst_247 {dimension_numbers = #tpu.dot_dimension_numbers<[1], [0], [0], [1], [0, 0, 1, 1], [], []>} : vector<2x32xf32>, vector<32x128xf32>, vector<2x128xf32> -> vector<2x128xf32>
    %514 = arith.addf %511, %513 : vector<2x128xf32>
    %515 = vector.broadcast %495 : vector<1x128xf32> to vector<2x128xf32>
    %516 = arith.addf %514, %515 : vector<2x128xf32>
    %c0_248 = arith.constant 0 : index
    %c0_249 = arith.constant 0 : index
    %c0_250 = arith.constant 0 : index
    %517 = vector.load %arg21[%c0_248, %c0_249, %c0_250] : memref<8x2x128xf32, #tpu.memory_space<vmem>>, vector<1x2x128xf32>
    %518 = vector.shape_cast %517 : vector<1x2x128xf32> to vector<2x128xf32>
    %519 = vector.shape_cast %516 : vector<2x128xf32> to vector<1x2x128xf32>
    tpu.vector_store %arg21[%c0_248, %c0_249, %c0_250], %519 {strides = array<i32>} : memref<8x2x128xf32, #tpu.memory_space<vmem>>, vector<1x2x128xf32>,
    %c1_251 = arith.constant 1 : index
    %c0_252 = arith.constant 0 : index
    %c0_253 = arith.constant 0 : index
    %520 = vector.load %arg22[%c1_251, %c0_252, %c0_253] : memref<8x2x32xf32, #tpu.memory_space<vmem>>, vector<1x2x32xf32>
    %521 = vector.shape_cast %520 : vector<1x2x32xf32> to vector<2x32xf32>
    %c1_254 = arith.constant 1 : index
    %c0_255 = arith.constant 0 : index
    %c0_256 = arith.constant 0 : index
    %522 = vector.load %arg23[%c1_254, %c0_255, %c0_256] : memref<8x2x32xf32, #tpu.memory_space<vmem>>, vector<1x2x32xf32>
    %523 = vector.shape_cast %522 : vector<1x2x32xf32> to vector<2x32xf32>
    %524 = vector.extract_strided_slice %490 {offsets = [0, 0], sizes = [32, 128], strides = [1, 1]} : vector<64x128xf32> to vector<32x128xf32>
    %cst_257 = arith.constant dense<0.000000e+00> : vector<2x128xf32>
    %525 = tpu.matmul %521, %524, %cst_257 {dimension_numbers = #tpu.dot_dimension_numbers<[1], [0], [0], [1], [0, 0, 1, 1], [], []>} : vector<2x32xf32>, vector<32x128xf32>, vector<2x128xf32> -> vector<2x128xf32>
    %526 = vector.extract_strided_slice %490 {offsets = [32, 0], sizes = [32, 128], strides = [1, 1]} : vector<64x128xf32> to vector<32x128xf32>
    %cst_258 = arith.constant dense<0.000000e+00> : vector<2x128xf32>
    %527 = tpu.matmul %523, %526, %cst_258 {dimension_numbers = #tpu.dot_dimension_numbers<[1], [0], [0], [1], [0, 0, 1, 1], [], []>} : vector<2x32xf32>, vector<32x128xf32>, vector<2x128xf32> -> vector<2x128xf32>
    %528 = arith.addf %525, %527 : vector<2x128xf32>
    %529 = vector.broadcast %494 : vector<1x128xf32> to vector<2x128xf32>
    %530 = arith.addf %528, %529 : vector<2x128xf32>
    %c1_259 = arith.constant 1 : index
    %c0_260 = arith.constant 0 : index
    %c0_261 = arith.constant 0 : index
    %531 = vector.load %arg20[%c1_259, %c0_260, %c0_261] : memref<8x2x128xf32, #tpu.memory_space<vmem>>, vector<1x2x128xf32>
    %532 = vector.shape_cast %531 : vector<1x2x128xf32> to vector<2x128xf32>
    %533 = vector.shape_cast %530 : vector<2x128xf32> to vector<1x2x128xf32>
    tpu.vector_store %arg20[%c1_259, %c0_260, %c0_261], %533 {strides = array<i32>} : memref<8x2x128xf32, #tpu.memory_space<vmem>>, vector<1x2x128xf32>,
    %534 = vector.extract_strided_slice %491 {offsets = [0, 0], sizes = [32, 128], strides = [1, 1]} : vector<64x128xf32> to vector<32x128xf32>
    %cst_262 = arith.constant dense<0.000000e+00> : vector<2x128xf32>
    %535 = tpu.matmul %521, %534, %cst_262 {dimension_numbers = #tpu.dot_dimension_numbers<[1], [0], [0], [1], [0, 0, 1, 1], [], []>} : vector<2x32xf32>, vector<32x128xf32>, vector<2x128xf32> -> vector<2x128xf32>
    %536 = vector.extract_strided_slice %491 {offsets = [32, 0], sizes = [32, 128], strides = [1, 1]} : vector<64x128xf32> to vector<32x128xf32>
    %cst_263 = arith.constant dense<0.000000e+00> : vector<2x128xf32>
    %537 = tpu.matmul %523, %536, %cst_263 {dimension_numbers = #tpu.dot_dimension_numbers<[1], [0], [0], [1], [0, 0, 1, 1], [], []>} : vector<2x32xf32>, vector<32x128xf32>, vector<2x128xf32> -> vector<2x128xf32>
    %538 = arith.addf %535, %537 : vector<2x128xf32>
    %539 = vector.broadcast %495 : vector<1x128xf32> to vector<2x128xf32>
    %540 = arith.addf %538, %539 : vector<2x128xf32>
    %c1_264 = arith.constant 1 : index
    %c0_265 = arith.constant 0 : index
    %c0_266 = arith.constant 0 : index
    %541 = vector.load %arg21[%c1_264, %c0_265, %c0_266] : memref<8x2x128xf32, #tpu.memory_space<vmem>>, vector<1x2x128xf32>
    %542 = vector.shape_cast %541 : vector<1x2x128xf32> to vector<2x128xf32>
    %543 = vector.shape_cast %540 : vector<2x128xf32> to vector<1x2x128xf32>
    tpu.vector_store %arg21[%c1_264, %c0_265, %c0_266], %543 {strides = array<i32>} : memref<8x2x128xf32, #tpu.memory_space<vmem>>, vector<1x2x128xf32>,
    %c2_267 = arith.constant 2 : index
    %c0_268 = arith.constant 0 : index
    %c0_269 = arith.constant 0 : index
    %544 = vector.load %arg22[%c2_267, %c0_268, %c0_269] : memref<8x2x32xf32, #tpu.memory_space<vmem>>, vector<1x2x32xf32>
    %545 = vector.shape_cast %544 : vector<1x2x32xf32> to vector<2x32xf32>
    %c2_270 = arith.constant 2 : index
    %c0_271 = arith.constant 0 : index
    %c0_272 = arith.constant 0 : index
    %546 = vector.load %arg23[%c2_270, %c0_271, %c0_272] : memref<8x2x32xf32, #tpu.memory_space<vmem>>, vector<1x2x32xf32>
    %547 = vector.shape_cast %546 : vector<1x2x32xf32> to vector<2x32xf32>
    %548 = vector.extract_strided_slice %490 {offsets = [0, 0], sizes = [32, 128], strides = [1, 1]} : vector<64x128xf32> to vector<32x128xf32>
    %cst_273 = arith.constant dense<0.000000e+00> : vector<2x128xf32>
    %549 = tpu.matmul %545, %548, %cst_273 {dimension_numbers = #tpu.dot_dimension_numbers<[1], [0], [0], [1], [0, 0, 1, 1], [], []>} : vector<2x32xf32>, vector<32x128xf32>, vector<2x128xf32> -> vector<2x128xf32>
    %550 = vector.extract_strided_slice %490 {offsets = [32, 0], sizes = [32, 128], strides = [1, 1]} : vector<64x128xf32> to vector<32x128xf32>
    %cst_274 = arith.constant dense<0.000000e+00> : vector<2x128xf32>
    %551 = tpu.matmul %547, %550, %cst_274 {dimension_numbers = #tpu.dot_dimension_numbers<[1], [0], [0], [1], [0, 0, 1, 1], [], []>} : vector<2x32xf32>, vector<32x128xf32>, vector<2x128xf32> -> vector<2x128xf32>
    %552 = arith.addf %549, %551 : vector<2x128xf32>
    %553 = vector.broadcast %494 : vector<1x128xf32> to vector<2x128xf32>
    %554 = arith.addf %552, %553 : vector<2x128xf32>
    %c2_275 = arith.constant 2 : index
    %c0_276 = arith.constant 0 : index
    %c0_277 = arith.constant 0 : index
    %555 = vector.load %arg20[%c2_275, %c0_276, %c0_277] : memref<8x2x128xf32, #tpu.memory_space<vmem>>, vector<1x2x128xf32>
    %556 = vector.shape_cast %555 : vector<1x2x128xf32> to vector<2x128xf32>
    %557 = vector.shape_cast %554 : vector<2x128xf32> to vector<1x2x128xf32>
    tpu.vector_store %arg20[%c2_275, %c0_276, %c0_277], %557 {strides = array<i32>} : memref<8x2x128xf32, #tpu.memory_space<vmem>>, vector<1x2x128xf32>,
    %558 = vector.extract_strided_slice %491 {offsets = [0, 0], sizes = [32, 128], strides = [1, 1]} : vector<64x128xf32> to vector<32x128xf32>
    %cst_278 = arith.constant dense<0.000000e+00> : vector<2x128xf32>
    %559 = tpu.matmul %545, %558, %cst_278 {dimension_numbers = #tpu.dot_dimension_numbers<[1], [0], [0], [1], [0, 0, 1, 1], [], []>} : vector<2x32xf32>, vector<32x128xf32>, vector<2x128xf32> -> vector<2x128xf32>
    %560 = vector.extract_strided_slice %491 {offsets = [32, 0], sizes = [32, 128], strides = [1, 1]} : vector<64x128xf32> to vector<32x128xf32>
    %cst_279 = arith.constant dense<0.000000e+00> : vector<2x128xf32>
    %561 = tpu.matmul %547, %560, %cst_279 {dimension_numbers = #tpu.dot_dimension_numbers<[1], [0], [0], [1], [0, 0, 1, 1], [], []>} : vector<2x32xf32>, vector<32x128xf32>, vector<2x128xf32> -> vector<2x128xf32>
    %562 = arith.addf %559, %561 : vector<2x128xf32>
    %563 = vector.broadcast %495 : vector<1x128xf32> to vector<2x128xf32>
    %564 = arith.addf %562, %563 : vector<2x128xf32>
    %c2_280 = arith.constant 2 : index
    %c0_281 = arith.constant 0 : index
    %c0_282 = arith.constant 0 : index
    %565 = vector.load %arg21[%c2_280, %c0_281, %c0_282] : memref<8x2x128xf32, #tpu.memory_space<vmem>>, vector<1x2x128xf32>
    %566 = vector.shape_cast %565 : vector<1x2x128xf32> to vector<2x128xf32>
    %567 = vector.shape_cast %564 : vector<2x128xf32> to vector<1x2x128xf32>
    tpu.vector_store %arg21[%c2_280, %c0_281, %c0_282], %567 {strides = array<i32>} : memref<8x2x128xf32, #tpu.memory_space<vmem>>, vector<1x2x128xf32>,
    %c3_283 = arith.constant 3 : index
    %c0_284 = arith.constant 0 : index
    %c0_285 = arith.constant 0 : index
    %568 = vector.load %arg22[%c3_283, %c0_284, %c0_285] : memref<8x2x32xf32, #tpu.memory_space<vmem>>, vector<1x2x32xf32>
    %569 = vector.shape_cast %568 : vector<1x2x32xf32> to vector<2x32xf32>
    %c3_286 = arith.constant 3 : index
    %c0_287 = arith.constant 0 : index
    %c0_288 = arith.constant 0 : index
    %570 = vector.load %arg23[%c3_286, %c0_287, %c0_288] : memref<8x2x32xf32, #tpu.memory_space<vmem>>, vector<1x2x32xf32>
    %571 = vector.shape_cast %570 : vector<1x2x32xf32> to vector<2x32xf32>
    %572 = vector.extract_strided_slice %490 {offsets = [0, 0], sizes = [32, 128], strides = [1, 1]} : vector<64x128xf32> to vector<32x128xf32>
    %cst_289 = arith.constant dense<0.000000e+00> : vector<2x128xf32>
    %573 = tpu.matmul %569, %572, %cst_289 {dimension_numbers = #tpu.dot_dimension_numbers<[1], [0], [0], [1], [0, 0, 1, 1], [], []>} : vector<2x32xf32>, vector<32x128xf32>, vector<2x128xf32> -> vector<2x128xf32>
    %574 = vector.extract_strided_slice %490 {offsets = [32, 0], sizes = [32, 128], strides = [1, 1]} : vector<64x128xf32> to vector<32x128xf32>
    %cst_290 = arith.constant dense<0.000000e+00> : vector<2x128xf32>
    %575 = tpu.matmul %571, %574, %cst_290 {dimension_numbers = #tpu.dot_dimension_numbers<[1], [0], [0], [1], [0, 0, 1, 1], [], []>} : vector<2x32xf32>, vector<32x128xf32>, vector<2x128xf32> -> vector<2x128xf32>
    %576 = arith.addf %573, %575 : vector<2x128xf32>
    %577 = vector.broadcast %494 : vector<1x128xf32> to vector<2x128xf32>
    %578 = arith.addf %576, %577 : vector<2x128xf32>
    %c3_291 = arith.constant 3 : index
    %c0_292 = arith.constant 0 : index
    %c0_293 = arith.constant 0 : index
    %579 = vector.load %arg20[%c3_291, %c0_292, %c0_293] : memref<8x2x128xf32, #tpu.memory_space<vmem>>, vector<1x2x128xf32>
    %580 = vector.shape_cast %579 : vector<1x2x128xf32> to vector<2x128xf32>
    %581 = vector.shape_cast %578 : vector<2x128xf32> to vector<1x2x128xf32>
    tpu.vector_store %arg20[%c3_291, %c0_292, %c0_293], %581 {strides = array<i32>} : memref<8x2x128xf32, #tpu.memory_space<vmem>>, vector<1x2x128xf32>,
    %582 = vector.extract_strided_slice %491 {offsets = [0, 0], sizes = [32, 128], strides = [1, 1]} : vector<64x128xf32> to vector<32x128xf32>
    %cst_294 = arith.constant dense<0.000000e+00> : vector<2x128xf32>
    %583 = tpu.matmul %569, %582, %cst_294 {dimension_numbers = #tpu.dot_dimension_numbers<[1], [0], [0], [1], [0, 0, 1, 1], [], []>} : vector<2x32xf32>, vector<32x128xf32>, vector<2x128xf32> -> vector<2x128xf32>
    %584 = vector.extract_strided_slice %491 {offsets = [32, 0], sizes = [32, 128], strides = [1, 1]} : vector<64x128xf32> to vector<32x128xf32>
    %cst_295 = arith.constant dense<0.000000e+00> : vector<2x128xf32>
    %585 = tpu.matmul %571, %584, %cst_295 {dimension_numbers = #tpu.dot_dimension_numbers<[1], [0], [0], [1], [0, 0, 1, 1], [], []>} : vector<2x32xf32>, vector<32x128xf32>, vector<2x128xf32> -> vector<2x128xf32>
    %586 = arith.addf %583, %585 : vector<2x128xf32>
    %587 = vector.broadcast %495 : vector<1x128xf32> to vector<2x128xf32>
    %588 = arith.addf %586, %587 : vector<2x128xf32>
    %c3_296 = arith.constant 3 : index
    %c0_297 = arith.constant 0 : index
    %c0_298 = arith.constant 0 : index
    %589 = vector.load %arg21[%c3_296, %c0_297, %c0_298] : memref<8x2x128xf32, #tpu.memory_space<vmem>>, vector<1x2x128xf32>
    %590 = vector.shape_cast %589 : vector<1x2x128xf32> to vector<2x128xf32>
    %591 = vector.shape_cast %588 : vector<2x128xf32> to vector<1x2x128xf32>
    tpu.vector_store %arg21[%c3_296, %c0_297, %c0_298], %591 {strides = array<i32>} : memref<8x2x128xf32, #tpu.memory_space<vmem>>, vector<1x2x128xf32>,
    %c4_299 = arith.constant 4 : index
    %c0_300 = arith.constant 0 : index
    %c0_301 = arith.constant 0 : index
    %592 = vector.load %arg22[%c4_299, %c0_300, %c0_301] : memref<8x2x32xf32, #tpu.memory_space<vmem>>, vector<1x2x32xf32>
    %593 = vector.shape_cast %592 : vector<1x2x32xf32> to vector<2x32xf32>
    %c4_302 = arith.constant 4 : index
    %c0_303 = arith.constant 0 : index
    %c0_304 = arith.constant 0 : index
    %594 = vector.load %arg23[%c4_302, %c0_303, %c0_304] : memref<8x2x32xf32, #tpu.memory_space<vmem>>, vector<1x2x32xf32>
    %595 = vector.shape_cast %594 : vector<1x2x32xf32> to vector<2x32xf32>
    %596 = vector.extract_strided_slice %490 {offsets = [0, 0], sizes = [32, 128], strides = [1, 1]} : vector<64x128xf32> to vector<32x128xf32>
    %cst_305 = arith.constant dense<0.000000e+00> : vector<2x128xf32>
    %597 = tpu.matmul %593, %596, %cst_305 {dimension_numbers = #tpu.dot_dimension_numbers<[1], [0], [0], [1], [0, 0, 1, 1], [], []>} : vector<2x32xf32>, vector<32x128xf32>, vector<2x128xf32> -> vector<2x128xf32>
    %598 = vector.extract_strided_slice %490 {offsets = [32, 0], sizes = [32, 128], strides = [1, 1]} : vector<64x128xf32> to vector<32x128xf32>
    %cst_306 = arith.constant dense<0.000000e+00> : vector<2x128xf32>
    %599 = tpu.matmul %595, %598, %cst_306 {dimension_numbers = #tpu.dot_dimension_numbers<[1], [0], [0], [1], [0, 0, 1, 1], [], []>} : vector<2x32xf32>, vector<32x128xf32>, vector<2x128xf32> -> vector<2x128xf32>
    %600 = arith.addf %597, %599 : vector<2x128xf32>
    %601 = vector.broadcast %494 : vector<1x128xf32> to vector<2x128xf32>
    %602 = arith.addf %600, %601 : vector<2x128xf32>
    %c4_307 = arith.constant 4 : index
    %c0_308 = arith.constant 0 : index
    %c0_309 = arith.constant 0 : index
    %603 = vector.load %arg20[%c4_307, %c0_308, %c0_309] : memref<8x2x128xf32, #tpu.memory_space<vmem>>, vector<1x2x128xf32>
    %604 = vector.shape_cast %603 : vector<1x2x128xf32> to vector<2x128xf32>
    %605 = vector.shape_cast %602 : vector<2x128xf32> to vector<1x2x128xf32>
    tpu.vector_store %arg20[%c4_307, %c0_308, %c0_309], %605 {strides = array<i32>} : memref<8x2x128xf32, #tpu.memory_space<vmem>>, vector<1x2x128xf32>,
    %606 = vector.extract_strided_slice %491 {offsets = [0, 0], sizes = [32, 128], strides = [1, 1]} : vector<64x128xf32> to vector<32x128xf32>
    %cst_310 = arith.constant dense<0.000000e+00> : vector<2x128xf32>
    %607 = tpu.matmul %593, %606, %cst_310 {dimension_numbers = #tpu.dot_dimension_numbers<[1], [0], [0], [1], [0, 0, 1, 1], [], []>} : vector<2x32xf32>, vector<32x128xf32>, vector<2x128xf32> -> vector<2x128xf32>
    %608 = vector.extract_strided_slice %491 {offsets = [32, 0], sizes = [32, 128], strides = [1, 1]} : vector<64x128xf32> to vector<32x128xf32>
    %cst_311 = arith.constant dense<0.000000e+00> : vector<2x128xf32>
    %609 = tpu.matmul %595, %608, %cst_311 {dimension_numbers = #tpu.dot_dimension_numbers<[1], [0], [0], [1], [0, 0, 1, 1], [], []>} : vector<2x32xf32>, vector<32x128xf32>, vector<2x128xf32> -> vector<2x128xf32>
    %610 = arith.addf %607, %609 : vector<2x128xf32>
    %611 = vector.broadcast %495 : vector<1x128xf32> to vector<2x128xf32>
    %612 = arith.addf %610, %611 : vector<2x128xf32>
    %c4_312 = arith.constant 4 : index
    %c0_313 = arith.constant 0 : index
    %c0_314 = arith.constant 0 : index
    %613 = vector.load %arg21[%c4_312, %c0_313, %c0_314] : memref<8x2x128xf32, #tpu.memory_space<vmem>>, vector<1x2x128xf32>
    %614 = vector.shape_cast %613 : vector<1x2x128xf32> to vector<2x128xf32>
    %615 = vector.shape_cast %612 : vector<2x128xf32> to vector<1x2x128xf32>
    tpu.vector_store %arg21[%c4_312, %c0_313, %c0_314], %615 {strides = array<i32>} : memref<8x2x128xf32, #tpu.memory_space<vmem>>, vector<1x2x128xf32>,
    %c5_315 = arith.constant 5 : index
    %c0_316 = arith.constant 0 : index
    %c0_317 = arith.constant 0 : index
    %616 = vector.load %arg22[%c5_315, %c0_316, %c0_317] : memref<8x2x32xf32, #tpu.memory_space<vmem>>, vector<1x2x32xf32>
    %617 = vector.shape_cast %616 : vector<1x2x32xf32> to vector<2x32xf32>
    %c5_318 = arith.constant 5 : index
    %c0_319 = arith.constant 0 : index
    %c0_320 = arith.constant 0 : index
    %618 = vector.load %arg23[%c5_318, %c0_319, %c0_320] : memref<8x2x32xf32, #tpu.memory_space<vmem>>, vector<1x2x32xf32>
    %619 = vector.shape_cast %618 : vector<1x2x32xf32> to vector<2x32xf32>
    %620 = vector.extract_strided_slice %490 {offsets = [0, 0], sizes = [32, 128], strides = [1, 1]} : vector<64x128xf32> to vector<32x128xf32>
    %cst_321 = arith.constant dense<0.000000e+00> : vector<2x128xf32>
    %621 = tpu.matmul %617, %620, %cst_321 {dimension_numbers = #tpu.dot_dimension_numbers<[1], [0], [0], [1], [0, 0, 1, 1], [], []>} : vector<2x32xf32>, vector<32x128xf32>, vector<2x128xf32> -> vector<2x128xf32>
    %622 = vector.extract_strided_slice %490 {offsets = [32, 0], sizes = [32, 128], strides = [1, 1]} : vector<64x128xf32> to vector<32x128xf32>
    %cst_322 = arith.constant dense<0.000000e+00> : vector<2x128xf32>
    %623 = tpu.matmul %619, %622, %cst_322 {dimension_numbers = #tpu.dot_dimension_numbers<[1], [0], [0], [1], [0, 0, 1, 1], [], []>} : vector<2x32xf32>, vector<32x128xf32>, vector<2x128xf32> -> vector<2x128xf32>
    %624 = arith.addf %621, %623 : vector<2x128xf32>
    %625 = vector.broadcast %494 : vector<1x128xf32> to vector<2x128xf32>
    %626 = arith.addf %624, %625 : vector<2x128xf32>
    %c5_323 = arith.constant 5 : index
    %c0_324 = arith.constant 0 : index
    %c0_325 = arith.constant 0 : index
    %627 = vector.load %arg20[%c5_323, %c0_324, %c0_325] : memref<8x2x128xf32, #tpu.memory_space<vmem>>, vector<1x2x128xf32>
    %628 = vector.shape_cast %627 : vector<1x2x128xf32> to vector<2x128xf32>
    %629 = vector.shape_cast %626 : vector<2x128xf32> to vector<1x2x128xf32>
    tpu.vector_store %arg20[%c5_323, %c0_324, %c0_325], %629 {strides = array<i32>} : memref<8x2x128xf32, #tpu.memory_space<vmem>>, vector<1x2x128xf32>,
    %630 = vector.extract_strided_slice %491 {offsets = [0, 0], sizes = [32, 128], strides = [1, 1]} : vector<64x128xf32> to vector<32x128xf32>
    %cst_326 = arith.constant dense<0.000000e+00> : vector<2x128xf32>
    %631 = tpu.matmul %617, %630, %cst_326 {dimension_numbers = #tpu.dot_dimension_numbers<[1], [0], [0], [1], [0, 0, 1, 1], [], []>} : vector<2x32xf32>, vector<32x128xf32>, vector<2x128xf32> -> vector<2x128xf32>
    %632 = vector.extract_strided_slice %491 {offsets = [32, 0], sizes = [32, 128], strides = [1, 1]} : vector<64x128xf32> to vector<32x128xf32>
    %cst_327 = arith.constant dense<0.000000e+00> : vector<2x128xf32>
    %633 = tpu.matmul %619, %632, %cst_327 {dimension_numbers = #tpu.dot_dimension_numbers<[1], [0], [0], [1], [0, 0, 1, 1], [], []>} : vector<2x32xf32>, vector<32x128xf32>, vector<2x128xf32> -> vector<2x128xf32>
    %634 = arith.addf %631, %633 : vector<2x128xf32>
    %635 = vector.broadcast %495 : vector<1x128xf32> to vector<2x128xf32>
    %636 = arith.addf %634, %635 : vector<2x128xf32>
    %c5_328 = arith.constant 5 : index
    %c0_329 = arith.constant 0 : index
    %c0_330 = arith.constant 0 : index
    %637 = vector.load %arg21[%c5_328, %c0_329, %c0_330] : memref<8x2x128xf32, #tpu.memory_space<vmem>>, vector<1x2x128xf32>
    %638 = vector.shape_cast %637 : vector<1x2x128xf32> to vector<2x128xf32>
    %639 = vector.shape_cast %636 : vector<2x128xf32> to vector<1x2x128xf32>
    tpu.vector_store %arg21[%c5_328, %c0_329, %c0_330], %639 {strides = array<i32>} : memref<8x2x128xf32, #tpu.memory_space<vmem>>, vector<1x2x128xf32>,
    %c6_331 = arith.constant 6 : index
    %c0_332 = arith.constant 0 : index
    %c0_333 = arith.constant 0 : index
    %640 = vector.load %arg22[%c6_331, %c0_332, %c0_333] : memref<8x2x32xf32, #tpu.memory_space<vmem>>, vector<1x2x32xf32>
    %641 = vector.shape_cast %640 : vector<1x2x32xf32> to vector<2x32xf32>
    %c6_334 = arith.constant 6 : index
    %c0_335 = arith.constant 0 : index
    %c0_336 = arith.constant 0 : index
    %642 = vector.load %arg23[%c6_334, %c0_335, %c0_336] : memref<8x2x32xf32, #tpu.memory_space<vmem>>, vector<1x2x32xf32>
    %643 = vector.shape_cast %642 : vector<1x2x32xf32> to vector<2x32xf32>
    %644 = vector.extract_strided_slice %490 {offsets = [0, 0], sizes = [32, 128], strides = [1, 1]} : vector<64x128xf32> to vector<32x128xf32>
    %cst_337 = arith.constant dense<0.000000e+00> : vector<2x128xf32>
    %645 = tpu.matmul %641, %644, %cst_337 {dimension_numbers = #tpu.dot_dimension_numbers<[1], [0], [0], [1], [0, 0, 1, 1], [], []>} : vector<2x32xf32>, vector<32x128xf32>, vector<2x128xf32> -> vector<2x128xf32>
    %646 = vector.extract_strided_slice %490 {offsets = [32, 0], sizes = [32, 128], strides = [1, 1]} : vector<64x128xf32> to vector<32x128xf32>
    %cst_338 = arith.constant dense<0.000000e+00> : vector<2x128xf32>
    %647 = tpu.matmul %643, %646, %cst_338 {dimension_numbers = #tpu.dot_dimension_numbers<[1], [0], [0], [1], [0, 0, 1, 1], [], []>} : vector<2x32xf32>, vector<32x128xf32>, vector<2x128xf32> -> vector<2x128xf32>
    %648 = arith.addf %645, %647 : vector<2x128xf32>
    %649 = vector.broadcast %494 : vector<1x128xf32> to vector<2x128xf32>
    %650 = arith.addf %648, %649 : vector<2x128xf32>
    %c6_339 = arith.constant 6 : index
    %c0_340 = arith.constant 0 : index
    %c0_341 = arith.constant 0 : index
    %651 = vector.load %arg20[%c6_339, %c0_340, %c0_341] : memref<8x2x128xf32, #tpu.memory_space<vmem>>, vector<1x2x128xf32>
    %652 = vector.shape_cast %651 : vector<1x2x128xf32> to vector<2x128xf32>
    %653 = vector.shape_cast %650 : vector<2x128xf32> to vector<1x2x128xf32>
    tpu.vector_store %arg20[%c6_339, %c0_340, %c0_341], %653 {strides = array<i32>} : memref<8x2x128xf32, #tpu.memory_space<vmem>>, vector<1x2x128xf32>,
    %654 = vector.extract_strided_slice %491 {offsets = [0, 0], sizes = [32, 128], strides = [1, 1]} : vector<64x128xf32> to vector<32x128xf32>
    %cst_342 = arith.constant dense<0.000000e+00> : vector<2x128xf32>
    %655 = tpu.matmul %641, %654, %cst_342 {dimension_numbers = #tpu.dot_dimension_numbers<[1], [0], [0], [1], [0, 0, 1, 1], [], []>} : vector<2x32xf32>, vector<32x128xf32>, vector<2x128xf32> -> vector<2x128xf32>
    %656 = vector.extract_strided_slice %491 {offsets = [32, 0], sizes = [32, 128], strides = [1, 1]} : vector<64x128xf32> to vector<32x128xf32>
    %cst_343 = arith.constant dense<0.000000e+00> : vector<2x128xf32>
    %657 = tpu.matmul %643, %656, %cst_343 {dimension_numbers = #tpu.dot_dimension_numbers<[1], [0], [0], [1], [0, 0, 1, 1], [], []>} : vector<2x32xf32>, vector<32x128xf32>, vector<2x128xf32> -> vector<2x128xf32>
    %658 = arith.addf %655, %657 : vector<2x128xf32>
    %659 = vector.broadcast %495 : vector<1x128xf32> to vector<2x128xf32>
    %660 = arith.addf %658, %659 : vector<2x128xf32>
    %c6_344 = arith.constant 6 : index
    %c0_345 = arith.constant 0 : index
    %c0_346 = arith.constant 0 : index
    %661 = vector.load %arg21[%c6_344, %c0_345, %c0_346] : memref<8x2x128xf32, #tpu.memory_space<vmem>>, vector<1x2x128xf32>
    %662 = vector.shape_cast %661 : vector<1x2x128xf32> to vector<2x128xf32>
    %663 = vector.shape_cast %660 : vector<2x128xf32> to vector<1x2x128xf32>
    tpu.vector_store %arg21[%c6_344, %c0_345, %c0_346], %663 {strides = array<i32>} : memref<8x2x128xf32, #tpu.memory_space<vmem>>, vector<1x2x128xf32>,
    %c7_347 = arith.constant 7 : index
    %c0_348 = arith.constant 0 : index
    %c0_349 = arith.constant 0 : index
    %664 = vector.load %arg22[%c7_347, %c0_348, %c0_349] : memref<8x2x32xf32, #tpu.memory_space<vmem>>, vector<1x2x32xf32>
    %665 = vector.shape_cast %664 : vector<1x2x32xf32> to vector<2x32xf32>
    %c7_350 = arith.constant 7 : index
    %c0_351 = arith.constant 0 : index
    %c0_352 = arith.constant 0 : index
    %666 = vector.load %arg23[%c7_350, %c0_351, %c0_352] : memref<8x2x32xf32, #tpu.memory_space<vmem>>, vector<1x2x32xf32>
    %667 = vector.shape_cast %666 : vector<1x2x32xf32> to vector<2x32xf32>
    %668 = vector.extract_strided_slice %490 {offsets = [0, 0], sizes = [32, 128], strides = [1, 1]} : vector<64x128xf32> to vector<32x128xf32>
    %cst_353 = arith.constant dense<0.000000e+00> : vector<2x128xf32>
    %669 = tpu.matmul %665, %668, %cst_353 {dimension_numbers = #tpu.dot_dimension_numbers<[1], [0], [0], [1], [0, 0, 1, 1], [], []>} : vector<2x32xf32>, vector<32x128xf32>, vector<2x128xf32> -> vector<2x128xf32>
    %670 = vector.extract_strided_slice %490 {offsets = [32, 0], sizes = [32, 128], strides = [1, 1]} : vector<64x128xf32> to vector<32x128xf32>
    %cst_354 = arith.constant dense<0.000000e+00> : vector<2x128xf32>
    %671 = tpu.matmul %667, %670, %cst_354 {dimension_numbers = #tpu.dot_dimension_numbers<[1], [0], [0], [1], [0, 0, 1, 1], [], []>} : vector<2x32xf32>, vector<32x128xf32>, vector<2x128xf32> -> vector<2x128xf32>
    %672 = arith.addf %669, %671 : vector<2x128xf32>
    %673 = vector.broadcast %494 : vector<1x128xf32> to vector<2x128xf32>
    %674 = arith.addf %672, %673 : vector<2x128xf32>
    %c7_355 = arith.constant 7 : index
    %c0_356 = arith.constant 0 : index
    %c0_357 = arith.constant 0 : index
    %675 = vector.load %arg20[%c7_355, %c0_356, %c0_357] : memref<8x2x128xf32, #tpu.memory_space<vmem>>, vector<1x2x128xf32>
    %676 = vector.shape_cast %675 : vector<1x2x128xf32> to vector<2x128xf32>
    %677 = vector.shape_cast %674 : vector<2x128xf32> to vector<1x2x128xf32>
    tpu.vector_store %arg20[%c7_355, %c0_356, %c0_357], %677 {strides = array<i32>} : memref<8x2x128xf32, #tpu.memory_space<vmem>>, vector<1x2x128xf32>,
    %678 = vector.extract_strided_slice %491 {offsets = [0, 0], sizes = [32, 128], strides = [1, 1]} : vector<64x128xf32> to vector<32x128xf32>
    %cst_358 = arith.constant dense<0.000000e+00> : vector<2x128xf32>
    %679 = tpu.matmul %665, %678, %cst_358 {dimension_numbers = #tpu.dot_dimension_numbers<[1], [0], [0], [1], [0, 0, 1, 1], [], []>} : vector<2x32xf32>, vector<32x128xf32>, vector<2x128xf32> -> vector<2x128xf32>
    %680 = vector.extract_strided_slice %491 {offsets = [32, 0], sizes = [32, 128], strides = [1, 1]} : vector<64x128xf32> to vector<32x128xf32>
    %cst_359 = arith.constant dense<0.000000e+00> : vector<2x128xf32>
    %681 = tpu.matmul %667, %680, %cst_359 {dimension_numbers = #tpu.dot_dimension_numbers<[1], [0], [0], [1], [0, 0, 1, 1], [], []>} : vector<2x32xf32>, vector<32x128xf32>, vector<2x128xf32> -> vector<2x128xf32>
    %682 = arith.addf %679, %681 : vector<2x128xf32>
    %683 = vector.broadcast %495 : vector<1x128xf32> to vector<2x128xf32>
    %684 = arith.addf %682, %683 : vector<2x128xf32>
    %c7_360 = arith.constant 7 : index
    %c0_361 = arith.constant 0 : index
    %c0_362 = arith.constant 0 : index
    %685 = vector.load %arg21[%c7_360, %c0_361, %c0_362] : memref<8x2x128xf32, #tpu.memory_space<vmem>>, vector<1x2x128xf32>
    %686 = vector.shape_cast %685 : vector<1x2x128xf32> to vector<2x128xf32>
    %687 = vector.shape_cast %684 : vector<2x128xf32> to vector<1x2x128xf32>
    tpu.vector_store %arg21[%c7_360, %c0_361, %c0_362], %687 {strides = array<i32>} : memref<8x2x128xf32, #tpu.memory_space<vmem>>, vector<1x2x128xf32>,
    %cst_363 = arith.constant 0.000000e+00 : f32
    %688 = vector.broadcast %cst_363 : f32 to vector<2x32xf32>
    %cst_364 = arith.constant 0.000000e+00 : f32
    %689 = vector.broadcast %cst_364 : f32 to vector<2x32xf32>
    %cst_365 = arith.constant 0.000000e+00 : f32
    %690 = vector.broadcast %cst_365 : f32 to vector<2x32xf32>
    %cst_366 = arith.constant 0.000000e+00 : f32
    %691 = vector.broadcast %cst_366 : f32 to vector<2x32xf32>
    %c0_367 = arith.constant 0 : index
    %c0_368 = arith.constant 0 : index
    %c0_369 = arith.constant 0 : index
    %692 = vector.load %arg20[%c0_367, %c0_368, %c0_369] : memref<8x2x128xf32, #tpu.memory_space<vmem>>, vector<1x2x128xf32>
    %693 = vector.shape_cast %692 : vector<1x2x128xf32> to vector<2x128xf32>
    %cst_370 = arith.constant dense<0.000000e+00> : vector<2x128xf32>
    %694 = tpu.matmul %688, %492, %cst_370 {dimension_numbers = #tpu.dot_dimension_numbers<[1], [0], [0], [1], [0, 0, 1, 1], [], []>} : vector<2x32xf32>, vector<32x128xf32>, vector<2x128xf32> -> vector<2x128xf32>
    %695 = arith.addf %693, %694 : vector<2x128xf32>
    %c7_371 = arith.constant 7 : index
    %c0_372 = arith.constant 0 : index
    %c0_373 = arith.constant 0 : index
    %696 = vector.load %arg21[%c7_371, %c0_372, %c0_373] : memref<8x2x128xf32, #tpu.memory_space<vmem>>, vector<1x2x128xf32>
    %697 = vector.shape_cast %696 : vector<1x2x128xf32> to vector<2x128xf32>
    %cst_374 = arith.constant dense<0.000000e+00> : vector<2x128xf32>
    %698 = tpu.matmul %689, %493, %cst_374 {dimension_numbers = #tpu.dot_dimension_numbers<[1], [0], [0], [1], [0, 0, 1, 1], [], []>} : vector<2x32xf32>, vector<32x128xf32>, vector<2x128xf32> -> vector<2x128xf32>
    %699 = arith.addf %697, %698 : vector<2x128xf32>
    %700 = vector.extract_strided_slice %695 {offsets = [0, 0], sizes = [2, 96], strides = [1, 1]} : vector<2x128xf32> to vector<2x96xf32>
    %701 = arith.negf %700 : vector<2x96xf32>
    %702 = math.exp %701 : vector<2x96xf32>
    %cst_375 = arith.constant 1.000000e+00 : f32
    %703 = vector.broadcast %cst_375 : f32 to vector<2x96xf32>
    %704 = arith.addf %703, %702 : vector<2x96xf32>
    %705 = arith.divf %703, %704 : vector<2x96xf32>
    %706 = vector.extract_strided_slice %699 {offsets = [0, 0], sizes = [2, 96], strides = [1, 1]} : vector<2x128xf32> to vector<2x96xf32>
    %707 = arith.negf %706 : vector<2x96xf32>
    %708 = math.exp %707 : vector<2x96xf32>
    %cst_376 = arith.constant 1.000000e+00 : f32
    %709 = vector.broadcast %cst_376 : f32 to vector<2x96xf32>
    %710 = arith.addf %709, %708 : vector<2x96xf32>
    %711 = arith.divf %709, %710 : vector<2x96xf32>
    %712 = vector.extract_strided_slice %695 {offsets = [0, 96], sizes = [2, 32], strides = [1, 1]} : vector<2x128xf32> to vector<2x32xf32>
    %713 = math.tanh %712 : vector<2x32xf32>
    %714 = vector.extract_strided_slice %699 {offsets = [0, 96], sizes = [2, 32], strides = [1, 1]} : vector<2x128xf32> to vector<2x32xf32>
    %715 = math.tanh %714 : vector<2x32xf32>
    %716 = vector.extract_strided_slice %705 {offsets = [0, 32], sizes = [2, 32], strides = [1, 1]} : vector<2x96xf32> to vector<2x32xf32>
    %717 = arith.mulf %716, %690 : vector<2x32xf32>
    %718 = vector.extract_strided_slice %705 {offsets = [0, 0], sizes = [2, 32], strides = [1, 1]} : vector<2x96xf32> to vector<2x32xf32>
    %719 = arith.mulf %718, %713 : vector<2x32xf32>
    %720 = arith.addf %717, %719 : vector<2x32xf32>
    %721 = vector.extract_strided_slice %711 {offsets = [0, 32], sizes = [2, 32], strides = [1, 1]} : vector<2x96xf32> to vector<2x32xf32>
    %722 = arith.mulf %721, %691 : vector<2x32xf32>
    %723 = vector.extract_strided_slice %711 {offsets = [0, 0], sizes = [2, 32], strides = [1, 1]} : vector<2x96xf32> to vector<2x32xf32>
    %724 = arith.mulf %723, %715 : vector<2x32xf32>
    %725 = arith.addf %722, %724 : vector<2x32xf32>
    %726 = vector.extract_strided_slice %705 {offsets = [0, 64], sizes = [2, 32], strides = [1, 1]} : vector<2x96xf32> to vector<2x32xf32>
    %727 = math.tanh %720 : vector<2x32xf32>
    %728 = arith.mulf %726, %727 : vector<2x32xf32>
    %729 = vector.extract_strided_slice %711 {offsets = [0, 64], sizes = [2, 32], strides = [1, 1]} : vector<2x96xf32> to vector<2x32xf32>
    %730 = math.tanh %725 : vector<2x32xf32>
    %731 = arith.mulf %729, %730 : vector<2x32xf32>
    %c0_377 = arith.constant 0 : index
    %c0_378 = arith.constant 0 : index
    %c0_379 = arith.constant 0 : index
    %732 = vector.load %arg22[%c0_377, %c0_378, %c0_379] : memref<8x2x32xf32, #tpu.memory_space<vmem>>, vector<1x2x32xf32>
    %733 = vector.shape_cast %732 : vector<1x2x32xf32> to vector<2x32xf32>
    %734 = vector.shape_cast %728 : vector<2x32xf32> to vector<1x2x32xf32>
    tpu.vector_store %arg22[%c0_377, %c0_378, %c0_379], %734 {strides = array<i32>} : memref<8x2x32xf32, #tpu.memory_space<vmem>>, vector<1x2x32xf32>,
    %c7_380 = arith.constant 7 : index
    %c0_381 = arith.constant 0 : index
    %c0_382 = arith.constant 0 : index
    %735 = vector.load %arg23[%c7_380, %c0_381, %c0_382] : memref<8x2x32xf32, #tpu.memory_space<vmem>>, vector<1x2x32xf32>
    %736 = vector.shape_cast %735 : vector<1x2x32xf32> to vector<2x32xf32>
    %737 = vector.shape_cast %731 : vector<2x32xf32> to vector<1x2x32xf32>
    tpu.vector_store %arg23[%c7_380, %c0_381, %c0_382], %737 {strides = array<i32>} : memref<8x2x32xf32, #tpu.memory_space<vmem>>, vector<1x2x32xf32>,
    %c1_383 = arith.constant 1 : index
    %c0_384 = arith.constant 0 : index
    %c0_385 = arith.constant 0 : index
    %738 = vector.load %arg20[%c1_383, %c0_384, %c0_385] : memref<8x2x128xf32, #tpu.memory_space<vmem>>, vector<1x2x128xf32>
    %739 = vector.shape_cast %738 : vector<1x2x128xf32> to vector<2x128xf32>
    %cst_386 = arith.constant dense<0.000000e+00> : vector<2x128xf32>
    %740 = tpu.matmul %728, %492, %cst_386 {dimension_numbers = #tpu.dot_dimension_numbers<[1], [0], [0], [1], [0, 0, 1, 1], [], []>} : vector<2x32xf32>, vector<32x128xf32>, vector<2x128xf32> -> vector<2x128xf32>
    %741 = arith.addf %739, %740 : vector<2x128xf32>
    %c6_387 = arith.constant 6 : index
    %c0_388 = arith.constant 0 : index
    %c0_389 = arith.constant 0 : index
    %742 = vector.load %arg21[%c6_387, %c0_388, %c0_389] : memref<8x2x128xf32, #tpu.memory_space<vmem>>, vector<1x2x128xf32>
    %743 = vector.shape_cast %742 : vector<1x2x128xf32> to vector<2x128xf32>
    %cst_390 = arith.constant dense<0.000000e+00> : vector<2x128xf32>
    %744 = tpu.matmul %731, %493, %cst_390 {dimension_numbers = #tpu.dot_dimension_numbers<[1], [0], [0], [1], [0, 0, 1, 1], [], []>} : vector<2x32xf32>, vector<32x128xf32>, vector<2x128xf32> -> vector<2x128xf32>
    %745 = arith.addf %743, %744 : vector<2x128xf32>
    %746 = vector.extract_strided_slice %741 {offsets = [0, 0], sizes = [2, 96], strides = [1, 1]} : vector<2x128xf32> to vector<2x96xf32>
    %747 = arith.negf %746 : vector<2x96xf32>
    %748 = math.exp %747 : vector<2x96xf32>
    %cst_391 = arith.constant 1.000000e+00 : f32
    %749 = vector.broadcast %cst_391 : f32 to vector<2x96xf32>
    %750 = arith.addf %749, %748 : vector<2x96xf32>
    %751 = arith.divf %749, %750 : vector<2x96xf32>
    %752 = vector.extract_strided_slice %745 {offsets = [0, 0], sizes = [2, 96], strides = [1, 1]} : vector<2x128xf32> to vector<2x96xf32>
    %753 = arith.negf %752 : vector<2x96xf32>
    %754 = math.exp %753 : vector<2x96xf32>
    %cst_392 = arith.constant 1.000000e+00 : f32
    %755 = vector.broadcast %cst_392 : f32 to vector<2x96xf32>
    %756 = arith.addf %755, %754 : vector<2x96xf32>
    %757 = arith.divf %755, %756 : vector<2x96xf32>
    %758 = vector.extract_strided_slice %741 {offsets = [0, 96], sizes = [2, 32], strides = [1, 1]} : vector<2x128xf32> to vector<2x32xf32>
    %759 = math.tanh %758 : vector<2x32xf32>
    %760 = vector.extract_strided_slice %745 {offsets = [0, 96], sizes = [2, 32], strides = [1, 1]} : vector<2x128xf32> to vector<2x32xf32>
    %761 = math.tanh %760 : vector<2x32xf32>
    %762 = vector.extract_strided_slice %751 {offsets = [0, 32], sizes = [2, 32], strides = [1, 1]} : vector<2x96xf32> to vector<2x32xf32>
    %763 = arith.mulf %762, %720 : vector<2x32xf32>
    %764 = vector.extract_strided_slice %751 {offsets = [0, 0], sizes = [2, 32], strides = [1, 1]} : vector<2x96xf32> to vector<2x32xf32>
    %765 = arith.mulf %764, %759 : vector<2x32xf32>
    %766 = arith.addf %763, %765 : vector<2x32xf32>
    %767 = vector.extract_strided_slice %757 {offsets = [0, 32], sizes = [2, 32], strides = [1, 1]} : vector<2x96xf32> to vector<2x32xf32>
    %768 = arith.mulf %767, %725 : vector<2x32xf32>
    %769 = vector.extract_strided_slice %757 {offsets = [0, 0], sizes = [2, 32], strides = [1, 1]} : vector<2x96xf32> to vector<2x32xf32>
    %770 = arith.mulf %769, %761 : vector<2x32xf32>
    %771 = arith.addf %768, %770 : vector<2x32xf32>
    %772 = vector.extract_strided_slice %751 {offsets = [0, 64], sizes = [2, 32], strides = [1, 1]} : vector<2x96xf32> to vector<2x32xf32>
    %773 = math.tanh %766 : vector<2x32xf32>
    %774 = arith.mulf %772, %773 : vector<2x32xf32>
    %775 = vector.extract_strided_slice %757 {offsets = [0, 64], sizes = [2, 32], strides = [1, 1]} : vector<2x96xf32> to vector<2x32xf32>
    %776 = math.tanh %771 : vector<2x32xf32>
    %777 = arith.mulf %775, %776 : vector<2x32xf32>
    %c1_393 = arith.constant 1 : index
    %c0_394 = arith.constant 0 : index
    %c0_395 = arith.constant 0 : index
    %778 = vector.load %arg22[%c1_393, %c0_394, %c0_395] : memref<8x2x32xf32, #tpu.memory_space<vmem>>, vector<1x2x32xf32>
    %779 = vector.shape_cast %778 : vector<1x2x32xf32> to vector<2x32xf32>
    %780 = vector.shape_cast %774 : vector<2x32xf32> to vector<1x2x32xf32>
    tpu.vector_store %arg22[%c1_393, %c0_394, %c0_395], %780 {strides = array<i32>} : memref<8x2x32xf32, #tpu.memory_space<vmem>>, vector<1x2x32xf32>,
    %c6_396 = arith.constant 6 : index
    %c0_397 = arith.constant 0 : index
    %c0_398 = arith.constant 0 : index
    %781 = vector.load %arg23[%c6_396, %c0_397, %c0_398] : memref<8x2x32xf32, #tpu.memory_space<vmem>>, vector<1x2x32xf32>
    %782 = vector.shape_cast %781 : vector<1x2x32xf32> to vector<2x32xf32>
    %783 = vector.shape_cast %777 : vector<2x32xf32> to vector<1x2x32xf32>
    tpu.vector_store %arg23[%c6_396, %c0_397, %c0_398], %783 {strides = array<i32>} : memref<8x2x32xf32, #tpu.memory_space<vmem>>, vector<1x2x32xf32>,
    %c2_399 = arith.constant 2 : index
    %c0_400 = arith.constant 0 : index
    %c0_401 = arith.constant 0 : index
    %784 = vector.load %arg20[%c2_399, %c0_400, %c0_401] : memref<8x2x128xf32, #tpu.memory_space<vmem>>, vector<1x2x128xf32>
    %785 = vector.shape_cast %784 : vector<1x2x128xf32> to vector<2x128xf32>
    %cst_402 = arith.constant dense<0.000000e+00> : vector<2x128xf32>
    %786 = tpu.matmul %774, %492, %cst_402 {dimension_numbers = #tpu.dot_dimension_numbers<[1], [0], [0], [1], [0, 0, 1, 1], [], []>} : vector<2x32xf32>, vector<32x128xf32>, vector<2x128xf32> -> vector<2x128xf32>
    %787 = arith.addf %785, %786 : vector<2x128xf32>
    %c5_403 = arith.constant 5 : index
    %c0_404 = arith.constant 0 : index
    %c0_405 = arith.constant 0 : index
    %788 = vector.load %arg21[%c5_403, %c0_404, %c0_405] : memref<8x2x128xf32, #tpu.memory_space<vmem>>, vector<1x2x128xf32>
    %789 = vector.shape_cast %788 : vector<1x2x128xf32> to vector<2x128xf32>
    %cst_406 = arith.constant dense<0.000000e+00> : vector<2x128xf32>
    %790 = tpu.matmul %777, %493, %cst_406 {dimension_numbers = #tpu.dot_dimension_numbers<[1], [0], [0], [1], [0, 0, 1, 1], [], []>} : vector<2x32xf32>, vector<32x128xf32>, vector<2x128xf32> -> vector<2x128xf32>
    %791 = arith.addf %789, %790 : vector<2x128xf32>
    %792 = vector.extract_strided_slice %787 {offsets = [0, 0], sizes = [2, 96], strides = [1, 1]} : vector<2x128xf32> to vector<2x96xf32>
    %793 = arith.negf %792 : vector<2x96xf32>
    %794 = math.exp %793 : vector<2x96xf32>
    %cst_407 = arith.constant 1.000000e+00 : f32
    %795 = vector.broadcast %cst_407 : f32 to vector<2x96xf32>
    %796 = arith.addf %795, %794 : vector<2x96xf32>
    %797 = arith.divf %795, %796 : vector<2x96xf32>
    %798 = vector.extract_strided_slice %791 {offsets = [0, 0], sizes = [2, 96], strides = [1, 1]} : vector<2x128xf32> to vector<2x96xf32>
    %799 = arith.negf %798 : vector<2x96xf32>
    %800 = math.exp %799 : vector<2x96xf32>
    %cst_408 = arith.constant 1.000000e+00 : f32
    %801 = vector.broadcast %cst_408 : f32 to vector<2x96xf32>
    %802 = arith.addf %801, %800 : vector<2x96xf32>
    %803 = arith.divf %801, %802 : vector<2x96xf32>
    %804 = vector.extract_strided_slice %787 {offsets = [0, 96], sizes = [2, 32], strides = [1, 1]} : vector<2x128xf32> to vector<2x32xf32>
    %805 = math.tanh %804 : vector<2x32xf32>
    %806 = vector.extract_strided_slice %791 {offsets = [0, 96], sizes = [2, 32], strides = [1, 1]} : vector<2x128xf32> to vector<2x32xf32>
    %807 = math.tanh %806 : vector<2x32xf32>
    %808 = vector.extract_strided_slice %797 {offsets = [0, 32], sizes = [2, 32], strides = [1, 1]} : vector<2x96xf32> to vector<2x32xf32>
    %809 = arith.mulf %808, %766 : vector<2x32xf32>
    %810 = vector.extract_strided_slice %797 {offsets = [0, 0], sizes = [2, 32], strides = [1, 1]} : vector<2x96xf32> to vector<2x32xf32>
    %811 = arith.mulf %810, %805 : vector<2x32xf32>
    %812 = arith.addf %809, %811 : vector<2x32xf32>
    %813 = vector.extract_strided_slice %803 {offsets = [0, 32], sizes = [2, 32], strides = [1, 1]} : vector<2x96xf32> to vector<2x32xf32>
    %814 = arith.mulf %813, %771 : vector<2x32xf32>
    %815 = vector.extract_strided_slice %803 {offsets = [0, 0], sizes = [2, 32], strides = [1, 1]} : vector<2x96xf32> to vector<2x32xf32>
    %816 = arith.mulf %815, %807 : vector<2x32xf32>
    %817 = arith.addf %814, %816 : vector<2x32xf32>
    %818 = vector.extract_strided_slice %797 {offsets = [0, 64], sizes = [2, 32], strides = [1, 1]} : vector<2x96xf32> to vector<2x32xf32>
    %819 = math.tanh %812 : vector<2x32xf32>
    %820 = arith.mulf %818, %819 : vector<2x32xf32>
    %821 = vector.extract_strided_slice %803 {offsets = [0, 64], sizes = [2, 32], strides = [1, 1]} : vector<2x96xf32> to vector<2x32xf32>
    %822 = math.tanh %817 : vector<2x32xf32>
    %823 = arith.mulf %821, %822 : vector<2x32xf32>
    %c2_409 = arith.constant 2 : index
    %c0_410 = arith.constant 0 : index
    %c0_411 = arith.constant 0 : index
    %824 = vector.load %arg22[%c2_409, %c0_410, %c0_411] : memref<8x2x32xf32, #tpu.memory_space<vmem>>, vector<1x2x32xf32>
    %825 = vector.shape_cast %824 : vector<1x2x32xf32> to vector<2x32xf32>
    %826 = vector.shape_cast %820 : vector<2x32xf32> to vector<1x2x32xf32>
    tpu.vector_store %arg22[%c2_409, %c0_410, %c0_411], %826 {strides = array<i32>} : memref<8x2x32xf32, #tpu.memory_space<vmem>>, vector<1x2x32xf32>,
    %c5_412 = arith.constant 5 : index
    %c0_413 = arith.constant 0 : index
    %c0_414 = arith.constant 0 : index
    %827 = vector.load %arg23[%c5_412, %c0_413, %c0_414] : memref<8x2x32xf32, #tpu.memory_space<vmem>>, vector<1x2x32xf32>
    %828 = vector.shape_cast %827 : vector<1x2x32xf32> to vector<2x32xf32>
    %829 = vector.shape_cast %823 : vector<2x32xf32> to vector<1x2x32xf32>
    tpu.vector_store %arg23[%c5_412, %c0_413, %c0_414], %829 {strides = array<i32>} : memref<8x2x32xf32, #tpu.memory_space<vmem>>, vector<1x2x32xf32>,
    %c3_415 = arith.constant 3 : index
    %c0_416 = arith.constant 0 : index
    %c0_417 = arith.constant 0 : index
    %830 = vector.load %arg20[%c3_415, %c0_416, %c0_417] : memref<8x2x128xf32, #tpu.memory_space<vmem>>, vector<1x2x128xf32>
    %831 = vector.shape_cast %830 : vector<1x2x128xf32> to vector<2x128xf32>
    %cst_418 = arith.constant dense<0.000000e+00> : vector<2x128xf32>
    %832 = tpu.matmul %820, %492, %cst_418 {dimension_numbers = #tpu.dot_dimension_numbers<[1], [0], [0], [1], [0, 0, 1, 1], [], []>} : vector<2x32xf32>, vector<32x128xf32>, vector<2x128xf32> -> vector<2x128xf32>
    %833 = arith.addf %831, %832 : vector<2x128xf32>
    %c4_419 = arith.constant 4 : index
    %c0_420 = arith.constant 0 : index
    %c0_421 = arith.constant 0 : index
    %834 = vector.load %arg21[%c4_419, %c0_420, %c0_421] : memref<8x2x128xf32, #tpu.memory_space<vmem>>, vector<1x2x128xf32>
    %835 = vector.shape_cast %834 : vector<1x2x128xf32> to vector<2x128xf32>
    %cst_422 = arith.constant dense<0.000000e+00> : vector<2x128xf32>
    %836 = tpu.matmul %823, %493, %cst_422 {dimension_numbers = #tpu.dot_dimension_numbers<[1], [0], [0], [1], [0, 0, 1, 1], [], []>} : vector<2x32xf32>, vector<32x128xf32>, vector<2x128xf32> -> vector<2x128xf32>
    %837 = arith.addf %835, %836 : vector<2x128xf32>
    %838 = vector.extract_strided_slice %833 {offsets = [0, 0], sizes = [2, 96], strides = [1, 1]} : vector<2x128xf32> to vector<2x96xf32>
    %839 = arith.negf %838 : vector<2x96xf32>
    %840 = math.exp %839 : vector<2x96xf32>
    %cst_423 = arith.constant 1.000000e+00 : f32
    %841 = vector.broadcast %cst_423 : f32 to vector<2x96xf32>
    %842 = arith.addf %841, %840 : vector<2x96xf32>
    %843 = arith.divf %841, %842 : vector<2x96xf32>
    %844 = vector.extract_strided_slice %837 {offsets = [0, 0], sizes = [2, 96], strides = [1, 1]} : vector<2x128xf32> to vector<2x96xf32>
    %845 = arith.negf %844 : vector<2x96xf32>
    %846 = math.exp %845 : vector<2x96xf32>
    %cst_424 = arith.constant 1.000000e+00 : f32
    %847 = vector.broadcast %cst_424 : f32 to vector<2x96xf32>
    %848 = arith.addf %847, %846 : vector<2x96xf32>
    %849 = arith.divf %847, %848 : vector<2x96xf32>
    %850 = vector.extract_strided_slice %833 {offsets = [0, 96], sizes = [2, 32], strides = [1, 1]} : vector<2x128xf32> to vector<2x32xf32>
    %851 = math.tanh %850 : vector<2x32xf32>
    %852 = vector.extract_strided_slice %837 {offsets = [0, 96], sizes = [2, 32], strides = [1, 1]} : vector<2x128xf32> to vector<2x32xf32>
    %853 = math.tanh %852 : vector<2x32xf32>
    %854 = vector.extract_strided_slice %843 {offsets = [0, 32], sizes = [2, 32], strides = [1, 1]} : vector<2x96xf32> to vector<2x32xf32>
    %855 = arith.mulf %854, %812 : vector<2x32xf32>
    %856 = vector.extract_strided_slice %843 {offsets = [0, 0], sizes = [2, 32], strides = [1, 1]} : vector<2x96xf32> to vector<2x32xf32>
    %857 = arith.mulf %856, %851 : vector<2x32xf32>
    %858 = arith.addf %855, %857 : vector<2x32xf32>
    %859 = vector.extract_strided_slice %849 {offsets = [0, 32], sizes = [2, 32], strides = [1, 1]} : vector<2x96xf32> to vector<2x32xf32>
    %860 = arith.mulf %859, %817 : vector<2x32xf32>
    %861 = vector.extract_strided_slice %849 {offsets = [0, 0], sizes = [2, 32], strides = [1, 1]} : vector<2x96xf32> to vector<2x32xf32>
    %862 = arith.mulf %861, %853 : vector<2x32xf32>
    %863 = arith.addf %860, %862 : vector<2x32xf32>
    %864 = vector.extract_strided_slice %843 {offsets = [0, 64], sizes = [2, 32], strides = [1, 1]} : vector<2x96xf32> to vector<2x32xf32>
    %865 = math.tanh %858 : vector<2x32xf32>
    %866 = arith.mulf %864, %865 : vector<2x32xf32>
    %867 = vector.extract_strided_slice %849 {offsets = [0, 64], sizes = [2, 32], strides = [1, 1]} : vector<2x96xf32> to vector<2x32xf32>
    %868 = math.tanh %863 : vector<2x32xf32>
    %869 = arith.mulf %867, %868 : vector<2x32xf32>
    %c3_425 = arith.constant 3 : index
    %c0_426 = arith.constant 0 : index
    %c0_427 = arith.constant 0 : index
    %870 = vector.load %arg22[%c3_425, %c0_426, %c0_427] : memref<8x2x32xf32, #tpu.memory_space<vmem>>, vector<1x2x32xf32>
    %871 = vector.shape_cast %870 : vector<1x2x32xf32> to vector<2x32xf32>
    %872 = vector.shape_cast %866 : vector<2x32xf32> to vector<1x2x32xf32>
    tpu.vector_store %arg22[%c3_425, %c0_426, %c0_427], %872 {strides = array<i32>} : memref<8x2x32xf32, #tpu.memory_space<vmem>>, vector<1x2x32xf32>,
    %c4_428 = arith.constant 4 : index
    %c0_429 = arith.constant 0 : index
    %c0_430 = arith.constant 0 : index
    %873 = vector.load %arg23[%c4_428, %c0_429, %c0_430] : memref<8x2x32xf32, #tpu.memory_space<vmem>>, vector<1x2x32xf32>
    %874 = vector.shape_cast %873 : vector<1x2x32xf32> to vector<2x32xf32>
    %875 = vector.shape_cast %869 : vector<2x32xf32> to vector<1x2x32xf32>
    tpu.vector_store %arg23[%c4_428, %c0_429, %c0_430], %875 {strides = array<i32>} : memref<8x2x32xf32, #tpu.memory_space<vmem>>, vector<1x2x32xf32>,
    %c4_431 = arith.constant 4 : index
    %c0_432 = arith.constant 0 : index
    %c0_433 = arith.constant 0 : index
    %876 = vector.load %arg20[%c4_431, %c0_432, %c0_433] : memref<8x2x128xf32, #tpu.memory_space<vmem>>, vector<1x2x128xf32>
    %877 = vector.shape_cast %876 : vector<1x2x128xf32> to vector<2x128xf32>
    %cst_434 = arith.constant dense<0.000000e+00> : vector<2x128xf32>
    %878 = tpu.matmul %866, %492, %cst_434 {dimension_numbers = #tpu.dot_dimension_numbers<[1], [0], [0], [1], [0, 0, 1, 1], [], []>} : vector<2x32xf32>, vector<32x128xf32>, vector<2x128xf32> -> vector<2x128xf32>
    %879 = arith.addf %877, %878 : vector<2x128xf32>
    %c3_435 = arith.constant 3 : index
    %c0_436 = arith.constant 0 : index
    %c0_437 = arith.constant 0 : index
    %880 = vector.load %arg21[%c3_435, %c0_436, %c0_437] : memref<8x2x128xf32, #tpu.memory_space<vmem>>, vector<1x2x128xf32>
    %881 = vector.shape_cast %880 : vector<1x2x128xf32> to vector<2x128xf32>
    %cst_438 = arith.constant dense<0.000000e+00> : vector<2x128xf32>
    %882 = tpu.matmul %869, %493, %cst_438 {dimension_numbers = #tpu.dot_dimension_numbers<[1], [0], [0], [1], [0, 0, 1, 1], [], []>} : vector<2x32xf32>, vector<32x128xf32>, vector<2x128xf32> -> vector<2x128xf32>
    %883 = arith.addf %881, %882 : vector<2x128xf32>
    %884 = vector.extract_strided_slice %879 {offsets = [0, 0], sizes = [2, 96], strides = [1, 1]} : vector<2x128xf32> to vector<2x96xf32>
    %885 = arith.negf %884 : vector<2x96xf32>
    %886 = math.exp %885 : vector<2x96xf32>
    %cst_439 = arith.constant 1.000000e+00 : f32
    %887 = vector.broadcast %cst_439 : f32 to vector<2x96xf32>
    %888 = arith.addf %887, %886 : vector<2x96xf32>
    %889 = arith.divf %887, %888 : vector<2x96xf32>
    %890 = vector.extract_strided_slice %883 {offsets = [0, 0], sizes = [2, 96], strides = [1, 1]} : vector<2x128xf32> to vector<2x96xf32>
    %891 = arith.negf %890 : vector<2x96xf32>
    %892 = math.exp %891 : vector<2x96xf32>
    %cst_440 = arith.constant 1.000000e+00 : f32
    %893 = vector.broadcast %cst_440 : f32 to vector<2x96xf32>
    %894 = arith.addf %893, %892 : vector<2x96xf32>
    %895 = arith.divf %893, %894 : vector<2x96xf32>
    %896 = vector.extract_strided_slice %879 {offsets = [0, 96], sizes = [2, 32], strides = [1, 1]} : vector<2x128xf32> to vector<2x32xf32>
    %897 = math.tanh %896 : vector<2x32xf32>
    %898 = vector.extract_strided_slice %883 {offsets = [0, 96], sizes = [2, 32], strides = [1, 1]} : vector<2x128xf32> to vector<2x32xf32>
    %899 = math.tanh %898 : vector<2x32xf32>
    %900 = vector.extract_strided_slice %889 {offsets = [0, 32], sizes = [2, 32], strides = [1, 1]} : vector<2x96xf32> to vector<2x32xf32>
    %901 = arith.mulf %900, %858 : vector<2x32xf32>
    %902 = vector.extract_strided_slice %889 {offsets = [0, 0], sizes = [2, 32], strides = [1, 1]} : vector<2x96xf32> to vector<2x32xf32>
    %903 = arith.mulf %902, %897 : vector<2x32xf32>
    %904 = arith.addf %901, %903 : vector<2x32xf32>
    %905 = vector.extract_strided_slice %895 {offsets = [0, 32], sizes = [2, 32], strides = [1, 1]} : vector<2x96xf32> to vector<2x32xf32>
    %906 = arith.mulf %905, %863 : vector<2x32xf32>
    %907 = vector.extract_strided_slice %895 {offsets = [0, 0], sizes = [2, 32], strides = [1, 1]} : vector<2x96xf32> to vector<2x32xf32>
    %908 = arith.mulf %907, %899 : vector<2x32xf32>
    %909 = arith.addf %906, %908 : vector<2x32xf32>
    %910 = vector.extract_strided_slice %889 {offsets = [0, 64], sizes = [2, 32], strides = [1, 1]} : vector<2x96xf32> to vector<2x32xf32>
    %911 = math.tanh %904 : vector<2x32xf32>
    %912 = arith.mulf %910, %911 : vector<2x32xf32>
    %913 = vector.extract_strided_slice %895 {offsets = [0, 64], sizes = [2, 32], strides = [1, 1]} : vector<2x96xf32> to vector<2x32xf32>
    %914 = math.tanh %909 : vector<2x32xf32>
    %915 = arith.mulf %913, %914 : vector<2x32xf32>
    %c4_441 = arith.constant 4 : index
    %c0_442 = arith.constant 0 : index
    %c0_443 = arith.constant 0 : index
    %916 = vector.load %arg22[%c4_441, %c0_442, %c0_443] : memref<8x2x32xf32, #tpu.memory_space<vmem>>, vector<1x2x32xf32>
    %917 = vector.shape_cast %916 : vector<1x2x32xf32> to vector<2x32xf32>
    %918 = vector.shape_cast %912 : vector<2x32xf32> to vector<1x2x32xf32>
    tpu.vector_store %arg22[%c4_441, %c0_442, %c0_443], %918 {strides = array<i32>} : memref<8x2x32xf32, #tpu.memory_space<vmem>>, vector<1x2x32xf32>,
    %c3_444 = arith.constant 3 : index
    %c0_445 = arith.constant 0 : index
    %c0_446 = arith.constant 0 : index
    %919 = vector.load %arg23[%c3_444, %c0_445, %c0_446] : memref<8x2x32xf32, #tpu.memory_space<vmem>>, vector<1x2x32xf32>
    %920 = vector.shape_cast %919 : vector<1x2x32xf32> to vector<2x32xf32>
    %921 = vector.shape_cast %915 : vector<2x32xf32> to vector<1x2x32xf32>
    tpu.vector_store %arg23[%c3_444, %c0_445, %c0_446], %921 {strides = array<i32>} : memref<8x2x32xf32, #tpu.memory_space<vmem>>, vector<1x2x32xf32>,
    %c5_447 = arith.constant 5 : index
    %c0_448 = arith.constant 0 : index
    %c0_449 = arith.constant 0 : index
    %922 = vector.load %arg20[%c5_447, %c0_448, %c0_449] : memref<8x2x128xf32, #tpu.memory_space<vmem>>, vector<1x2x128xf32>
    %923 = vector.shape_cast %922 : vector<1x2x128xf32> to vector<2x128xf32>
    %cst_450 = arith.constant dense<0.000000e+00> : vector<2x128xf32>
    %924 = tpu.matmul %912, %492, %cst_450 {dimension_numbers = #tpu.dot_dimension_numbers<[1], [0], [0], [1], [0, 0, 1, 1], [], []>} : vector<2x32xf32>, vector<32x128xf32>, vector<2x128xf32> -> vector<2x128xf32>
    %925 = arith.addf %923, %924 : vector<2x128xf32>
    %c2_451 = arith.constant 2 : index
    %c0_452 = arith.constant 0 : index
    %c0_453 = arith.constant 0 : index
    %926 = vector.load %arg21[%c2_451, %c0_452, %c0_453] : memref<8x2x128xf32, #tpu.memory_space<vmem>>, vector<1x2x128xf32>
    %927 = vector.shape_cast %926 : vector<1x2x128xf32> to vector<2x128xf32>
    %cst_454 = arith.constant dense<0.000000e+00> : vector<2x128xf32>
    %928 = tpu.matmul %915, %493, %cst_454 {dimension_numbers = #tpu.dot_dimension_numbers<[1], [0], [0], [1], [0, 0, 1, 1], [], []>} : vector<2x32xf32>, vector<32x128xf32>, vector<2x128xf32> -> vector<2x128xf32>
    %929 = arith.addf %927, %928 : vector<2x128xf32>
    %930 = vector.extract_strided_slice %925 {offsets = [0, 0], sizes = [2, 96], strides = [1, 1]} : vector<2x128xf32> to vector<2x96xf32>
    %931 = arith.negf %930 : vector<2x96xf32>
    %932 = math.exp %931 : vector<2x96xf32>
    %cst_455 = arith.constant 1.000000e+00 : f32
    %933 = vector.broadcast %cst_455 : f32 to vector<2x96xf32>
    %934 = arith.addf %933, %932 : vector<2x96xf32>
    %935 = arith.divf %933, %934 : vector<2x96xf32>
    %936 = vector.extract_strided_slice %929 {offsets = [0, 0], sizes = [2, 96], strides = [1, 1]} : vector<2x128xf32> to vector<2x96xf32>
    %937 = arith.negf %936 : vector<2x96xf32>
    %938 = math.exp %937 : vector<2x96xf32>
    %cst_456 = arith.constant 1.000000e+00 : f32
    %939 = vector.broadcast %cst_456 : f32 to vector<2x96xf32>
    %940 = arith.addf %939, %938 : vector<2x96xf32>
    %941 = arith.divf %939, %940 : vector<2x96xf32>
    %942 = vector.extract_strided_slice %925 {offsets = [0, 96], sizes = [2, 32], strides = [1, 1]} : vector<2x128xf32> to vector<2x32xf32>
    %943 = math.tanh %942 : vector<2x32xf32>
    %944 = vector.extract_strided_slice %929 {offsets = [0, 96], sizes = [2, 32], strides = [1, 1]} : vector<2x128xf32> to vector<2x32xf32>
    %945 = math.tanh %944 : vector<2x32xf32>
    %946 = vector.extract_strided_slice %935 {offsets = [0, 32], sizes = [2, 32], strides = [1, 1]} : vector<2x96xf32> to vector<2x32xf32>
    %947 = arith.mulf %946, %904 : vector<2x32xf32>
    %948 = vector.extract_strided_slice %935 {offsets = [0, 0], sizes = [2, 32], strides = [1, 1]} : vector<2x96xf32> to vector<2x32xf32>
    %949 = arith.mulf %948, %943 : vector<2x32xf32>
    %950 = arith.addf %947, %949 : vector<2x32xf32>
    %951 = vector.extract_strided_slice %941 {offsets = [0, 32], sizes = [2, 32], strides = [1, 1]} : vector<2x96xf32> to vector<2x32xf32>
    %952 = arith.mulf %951, %909 : vector<2x32xf32>
    %953 = vector.extract_strided_slice %941 {offsets = [0, 0], sizes = [2, 32], strides = [1, 1]} : vector<2x96xf32> to vector<2x32xf32>
    %954 = arith.mulf %953, %945 : vector<2x32xf32>
    %955 = arith.addf %952, %954 : vector<2x32xf32>
    %956 = vector.extract_strided_slice %935 {offsets = [0, 64], sizes = [2, 32], strides = [1, 1]} : vector<2x96xf32> to vector<2x32xf32>
    %957 = math.tanh %950 : vector<2x32xf32>
    %958 = arith.mulf %956, %957 : vector<2x32xf32>
    %959 = vector.extract_strided_slice %941 {offsets = [0, 64], sizes = [2, 32], strides = [1, 1]} : vector<2x96xf32> to vector<2x32xf32>
    %960 = math.tanh %955 : vector<2x32xf32>
    %961 = arith.mulf %959, %960 : vector<2x32xf32>
    %c5_457 = arith.constant 5 : index
    %c0_458 = arith.constant 0 : index
    %c0_459 = arith.constant 0 : index
    %962 = vector.load %arg22[%c5_457, %c0_458, %c0_459] : memref<8x2x32xf32, #tpu.memory_space<vmem>>, vector<1x2x32xf32>
    %963 = vector.shape_cast %962 : vector<1x2x32xf32> to vector<2x32xf32>
    %964 = vector.shape_cast %958 : vector<2x32xf32> to vector<1x2x32xf32>
    tpu.vector_store %arg22[%c5_457, %c0_458, %c0_459], %964 {strides = array<i32>} : memref<8x2x32xf32, #tpu.memory_space<vmem>>, vector<1x2x32xf32>,
    %c2_460 = arith.constant 2 : index
    %c0_461 = arith.constant 0 : index
    %c0_462 = arith.constant 0 : index
    %965 = vector.load %arg23[%c2_460, %c0_461, %c0_462] : memref<8x2x32xf32, #tpu.memory_space<vmem>>, vector<1x2x32xf32>
    %966 = vector.shape_cast %965 : vector<1x2x32xf32> to vector<2x32xf32>
    %967 = vector.shape_cast %961 : vector<2x32xf32> to vector<1x2x32xf32>
    tpu.vector_store %arg23[%c2_460, %c0_461, %c0_462], %967 {strides = array<i32>} : memref<8x2x32xf32, #tpu.memory_space<vmem>>, vector<1x2x32xf32>,
    %c6_463 = arith.constant 6 : index
    %c0_464 = arith.constant 0 : index
    %c0_465 = arith.constant 0 : index
    %968 = vector.load %arg20[%c6_463, %c0_464, %c0_465] : memref<8x2x128xf32, #tpu.memory_space<vmem>>, vector<1x2x128xf32>
    %969 = vector.shape_cast %968 : vector<1x2x128xf32> to vector<2x128xf32>
    %cst_466 = arith.constant dense<0.000000e+00> : vector<2x128xf32>
    %970 = tpu.matmul %958, %492, %cst_466 {dimension_numbers = #tpu.dot_dimension_numbers<[1], [0], [0], [1], [0, 0, 1, 1], [], []>} : vector<2x32xf32>, vector<32x128xf32>, vector<2x128xf32> -> vector<2x128xf32>
    %971 = arith.addf %969, %970 : vector<2x128xf32>
    %c1_467 = arith.constant 1 : index
    %c0_468 = arith.constant 0 : index
    %c0_469 = arith.constant 0 : index
    %972 = vector.load %arg21[%c1_467, %c0_468, %c0_469] : memref<8x2x128xf32, #tpu.memory_space<vmem>>, vector<1x2x128xf32>
    %973 = vector.shape_cast %972 : vector<1x2x128xf32> to vector<2x128xf32>
    %cst_470 = arith.constant dense<0.000000e+00> : vector<2x128xf32>
    %974 = tpu.matmul %961, %493, %cst_470 {dimension_numbers = #tpu.dot_dimension_numbers<[1], [0], [0], [1], [0, 0, 1, 1], [], []>} : vector<2x32xf32>, vector<32x128xf32>, vector<2x128xf32> -> vector<2x128xf32>
    %975 = arith.addf %973, %974 : vector<2x128xf32>
    %976 = vector.extract_strided_slice %971 {offsets = [0, 0], sizes = [2, 96], strides = [1, 1]} : vector<2x128xf32> to vector<2x96xf32>
    %977 = arith.negf %976 : vector<2x96xf32>
    %978 = math.exp %977 : vector<2x96xf32>
    %cst_471 = arith.constant 1.000000e+00 : f32
    %979 = vector.broadcast %cst_471 : f32 to vector<2x96xf32>
    %980 = arith.addf %979, %978 : vector<2x96xf32>
    %981 = arith.divf %979, %980 : vector<2x96xf32>
    %982 = vector.extract_strided_slice %975 {offsets = [0, 0], sizes = [2, 96], strides = [1, 1]} : vector<2x128xf32> to vector<2x96xf32>
    %983 = arith.negf %982 : vector<2x96xf32>
    %984 = math.exp %983 : vector<2x96xf32>
    %cst_472 = arith.constant 1.000000e+00 : f32
    %985 = vector.broadcast %cst_472 : f32 to vector<2x96xf32>
    %986 = arith.addf %985, %984 : vector<2x96xf32>
    %987 = arith.divf %985, %986 : vector<2x96xf32>
    %988 = vector.extract_strided_slice %971 {offsets = [0, 96], sizes = [2, 32], strides = [1, 1]} : vector<2x128xf32> to vector<2x32xf32>
    %989 = math.tanh %988 : vector<2x32xf32>
    %990 = vector.extract_strided_slice %975 {offsets = [0, 96], sizes = [2, 32], strides = [1, 1]} : vector<2x128xf32> to vector<2x32xf32>
    %991 = math.tanh %990 : vector<2x32xf32>
    %992 = vector.extract_strided_slice %981 {offsets = [0, 32], sizes = [2, 32], strides = [1, 1]} : vector<2x96xf32> to vector<2x32xf32>
    %993 = arith.mulf %992, %950 : vector<2x32xf32>
    %994 = vector.extract_strided_slice %981 {offsets = [0, 0], sizes = [2, 32], strides = [1, 1]} : vector<2x96xf32> to vector<2x32xf32>
    %995 = arith.mulf %994, %989 : vector<2x32xf32>
    %996 = arith.addf %993, %995 : vector<2x32xf32>
    %997 = vector.extract_strided_slice %987 {offsets = [0, 32], sizes = [2, 32], strides = [1, 1]} : vector<2x96xf32> to vector<2x32xf32>
    %998 = arith.mulf %997, %955 : vector<2x32xf32>
    %999 = vector.extract_strided_slice %987 {offsets = [0, 0], sizes = [2, 32], strides = [1, 1]} : vector<2x96xf32> to vector<2x32xf32>
    %1000 = arith.mulf %999, %991 : vector<2x32xf32>
    %1001 = arith.addf %998, %1000 : vector<2x32xf32>
    %1002 = vector.extract_strided_slice %981 {offsets = [0, 64], sizes = [2, 32], strides = [1, 1]} : vector<2x96xf32> to vector<2x32xf32>
    %1003 = math.tanh %996 : vector<2x32xf32>
    %1004 = arith.mulf %1002, %1003 : vector<2x32xf32>
    %1005 = vector.extract_strided_slice %987 {offsets = [0, 64], sizes = [2, 32], strides = [1, 1]} : vector<2x96xf32> to vector<2x32xf32>
    %1006 = math.tanh %1001 : vector<2x32xf32>
    %1007 = arith.mulf %1005, %1006 : vector<2x32xf32>
    %c6_473 = arith.constant 6 : index
    %c0_474 = arith.constant 0 : index
    %c0_475 = arith.constant 0 : index
    %1008 = vector.load %arg22[%c6_473, %c0_474, %c0_475] : memref<8x2x32xf32, #tpu.memory_space<vmem>>, vector<1x2x32xf32>
    %1009 = vector.shape_cast %1008 : vector<1x2x32xf32> to vector<2x32xf32>
    %1010 = vector.shape_cast %1004 : vector<2x32xf32> to vector<1x2x32xf32>
    tpu.vector_store %arg22[%c6_473, %c0_474, %c0_475], %1010 {strides = array<i32>} : memref<8x2x32xf32, #tpu.memory_space<vmem>>, vector<1x2x32xf32>,
    %c1_476 = arith.constant 1 : index
    %c0_477 = arith.constant 0 : index
    %c0_478 = arith.constant 0 : index
    %1011 = vector.load %arg23[%c1_476, %c0_477, %c0_478] : memref<8x2x32xf32, #tpu.memory_space<vmem>>, vector<1x2x32xf32>
    %1012 = vector.shape_cast %1011 : vector<1x2x32xf32> to vector<2x32xf32>
    %1013 = vector.shape_cast %1007 : vector<2x32xf32> to vector<1x2x32xf32>
    tpu.vector_store %arg23[%c1_476, %c0_477, %c0_478], %1013 {strides = array<i32>} : memref<8x2x32xf32, #tpu.memory_space<vmem>>, vector<1x2x32xf32>,
    %c7_479 = arith.constant 7 : index
    %c0_480 = arith.constant 0 : index
    %c0_481 = arith.constant 0 : index
    %1014 = vector.load %arg20[%c7_479, %c0_480, %c0_481] : memref<8x2x128xf32, #tpu.memory_space<vmem>>, vector<1x2x128xf32>
    %1015 = vector.shape_cast %1014 : vector<1x2x128xf32> to vector<2x128xf32>
    %cst_482 = arith.constant dense<0.000000e+00> : vector<2x128xf32>
    %1016 = tpu.matmul %1004, %492, %cst_482 {dimension_numbers = #tpu.dot_dimension_numbers<[1], [0], [0], [1], [0, 0, 1, 1], [], []>} : vector<2x32xf32>, vector<32x128xf32>, vector<2x128xf32> -> vector<2x128xf32>
    %1017 = arith.addf %1015, %1016 : vector<2x128xf32>
    %c0_483 = arith.constant 0 : index
    %c0_484 = arith.constant 0 : index
    %c0_485 = arith.constant 0 : index
    %1018 = vector.load %arg21[%c0_483, %c0_484, %c0_485] : memref<8x2x128xf32, #tpu.memory_space<vmem>>, vector<1x2x128xf32>
    %1019 = vector.shape_cast %1018 : vector<1x2x128xf32> to vector<2x128xf32>
    %cst_486 = arith.constant dense<0.000000e+00> : vector<2x128xf32>
    %1020 = tpu.matmul %1007, %493, %cst_486 {dimension_numbers = #tpu.dot_dimension_numbers<[1], [0], [0], [1], [0, 0, 1, 1], [], []>} : vector<2x32xf32>, vector<32x128xf32>, vector<2x128xf32> -> vector<2x128xf32>
    %1021 = arith.addf %1019, %1020 : vector<2x128xf32>
    %1022 = vector.extract_strided_slice %1017 {offsets = [0, 0], sizes = [2, 96], strides = [1, 1]} : vector<2x128xf32> to vector<2x96xf32>
    %1023 = arith.negf %1022 : vector<2x96xf32>
    %1024 = math.exp %1023 : vector<2x96xf32>
    %cst_487 = arith.constant 1.000000e+00 : f32
    %1025 = vector.broadcast %cst_487 : f32 to vector<2x96xf32>
    %1026 = arith.addf %1025, %1024 : vector<2x96xf32>
    %1027 = arith.divf %1025, %1026 : vector<2x96xf32>
    %1028 = vector.extract_strided_slice %1021 {offsets = [0, 0], sizes = [2, 96], strides = [1, 1]} : vector<2x128xf32> to vector<2x96xf32>
    %1029 = arith.negf %1028 : vector<2x96xf32>
    %1030 = math.exp %1029 : vector<2x96xf32>
    %cst_488 = arith.constant 1.000000e+00 : f32
    %1031 = vector.broadcast %cst_488 : f32 to vector<2x96xf32>
    %1032 = arith.addf %1031, %1030 : vector<2x96xf32>
    %1033 = arith.divf %1031, %1032 : vector<2x96xf32>
    %1034 = vector.extract_strided_slice %1017 {offsets = [0, 96], sizes = [2, 32], strides = [1, 1]} : vector<2x128xf32> to vector<2x32xf32>
    %1035 = math.tanh %1034 : vector<2x32xf32>
    %1036 = vector.extract_strided_slice %1021 {offsets = [0, 96], sizes = [2, 32], strides = [1, 1]} : vector<2x128xf32> to vector<2x32xf32>
    %1037 = math.tanh %1036 : vector<2x32xf32>
    %1038 = vector.extract_strided_slice %1027 {offsets = [0, 32], sizes = [2, 32], strides = [1, 1]} : vector<2x96xf32> to vector<2x32xf32>
    %1039 = arith.mulf %1038, %996 : vector<2x32xf32>
    %1040 = vector.extract_strided_slice %1027 {offsets = [0, 0], sizes = [2, 32], strides = [1, 1]} : vector<2x96xf32> to vector<2x32xf32>
    %1041 = arith.mulf %1040, %1035 : vector<2x32xf32>
    %1042 = arith.addf %1039, %1041 : vector<2x32xf32>
    %1043 = vector.extract_strided_slice %1033 {offsets = [0, 32], sizes = [2, 32], strides = [1, 1]} : vector<2x96xf32> to vector<2x32xf32>
    %1044 = arith.mulf %1043, %1001 : vector<2x32xf32>
    %1045 = vector.extract_strided_slice %1033 {offsets = [0, 0], sizes = [2, 32], strides = [1, 1]} : vector<2x96xf32> to vector<2x32xf32>
    %1046 = arith.mulf %1045, %1037 : vector<2x32xf32>
    %1047 = arith.addf %1044, %1046 : vector<2x32xf32>
    %1048 = vector.extract_strided_slice %1027 {offsets = [0, 64], sizes = [2, 32], strides = [1, 1]} : vector<2x96xf32> to vector<2x32xf32>
    %1049 = math.tanh %1042 : vector<2x32xf32>
    %1050 = arith.mulf %1048, %1049 : vector<2x32xf32>
    %1051 = vector.extract_strided_slice %1033 {offsets = [0, 64], sizes = [2, 32], strides = [1, 1]} : vector<2x96xf32> to vector<2x32xf32>
    %1052 = math.tanh %1047 : vector<2x32xf32>
    %1053 = arith.mulf %1051, %1052 : vector<2x32xf32>
    %c7_489 = arith.constant 7 : index
    %c0_490 = arith.constant 0 : index
    %c0_491 = arith.constant 0 : index
    %1054 = vector.load %arg22[%c7_489, %c0_490, %c0_491] : memref<8x2x32xf32, #tpu.memory_space<vmem>>, vector<1x2x32xf32>
    %1055 = vector.shape_cast %1054 : vector<1x2x32xf32> to vector<2x32xf32>
    %1056 = vector.shape_cast %1050 : vector<2x32xf32> to vector<1x2x32xf32>
    tpu.vector_store %arg22[%c7_489, %c0_490, %c0_491], %1056 {strides = array<i32>} : memref<8x2x32xf32, #tpu.memory_space<vmem>>, vector<1x2x32xf32>,
    %c0_492 = arith.constant 0 : index
    %c0_493 = arith.constant 0 : index
    %c0_494 = arith.constant 0 : index
    %1057 = vector.load %arg23[%c0_492, %c0_493, %c0_494] : memref<8x2x32xf32, #tpu.memory_space<vmem>>, vector<1x2x32xf32>
    %1058 = vector.shape_cast %1057 : vector<1x2x32xf32> to vector<2x32xf32>
    %1059 = vector.shape_cast %1053 : vector<2x32xf32> to vector<1x2x32xf32>
    tpu.vector_store %arg23[%c0_492, %c0_493, %c0_494], %1059 {strides = array<i32>} : memref<8x2x32xf32, #tpu.memory_space<vmem>>, vector<1x2x32xf32>,
    %c0_495 = arith.constant 0 : index
    %c0_496 = arith.constant 0 : index
    %c0_497 = arith.constant 0 : index
    %1060 = vector.load %arg22[%c0_495, %c0_496, %c0_497] : memref<8x2x32xf32, #tpu.memory_space<vmem>>, vector<8x2x32xf32>
    %c0_498 = arith.constant 0 : index
    %c0_499 = arith.constant 0 : index
    %c0_500 = arith.constant 0 : index
    %1061 = vector.load %arg23[%c0_498, %c0_499, %c0_500] : memref<8x2x32xf32, #tpu.memory_space<vmem>>, vector<8x2x32xf32>
    %c0_501 = arith.constant 0 : index
    %c0_502 = arith.constant 0 : index
    %1062 = vector.load %arg13[%c0_501, %c0_502] : memref<1x64xf32, #tpu.memory_space<vmem>>, vector<1x64xf32>
    %1063 = vector.extract_strided_slice %1062 {offsets = [0, 0], sizes = [1, 32], strides = [1, 1]} : vector<1x64xf32> to vector<1x32xf32>
    %1064 = vector.shape_cast %1063 : vector<1x32xf32> to vector<1x1x32xf32>
    %1065 = vector.extract_strided_slice %1062 {offsets = [0, 32], sizes = [1, 32], strides = [1, 1]} : vector<1x64xf32> to vector<1x32xf32>
    %1066 = vector.shape_cast %1065 : vector<1x32xf32> to vector<1x1x32xf32>
    %c0_503 = arith.constant 0 : index
    %c0_504 = arith.constant 0 : index
    %1067 = vector.load %arg14[%c0_503, %c0_504] : memref<1x1xf32, #tpu.memory_space<vmem>>, vector<1x1xf32>
    %1068 = vector.broadcast %1064 : vector<1x1x32xf32> to vector<8x2x32xf32>
    %1069 = arith.mulf %1060, %1068 : vector<8x2x32xf32>
    %cst_505 = arith.constant dense<0.000000e+00> : vector<8x2xf32>
    %1070 = vector.multi_reduction <add>, %1069, %cst_505 [2] : vector<8x2x32xf32> to vector<8x2xf32>
    %1071 = vector.shape_cast %1070 : vector<8x2xf32> to vector<8x2x1xf32>
    %1072 = vector.broadcast %1066 : vector<1x1x32xf32> to vector<8x2x32xf32>
    %1073 = arith.mulf %1061, %1072 : vector<8x2x32xf32>
    %cst_506 = arith.constant dense<0.000000e+00> : vector<8x2xf32>
    %1074 = vector.multi_reduction <add>, %1073, %cst_506 [2] : vector<8x2x32xf32> to vector<8x2xf32>
    %1075 = vector.shape_cast %1074 : vector<8x2xf32> to vector<8x2x1xf32>
    %1076 = arith.addf %1071, %1075 : vector<8x2x1xf32>
    %1077 = vector.shape_cast %1067 : vector<1x1xf32> to vector<1x1x1xf32>
    %1078 = vector.broadcast %1077 : vector<1x1x1xf32> to vector<8x2x1xf32>
    %1079 = arith.addf %1076, %1078 : vector<8x2x1xf32>
    %cst_507 = arith.constant dense<0xFF800000> : vector<2x1xf32>
    %1080 = vector.multi_reduction <maximumf>, %1079, %cst_507 [0] : vector<8x2x1xf32> to vector<2x1xf32>
    %1081 = vector.shape_cast %1080 : vector<2x1xf32> to vector<1x2x1xf32>
    %1082 = vector.broadcast %1081 : vector<1x2x1xf32> to vector<8x2x1xf32>
    %1083 = arith.subf %1079, %1082 : vector<8x2x1xf32>
    %1084 = math.exp %1083 : vector<8x2x1xf32>
    %cst_508 = arith.constant dense<0.000000e+00> : vector<2x1xf32>
    %1085 = vector.multi_reduction <add>, %1084, %cst_508 [0] : vector<8x2x1xf32> to vector<2x1xf32>
    %1086 = vector.shape_cast %1085 : vector<2x1xf32> to vector<1x2x1xf32>
    %1087 = vector.broadcast %1086 : vector<1x2x1xf32> to vector<8x2x1xf32>
    %1088 = arith.divf %1084, %1087 : vector<8x2x1xf32>
    %1089 = vector.broadcast %1088 : vector<8x2x1xf32> to vector<8x2x32xf32>
    %1090 = arith.mulf %1089, %1060 : vector<8x2x32xf32>
    %cst_509 = arith.constant dense<0.000000e+00> : vector<2x32xf32>
    %1091 = vector.multi_reduction <add>, %1090, %cst_509 [0] : vector<8x2x32xf32> to vector<2x32xf32>
    %1092 = vector.broadcast %1088 : vector<8x2x1xf32> to vector<8x2x32xf32>
    %1093 = arith.mulf %1092, %1061 : vector<8x2x32xf32>
    %cst_510 = arith.constant dense<0.000000e+00> : vector<2x32xf32>
    %1094 = vector.multi_reduction <add>, %1093, %cst_510 [0] : vector<8x2x32xf32> to vector<2x32xf32>
    %c0_511 = arith.constant 0 : index
    %c0_512 = arith.constant 0 : index
    %1095 = vector.load %arg15[%c0_511, %c0_512] : memref<64x32xf32, #tpu.memory_space<vmem>>, vector<32x32xf32>
    %cst_513 = arith.constant dense<0.000000e+00> : vector<2x32xf32>
    %1096 = tpu.matmul %1091, %1095, %cst_513 {dimension_numbers = #tpu.dot_dimension_numbers<[1], [0], [0], [1], [0, 0, 1, 1], [], []>} : vector<2x32xf32>, vector<32x32xf32>, vector<2x32xf32> -> vector<2x32xf32>
    %c32 = arith.constant 32 : index
    %c0_514 = arith.constant 0 : index
    %1097 = vector.load %arg15[%c32, %c0_514] : memref<64x32xf32, #tpu.memory_space<vmem>>, vector<32x32xf32>
    %cst_515 = arith.constant dense<0.000000e+00> : vector<2x32xf32>
    %1098 = tpu.matmul %1094, %1097, %cst_515 {dimension_numbers = #tpu.dot_dimension_numbers<[1], [0], [0], [1], [0, 0, 1, 1], [], []>} : vector<2x32xf32>, vector<32x32xf32>, vector<2x32xf32> -> vector<2x32xf32>
    %1099 = arith.addf %1096, %1098 : vector<2x32xf32>
    %c0_516 = arith.constant 0 : index
    %c0_517 = arith.constant 0 : index
    %1100 = vector.load %arg16[%c0_516, %c0_517] : memref<1x32xf32, #tpu.memory_space<vmem>>, vector<1x32xf32>
    %1101 = vector.broadcast %1100 : vector<1x32xf32> to vector<2x32xf32>
    %1102 = arith.addf %1099, %1101 : vector<2x32xf32>
    %cst_518 = arith.constant 0.000000e+00 : f32
    %1103 = vector.broadcast %cst_518 : f32 to vector<2x32xf32>
    %1104 = arith.maximumf %1102, %1103 : vector<2x32xf32>
    %c0_519 = arith.constant 0 : index
    %c0_520 = arith.constant 0 : index
    %1105 = vector.load %arg17[%c0_519, %c0_520] : memref<32x128xf32, #tpu.memory_space<vmem>>, vector<32x128xf32>
    %cst_521 = arith.constant dense<0.000000e+00> : vector<2x128xf32>
    %1106 = tpu.matmul %1104, %1105, %cst_521 {dimension_numbers = #tpu.dot_dimension_numbers<[1], [0], [0], [1], [0, 0, 1, 1], [], []>} : vector<2x32xf32>, vector<32x128xf32>, vector<2x128xf32> -> vector<2x128xf32>
    %c0_522 = arith.constant 0 : index
    %c0_523 = arith.constant 0 : index
    %1107 = vector.load %arg18[%c0_522, %c0_523] : memref<1x128xf32, #tpu.memory_space<vmem>>, vector<1x128xf32>
    %1108 = vector.broadcast %1107 : vector<1x128xf32> to vector<2x128xf32>
    %1109 = arith.addf %1106, %1108 : vector<2x128xf32>
    %c0_524 = arith.constant 0 : index
    %c0_525 = arith.constant 0 : index
    %1110 = vector.load %arg19[%c0_524, %c0_525] : memref<2x128xf32, #tpu.memory_space<vmem>>, vector<2x128xf32>
    tpu.vector_store %arg19[%c0_524, %c0_525], %1109 {strides = array<i32>} : memref<2x128xf32, #tpu.memory_space<vmem>>, vector<2x128xf32>,
    return
  }
}

</mosaic_0001>

<bundles_post_ra>
// kernel: attention_lstm_forward.1
= control target key start
LH: loop header
LB: loop body
LE: loop exit
PB: predicated region body
PF: predicated region fallthrough
CT: control target
= control target key end

     0   :  { %s11092_s0 = inlined_call_operand.vmem [shape: f32[8,2,16], index: 0, kind: input, shape index: {}]   ;;  %s11093_s1 = inlined_call_operand.hbm [shape: f32[16,128], index: 1, kind: input, shape index: {}]   ;;  %s11094_s2 = inlined_call_operand.hbm [shape: f32[16,128], index: 2, kind: input, shape index: {}]   ;;  %s11095_s3 = inlined_call_operand.hbm [shape: f32[32,128], index: 3, kind: input, shape index: {}]   ;;  %s11096_s4 = inlined_call_operand.hbm [shape: f32[32,128], index: 4, kind: input, shape index: {}]   ;;  %s11097_s5 = inlined_call_operand.vmem [shape: f32[1,128], index: 5, kind: input, shape index: {}]   ;;  %s11098_s6 = inlined_call_operand.vmem [shape: f32[1,128], index: 6, kind: input, shape index: {}]   ;;  %s11099_s7 = inlined_call_operand.vmem [shape: f32[64,128], index: 7, kind: input, shape index: {}]   ;;  %s11100_s8 = inlined_call_operand.vmem [shape: f32[64,128], index: 8, kind: input, shape index: {}]   ;;  %s11101_s9 = inlined_call_operand.hbm [shape: f32[32,128], index: 9, kind: input, shape index: {}]   ;;  %s11102_s10 = inlined_call_operand.hbm [shape: f32[32,128], index: 10, kind: input, shape index: {}]   ;;  %s11103_s11 = inlined_call_operand.vmem [shape: f32[1,128], index: 11, kind: input, shape index: {}]   ;;  %s11104_s12 = inlined_call_operand.vmem [shape: f32[1,128], index: 12, kind: input, shape index: {}]   ;;  %s11105_s13 = inlined_call_operand.hbm [shape: f32[1,64], index: 13, kind: input, shape index: {}]   ;;  %s11106_s14 = inlined_call_operand.<no memory space> [shape: f32[1,1], index: 14, kind: input, shape index: {}]   ;;  %s11107_s15 = inlined_call_operand.vmem [shape: f32[64,32], index: 15, kind: input, shape index: {}]   ;;  %s11108_s16 = inlined_call_operand.vmem [shape: f32[1,32], index: 16, kind: input, shape index: {}]   ;;  %s11109_s17 = inlined_call_operand.hbm [shape: f32[32,128], index: 17, kind: input, shape index: {}]   ;;  %s11110_s18 = inlined_call_operand.vmem [shape: f32[1,128], index: 18, kind: input, shape index: {}]   ;;  %s11111_s19 = inlined_call_operand.hbm [shape: f32[2,128], index: 19, kind: output, shape index: {}]  }
   0x1   :  { %11113 = sst [smem:[#allocation28_spill]] %s11092_s0  ;;  %v24_v0 = vstv %s11106_s14 }
   0x2   :  { %11114 = sst [smem:[#allocation29_spill]] %s11093_s1  ;;  %25 = vst [vmem:[#allocation6] sm:$0x1] %v24_v0 }
   0x3   :  { %11115 = sst [smem:[#allocation30_spill]] %s11094_s2 }
   0x4   :  { %11116 = sst [smem:[#allocation31_spill]] %s11095_s3 }
   0x5   :  { %26 = vsyncpa [#allocation8], 0 }
   0x6   :  { %27 = vsyncpa [#allocation11], 0 }
   0x7   :  { %28 = vsyncpa [#allocation14], 0 }
   0x8   :  { %29 = vsyncpa [#allocation17], 0 }
   0x9   :  { %30 = vsyncpa [#allocation20], 0 }
   0xa   :  { %31 = vsyncpa [#allocation9], 0  ;;  %s9458_s20 = smov [#allocation10]   ;;  %s9459_s1 = smov [#allocation13]  }
   0xb   :  { %s51_s21 = sshll.u32 %s9458_s20, 4  ;;  %s75_s22 = sshll.u32 %s9459_s1, 4  ;;  %s52_s21 = int_to_ptr.vmem [resolvable:$true] %s51_s21  ;;  %s76_s22 = int_to_ptr.vmem [resolvable:$true] %s75_s22 }
   0xc   :  { %s9274_s2 = scalar_lea.vmem %s52_s21, 256  ;;  %p9279_p1 = scmp.lt.s32.totalorder %s52_s21, %s52_s21 }
   0xd   :  { %p9275_p0 = scmp.ne.s32.totalorder %s52_s21, %s9274_s2  ;;  %p9280_p2 = scmp.lt.s32.totalorder %s9274_s2, %s9274_s2 }
   0xf   :  { %p9281_p3 = por %p9280_p2, %p9279_p1 }
  0x11   :  { %p9282_p4 = pnand %p9281_p3, %p9275_p0 }
  0x13   :  { %9285 = shalt.err (!%p9282_p4)
}
  0x14   :  { %s9460_s14 = smov 128   ;;  %s9461_s23 = smov 8  }
  0x15   :  { %s11117_s3 = sld [smem:[#allocation30_spill]]  ;;  %s9294_s26 = scalar_lea.vmem %s76_s22, 512 }
  0x16   :  { %p9295_p5 = scmp.ne.s32.totalorder %s76_s22, %s9294_s26  ;;  %p9299_p6 = scmp.lt.s32.totalorder %s76_s22, %s76_s22 }
  0x17   :  { %p9300_p7 = scmp.lt.s32.totalorder %s9294_s26, %s9294_s26 }
  0x19   :  { %p9301_p8 = por %p9300_p7, %p9299_p6 }
  0x1b   :  { %57 = dma.hbm_to_vmem [thread:$0]  %s11117_s3, 256, %s52_s21, [#allocation11], %s9460_s14, %s9460_s14, %s9461_s23  }
  0x1c   :  { %p9302_p9 = pnand %p9301_p8, %p9295_p5 }
  0x1e   :  { %9305 = shalt.err (!%p9302_p9)
}
  0x1f   :  { %81 = dma.hbm_to_vmem [thread:$0]  %s11096_s4, 512, %s76_s22, [#allocation14], %s9460_s14, %s9460_s14, %s9461_s23  }
  0x20   :  { %s9462_s29 = smov [#allocation16]   ;;  %s9463_s30 = smov [#allocation7]  }
  0x21   :  { %s107_s0 = sshll.u32 %s9462_s29, 4  ;;  %s39_s20 = sshll.u32 %s9463_s30, 4  ;;  %s108_s0 = int_to_ptr.vmem [resolvable:$true] %s107_s0  ;;  %s40_s20 = int_to_ptr.vmem [resolvable:$true] %s39_s20 }
  0x22   :  { %s9314_s21 = scalar_lea.vmem %s108_s0, 512  ;;  %p9319_p11 = scmp.lt.s32.totalorder %s108_s0, %s108_s0 }
  0x23   :  { %p9315_p10 = scmp.ne.s32.totalorder %s108_s0, %s9314_s21  ;;  %p9320_p12 = scmp.lt.s32.totalorder %s9314_s21, %s9314_s21 }
  0x25   :  { %p9321_p13 = por %p9320_p12, %p9319_p11 }
  0x27   :  { %p9322_p0 = pnand %p9321_p13, %p9315_p10 }
  0x29   :  { %9325 = shalt.err (!%p9322_p0)
}
  0x2a   :  { %113 = dma.hbm_to_vmem [thread:$0]  %s11102_s10, 512, %s108_s0, [#allocation17], %s9460_s14, %s9460_s14, %s9461_s23  }
  0x2b   :  { %s9334_s4 = scalar_lea.vmem %s40_s20, 256  ;;  %p9339_p2 = scmp.lt.s32.totalorder %s40_s20, %s40_s20 }
  0x2c   :  { %p9335_p1 = scmp.ne.s32.totalorder %s40_s20, %s9334_s4  ;;  %p9340_p3 = scmp.lt.s32.totalorder %s9334_s4, %s9334_s4 }
  0x2e   :  { %p9341_p4 = por %p9340_p3, %p9339_p2 }
  0x30   :  { %p9342_p5 = pnand %p9341_p4, %p9335_p1 }
  0x32   :  { %9345 = shalt.err (!%p9342_p5)
}
  0x33   :  { %s11118_s25 = sld [smem:[#allocation29_spill]]  ;;  %s9464_s3 = smov [#allocation12]  }
  0x34   :  { %s63_s26 = sshll.u32 %s9464_s3, 4  ;;  %s9465_s27 = smov [#allocation15]   ;;  %s64_s26 = int_to_ptr.vmem [resolvable:$true] %s63_s26 }
  0x35   :  { %s95_s28 = sshll.u32 %s9465_s27, 4  ;;  %s9354_s10 = scalar_lea.vmem %s64_s26, 512  ;;  %s96_s28 = int_to_ptr.vmem [resolvable:$true] %s95_s28 }
  0x36   :  { %p9355_p6 = scmp.ne.s32.totalorder %s64_s26, %s9354_s10  ;;  %p9359_p7 = scmp.lt.s32.totalorder %s64_s26, %s64_s26 }
  0x37   :  { %p9360_p8 = scmp.lt.s32.totalorder %s9354_s10, %s9354_s10 }
  0x39   :  { %45 = dma.hbm_to_vmem [thread:$0]  %s11118_s25, 256, %s40_s20, [#allocation8], %s9460_s14, %s9460_s14, %s9461_s23  }
  0x3a   :  { %p9361_p9 = por %p9360_p8, %p9359_p7 }
  0x3c   :  { %p9362_p10 = pnand %p9361_p9, %p9355_p6 }
  0x3e   :  { %9365 = shalt.err (!%p9362_p10)
}
  0x3f   :  { %s11119_s30 = sld [smem:[#allocation31_spill]]  ;;  %s9374_s20 = scalar_lea.vmem %s96_s28, 512 }
  0x40   :  { %p9375_p11 = scmp.ne.s32.totalorder %s96_s28, %s9374_s20  ;;  %p9379_p12 = scmp.lt.s32.totalorder %s96_s28, %s96_s28 }
  0x41   :  { %p9380_p13 = scmp.lt.s32.totalorder %s9374_s20, %s9374_s20 }
  0x43   :  { %p9381_p0 = por %p9380_p13, %p9379_p12 }
  0x45   :  { %69 = dma.hbm_to_vmem [thread:$0]  %s11119_s30, 512, %s64_s26, [#allocation11], %s9460_s14, %s9460_s14, %s9461_s23  }
  0x46   :  { %p9382_p1 = pnand %p9381_p0, %p9375_p11 }
  0x48   :  { %9385 = shalt.err (!%p9382_p1)
}
  0x49   :  { %101 = dma.hbm_to_vmem [thread:$0]  %s11101_s9, 512, %s96_s28, [#allocation14], %s9460_s14, %s9460_s14, %s9461_s23  }
  0x4a   :  { %s9466_s2 = smov [#allocation18]   ;;  %s9467_s22 = smov [#allocation19]  }
  0x4b   :  { %s124_s4 = sshll.u32 %s9466_s2, 4  ;;  %s139_s24 = sshll.u32 %s9467_s22, 4  ;;  %s125_s4 = int_to_ptr.vmem [resolvable:$true] %s124_s4  ;;  %s140_s24 = int_to_ptr.vmem [resolvable:$true] %s139_s24 }
  0x4c   :  { %s9394_s25 = scalar_lea.vmem %s125_s4, 16  ;;  %s9398_s3 = scalar_lea.vmem %s125_s4, 32 }
  0x4d   :  { %p9395_p2 = scmp.ne.s32.totalorder %s125_s4, %s9394_s25  ;;  %p9399_p3 = scmp.lt.s32.totalorder %s125_s4, %s125_s4 }
  0x4e   :  { %p9400_p4 = scmp.lt.s32.totalorder %s9398_s3, %s9394_s25 }
  0x50   :  { %p9401_p5 = por %p9400_p4, %p9399_p3 }
  0x52   :  { %p9402_p6 = pnand %p9401_p5, %p9395_p2 }
  0x54   :  { %9405 = shalt.err (!%p9402_p6)
}
  0x55   :  { %127 = dma.hbm_to_vmem [thread:$0]  %s11105_s13, 16, %s125_s4, [#allocation17]  }
  0x56   :  { %s9414_s10 = scalar_lea.vmem %s140_s24, 512  ;;  %p9419_p8 = scmp.lt.s32.totalorder %s140_s24, %s140_s24 }
  0x57   :  { %p9415_p7 = scmp.ne.s32.totalorder %s140_s24, %s9414_s10  ;;  %p9420_p9 = scmp.lt.s32.totalorder %s9414_s10, %s9414_s10 }
  0x59   :  { %p9421_p10 = por %p9420_p9, %p9419_p8 }
  0x5b   :  { %p9422_p11 = pnand %p9421_p10, %p9415_p7 }
  0x5d   :  { %9425 = shalt.err (!%p9422_p11)
}
  0x5e   :  { %145 = dma.hbm_to_vmem [thread:$0]  %s11109_s17, 512, %s140_s24, [#allocation20], %s9460_s14, %s9460_s14, %s9461_s23  }
  0x5f   :  { %9446 = dma.done.wait [#allocation8], 256  }
  0x60   :  { %9447 = vsyncadd [#allocation8], 4294967040 }
  0x61   :  { %9448 = dma.done.wait [#allocation11], 768  }
  0x62   :  { %9449 = vsyncadd [#allocation11], 4294966528 }
  0x63   :  { %9450 = dma.done.wait [#allocation14], 1024  }
  0x64   :  { %9451 = vsyncadd [#allocation14], 4294966272 }
  0x65   :  { %9452 = dma.done.wait [#allocation17], 528  }
  0x66   :  { %9453 = vsyncadd [#allocation17], 4294966768 }
  0x67   :  { %9454 = dma.done.wait [#allocation20], 512  }
  0x68   :  { %9455 = vsyncadd [#allocation20], 4294966784  ;;  %v9468_v1 = vmov 0.0   ;;  %vm9469_vm0 = vmmov 0   ;;  %v9629_v2 = vld [vmem:[#allocation7 + $0x8] sm:$0xff]  ;;  %v9631_v3 = vld [vmem:[#allocation7] sm:$0xff] }
  0x69   :  { %8108 = vmatprep.subr.mxu1 %v9468_v1  ;;  %8122 = vmatprep.subr.mxu0 %v9468_v1  ;;  %s11120_s14 = sld [smem:[#allocation28_spill]]  ;;  %vm193_vm1 = vcmask 130048   ;;  %v9640_v5 = vld [vmem:[#allocation10 + $0x8] sm:$0xff]  ;;  %v9649_v7 = vld [vmem:[#allocation10] sm:$0xff]  ;;  %v9766_v16 = vld [vmem:[#allocation12 + $0x8] sm:$0xff]  ;;  %vm1588_vm2 = vcmask 254976  }
  0x6a   :  { %8112 = vmatprep.mubr.msk.f32.mxu1 %vm9469_vm0, %v9468_v1  ;;  %8126 = vmatprep.mubr.msk.f32.mxu0 %vm9469_vm0, %v9468_v1  ;;  %v9753_v14 = vld [vmem:[#allocation12 + $0x18] sm:$0xff]  ;;  %v9759_v15 = vld [vmem:[#allocation12 + $0x10] sm:$0xff]  ;;  %v9774_v17 = vld [vmem:[#allocation12] sm:$0xff]  ;;  %vm1389_vm3 = vcmask 261120   ;;  %vm7182_vm4 = vcmask 1024   ;;  %s9474_s20 = smov [#allocation21]  }
  0x6b   :  { %8109 = vmatpush3.msra.mxu1 %v9629_v2  ;;  %8123 = vmatpush3.msra.mxu0 %v9629_v2  ;;  %v9784_v18 = vld [vmem:[#allocation13 + $0x18] sm:$0xff]  ;;  %v9789_v19 = vld [vmem:[#allocation13 + $0x10] sm:$0xff]  ;;  %v9796_v20 = vld [vmem:[#allocation13 + $0x8] sm:$0xff]  ;;  %s7586_s21 = sshll.u32 %s9474_s20, 4  ;;  %s7587_s21 = int_to_ptr.vmem [resolvable:$true] %s7586_s21 }
  0x6c   :  { %8110 = vmatprep.subr.mxu1 %v9468_v1  ;;  %8124 = vmatprep.subr.mxu0 %v9468_v1  ;;  %v9802_v21 = vld [vmem:[#allocation13] sm:$0xff]  ;;  %v7599_v22 = vld [vmem:[%s11097_s5] ss:$0 sm:$0xff]  ;;  %s9470_s5 = smov 32   ;;  %s9426_s1 = scalar_lea.vmem %s7587_s21, 32 }
  0x6d   :  { %8111 = vmatpush3.msra.mxu1 %v9631_v3  ;;  %8125 = vmatpush3.msra.mxu0 %v9631_v3  ;;  %v7601_v27 = vld [vmem:[%s11098_s6] ss:$0 sm:$0xff]  ;;  %s9471_s6 = smov 64   ;;  %p9427_p12 = scmp.ne.s32.totalorder %s7587_s21, %s9426_s1 }
  0x6e   :  { %8115 = vmatprep.subr.mxu1 %v9468_v1  ;;  %8136 = vmatprep.subr.mxu0 %v9468_v1  ;;  %p9431_p13 = scmp.lt.s32.totalorder %s7587_s21, %s7587_s21  ;;  %p9432_p0 = scmp.lt.s32.totalorder %s9426_s1, %s9426_s1 }
  0x6f   :  { %v186_v4 = vld [vmem:[%s11120_s14] sm:$0x3]  ;;  %v7603_v6 = vld [vmem:[%s11120_s14 + $0x2] sm:$0x3]  ;;  %v7606_v8 = vld [vmem:[%s11120_s14 + $0x4] sm:$0x3] }
  0x70   :  { %8113 = vmatmul.mubr.msk.f32.vlgmr.msra.gmra.mxu1 %vm193_vm1, %v186_v4  ;;  %8127 = vmatmul.mubr.msk.f32.vlgmr.msra.gmra.mxu0 %vm193_vm1, %v7603_v6  ;;  %v7609_v9 = vld [vmem:[%s11120_s14 + $0x6] sm:$0x3]  ;;  %v7612_v10 = vld [vmem:[%s11120_s14 + $0x8] sm:$0x3]  ;;  %v7615_v11 = vld [vmem:[%s11120_s14 + $0xa] sm:$0x3]  ;;  %p9433_p1 = por %p9432_p0, %p9431_p13 }
  0x71   :  { %8116 = vmatpush3.msra.mxu1 %v9640_v5  ;;  %8137 = vmatpush3.msra.mxu0 %v9629_v2  ;;  %v7618_v12 = vld [vmem:[%s11120_s14 + $0xc] sm:$0x3]  ;;  %v7621_v13 = vld [vmem:[%s11120_s14 + $0xe] sm:$0x3] }
  0x72   :  { %8117 = vmatprep.subr.mxu1 %v9468_v1  ;;  %8138 = vmatprep.subr.mxu0 %v9468_v1  ;;  %p9434_p2 = pnand %p9433_p1, %p9427_p12 }
  0x73   :  { %8118 = vmatpush3.msra.mxu1 %v9649_v7  ;;  %8119 = vmatprep.mubr.msk.f32.mxu1 %vm9469_vm0, %v9468_v1 }
  0x74   :  { %8139 = vmatpush3.msra.mxu0 %v9631_v3  ;;  %8120 = vmatmul.mubr.msk.f32.vlgmr.msra.gmra.mxu1 %vm193_vm1, %v186_v4 }
  0x75   :  { %8129 = vmatprep.subr.mxu1 %v9468_v1  ;;  %8140 = vmatprep.mubr.msk.f32.mxu0 %vm9469_vm0, %v9468_v1 }
  0x76   :  { %8150 = vmatprep.subr.mxu0 %v9468_v1  ;;  %8130 = vmatpush3.msra.mxu1 %v9640_v5 }
  0x77   :  { %8141 = vmatmul.mubr.msk.f32.vlgmr.msra.gmra.mxu0 %vm193_vm1, %v7606_v8  ;;  %8131 = vmatprep.subr.mxu1 %v9468_v1 }
  0x78   :  { %8151 = vmatpush3.msra.mxu0 %v9629_v2  ;;  %8132 = vmatpush3.msra.mxu1 %v9649_v7 }
  0x79   :  { %8152 = vmatprep.subr.mxu0 %v9468_v1  ;;  %8133 = vmatprep.mubr.msk.f32.mxu1 %vm9469_vm0, %v9468_v1 }
  0x7a   :  { %8153 = vmatpush3.msra.mxu0 %v9631_v3  ;;  %8134 = vmatmul.mubr.msk.f32.vlgmr.msra.gmra.mxu1 %vm193_vm1, %v7603_v6 }
  0x7b   :  { %8143 = vmatprep.subr.mxu1 %v9468_v1  ;;  %8154 = vmatprep.mubr.msk.f32.mxu0 %vm9469_vm0, %v9468_v1 }
  0x7c   :  { %8164 = vmatprep.subr.mxu0 %v9468_v1  ;;  %8144 = vmatpush3.msra.mxu1 %v9640_v5 }
  0x7d   :  { %8155 = vmatmul.mubr.msk.f32.vlgmr.msra.gmra.mxu0 %vm193_vm1, %v7609_v9  ;;  %8145 = vmatprep.subr.mxu1 %v9468_v1 }
  0x7e   :  { %8165 = vmatpush3.msra.mxu0 %v9629_v2  ;;  %8146 = vmatpush3.msra.mxu1 %v9649_v7 }
  0x7f   :  { %8166 = vmatprep.subr.mxu0 %v9468_v1  ;;  %8147 = vmatprep.mubr.msk.f32.mxu1 %vm9469_vm0, %v9468_v1 }
  0x80   :  { %8167 = vmatpush3.msra.mxu0 %v9631_v3  ;;  %8148 = vmatmul.mubr.msk.f32.vlgmr.msra.gmra.mxu1 %vm193_vm1, %v7606_v8 }
  0x81   :  { %8157 = vmatprep.subr.mxu1 %v9468_v1  ;;  %8168 = vmatprep.mubr.msk.f32.mxu0 %vm9469_vm0, %v9468_v1 }
  0x82   :  { %8178 = vmatprep.subr.mxu0 %v9468_v1  ;;  %8158 = vmatpush3.msra.mxu1 %v9640_v5 }
  0x83   :  { %8169 = vmatmul.mubr.msk.f32.vlgmr.msra.gmra.mxu0 %vm193_vm1, %v7612_v10  ;;  %8159 = vmatprep.subr.mxu1 %v9468_v1 }
  0x84   :  { %8179 = vmatpush3.msra.mxu0 %v9629_v2  ;;  %8160 = vmatpush3.msra.mxu1 %v9649_v7 }
  0x85   :  { %8180 = vmatprep.subr.mxu0 %v9468_v1  ;;  %8161 = vmatprep.mubr.msk.f32.mxu1 %vm9469_vm0, %v9468_v1 }
  0x86   :  { %8181 = vmatpush3.msra.mxu0 %v9631_v3  ;;  %8162 = vmatmul.mubr.msk.f32.vlgmr.msra.gmra.mxu1 %vm193_vm1, %v7609_v9 }
  0x87   :  { %8171 = vmatprep.subr.mxu1 %v9468_v1  ;;  %8182 = vmatprep.mubr.msk.f32.mxu0 %vm9469_vm0, %v9468_v1 }
  0x88   :  { %8192 = vmatprep.subr.mxu0 %v9468_v1  ;;  %8172 = vmatpush3.msra.mxu1 %v9640_v5 }
  0x89   :  { %8183 = vmatmul.mubr.msk.f32.vlgmr.msra.gmra.mxu0 %vm193_vm1, %v7615_v11  ;;  %8173 = vmatprep.subr.mxu1 %v9468_v1 }
  0x8a   :  { %8193 = vmatpush3.msra.mxu0 %v9629_v2  ;;  %8174 = vmatpush3.msra.mxu1 %v9649_v7 }
  0x8b   :  { %8194 = vmatprep.subr.mxu0 %v9468_v1  ;;  %8175 = vmatprep.mubr.msk.f32.mxu1 %vm9469_vm0, %v9468_v1 }
  0x8c   :  { %8195 = vmatpush3.msra.mxu0 %v9631_v3  ;;  %8176 = vmatmul.mubr.msk.f32.vlgmr.msra.gmra.mxu1 %vm193_vm1, %v7612_v10 }
  0x8d   :  { %8185 = vmatprep.subr.mxu1 %v9468_v1  ;;  %8196 = vmatprep.mubr.msk.f32.mxu0 %vm9469_vm0, %v9468_v1 }
  0x8e   :  { %8206 = vmatprep.subr.mxu0 %v9468_v1  ;;  %8186 = vmatpush3.msra.mxu1 %v9640_v5 }
  0x8f   :  { %8197 = vmatmul.mubr.msk.f32.vlgmr.msra.gmra.mxu0 %vm193_vm1, %v7618_v12  ;;  %8187 = vmatprep.subr.mxu1 %v9468_v1 }
  0x90   :  { %8207 = vmatpush3.msra.mxu0 %v9629_v2  ;;  %8188 = vmatpush3.msra.mxu1 %v9649_v7 }
  0x91   :  { %8208 = vmatprep.subr.mxu0 %v9468_v1  ;;  %8189 = vmatprep.mubr.msk.f32.mxu1 %vm9469_vm0, %v9468_v1 }
  0x92   :  { %8209 = vmatpush3.msra.mxu0 %v9631_v3  ;;  %8190 = vmatmul.mubr.msk.f32.vlgmr.msra.gmra.mxu1 %vm193_vm1, %v7615_v11 }
  0x93   :  { %8199 = vmatprep.subr.mxu1 %v9468_v1  ;;  %8210 = vmatprep.mubr.msk.f32.mxu0 %vm9469_vm0, %v9468_v1 }
  0x94   :  { %8220 = vmatprep.subr.mxu0 %v9468_v1  ;;  %8200 = vmatpush3.msra.mxu1 %v9640_v5 }
  0x95   :  { %8211 = vmatmul.mubr.msk.f32.vlgmr.msra.gmra.mxu0 %vm193_vm1, %v7621_v13  ;;  %8201 = vmatprep.subr.mxu1 %v9468_v1 }
  0x96   :  { %8221 = vmatpush3.msra.mxu0 %v9753_v14  ;;  %8202 = vmatpush3.msra.mxu1 %v9649_v7 }
  0x97   :  { %8222 = vmatprep.subr.mxu0 %v9468_v1  ;;  %8203 = vmatprep.mubr.msk.f32.mxu1 %vm9469_vm0, %v9468_v1 }
  0x98   :  { %8223 = vmatpush3.msra.mxu0 %v9759_v15  ;;  %8204 = vmatmul.mubr.msk.f32.vlgmr.msra.gmra.mxu1 %vm193_vm1, %v7618_v12 }
  0x99   :  { %8213 = vmatprep.subr.mxu1 %v9468_v1  ;;  %8224 = vmatprep.subr.mxu0 %v9468_v1 }
  0x9a   :  { %8214 = vmatpush3.msra.mxu1 %v9640_v5  ;;  %8225 = vmatpush3.msra.mxu0 %v9766_v16 }
  0x9b   :  { %8215 = vmatprep.subr.mxu1 %v9468_v1  ;;  %8226 = vmatprep.subr.mxu0 %v9468_v1 }
  0x9c   :  { %8216 = vmatpush3.msra.mxu1 %v9649_v7  ;;  %8217 = vmatprep.mubr.msk.f32.mxu1 %vm9469_vm0, %v9468_v1 }
  0x9d   :  { %8227 = vmatpush3.msra.mxu0 %v9774_v17  ;;  %8228 = vmatprep.mubr.msk.f32.mxu0 %vm9469_vm0, %v9468_v1 }
  0x9e   :  { %8218 = vmatmul.mubr.msk.f32.vlgmr.msra.gmra.mxu1 %vm193_vm1, %v7621_v13  ;;  %8229 = vmatmul.mubr.f32.vlgmr.msra.gmra.mxu0 %v9468_v1 }
  0x9f   :  { %8231 = vmatprep.subr.mxu1 %v9468_v1  ;;  %8239 = vmatprep.mubr.msk.f32.mxu1 %vm9469_vm0, %v9468_v1 }
  0xa0   :  { %8232 = vmatpush3.msra.mxu1 %v9784_v18  ;;  %8242 = vmatprep.subr.mxu0 %v9468_v1 }
  0xa1   :  { %8233 = vmatprep.subr.mxu1 %v9468_v1  ;;  %8243 = vmatpush3.msra.mxu0 %v9753_v14 }
  0xa2   :  { %8234 = vmatpush3.msra.mxu1 %v9789_v19  ;;  %8244 = vmatprep.subr.mxu0 %v9468_v1 }
  0xa3   :  { %8235 = vmatprep.subr.mxu1 %v9468_v1  ;;  %8245 = vmatpush3.msra.mxu0 %v9759_v15 }
  0xa4   :  { %8236 = vmatpush3.msra.mxu1 %v9796_v20  ;;  %8246 = vmatprep.subr.mxu0 %v9468_v1 }
  0xa5   :  { %8237 = vmatprep.subr.mxu1 %v9468_v1  ;;  %8247 = vmatpush3.msra.mxu0 %v9766_v16 }
  0xa6   :  { %8238 = vmatpush3.msra.mxu1 %v9802_v21  ;;  %8248 = vmatprep.subr.mxu0 %v9468_v1 }
  0xa7   :  { %8240 = vmatmul.mubr.f32.vlgmr.msra.gmra.mxu1 %v9468_v1  ;;  %8253 = vmatprep.subr.mxu1 %v9468_v1 }
  0xa8   :  { %8254 = vmatpush3.msra.mxu1 %v9784_v18  ;;  %8261 = vmatprep.mubr.msk.f32.mxu1 %vm9469_vm0, %v9468_v1 }
  0xa9   :  { %8255 = vmatprep.subr.mxu1 %v9468_v1  ;;  %8249 = vmatpush3.msra.mxu0 %v9774_v17 }
  0xaa   :  { %8256 = vmatpush3.msra.mxu1 %v9789_v19  ;;  %8250 = vmatprep.mubr.msk.f32.mxu0 %vm9469_vm0, %v9468_v1 }
  0xab   :  { %8257 = vmatprep.subr.mxu1 %v9468_v1  ;;  %8264 = vmatprep.subr.mxu0 %v9468_v1 }
  0xac   :  { %8258 = vmatpush3.msra.mxu1 %v9796_v20 }
  0xad   :  { %8259 = vmatprep.subr.mxu1 %v9468_v1 }
  0xae   :  { %8260 = vmatpush3.msra.mxu1 %v9802_v21 }
  0xaf   :  { %8275 = vmatprep.subr.mxu1 %v9468_v1 }
 0x130   :  { %v263_v23 = vpop.f32.mrf.mxu1  ;;  %v416_v26 = vpop.f32.mrf.mxu0 }
 0x131   :  { %v264_v24 = vadd.f32 %v7599_v22, %v263_v23  ;;  %v417_v28 = vadd.f32 %v7599_v22, %v416_v26 }
 0x132   :  { %v8114_v25 = vpop.f32.mrf.mxu1  ;;  %v8128_v29 = vpop.f32.mrf.mxu0 }
 0x133   :  { %267 = vst [vmem:[#allocation2] sm:$0x3] %v264_v24  ;;  %421 = vst [vmem:[#allocation2 + $0x2] sm:$0x3] %v417_v28 }
 0x134   :  { %v340_v30 = vpop.f32.mrf.mxu1 }
 0x135   :  { %v341_v31 = vadd.f32 %v7601_v27, %v340_v30 }
 0x136   :  { %v8121_v32 = vpop.f32.mrf.mxu1 }
 0x137   :  { %344 = vst [vmem:[#allocation3] sm:$0x3] %v341_v31  ;;  %v565_v33 = vpop.f32.mrf.mxu0 }
 0x138   :  { %v566_v34 = vadd.f32 %v7599_v22, %v565_v33 }
 0x139   :  { %v8142_v35 = vpop.f32.mrf.mxu0 }
 0x13a   :  { %v488_v36 = vpop.f32.mrf.mxu1  ;;  %570 = vst [vmem:[#allocation2 + $0x4] sm:$0x3] %v566_v34  ;;  %v1388_v7 = vld [vmem:[#allocation2] sm:$0x3] }
 0x13b   :  { %v489_v37 = vadd.f32 %v7601_v27, %v488_v36 }
 0x13c   :  { %v8135_v38 = vpop.f32.mrf.mxu1 }
 0x13d   :  { %493 = vst [vmem:[#allocation3 + $0x2] sm:$0x3] %v489_v37  ;;  %v714_v39 = vpop.f32.mrf.mxu0 }
 0x13e   :  { %v715_v40 = vadd.f32 %v7599_v22, %v714_v39 }
 0x13f   :  { %v8156_v41 = vpop.f32.mrf.mxu0 }
 0x140   :  { %v637_v42 = vpop.f32.mrf.mxu1  ;;  %719 = vst [vmem:[#allocation2 + $0x6] sm:$0x3] %v715_v40 }
 0x141   :  { %v638_v43 = vadd.f32 %v7601_v27, %v637_v42 }
 0x142   :  { %v8149_v44 = vpop.f32.mrf.mxu1 }
 0x143   :  { %642 = vst [vmem:[#allocation3 + $0x4] sm:$0x3] %v638_v43  ;;  %v863_v45 = vpop.f32.mrf.mxu0 }
 0x144   :  { %v864_v46 = vadd.f32 %v7599_v22, %v863_v45 }
 0x145   :  { %v8170_v47 = vpop.f32.mrf.mxu0 }
 0x146   :  { %v786_v48 = vpop.f32.mrf.mxu1  ;;  %868 = vst [vmem:[#allocation2 + $0x8] sm:$0x3] %v864_v46 }
 0x147   :  { %v787_v49 = vadd.f32 %v7601_v27, %v786_v48 }
 0x148   :  { %v8163_v50 = vpop.f32.mrf.mxu1 }
 0x149   :  { %791 = vst [vmem:[#allocation3 + $0x6] sm:$0x3] %v787_v49  ;;  %v1012_v51 = vpop.f32.mrf.mxu0 }
 0x14a   :  { %v1013_v52 = vadd.f32 %v7599_v22, %v1012_v51 }
 0x14b   :  { %v8184_v53 = vpop.f32.mrf.mxu0 }
 0x14c   :  { %v935_v54 = vpop.f32.mrf.mxu1  ;;  %1017 = vst [vmem:[#allocation2 + $0xa] sm:$0x3] %v1013_v52 }
 0x14d   :  { %v936_v55 = vadd.f32 %v7601_v27, %v935_v54 }
 0x14e   :  { %v8177_v56 = vpop.f32.mrf.mxu1 }
 0x14f   :  { %940 = vst [vmem:[#allocation3 + $0x8] sm:$0x3] %v936_v55  ;;  %v1161_v57 = vpop.f32.mrf.mxu0 }
 0x150   :  { %v1162_v58 = vadd.f32 %v7599_v22, %v1161_v57  ;;  %v1596_v57 = vld [vmem:[#allocation2 + $0x2] sm:$0x3] }
 0x151   :  { %v8198_v59 = vpop.f32.mrf.mxu0 }
 0x152   :  { %v1084_v60 = vpop.f32.mrf.mxu1  ;;  %1166 = vst [vmem:[#allocation2 + $0xc] sm:$0x3] %v1162_v58 }
 0x153   :  { %v1085_v61 = vadd.f32 %v7601_v27, %v1084_v60 }
 0x154   :  { %v8191_v62 = vpop.f32.mrf.mxu1 }
 0x155   :  { %1089 = vst [vmem:[#allocation3 + $0xa] sm:$0x3] %v1085_v61  ;;  %v1310_v63 = vpop.f32.mrf.mxu0 }
 0x156   :  { %v1311_v0 = vadd.f32 %v7599_v22, %v1310_v63 }
 0x157   :  { %v8212_v2 = vpop.f32.mrf.mxu0 }
 0x158   :  { %v1233_v3 = vpop.f32.mrf.mxu1  ;;  %1315 = vst [vmem:[#allocation2 + $0xe] sm:$0x3] %v1311_v0 }
 0x159   :  { %v1234_v4 = vadd.f32 %v7601_v27, %v1233_v3 }
 0x15a   :  { %v8205_v5 = vpop.f32.mrf.mxu1 }
 0x15b   :  { %1238 = vst [vmem:[#allocation3 + $0xc] sm:$0x3] %v1234_v4 }
 0x15e   :  { %v1382_v6 = vpop.f32.mrf.mxu1  ;;  %v1459_v8 = vpop.f32.mrf.mxu0 }
 0x15f   :  { %v1383_v9 = vadd.f32 %v7601_v27, %v1382_v6  ;;  %v1463_v10 = vadd.f32 %v1459_v8, %v1388_v7 }
 0x160   :  { %v8219_v11 = vpop.f32.mrf.mxu1  ;;  %v8230_v12 = vpop.f32.mrf.mxu0 }
 0x161   :  { %1387 = vst [vmem:[#allocation3 + $0xe] sm:$0x3] %v1383_v9  ;;  %8976 = vtanh.f32 %v1463_v10  ;;  %v7624_v29 = vmul.f32 -1.442695, %v1463_v10 }
 0x162   :  { %v1670_v53 = vld [vmem:[#allocation3 + $0xc] sm:$0x3] }
 0x167   :  { %v1531_v13 = vpop.f32.mrf.mxu1 }
 0x168   :  { %v1464_v23 = vld [vmem:[#allocation3 + $0xe] sm:$0x3] }
 0x169   :  { %v1535_v24 = vadd.f32 %v1531_v13, %v1464_v23  ;;  %v8241_v25 = vpop.f32.mrf.mxu1 }
 0x16b   :  { %8978 = vtanh.f32 %v1535_v24  ;;  %v7625_v28 = vmul.f32 -1.442695, %v1535_v24 }
 0x16d   :  { %8980 = vpow2.f32 %v7625_v28 }
 0x16e   :  { %v8977_v22 = vpop.eup %8976  ;;  %8982 = vpow2.f32 %v7624_v29 }
 0x16f   :  { %1552 = vrot.lane.b32.xlu1 %v8977_v22, %s9470_s5 }
 0x178   :  { %v8979_v26 = vpop.eup %8978 }
 0x179   :  { %1563 = vrot.lane.b32.xlu0 %v8979_v26, %s9470_s5 }
 0x17a   :  { %v8981_v27 = vpop.eup %8980 }
 0x17b   :  { %v1545_v30 = vadd.f32 1.0, %v8981_v27  ;;  %v8983_v31 = vpop.eup %8982 }
 0x17c   :  { %v1539_v32 = vadd.f32 1.0, %v8983_v31 }
 0x17d   :  { %8984 = vrcp.f32 %v1545_v30 }
 0x17e   :  { %8986 = vrcp.f32 %v1539_v32 }
 0x18a   :  { %v8985_v33 = vpop.eup %8984 }
 0x18b   :  { %v8987_v37 = vpop.eup %8986  ;;  %v1561_v39 = vmul.f32 0.0, %v8985_v33 }
 0x18c   :  { %v1550_v42 = vmul.f32 0.0, %v8987_v37 }
 0x1e1   :  { %v1553_v36 = vpop.permute.xlu1 %1552 }
 0x1e2   :  { %v1555_v38 = vmul.f32 %v8987_v37, %v1553_v36 }
 0x1eb   :  { %v1564_v34 = vpop.permute.xlu0 %1563 }
 0x1ec   :  { %v1566_v35 = vmul.f32 %v8985_v33, %v1564_v34  ;;  %v1878_v34 = vld [vmem:[#allocation3 + $0xa] sm:$0x3] }
 0x1ee   :  { %1568 = vrot.lane.b32.xlu0 %v1566_v35, %s9470_s5 }
 0x1f2   :  { %1557 = vrot.lane.b32.xlu0 %v1555_v38, %s9470_s5  ;;  %v1804_v38 = vld [vmem:[#allocation2 + $0x4] sm:$0x3] }
 0x260   :  { %v1569_v40 = vpop.permute.xlu0 %1568 }
 0x261   :  { %v9837_v41 = vadd.f32 %v1569_v40, %v1561_v39 }
 0x263   :  { %8988 = vtanh.f32 %v9837_v41 }
 0x264   :  { %v1558_v43 = vpop.permute.xlu0 %1557 }
 0x265   :  { %v9840_v44 = vadd.f32 %v1558_v43, %v1550_v42 }
 0x267   :  { %8990 = vtanh.f32 %v9840_v44 }
 0x270   :  { %v8989_v45 = vpop.eup %8988 }
 0x271   :  { %1580 = vrot.lane.b32.xlu1 %v8989_v45, %s9470_s5 }
 0x274   :  { %v8991_v46 = vpop.eup %8990 }
 0x275   :  { %1574 = vrot.lane.b32.xlu0 %v8991_v46, %s9470_s5 }
 0x2e3   :  { %v1581_v47 = vpop.permute.xlu1 %1580 }
 0x2e4   :  { %v1583_v48 = vmul.f32 %v8985_v33, %v1581_v47 }
 0x2e6   :  { %1591 = vrot.lane.b32.xlu1 %v1583_v48, %s9471_s6 }
 0x2e7   :  { %v1575_v49 = vpop.permute.xlu0 %1574 }
 0x2e8   :  { %v1577_v50 = vmul.f32 %v8987_v37, %v1575_v49 }
 0x2ea   :  { %1585 = vrot.lane.b32.xlu1 %v1577_v50, %s9471_s6 }
 0x358   :  { %v1592_v51 = vpop.permute.xlu1 %1591 }
 0x359   :  { %1595 = vst.msk [vmem:[#allocation5 + $0xe] sm:$0x3] %vm1588_vm2, %v1592_v51  ;;  %8262 = vmatmul.mubr.msk.f32.vlgmr.msra.gmra.mxu1 %vm1389_vm3, %v1592_v51 }
 0x35a   :  { %8276 = vmatpush3.msra.mxu1 %v9784_v18  ;;  %8283 = vmatprep.mubr.msk.f32.mxu1 %vm9469_vm0, %v9468_v1 }
 0x35b   :  { %8277 = vmatprep.subr.mxu1 %v9468_v1 }
 0x35c   :  { %v1586_v52 = vpop.permute.xlu1 %1585  ;;  %8278 = vmatpush3.msra.mxu1 %v9789_v19 }
 0x35d   :  { %1589 = vst.msk [vmem:[#allocation4] sm:$0x3] %vm1588_vm2, %v1586_v52  ;;  %8251 = vmatmul.mubr.msk.f32.vlgmr.msra.gmra.mxu0 %vm1389_vm3, %v1586_v52  ;;  %8279 = vmatprep.subr.mxu1 %v9468_v1 }
 0x35e   :  { %8265 = vmatpush3.msra.mxu0 %v9753_v14  ;;  %8280 = vmatpush3.msra.mxu1 %v9796_v20 }
 0x35f   :  { %8266 = vmatprep.subr.mxu0 %v9468_v1  ;;  %8281 = vmatprep.subr.mxu1 %v9468_v1 }
 0x360   :  { %8267 = vmatpush3.msra.mxu0 %v9759_v15  ;;  %8282 = vmatpush3.msra.mxu1 %v9802_v21 }
 0x361   :  { %8268 = vmatprep.subr.mxu0 %v9468_v1  ;;  %8272 = vmatprep.mubr.msk.f32.mxu0 %vm9469_vm0, %v9468_v1 }
 0x362   :  { %8269 = vmatpush3.msra.mxu0 %v9766_v16  ;;  %8297 = vmatprep.subr.mxu1 %v9468_v1 }
 0x363   :  { %8270 = vmatprep.subr.mxu0 %v9468_v1 }
 0x364   :  { %8271 = vmatpush3.msra.mxu0 %v9774_v17 }
 0x365   :  { %8286 = vmatprep.subr.mxu0 %v9468_v1 }
 0x419   :  { %v1739_v54 = vpop.f32.mrf.mxu1 }
 0x41a   :  { %v1743_v55 = vadd.f32 %v1739_v54, %v1670_v53 }
 0x41b   :  { %v8263_v56 = vpop.f32.mrf.mxu1 }
 0x41c   :  { %8992 = vtanh.f32 %v1743_v55  ;;  %v7629_v63 = vmul.f32 -1.442695, %v1743_v55 }
 0x41d   :  { %v1665_v58 = vpop.f32.mrf.mxu0 }
 0x41e   :  { %v1669_v59 = vadd.f32 %v1665_v58, %v1596_v57 }
 0x41f   :  { %v8252_v60 = vpop.f32.mrf.mxu0 }
 0x420   :  { %8994 = vtanh.f32 %v1669_v59  ;;  %v7628_v0 = vmul.f32 -1.442695, %v1669_v59 }
 0x421   :  { %8996 = vpow2.f32 %v7629_v63 }
 0x422   :  { %8998 = vpow2.f32 %v7628_v0 }
 0x429   :  { %v8993_v61 = vpop.eup %8992 }
 0x42a   :  { %1771 = vrot.lane.b32.xlu0 %v8993_v61, %s9470_s5 }
 0x42d   :  { %v8995_v62 = vpop.eup %8994 }
 0x42e   :  { %1760 = vrot.lane.b32.xlu0 %v8995_v62, %s9470_s5  ;;  %v8997_v2 = vpop.eup %8996 }
 0x42f   :  { %v1753_v3 = vadd.f32 1.0, %v8997_v2  ;;  %v8999_v4 = vpop.eup %8998 }
 0x430   :  { %v1747_v5 = vadd.f32 1.0, %v8999_v4 }
 0x431   :  { %9000 = vrcp.f32 %v1753_v3 }
 0x432   :  { %9002 = vrcp.f32 %v1747_v5 }
 0x43e   :  { %v9001_v6 = vpop.eup %9000 }
 0x43f   :  { %v9003_v9 = vpop.eup %9002  ;;  %v1769_v12 = vmul.f32 %v9001_v6, %v9837_v41 }
 0x440   :  { %v1758_v24 = vmul.f32 %v9003_v9, %v9840_v44 }
 0x49c   :  { %v1772_v7 = vpop.permute.xlu0 %1771 }
 0x49d   :  { %v1774_v8 = vmul.f32 %v9001_v6, %v1772_v7  ;;  %v2086_v7 = vld [vmem:[#allocation3 + $0x8] sm:$0x3] }
 0x49f   :  { %1776 = vrot.lane.b32.xlu1 %v1774_v8, %s9470_s5 }
 0x4a0   :  { %v1761_v10 = vpop.permute.xlu0 %1760 }
 0x4a1   :  { %v1763_v11 = vmul.f32 %v9003_v9, %v1761_v10 }
 0x4a3   :  { %1765 = vrot.lane.b32.xlu0 %v1763_v11, %s9470_s5  ;;  %v2012_v11 = vld [vmem:[#allocation2 + $0x6] sm:$0x3] }
 0x511   :  { %v1777_v13 = vpop.permute.xlu1 %1776 }
 0x512   :  { %v9876_v23 = vadd.f32 %v1777_v13, %v1769_v12 }
 0x514   :  { %9004 = vtanh.f32 %v9876_v23 }
 0x515   :  { %v1766_v25 = vpop.permute.xlu0 %1765 }
 0x516   :  { %v9880_v22 = vadd.f32 %v1766_v25, %v1758_v24 }
 0x518   :  { %9006 = vtanh.f32 %v9880_v22 }
 0x521   :  { %v9005_v26 = vpop.eup %9004 }
 0x522   :  { %1788 = vrot.lane.b32.xlu1 %v9005_v26, %s9470_s5 }
 0x525   :  { %v9007_v28 = vpop.eup %9006 }
 0x526   :  { %1782 = vrot.lane.b32.xlu0 %v9007_v28, %s9470_s5 }
 0x594   :  { %v1789_v29 = vpop.permute.xlu1 %1788 }
 0x595   :  { %v1791_v27 = vmul.f32 %v9001_v6, %v1789_v29 }
 0x597   :  { %1799 = vrot.lane.b32.xlu1 %v1791_v27, %s9471_s6 }
 0x598   :  { %v1783_v30 = vpop.permute.xlu0 %1782 }
 0x599   :  { %v1785_v31 = vmul.f32 %v9003_v9, %v1783_v30 }
 0x59b   :  { %1793 = vrot.lane.b32.xlu1 %v1785_v31, %s9471_s6 }
 0x609   :  { %v1800_v32 = vpop.permute.xlu1 %1799 }
 0x60a   :  { %1803 = vst.msk [vmem:[#allocation5 + $0xc] sm:$0x3] %vm1588_vm2, %v1800_v32  ;;  %8284 = vmatmul.mubr.msk.f32.vlgmr.msra.gmra.mxu1 %vm1389_vm3, %v1800_v32 }
 0x60b   :  { %8298 = vmatpush3.msra.mxu1 %v9784_v18  ;;  %8305 = vmatprep.mubr.msk.f32.mxu1 %vm9469_vm0, %v9468_v1 }
 0x60c   :  { %8299 = vmatprep.subr.mxu1 %v9468_v1 }
 0x60d   :  { %v1794_v33 = vpop.permute.xlu1 %1793  ;;  %8300 = vmatpush3.msra.mxu1 %v9789_v19 }
 0x60e   :  { %1797 = vst.msk [vmem:[#allocation4 + $0x2] sm:$0x3] %vm1588_vm2, %v1794_v33  ;;  %8273 = vmatmul.mubr.msk.f32.vlgmr.msra.gmra.mxu0 %vm1389_vm3, %v1794_v33  ;;  %8301 = vmatprep.subr.mxu1 %v9468_v1 }
 0x60f   :  { %8287 = vmatpush3.msra.mxu0 %v9753_v14  ;;  %8302 = vmatpush3.msra.mxu1 %v9796_v20 }
 0x610   :  { %8288 = vmatprep.subr.mxu0 %v9468_v1  ;;  %8303 = vmatprep.subr.mxu1 %v9468_v1 }
 0x611   :  { %8289 = vmatpush3.msra.mxu0 %v9759_v15  ;;  %8304 = vmatpush3.msra.mxu1 %v9802_v21 }
 0x612   :  { %8290 = vmatprep.subr.mxu0 %v9468_v1  ;;  %8294 = vmatprep.mubr.msk.f32.mxu0 %vm9469_vm0, %v9468_v1 }
 0x613   :  { %8291 = vmatpush3.msra.mxu0 %v9766_v16  ;;  %8319 = vmatprep.subr.mxu1 %v9468_v1 }
 0x614   :  { %8292 = vmatprep.subr.mxu0 %v9468_v1 }
 0x615   :  { %8293 = vmatpush3.msra.mxu0 %v9774_v17 }
 0x616   :  { %8308 = vmatprep.subr.mxu0 %v9468_v1 }
 0x6ca   :  { %v1947_v35 = vpop.f32.mrf.mxu1 }
 0x6cb   :  { %v1951_v36 = vadd.f32 %v1947_v35, %v1878_v34 }
 0x6cc   :  { %v8285_v37 = vpop.f32.mrf.mxu1 }
 0x6cd   :  { %9008 = vtanh.f32 %v1951_v36  ;;  %v7633_v44 = vmul.f32 -1.442695, %v1951_v36 }
 0x6ce   :  { %v1873_v39 = vpop.f32.mrf.mxu0 }
 0x6cf   :  { %v1877_v40 = vadd.f32 %v1873_v39, %v1804_v38 }
 0x6d0   :  { %v8274_v41 = vpop.f32.mrf.mxu0 }
 0x6d1   :  { %9010 = vtanh.f32 %v1877_v40  ;;  %v7632_v45 = vmul.f32 -1.442695, %v1877_v40 }
 0x6d2   :  { %9012 = vpow2.f32 %v7633_v44 }
 0x6d3   :  { %9014 = vpow2.f32 %v7632_v45 }
 0x6da   :  { %v9009_v42 = vpop.eup %9008 }
 0x6db   :  { %1979 = vrot.lane.b32.xlu0 %v9009_v42, %s9470_s5 }
 0x6de   :  { %v9011_v43 = vpop.eup %9010 }
 0x6df   :  { %1968 = vrot.lane.b32.xlu0 %v9011_v43, %s9470_s5  ;;  %v9013_v46 = vpop.eup %9012 }
 0x6e0   :  { %v1961_v47 = vadd.f32 1.0, %v9013_v46  ;;  %v9015_v48 = vpop.eup %9014 }
 0x6e1   :  { %v1955_v49 = vadd.f32 1.0, %v9015_v48 }
 0x6e2   :  { %9016 = vrcp.f32 %v1961_v47 }
 0x6e3   :  { %9018 = vrcp.f32 %v1955_v49 }
 0x6ef   :  { %v9017_v50 = vpop.eup %9016 }
 0x6f0   :  { %v9019_v53 = vpop.eup %9018  ;;  %v1977_v56 = vmul.f32 %v9017_v50, %v9876_v23 }
 0x6f1   :  { %v1966_v59 = vmul.f32 %v9019_v53, %v9880_v22 }
 0x74d   :  { %v1980_v51 = vpop.permute.xlu0 %1979 }
 0x74e   :  { %v1982_v52 = vmul.f32 %v9017_v50, %v1980_v51  ;;  %v2294_v51 = vld [vmem:[#allocation3 + $0x6] sm:$0x3] }
 0x750   :  { %1984 = vrot.lane.b32.xlu1 %v1982_v52, %s9470_s5 }
 0x751   :  { %v1969_v54 = vpop.permute.xlu0 %1968 }
 0x752   :  { %v1971_v55 = vmul.f32 %v9019_v53, %v1969_v54 }
 0x754   :  { %1973 = vrot.lane.b32.xlu0 %v1971_v55, %s9470_s5  ;;  %v2220_v55 = vld [vmem:[#allocation2 + $0x8] sm:$0x3] }
 0x7c2   :  { %v1985_v57 = vpop.permute.xlu1 %1984 }
 0x7c3   :  { %v9916_v58 = vadd.f32 %v1985_v57, %v1977_v56 }
 0x7c5   :  { %9020 = vtanh.f32 %v9916_v58 }
 0x7c6   :  { %v1974_v60 = vpop.permute.xlu0 %1973 }
 0x7c7   :  { %v9920_v61 = vadd.f32 %v1974_v60, %v1966_v59 }
 0x7c9   :  { %9022 = vtanh.f32 %v9920_v61 }
 0x7d2   :  { %v9021_v62 = vpop.eup %9020 }
 0x7d3   :  { %1996 = vrot.lane.b32.xlu1 %v9021_v62, %s9470_s5 }
 0x7d6   :  { %v9023_v63 = vpop.eup %9022 }
 0x7d7   :  { %1990 = vrot.lane.b32.xlu0 %v9023_v63, %s9470_s5 }
 0x845   :  { %v1997_v0 = vpop.permute.xlu1 %1996 }
 0x846   :  { %v1999_v2 = vmul.f32 %v9017_v50, %v1997_v0 }
 0x848   :  { %2007 = vrot.lane.b32.xlu1 %v1999_v2, %s9471_s6 }
 0x849   :  { %v1991_v3 = vpop.permute.xlu0 %1990 }
 0x84a   :  { %v1993_v4 = vmul.f32 %v9019_v53, %v1991_v3 }
 0x84c   :  { %2001 = vrot.lane.b32.xlu1 %v1993_v4, %s9471_s6 }
 0x8ba   :  { %v2008_v5 = vpop.permute.xlu1 %2007 }
 0x8bb   :  { %2011 = vst.msk [vmem:[#allocation5 + $0xa] sm:$0x3] %vm1588_vm2, %v2008_v5  ;;  %8306 = vmatmul.mubr.msk.f32.vlgmr.msra.gmra.mxu1 %vm1389_vm3, %v2008_v5 }
 0x8bc   :  { %8320 = vmatpush3.msra.mxu1 %v9784_v18  ;;  %8327 = vmatprep.mubr.msk.f32.mxu1 %vm9469_vm0, %v9468_v1 }
 0x8bd   :  { %8321 = vmatprep.subr.mxu1 %v9468_v1 }
 0x8be   :  { %v2002_v6 = vpop.permute.xlu1 %2001  ;;  %8322 = vmatpush3.msra.mxu1 %v9789_v19 }
 0x8bf   :  { %2005 = vst.msk [vmem:[#allocation4 + $0x4] sm:$0x3] %vm1588_vm2, %v2002_v6  ;;  %8295 = vmatmul.mubr.msk.f32.vlgmr.msra.gmra.mxu0 %vm1389_vm3, %v2002_v6  ;;  %8323 = vmatprep.subr.mxu1 %v9468_v1 }
 0x8c0   :  { %8309 = vmatpush3.msra.mxu0 %v9753_v14  ;;  %8324 = vmatpush3.msra.mxu1 %v9796_v20 }
 0x8c1   :  { %8310 = vmatprep.subr.mxu0 %v9468_v1  ;;  %8325 = vmatprep.subr.mxu1 %v9468_v1 }
 0x8c2   :  { %8311 = vmatpush3.msra.mxu0 %v9759_v15  ;;  %8326 = vmatpush3.msra.mxu1 %v9802_v21 }
 0x8c3   :  { %8312 = vmatprep.subr.mxu0 %v9468_v1  ;;  %8316 = vmatprep.mubr.msk.f32.mxu0 %vm9469_vm0, %v9468_v1 }
 0x8c4   :  { %8313 = vmatpush3.msra.mxu0 %v9766_v16  ;;  %8341 = vmatprep.subr.mxu1 %v9468_v1 }
 0x8c5   :  { %8314 = vmatprep.subr.mxu0 %v9468_v1 }
 0x8c6   :  { %8315 = vmatpush3.msra.mxu0 %v9774_v17 }
 0x8c7   :  { %8330 = vmatprep.subr.mxu0 %v9468_v1 }
 0x97b   :  { %v2155_v8 = vpop.f32.mrf.mxu1 }
 0x97c   :  { %v2159_v9 = vadd.f32 %v2155_v8, %v2086_v7 }
 0x97d   :  { %v8307_v10 = vpop.f32.mrf.mxu1 }
 0x97e   :  { %9024 = vtanh.f32 %v2159_v9  ;;  %v7637_v22 = vmul.f32 -1.442695, %v2159_v9 }
 0x97f   :  { %v2081_v12 = vpop.f32.mrf.mxu0 }
 0x980   :  { %v2085_v13 = vadd.f32 %v2081_v12, %v2012_v11 }
 0x981   :  { %v8296_v23 = vpop.f32.mrf.mxu0 }
 0x982   :  { %9026 = vtanh.f32 %v2085_v13  ;;  %v7636_v26 = vmul.f32 -1.442695, %v2085_v13 }
 0x983   :  { %9028 = vpow2.f32 %v7637_v22 }
 0x984   :  { %9030 = vpow2.f32 %v7636_v26 }
 0x98b   :  { %v9025_v24 = vpop.eup %9024 }
 0x98c   :  { %2187 = vrot.lane.b32.xlu0 %v9025_v24, %s9470_s5 }
 0x98f   :  { %v9027_v25 = vpop.eup %9026 }
 0x990   :  { %2176 = vrot.lane.b32.xlu0 %v9027_v25, %s9470_s5  ;;  %v9029_v28 = vpop.eup %9028 }
 0x991   :  { %v2169_v29 = vadd.f32 1.0, %v9029_v28  ;;  %v9031_v27 = vpop.eup %9030 }
 0x992   :  { %v2163_v30 = vadd.f32 1.0, %v9031_v27 }
 0x993   :  { %9032 = vrcp.f32 %v2169_v29 }
 0x994   :  { %9034 = vrcp.f32 %v2163_v30 }
 0x9a0   :  { %v9033_v31 = vpop.eup %9032 }
 0x9a1   :  { %v9035_v34 = vpop.eup %9034  ;;  %v2185_v37 = vmul.f32 %v9033_v31, %v9916_v58 }
 0x9a2   :  { %v2174_v40 = vmul.f32 %v9035_v34, %v9920_v61 }
 0x9fe   :  { %v2188_v32 = vpop.permute.xlu0 %2187 }
 0x9ff   :  { %v2190_v33 = vmul.f32 %v9033_v31, %v2188_v32 }
 0xa01   :  { %2192 = vrot.lane.b32.xlu1 %v2190_v33, %s9470_s5 }
 0xa02   :  { %v2177_v35 = vpop.permute.xlu0 %2176 }
 0xa03   :  { %v2179_v36 = vmul.f32 %v9035_v34, %v2177_v35 }
 0xa05   :  { %2181 = vrot.lane.b32.xlu0 %v2179_v36, %s9470_s5 }
 0xa73   :  { %v2193_v38 = vpop.permute.xlu1 %2192 }
 0xa74   :  { %v9956_v39 = vadd.f32 %v2193_v38, %v2185_v37 }
 0xa76   :  { %9036 = vtanh.f32 %v9956_v39 }
 0xa77   :  { %v2182_v41 = vpop.permute.xlu0 %2181 }
 0xa78   :  { %v9960_v42 = vadd.f32 %v2182_v41, %v2174_v40 }
 0xa7a   :  { %9038 = vtanh.f32 %v9960_v42 }
 0xa83   :  { %v9037_v43 = vpop.eup %9036 }
 0xa84   :  { %2204 = vrot.lane.b32.xlu1 %v9037_v43, %s9470_s5 }
 0xa87   :  { %v9039_v44 = vpop.eup %9038 }
 0xa88   :  { %2198 = vrot.lane.b32.xlu0 %v9039_v44, %s9470_s5 }
 0xaf6   :  { %v2205_v45 = vpop.permute.xlu1 %2204 }
 0xaf7   :  { %v2207_v46 = vmul.f32 %v9033_v31, %v2205_v45 }
 0xaf9   :  { %2215 = vrot.lane.b32.xlu1 %v2207_v46, %s9471_s6 }
 0xafa   :  { %v2199_v47 = vpop.permute.xlu0 %2198 }
 0xafb   :  { %v2201_v48 = vmul.f32 %v9035_v34, %v2199_v47 }
 0xafd   :  { %2209 = vrot.lane.b32.xlu1 %v2201_v48, %s9471_s6 }
 0xb6b   :  { %v2216_v49 = vpop.permute.xlu1 %2215 }
 0xb6c   :  { %2219 = vst.msk [vmem:[#allocation5 + $0x8] sm:$0x3] %vm1588_vm2, %v2216_v49  ;;  %8328 = vmatmul.mubr.msk.f32.vlgmr.msra.gmra.mxu1 %vm1389_vm3, %v2216_v49 }
 0xb6d   :  { %8342 = vmatpush3.msra.mxu1 %v9784_v18  ;;  %8349 = vmatprep.mubr.msk.f32.mxu1 %vm9469_vm0, %v9468_v1 }
 0xb6e   :  { %8343 = vmatprep.subr.mxu1 %v9468_v1 }
 0xb6f   :  { %v2210_v50 = vpop.permute.xlu1 %2209  ;;  %8344 = vmatpush3.msra.mxu1 %v9789_v19 }
 0xb70   :  { %2213 = vst.msk [vmem:[#allocation4 + $0x6] sm:$0x3] %vm1588_vm2, %v2210_v50  ;;  %8317 = vmatmul.mubr.msk.f32.vlgmr.msra.gmra.mxu0 %vm1389_vm3, %v2210_v50  ;;  %8345 = vmatprep.subr.mxu1 %v9468_v1 }
 0xb71   :  { %8331 = vmatpush3.msra.mxu0 %v9753_v14  ;;  %8346 = vmatpush3.msra.mxu1 %v9796_v20 }
 0xb72   :  { %8332 = vmatprep.subr.mxu0 %v9468_v1  ;;  %8347 = vmatprep.subr.mxu1 %v9468_v1 }
 0xb73   :  { %8333 = vmatpush3.msra.mxu0 %v9759_v15  ;;  %8348 = vmatpush3.msra.mxu1 %v9802_v21 }
 0xb74   :  { %8334 = vmatprep.subr.mxu0 %v9468_v1  ;;  %8338 = vmatprep.mubr.msk.f32.mxu0 %vm9469_vm0, %v9468_v1 }
 0xb75   :  { %8335 = vmatpush3.msra.mxu0 %v9766_v16  ;;  %8363 = vmatprep.subr.mxu1 %v9468_v1 }
 0xb76   :  { %8336 = vmatprep.subr.mxu0 %v9468_v1 }
 0xb77   :  { %8337 = vmatpush3.msra.mxu0 %v9774_v17 }
 0xb78   :  { %8352 = vmatprep.subr.mxu0 %v9468_v1 }
 0xc2c   :  { %v2363_v52 = vpop.f32.mrf.mxu1 }
 0xc2d   :  { %v2367_v53 = vadd.f32 %v2363_v52, %v2294_v51 }
 0xc2e   :  { %v8329_v54 = vpop.f32.mrf.mxu1 }
 0xc2f   :  { %9040 = vtanh.f32 %v2367_v53  ;;  %v7641_v61 = vmul.f32 -1.442695, %v2367_v53 }
 0xc30   :  { %v2289_v56 = vpop.f32.mrf.mxu0 }
 0xc31   :  { %v2293_v57 = vadd.f32 %v2289_v56, %v2220_v55 }
 0xc32   :  { %v8318_v58 = vpop.f32.mrf.mxu0 }
 0xc33   :  { %9042 = vtanh.f32 %v2293_v57  ;;  %v7640_v62 = vmul.f32 -1.442695, %v2293_v57 }
 0xc34   :  { %9044 = vpow2.f32 %v7641_v61  ;;  %v9251_v61 = vld [vmem:[#allocation13 + $0x10] sm:$0xff] }
 0xc35   :  { %9046 = vpow2.f32 %v7640_v62  ;;  %v9252_v62 = vld [vmem:[#allocation13 + $0x8] sm:$0xff] }
 0xc3c   :  { %v9041_v59 = vpop.eup %9040 }
 0xc3d   :  { %2395 = vrot.lane.b32.xlu0 %v9041_v59, %s9470_s5  ;;  %v9250_v59 = vld [vmem:[#allocation13 + $0x18] sm:$0xff] }
 0xc40   :  { %v9043_v60 = vpop.eup %9042 }
 0xc41   :  { %2384 = vrot.lane.b32.xlu0 %v9043_v60, %s9470_s5  ;;  %v9045_v63 = vpop.eup %9044 }
 0xc42   :  { %v2377_v0 = vadd.f32 1.0, %v9045_v63  ;;  %v9047_v2 = vpop.eup %9046  ;;  %v9253_v63 = vld [vmem:[#allocation12 + $0x18] sm:$0xff] }
 0xc43   :  { %v2371_v3 = vadd.f32 1.0, %v9047_v2  ;;  %v9255_v2 = vld [vmem:[#allocation12 + $0x10] sm:$0xff] }
 0xc44   :  { %9048 = vrcp.f32 %v2377_v0  ;;  %v9254_v0 = vld [vmem:[#allocation13] sm:$0xff] }
 0xc45   :  { %9050 = vrcp.f32 %v2371_v3  ;;  %v9256_v3 = vld [vmem:[#allocation12 + $0x8] sm:$0xff] }
 0xc51   :  { %v9049_v4 = vpop.eup %9048 }
 0xc52   :  { %v9051_v7 = vpop.eup %9050  ;;  %v2393_v10 = vmul.f32 %v9049_v4, %v9956_v39 }
 0xc53   :  { %v2382_v13 = vmul.f32 %v9051_v7, %v9960_v42 }
 0xcaf   :  { %v2396_v5 = vpop.permute.xlu0 %2395 }
 0xcb0   :  { %v2398_v6 = vmul.f32 %v9049_v4, %v2396_v5  ;;  %v2710_v5 = vld [vmem:[#allocation3 + $0x2] sm:$0x3] }
 0xcb2   :  { %2400 = vrot.lane.b32.xlu1 %v2398_v6, %s9470_s5 }
 0xcb3   :  { %v2385_v8 = vpop.permute.xlu0 %2384 }
 0xcb4   :  { %v2387_v9 = vmul.f32 %v9051_v7, %v2385_v8 }
 0xcb6   :  { %2389 = vrot.lane.b32.xlu0 %v2387_v9, %s9470_s5  ;;  %v2636_v9 = vld [vmem:[#allocation2 + $0xc] sm:$0x3] }
 0xd24   :  { %v2401_v11 = vpop.permute.xlu1 %2400 }
 0xd25   :  { %v9996_v12 = vadd.f32 %v2401_v11, %v2393_v10 }
 0xd27   :  { %9052 = vtanh.f32 %v9996_v12 }
 0xd28   :  { %v2390_v23 = vpop.permute.xlu0 %2389 }
 0xd29   :  { %v10000_v24 = vadd.f32 %v2390_v23, %v2382_v13 }
 0xd2b   :  { %9054 = vtanh.f32 %v10000_v24 }
 0xd34   :  { %v9053_v25 = vpop.eup %9052 }
 0xd35   :  { %2412 = vrot.lane.b32.xlu1 %v9053_v25, %s9470_s5 }
 0xd38   :  { %v9055_v22 = vpop.eup %9054 }
 0xd39   :  { %2406 = vrot.lane.b32.xlu0 %v9055_v22, %s9470_s5 }
 0xda7   :  { %v2413_v26 = vpop.permute.xlu1 %2412 }
 0xda8   :  { %v2415_v28 = vmul.f32 %v9049_v4, %v2413_v26  ;;  %v9257_v4 = vld [vmem:[#allocation12] sm:$0xff] }
 0xdaa   :  { %2423 = vrot.lane.b32.xlu1 %v2415_v28, %s9471_s6 }
 0xdab   :  { %v2407_v29 = vpop.permute.xlu0 %2406 }
 0xdac   :  { %v2409_v27 = vmul.f32 %v9051_v7, %v2407_v29 }
 0xdae   :  { %2417 = vrot.lane.b32.xlu1 %v2409_v27, %s9471_s6 }
 0xe1c   :  { %v2424_v30 = vpop.permute.xlu1 %2423 }
 0xe1d   :  { %2427 = vst.msk [vmem:[#allocation5 + $0x6] sm:$0x3] %vm1588_vm2, %v2424_v30  ;;  %8350 = vmatmul.mubr.msk.f32.vlgmr.msra.gmra.mxu1 %vm1389_vm3, %v2424_v30 }
 0xe1e   :  { %8364 = vmatpush3.msra.mxu1 %v9784_v18  ;;  %8371 = vmatprep.mubr.msk.f32.mxu1 %vm9469_vm0, %v9468_v1 }
 0xe1f   :  { %8365 = vmatprep.subr.mxu1 %v9468_v1 }
 0xe20   :  { %v2418_v31 = vpop.permute.xlu1 %2417  ;;  %8366 = vmatpush3.msra.mxu1 %v9789_v19 }
 0xe21   :  { %2421 = vst.msk [vmem:[#allocation4 + $0x8] sm:$0x3] %vm1588_vm2, %v2418_v31  ;;  %8339 = vmatmul.mubr.msk.f32.vlgmr.msra.gmra.mxu0 %vm1389_vm3, %v2418_v31  ;;  %8367 = vmatprep.subr.mxu1 %v9468_v1 }
 0xe22   :  { %8353 = vmatpush3.msra.mxu0 %v9753_v14  ;;  %8368 = vmatpush3.msra.mxu1 %v9796_v20  ;;  %v2502_v14 = vld [vmem:[#allocation3 + $0x4] sm:$0x3]  ;;  %v2428_v20 = vld [vmem:[#allocation2 + $0xa] sm:$0x3] }
 0xe23   :  { %8354 = vmatprep.subr.mxu0 %v9468_v1  ;;  %8369 = vmatprep.subr.mxu1 %v9468_v1 }
 0xe24   :  { %8355 = vmatpush3.msra.mxu0 %v9759_v15  ;;  %8370 = vmatpush3.msra.mxu1 %v9802_v21 }
 0xe25   :  { %8356 = vmatprep.subr.mxu0 %v9468_v1  ;;  %8360 = vmatprep.mubr.msk.f32.mxu0 %vm9469_vm0, %v9468_v1 }
 0xe26   :  { %8357 = vmatpush3.msra.mxu0 %v9766_v16  ;;  %8385 = vmatprep.subr.mxu1 %v9468_v1 }
 0xe27   :  { %8358 = vmatprep.subr.mxu0 %v9468_v1 }
 0xe28   :  { %8359 = vmatpush3.msra.mxu0 %v9774_v17 }
 0xe29   :  { %8374 = vmatprep.subr.mxu0 %v9468_v1 }
 0xedd   :  { %v2571_v18 = vpop.f32.mrf.mxu1 }
 0xede   :  { %v2575_v15 = vadd.f32 %v2571_v18, %v2502_v14 }
 0xedf   :  { %v8351_v19 = vpop.f32.mrf.mxu1 }
 0xee0   :  { %9056 = vtanh.f32 %v2575_v15  ;;  %v7645_v35 = vmul.f32 -1.442695, %v2575_v15 }
 0xee1   :  { %v2497_v21 = vpop.f32.mrf.mxu0 }
 0xee2   :  { %v2501_v32 = vadd.f32 %v2497_v21, %v2428_v20 }
 0xee3   :  { %v8340_v33 = vpop.f32.mrf.mxu0 }
 0xee4   :  { %9058 = vtanh.f32 %v2501_v32  ;;  %v7644_v17 = vmul.f32 -1.442695, %v2501_v32 }
 0xee5   :  { %9060 = vpow2.f32 %v7645_v35 }
 0xee6   :  { %9062 = vpow2.f32 %v7644_v17 }
 0xeed   :  { %v9057_v34 = vpop.eup %9056 }
 0xeee   :  { %2603 = vrot.lane.b32.xlu0 %v9057_v34, %s9470_s5 }
 0xef1   :  { %v9059_v16 = vpop.eup %9058 }
 0xef2   :  { %2592 = vrot.lane.b32.xlu0 %v9059_v16, %s9470_s5  ;;  %v9061_v36 = vpop.eup %9060 }
 0xef3   :  { %v2585_v37 = vadd.f32 1.0, %v9061_v36  ;;  %v9063_v38 = vpop.eup %9062 }
 0xef4   :  { %v2579_v39 = vadd.f32 1.0, %v9063_v38 }
 0xef5   :  { %9064 = vrcp.f32 %v2585_v37 }
 0xef6   :  { %9066 = vrcp.f32 %v2579_v39  ;;  %v10082_v39 = vld [vmem:[%s11099_s7 + $0x18] sm:$0xff] }
 0xf02   :  { %v9065_v40 = vpop.eup %9064 }
 0xf03   :  { %v9067_v43 = vpop.eup %9066  ;;  %v2601_v46 = vmul.f32 %v9065_v40, %v9996_v12 }
 0xf04   :  { %v2590_v49 = vmul.f32 %v9067_v43, %v10000_v24 }
 0xf60   :  { %v2604_v41 = vpop.permute.xlu0 %2603 }
 0xf61   :  { %v2606_v42 = vmul.f32 %v9065_v40, %v2604_v41  ;;  %v10089_v41 = vld [vmem:[%s11099_s7 + $0x10] sm:$0xff] }
 0xf63   :  { %2608 = vrot.lane.b32.xlu1 %v2606_v42, %s9470_s5  ;;  %v10098_v42 = vld [vmem:[%s11099_s7 + $0x8] sm:$0xff] }
 0xf64   :  { %v2593_v44 = vpop.permute.xlu0 %2592 }
 0xf65   :  { %v2595_v45 = vmul.f32 %v9067_v43, %v2593_v44  ;;  %v10107_v44 = vld [vmem:[%s11099_s7] sm:$0xff] }
 0xf67   :  { %2597 = vrot.lane.b32.xlu0 %v2595_v45, %s9470_s5  ;;  %v10116_v45 = vld [vmem:[%s11100_s8 + $0x18] sm:$0xff] }
 0xfd5   :  { %v2609_v47 = vpop.permute.xlu1 %2608 }
 0xfd6   :  { %v10036_v48 = vadd.f32 %v2609_v47, %v2601_v46  ;;  %v3077_v46 = vld [vmem:[#allocation4] sm:$0x3]  ;;  %v10124_v47 = vld [vmem:[%s11100_s8 + $0x10] sm:$0xff] }
 0xfd8   :  { %9068 = vtanh.f32 %v10036_v48 }
 0xfd9   :  { %v2598_v50 = vpop.permute.xlu0 %2597 }
 0xfda   :  { %v10040_v51 = vadd.f32 %v2598_v50, %v2590_v49  ;;  %v10140_v49 = vld [vmem:[%s11100_s8] sm:$0xff] }
 0xfdb   :  { %v3381_v50 = vld [vmem:[#allocation4 + $0x2] sm:$0x3] }
 0xfdc   :  { %9070 = vtanh.f32 %v10040_v51 }
 0xfe5   :  { %v9069_v52 = vpop.eup %9068 }
 0xfe6   :  { %2620 = vrot.lane.b32.xlu1 %v9069_v52, %s9470_s5  ;;  %v3965_v52 = vld [vmem:[#allocation4 + $0x6] sm:$0x3] }
 0xfe9   :  { %v9071_v53 = vpop.eup %9070 }
 0xfea   :  { %2614 = vrot.lane.b32.xlu0 %v9071_v53, %s9470_s5  ;;  %v4257_v53 = vld [vmem:[#allocation4 + $0x8] sm:$0x3] }
0x1058   :  { %v2621_v54 = vpop.permute.xlu1 %2620 }
0x1059   :  { %v2623_v55 = vmul.f32 %v9065_v40, %v2621_v54 }
0x105b   :  { %2631 = vrot.lane.b32.xlu1 %v2623_v55, %s9471_s6 }
0x105c   :  { %v2615_v56 = vpop.permute.xlu0 %2614 }
0x105d   :  { %v2617_v57 = vmul.f32 %v9067_v43, %v2615_v56  ;;  %v2918_v56 = vld [vmem:[#allocation3] sm:$0x3] }
0x105f   :  { %2625 = vrot.lane.b32.xlu1 %v2617_v57, %s9471_s6 }
0x10cd   :  { %v2632_v58 = vpop.permute.xlu1 %2631 }
0x10ce   :  { %2635 = vst.msk [vmem:[#allocation5 + $0x4] sm:$0x3] %vm1588_vm2, %v2632_v58  ;;  %8372 = vmatmul.mubr.msk.f32.vlgmr.msra.gmra.mxu1 %vm1389_vm3, %v2632_v58 }
0x10cf   :  { %8386 = vmatpush3.msra.mxu1 %v9250_v59  ;;  %8393 = vmatprep.mubr.msk.f32.mxu1 %vm9469_vm0, %v9468_v1 }
0x10d0   :  { %8387 = vmatprep.subr.mxu1 %v9468_v1 }
0x10d1   :  { %v2626_v60 = vpop.permute.xlu1 %2625  ;;  %8388 = vmatpush3.msra.mxu1 %v9251_v61 }
0x10d2   :  { %2629 = vst.msk [vmem:[#allocation4 + $0xa] sm:$0x3] %vm1588_vm2, %v2626_v60  ;;  %8361 = vmatmul.mubr.msk.f32.vlgmr.msra.gmra.mxu0 %vm1389_vm3, %v2626_v60  ;;  %8389 = vmatprep.subr.mxu1 %v9468_v1  ;;  %v2844_v60 = vld [vmem:[#allocation2 + $0xe] sm:$0x3] }
0x10d3   :  { %8390 = vmatpush3.msra.mxu1 %v9252_v62  ;;  %8375 = vmatpush3.msra.mxu0 %v9253_v63 }
0x10d4   :  { %8391 = vmatprep.subr.mxu1 %v9468_v1  ;;  %8376 = vmatprep.subr.mxu0 %v9468_v1 }
0x10d5   :  { %8392 = vmatpush3.msra.mxu1 %v9254_v0  ;;  %8377 = vmatpush3.msra.mxu0 %v9255_v2 }
0x10d6   :  { %8407 = vmatprep.subr.mxu1 %v9468_v1  ;;  %8378 = vmatprep.subr.mxu0 %v9468_v1 }
0x10d7   :  { %8379 = vmatpush3.msra.mxu0 %v9256_v3  ;;  %8382 = vmatprep.mubr.msk.f32.mxu0 %vm9469_vm0, %v9468_v1 }
0x10d8   :  { %8380 = vmatprep.subr.mxu0 %v9468_v1 }
0x10d9   :  { %8381 = vmatpush3.msra.mxu0 %v9257_v4  ;;  %v4549_v54 = vld [vmem:[#allocation4 + $0xa] sm:$0x3] }
0x10da   :  { %8396 = vmatprep.subr.mxu0 %v9468_v1 }
0x118e   :  { %v2779_v6 = vpop.f32.mrf.mxu1 }
0x118f   :  { %v2783_v7 = vadd.f32 %v2779_v6, %v2710_v5 }
0x1190   :  { %v8373_v8 = vpop.f32.mrf.mxu1 }
0x1191   :  { %9072 = vtanh.f32 %v2783_v7  ;;  %v7649_v24 = vmul.f32 -1.442695, %v2783_v7 }
0x1192   :  { %v2705_v10 = vpop.f32.mrf.mxu0 }
0x1193   :  { %v2709_v11 = vadd.f32 %v2705_v10, %v2636_v9 }
0x1194   :  { %v8362_v12 = vpop.f32.mrf.mxu0 }
0x1195   :  { %9074 = vtanh.f32 %v2709_v11  ;;  %v7648_v25 = vmul.f32 -1.442695, %v2709_v11 }
0x1196   :  { %9076 = vpow2.f32 %v7649_v24 }
0x1197   :  { %9078 = vpow2.f32 %v7648_v25 }
0x119e   :  { %v9073_v13 = vpop.eup %9072 }
0x119f   :  { %2811 = vrot.lane.b32.xlu0 %v9073_v13, %s9470_s5 }
0x11a2   :  { %v9075_v23 = vpop.eup %9074 }
0x11a3   :  { %2800 = vrot.lane.b32.xlu0 %v9075_v23, %s9470_s5  ;;  %v9077_v22 = vpop.eup %9076 }
0x11a4   :  { %v2793_v26 = vadd.f32 1.0, %v9077_v22  ;;  %v9079_v28 = vpop.eup %9078 }
0x11a5   :  { %v2787_v29 = vadd.f32 1.0, %v9079_v28 }
0x11a6   :  { %9080 = vrcp.f32 %v2793_v26 }
0x11a7   :  { %9082 = vrcp.f32 %v2787_v29 }
0x11b3   :  { %v9081_v27 = vpop.eup %9080 }
0x11b4   :  { %v9083_v14 = vpop.eup %9082  ;;  %v2809_v19 = vmul.f32 %v9081_v27, %v10036_v48  ;;  %v10133_v48 = vld [vmem:[%s11100_s8 + $0x8] sm:$0xff] }
0x11b5   :  { %v2798_v32 = vmul.f32 %v9083_v14, %v10040_v51  ;;  %v3673_v51 = vld [vmem:[#allocation4 + $0x4] sm:$0x3] }
0x1211   :  { %v2812_v30 = vpop.permute.xlu0 %2811 }
0x1212   :  { %v2814_v31 = vmul.f32 %v9081_v27, %v2812_v30 }
0x1214   :  { %2816 = vrot.lane.b32.xlu1 %v2814_v31, %s9470_s5 }
0x1215   :  { %v2801_v18 = vpop.permute.xlu0 %2800 }
0x1216   :  { %v2803_v15 = vmul.f32 %v9083_v14, %v2801_v18 }
0x1218   :  { %2805 = vrot.lane.b32.xlu0 %v2803_v15, %s9470_s5 }
0x1286   :  { %v2817_v20 = vpop.permute.xlu1 %2816 }
0x1287   :  { %v10068_v21 = vadd.f32 %v2817_v20, %v2809_v19 }
0x1289   :  { %9084 = vtanh.f32 %v10068_v21 }
0x128a   :  { %v2806_v33 = vpop.permute.xlu0 %2805 }
0x128b   :  { %v10072_v34 = vadd.f32 %v2806_v33, %v2798_v32 }
0x128d   :  { %9086 = vtanh.f32 %v10072_v34 }
0x1296   :  { %v9085_v16 = vpop.eup %9084 }
0x1297   :  { %2828 = vrot.lane.b32.xlu1 %v9085_v16, %s9470_s5 }
0x129a   :  { %v9087_v35 = vpop.eup %9086 }
0x129b   :  { %2822 = vrot.lane.b32.xlu0 %v9087_v35, %s9470_s5 }
0x1309   :  { %v2829_v17 = vpop.permute.xlu1 %2828 }
0x130a   :  { %v2831_v36 = vmul.f32 %v9081_v27, %v2829_v17 }
0x130c   :  { %2839 = vrot.lane.b32.xlu1 %v2831_v36, %s9471_s6 }
0x130d   :  { %v2823_v37 = vpop.permute.xlu0 %2822 }
0x130e   :  { %v2825_v38 = vmul.f32 %v9083_v14, %v2823_v37 }
0x1310   :  { %2833 = vrot.lane.b32.xlu1 %v2825_v38, %s9471_s6 }
0x137e   :  { %v2840_v40 = vpop.permute.xlu1 %2839 }
0x137f   :  { %2843 = vst.msk [vmem:[#allocation5 + $0x2] sm:$0x3] %vm1588_vm2, %v2840_v40  ;;  %8394 = vmatmul.mubr.msk.f32.vlgmr.msra.gmra.mxu1 %vm1389_vm3, %v2840_v40 }
0x1380   :  { %8408 = vmatpush3.msra.mxu1 %v10082_v39  ;;  %8415 = vmatprep.mubr.msk.f32.mxu1 %vm9469_vm0, %v9468_v1 }
0x1381   :  { %8409 = vmatprep.subr.mxu1 %v9468_v1 }
0x1382   :  { %8410 = vmatpush3.msra.mxu1 %v10089_v41  ;;  %v2834_v43 = vpop.permute.xlu1 %2833 }
0x1383   :  { %8411 = vmatprep.subr.mxu1 %v9468_v1  ;;  %2837 = vst.msk [vmem:[#allocation4 + $0xc] sm:$0x3] %vm1588_vm2, %v2834_v43  ;;  %8383 = vmatmul.mubr.msk.f32.vlgmr.msra.gmra.mxu0 %vm1389_vm3, %v2834_v43 }
0x1384   :  { %8412 = vmatpush3.msra.mxu1 %v10098_v42  ;;  %8404 = vmatprep.mubr.msk.f32.mxu0 %vm9469_vm0, %v9468_v1 }
0x1385   :  { %8413 = vmatprep.subr.mxu1 %v9468_v1 }
0x1386   :  { %8414 = vmatpush3.msra.mxu1 %v10107_v44 }
0x1387   :  { %8416 = vmatmul.mubr.msk.f32.vlgmr.msra.gmra.mxu1 %vm1389_vm3, %v3077_v46  ;;  %8429 = vmatprep.subr.mxu1 %v9468_v1 }
0x1388   :  { %8430 = vmatpush3.msra.mxu1 %v10116_v45  ;;  %8437 = vmatprep.mubr.msk.f32.mxu1 %vm9469_vm0, %v9468_v1 }
0x1389   :  { %8431 = vmatprep.subr.mxu1 %v9468_v1 }
0x138a   :  { %8432 = vmatpush3.msra.mxu1 %v10124_v47  ;;  %v4841_v55 = vld [vmem:[#allocation4 + $0xc] sm:$0x3] }
0x138b   :  { %8433 = vmatprep.subr.mxu1 %v9468_v1 }
0x138c   :  { %8434 = vmatpush3.msra.mxu1 %v10133_v48 }
0x138d   :  { %8435 = vmatprep.subr.mxu1 %v9468_v1 }
0x138e   :  { %8436 = vmatpush3.msra.mxu1 %v10140_v49 }
0x138f   :  { %8438 = vmatmul.mubr.msk.f32.vlgmr.msra.gmra.mxu1 %vm1389_vm3, %v3077_v46  ;;  %8451 = vmatprep.subr.mxu1 %v9468_v1 }
0x1390   :  { %8452 = vmatpush3.msra.mxu1 %v10082_v39  ;;  %8459 = vmatprep.mubr.msk.f32.mxu1 %vm9469_vm0, %v9468_v1 }
0x1391   :  { %8453 = vmatprep.subr.mxu1 %v9468_v1 }
0x1392   :  { %8454 = vmatpush3.msra.mxu1 %v10089_v41 }
0x1393   :  { %8455 = vmatprep.subr.mxu1 %v9468_v1 }
0x1394   :  { %8456 = vmatpush3.msra.mxu1 %v10098_v42 }
0x1395   :  { %8457 = vmatprep.subr.mxu1 %v9468_v1 }
0x1396   :  { %8458 = vmatpush3.msra.mxu1 %v10107_v44 }
0x1397   :  { %8460 = vmatmul.mubr.msk.f32.vlgmr.msra.gmra.mxu1 %vm1389_vm3, %v3381_v50  ;;  %8473 = vmatprep.subr.mxu1 %v9468_v1 }
0x1398   :  { %8474 = vmatpush3.msra.mxu1 %v10116_v45  ;;  %8481 = vmatprep.mubr.msk.f32.mxu1 %vm9469_vm0, %v9468_v1 }
0x1399   :  { %8475 = vmatprep.subr.mxu1 %v9468_v1 }
0x139a   :  { %8476 = vmatpush3.msra.mxu1 %v10124_v47 }
0x139b   :  { %8477 = vmatprep.subr.mxu1 %v9468_v1 }
0x139c   :  { %8478 = vmatpush3.msra.mxu1 %v10133_v48 }
0x139d   :  { %8479 = vmatprep.subr.mxu1 %v9468_v1 }
0x139e   :  { %8480 = vmatpush3.msra.mxu1 %v10140_v49 }
0x139f   :  { %8482 = vmatmul.mubr.msk.f32.vlgmr.msra.gmra.mxu1 %vm1389_vm3, %v3381_v50  ;;  %8495 = vmatprep.subr.mxu1 %v9468_v1 }
0x13a0   :  { %8496 = vmatpush3.msra.mxu1 %v10082_v39  ;;  %8503 = vmatprep.mubr.msk.f32.mxu1 %vm9469_vm0, %v9468_v1 }
0x13a1   :  { %8497 = vmatprep.subr.mxu1 %v9468_v1 }
0x13a2   :  { %8498 = vmatpush3.msra.mxu1 %v10089_v41 }
0x13a3   :  { %8499 = vmatprep.subr.mxu1 %v9468_v1 }
0x13a4   :  { %8500 = vmatpush3.msra.mxu1 %v10098_v42 }
0x13a5   :  { %8501 = vmatprep.subr.mxu1 %v9468_v1 }
0x13a6   :  { %8502 = vmatpush3.msra.mxu1 %v10107_v44 }
0x13a7   :  { %8504 = vmatmul.mubr.msk.f32.vlgmr.msra.gmra.mxu1 %vm1389_vm3, %v3673_v51  ;;  %8517 = vmatprep.subr.mxu1 %v9468_v1 }
0x13a8   :  { %8518 = vmatpush3.msra.mxu1 %v10116_v45  ;;  %8525 = vmatprep.mubr.msk.f32.mxu1 %vm9469_vm0, %v9468_v1 }
0x13a9   :  { %8519 = vmatprep.subr.mxu1 %v9468_v1 }
0x13aa   :  { %8520 = vmatpush3.msra.mxu1 %v10124_v47 }
0x13ab   :  { %8521 = vmatprep.subr.mxu1 %v9468_v1 }
0x13ac   :  { %8522 = vmatpush3.msra.mxu1 %v10133_v48 }
0x13ad   :  { %8523 = vmatprep.subr.mxu1 %v9468_v1 }
0x13ae   :  { %8524 = vmatpush3.msra.mxu1 %v10140_v49 }
0x13af   :  { %8526 = vmatmul.mubr.msk.f32.vlgmr.msra.gmra.mxu1 %vm1389_vm3, %v3673_v51  ;;  %8539 = vmatprep.subr.mxu1 %v9468_v1 }
0x13b0   :  { %8540 = vmatpush3.msra.mxu1 %v10082_v39  ;;  %8547 = vmatprep.mubr.msk.f32.mxu1 %vm9469_vm0, %v9468_v1 }
0x13b1   :  { %8541 = vmatprep.subr.mxu1 %v9468_v1 }
0x13b2   :  { %8542 = vmatpush3.msra.mxu1 %v10089_v41 }
0x13b3   :  { %8543 = vmatprep.subr.mxu1 %v9468_v1 }
0x13b4   :  { %8544 = vmatpush3.msra.mxu1 %v10098_v42 }
0x13b5   :  { %8545 = vmatprep.subr.mxu1 %v9468_v1 }
0x13b6   :  { %8546 = vmatpush3.msra.mxu1 %v10107_v44 }
0x13b7   :  { %8548 = vmatmul.mubr.msk.f32.vlgmr.msra.gmra.mxu1 %vm1389_vm3, %v3965_v52  ;;  %8561 = vmatprep.subr.mxu1 %v9468_v1 }
0x13b8   :  { %8562 = vmatpush3.msra.mxu1 %v10116_v45  ;;  %8569 = vmatprep.mubr.msk.f32.mxu1 %vm9469_vm0, %v9468_v1 }
0x13b9   :  { %8563 = vmatprep.subr.mxu1 %v9468_v1 }
0x13ba   :  { %8564 = vmatpush3.msra.mxu1 %v10124_v47 }
0x13bb   :  { %8565 = vmatprep.subr.mxu1 %v9468_v1 }
0x13bc   :  { %8566 = vmatpush3.msra.mxu1 %v10133_v48 }
0x13bd   :  { %8567 = vmatprep.subr.mxu1 %v9468_v1 }
0x13be   :  { %8568 = vmatpush3.msra.mxu1 %v10140_v49 }
0x13bf   :  { %8570 = vmatmul.mubr.msk.f32.vlgmr.msra.gmra.mxu1 %vm1389_vm3, %v3965_v52  ;;  %8583 = vmatprep.subr.mxu1 %v9468_v1 }
0x13c0   :  { %8584 = vmatpush3.msra.mxu1 %v10082_v39  ;;  %8591 = vmatprep.mubr.msk.f32.mxu1 %vm9469_vm0, %v9468_v1 }
0x13c1   :  { %8585 = vmatprep.subr.mxu1 %v9468_v1 }
0x13c2   :  { %8586 = vmatpush3.msra.mxu1 %v10089_v41 }
0x13c3   :  { %8587 = vmatprep.subr.mxu1 %v9468_v1 }
0x13c4   :  { %8588 = vmatpush3.msra.mxu1 %v10098_v42 }
0x13c5   :  { %8589 = vmatprep.subr.mxu1 %v9468_v1 }
0x13c6   :  { %8590 = vmatpush3.msra.mxu1 %v10107_v44 }
0x13c7   :  { %8592 = vmatmul.mubr.msk.f32.vlgmr.msra.gmra.mxu1 %vm1389_vm3, %v4257_v53  ;;  %8605 = vmatprep.subr.mxu1 %v9468_v1 }
0x13c8   :  { %8606 = vmatpush3.msra.mxu1 %v10116_v45  ;;  %8613 = vmatprep.mubr.msk.f32.mxu1 %vm9469_vm0, %v9468_v1 }
0x13c9   :  { %8607 = vmatprep.subr.mxu1 %v9468_v1 }
0x13ca   :  { %8608 = vmatpush3.msra.mxu1 %v10124_v47 }
0x13cb   :  { %8609 = vmatprep.subr.mxu1 %v9468_v1 }
0x13cc   :  { %8610 = vmatpush3.msra.mxu1 %v10133_v48 }
0x13cd   :  { %8611 = vmatprep.subr.mxu1 %v9468_v1 }
0x13ce   :  { %8612 = vmatpush3.msra.mxu1 %v10140_v49 }
0x13cf   :  { %8614 = vmatmul.mubr.msk.f32.vlgmr.msra.gmra.mxu1 %vm1389_vm3, %v4257_v53  ;;  %8627 = vmatprep.subr.mxu1 %v9468_v1 }
0x13d0   :  { %8628 = vmatpush3.msra.mxu1 %v10082_v39  ;;  %8635 = vmatprep.mubr.msk.f32.mxu1 %vm9469_vm0, %v9468_v1 }
0x13d1   :  { %8629 = vmatprep.subr.mxu1 %v9468_v1 }
0x13d2   :  { %8630 = vmatpush3.msra.mxu1 %v10089_v41 }
0x13d3   :  { %8631 = vmatprep.subr.mxu1 %v9468_v1 }
0x13d4   :  { %8632 = vmatpush3.msra.mxu1 %v10098_v42 }
0x13d5   :  { %8633 = vmatprep.subr.mxu1 %v9468_v1 }
0x13d6   :  { %8634 = vmatpush3.msra.mxu1 %v10107_v44 }
0x13d7   :  { %8636 = vmatmul.mubr.msk.f32.vlgmr.msra.gmra.mxu1 %vm1389_vm3, %v4549_v54  ;;  %8649 = vmatprep.subr.mxu1 %v9468_v1 }
0x13d8   :  { %8650 = vmatpush3.msra.mxu1 %v10116_v45  ;;  %8657 = vmatprep.mubr.msk.f32.mxu1 %vm9469_vm0, %v9468_v1 }
0x13d9   :  { %8651 = vmatprep.subr.mxu1 %v9468_v1 }
0x13da   :  { %8652 = vmatpush3.msra.mxu1 %v10124_v47 }
0x13db   :  { %8653 = vmatprep.subr.mxu1 %v9468_v1 }
0x13dc   :  { %8654 = vmatpush3.msra.mxu1 %v10133_v48 }
0x13dd   :  { %8655 = vmatprep.subr.mxu1 %v9468_v1 }
0x13de   :  { %8656 = vmatpush3.msra.mxu1 %v10140_v49 }
0x13df   :  { %8658 = vmatmul.mubr.msk.f32.vlgmr.msra.gmra.mxu1 %vm1389_vm3, %v4549_v54  ;;  %8671 = vmatprep.subr.mxu1 %v9468_v1 }
0x13e0   :  { %8672 = vmatpush3.msra.mxu1 %v10082_v39  ;;  %8679 = vmatprep.mubr.msk.f32.mxu1 %vm9469_vm0, %v9468_v1 }
0x13e1   :  { %8673 = vmatprep.subr.mxu1 %v9468_v1 }
0x13e2   :  { %8674 = vmatpush3.msra.mxu1 %v10089_v41 }
0x13e3   :  { %8675 = vmatprep.subr.mxu1 %v9468_v1 }
0x13e4   :  { %8676 = vmatpush3.msra.mxu1 %v10098_v42 }
0x13e5   :  { %8677 = vmatprep.subr.mxu1 %v9468_v1 }
0x13e6   :  { %8678 = vmatpush3.msra.mxu1 %v10107_v44 }
0x13e7   :  { %8680 = vmatmul.mubr.msk.f32.vlgmr.msra.gmra.mxu1 %vm1389_vm3, %v4841_v55  ;;  %8693 = vmatprep.subr.mxu1 %v9468_v1 }
0x13e8   :  { %8694 = vmatpush3.msra.mxu1 %v10116_v45  ;;  %8701 = vmatprep.mubr.msk.f32.mxu1 %vm9469_vm0, %v9468_v1 }
0x13e9   :  { %8695 = vmatprep.subr.mxu1 %v9468_v1 }
0x13ea   :  { %8696 = vmatpush3.msra.mxu1 %v10124_v47 }
0x13eb   :  { %8697 = vmatprep.subr.mxu1 %v9468_v1 }
0x13ec   :  { %8698 = vmatpush3.msra.mxu1 %v10133_v48 }
0x13ed   :  { %8699 = vmatprep.subr.mxu1 %v9468_v1 }
0x13ee   :  { %8700 = vmatpush3.msra.mxu1 %v10140_v49 }
0x13ef   :  { %8702 = vmatmul.mubr.msk.f32.vlgmr.msra.gmra.mxu1 %vm1389_vm3, %v4841_v55  ;;  %8715 = vmatprep.subr.mxu1 %v9468_v1 }
0x13f0   :  { %8716 = vmatpush3.msra.mxu1 %v10082_v39  ;;  %8723 = vmatprep.mubr.msk.f32.mxu1 %vm9469_vm0, %v9468_v1 }
0x13f1   :  { %8717 = vmatprep.subr.mxu1 %v9468_v1 }
0x13f2   :  { %8718 = vmatpush3.msra.mxu1 %v10089_v41 }
0x13f3   :  { %8719 = vmatprep.subr.mxu1 %v9468_v1 }
0x13f4   :  { %8720 = vmatpush3.msra.mxu1 %v10098_v42 }
0x13f5   :  { %8721 = vmatprep.subr.mxu1 %v9468_v1 }
0x13f6   :  { %8722 = vmatpush3.msra.mxu1 %v10107_v44 }
0x13f7   :  { %8737 = vmatprep.subr.mxu1 %v9468_v1 }
0x143f   :  { %v2987_v57 = vpop.f32.mrf.mxu1 }
0x1440   :  { %v2991_v58 = vadd.f32 %v2987_v57, %v2918_v56  ;;  %v10328_v57 = vld [vmem:[%s11099_s7 + $0x38] sm:$0xff] }
0x1441   :  { %v8395_v59 = vpop.f32.mrf.mxu1  ;;  %8397 = vmatpush3.msra.mxu0 %v10328_v57 }
0x1442   :  { %9088 = vtanh.f32 %v2991_v58  ;;  %v7653_v18 = vmul.f32 -1.442695, %v2991_v58  ;;  %8398 = vmatprep.subr.mxu0 %v9468_v1  ;;  %v10347_v58 = vld [vmem:[%s11099_s7 + $0x20] sm:$0xff] }
0x1443   :  { %v2913_v61 = vpop.f32.mrf.mxu0 }
0x1444   :  { %v2917_v62 = vadd.f32 %v2913_v61, %v2844_v60 }
0x1445   :  { %v8384_v63 = vpop.f32.mrf.mxu0 }
0x1446   :  { %9090 = vtanh.f32 %v2917_v62  ;;  %v7652_v19 = vmul.f32 -1.442695, %v2917_v62 }
0x1447   :  { %v10289_v0 = vpop.f32.mrf.mxu1  ;;  %9092 = vpow2.f32 %v7653_v18  ;;  %v5134_v18 = vld [vmem:[#allocation5 + $0xe] sm:$0x3] }
0x1448   :  { %9094 = vpow2.f32 %v7652_v19  ;;  %v10581_v19 = vld [vmem:[#allocation15 + $0x18] sm:$0xff] }
0x1449   :  { %v8417_v2 = vpop.f32.mrf.mxu1 }
0x144f   :  { %v9089_v3 = vpop.eup %9088  ;;  %v10291_v4 = vpop.f32.mrf.mxu1 }
0x1450   :  { %3019 = vrot.lane.b32.xlu0 %v9089_v3, %s9470_s5  ;;  %v10360_v3 = vld [vmem:[%s11100_s8 + $0x38] sm:$0xff] }
0x1451   :  { %v8439_v5 = vpop.f32.mrf.mxu1 }
0x1453   :  { %v9091_v6 = vpop.eup %9090 }
0x1454   :  { %3008 = vrot.lane.b32.xlu0 %v9091_v6, %s9470_s5  ;;  %v9093_v16 = vpop.eup %9092  ;;  %v10366_v6 = vld [vmem:[%s11100_s8 + $0x30] sm:$0xff] }
0x1455   :  { %v3001_v17 = vadd.f32 1.0, %v9093_v16  ;;  %v9095_v37 = vpop.eup %9094  ;;  %v10596_v16 = vld [vmem:[#allocation15] sm:$0xff] }
0x1456   :  { %v2995_v38 = vadd.f32 1.0, %v9095_v37 }
0x1457   :  { %v10295_v7 = vpop.f32.mrf.mxu1  ;;  %9096 = vrcp.f32 %v3001_v17  ;;  %v10616_v17 = vld [vmem:[%s11103_s11] ss:$0 sm:$0xff]  ;;  %s9472_s11 = smov 96  }
0x1458   :  { %9098 = vrcp.f32 %v2995_v38 }
0x1459   :  { %v8461_v8 = vpop.f32.mrf.mxu1 }
0x145a   :  { %v10375_v8 = vld [vmem:[%s11100_s8 + $0x28] sm:$0xff] }
0x145f   :  { %v10297_v9 = vpop.f32.mrf.mxu1 }
0x1461   :  { %v8483_v10 = vpop.f32.mrf.mxu1 }
0x1464   :  { %v9097_v39 = vpop.eup %9096 }
0x1465   :  { %v9099_v42 = vpop.eup %9098  ;;  %v3017_v46 = vmul.f32 %v9097_v39, %v10068_v21  ;;  %v10333_v21 = vld [vmem:[%s11099_s7 + $0x30] sm:$0xff] }
0x1466   :  { %v3006_v52 = vmul.f32 %v9099_v42, %v10072_v34  ;;  %8399 = vmatpush3.msra.mxu0 %v10333_v21  ;;  %v10342_v34 = vld [vmem:[%s11099_s7 + $0x28] sm:$0xff] }
0x1467   :  { %v10299_v11 = vpop.f32.mrf.mxu1  ;;  %8400 = vmatprep.subr.mxu0 %v9468_v1 }
0x1468   :  { %8401 = vmatpush3.msra.mxu0 %v10342_v34 }
0x1469   :  { %v8505_v12 = vpop.f32.mrf.mxu1  ;;  %8402 = vmatprep.subr.mxu0 %v9468_v1 }
0x146a   :  { %8403 = vmatpush3.msra.mxu0 %v10347_v58  ;;  %v10383_v12 = vld [vmem:[%s11100_s8 + $0x20] sm:$0xff] }
0x146b   :  { %8418 = vmatprep.subr.mxu0 %v9468_v1 }
0x146f   :  { %v10301_v13 = vpop.f32.mrf.mxu1 }
0x1471   :  { %v8527_v23 = vpop.f32.mrf.mxu1 }
0x1472   :  { %v10428_v23 = vld [vmem:[#allocation16] sm:$0xff] }
0x1477   :  { %v10303_v24 = vpop.f32.mrf.mxu1 }
0x1479   :  { %v8549_v25 = vpop.f32.mrf.mxu1 }
0x147a   :  { %v3674_v25 = vld [vmem:[#allocation5 + $0x4] sm:$0x3] }
0x147f   :  { %v10305_v22 = vpop.f32.mrf.mxu1 }
0x1481   :  { %v8571_v26 = vpop.f32.mrf.mxu1 }
0x1482   :  { %v3966_v26 = vld [vmem:[#allocation5 + $0x6] sm:$0x3] }
0x1487   :  { %v10307_v28 = vpop.f32.mrf.mxu1 }
0x1489   :  { %v8593_v29 = vpop.f32.mrf.mxu1 }
0x148a   :  { %v4258_v29 = vld [vmem:[#allocation5 + $0x8] sm:$0x3] }
0x148f   :  { %v10309_v27 = vpop.f32.mrf.mxu1 }
0x1491   :  { %v8615_v30 = vpop.f32.mrf.mxu1 }
0x1492   :  { %v4550_v30 = vld [vmem:[#allocation5 + $0xa] sm:$0x3] }
0x1497   :  { %v10311_v31 = vpop.f32.mrf.mxu1 }
0x1499   :  { %v8637_v14 = vpop.f32.mrf.mxu1 }
0x149a   :  { %v4842_v14 = vld [vmem:[#allocation5 + $0xc] sm:$0x3] }
0x149f   :  { %v10313_v15 = vpop.f32.mrf.mxu1 }
0x14a1   :  { %v8659_v20 = vpop.f32.mrf.mxu1 }
0x14a2   :  { %v10586_v20 = vld [vmem:[#allocation15 + $0x10] sm:$0xff] }
0x14a7   :  { %v10315_v32 = vpop.f32.mrf.mxu1 }
0x14a9   :  { %v8681_v33 = vpop.f32.mrf.mxu1 }
0x14aa   :  { %v10592_v33 = vld [vmem:[#allocation15 + $0x8] sm:$0xff] }
0x14af   :  { %v10317_v35 = vpop.f32.mrf.mxu1 }
0x14b1   :  { %v8703_v36 = vpop.f32.mrf.mxu1 }
0x14c2   :  { %v3020_v40 = vpop.permute.xlu0 %3019 }
0x14c3   :  { %v3022_v41 = vmul.f32 %v9097_v39, %v3020_v40 }
0x14c5   :  { %3024 = vrot.lane.b32.xlu1 %v3022_v41, %s9470_s5 }
0x14c6   :  { %v3009_v43 = vpop.permute.xlu0 %3008 }
0x14c7   :  { %v3011_v44 = vmul.f32 %v9099_v42, %v3009_v43 }
0x14c9   :  { %3013 = vrot.lane.b32.xlu0 %v3011_v44, %s9470_s5 }
0x1537   :  { %v3025_v50 = vpop.permute.xlu1 %3024 }
0x1538   :  { %v3027_v51 = vadd.f32 %v3025_v50, %v3017_v46 }
0x153a   :  { %9100 = vtanh.f32 %v3027_v51 }
0x153b   :  { %v3014_v53 = vpop.permute.xlu0 %3013 }
0x153c   :  { %v3016_v54 = vadd.f32 %v3014_v53, %v3006_v52 }
0x153e   :  { %9102 = vtanh.f32 %v3016_v54 }
0x1547   :  { %v9101_v55 = vpop.eup %9100 }
0x1548   :  { %3036 = vrot.lane.b32.xlu1 %v9101_v55, %s9470_s5 }
0x154b   :  { %v9103_v56 = vpop.eup %9102 }
0x154c   :  { %3030 = vrot.lane.b32.xlu0 %v9103_v56, %s9470_s5 }
0x15ba   :  { %v3037_v59 = vpop.permute.xlu1 %3036 }
0x15bb   :  { %v3039_v60 = vmul.f32 %v9097_v39, %v3037_v59 }
0x15bd   :  { %3047 = vrot.lane.b32.xlu1 %v3039_v60, %s9471_s6 }
0x15be   :  { %v3031_v61 = vpop.permute.xlu0 %3030 }
0x15bf   :  { %v3033_v62 = vmul.f32 %v9099_v42, %v3031_v61  ;;  %v10625_v42 = vld [vmem:[%s11104_s12] ss:$0 sm:$0xff] }
0x15c1   :  { %3041 = vrot.lane.b32.xlu1 %v3033_v62, %s9471_s6 }
0x162f   :  { %v3048_v63 = vpop.permute.xlu1 %3047 }
0x1630   :  { %3050 = vst.msk [vmem:[#allocation5] sm:$0x3] %vm1588_vm2, %v3048_v63 }
0x1633   :  { %v3042_v2 = vpop.permute.xlu1 %3041 }
0x1634   :  { %3045 = vst.msk [vmem:[#allocation4 + $0xe] sm:$0x3] %vm1588_vm2, %v3042_v2 }
0x1637   :  { %v3078_v5 = vld [vmem:[#allocation5] sm:$0x3] }
0x1638   :  { %8405 = vmatmul.mubr.msk.f32.vlgmr.msra.gmra.mxu0 %vm1389_vm3, %v3078_v5 }
0x1639   :  { %8419 = vmatpush3.msra.mxu0 %v10360_v3  ;;  %8426 = vmatprep.mubr.msk.f32.mxu0 %vm9469_vm0, %v9468_v1 }
0x163a   :  { %8420 = vmatprep.subr.mxu0 %v9468_v1 }
0x163b   :  { %8421 = vmatpush3.msra.mxu0 %v10366_v6  ;;  %v5133_v10 = vld [vmem:[#allocation4 + $0xe] sm:$0x3] }
0x163c   :  { %8422 = vmatprep.subr.mxu0 %v9468_v1  ;;  %8724 = vmatmul.mubr.msk.f32.vlgmr.msra.gmra.mxu1 %vm1389_vm3, %v5133_v10 }
0x163d   :  { %8423 = vmatpush3.msra.mxu0 %v10375_v8  ;;  %8738 = vmatpush3.msra.mxu1 %v10116_v45  ;;  %v10404_v45 = vld [vmem:[#allocation16 + $0x18] sm:$0xff] }
0x163e   :  { %8424 = vmatprep.subr.mxu0 %v9468_v1  ;;  %8739 = vmatprep.subr.mxu1 %v9468_v1 }
0x163f   :  { %8425 = vmatpush3.msra.mxu0 %v10383_v12  ;;  %8740 = vmatpush3.msra.mxu1 %v10124_v47  ;;  %v3382_v47 = vld [vmem:[#allocation5 + $0x2] sm:$0x3] }
0x1640   :  { %8427 = vmatmul.mubr.msk.f32.vlgmr.msra.gmra.mxu0 %vm1389_vm3, %v3078_v5  ;;  %8440 = vmatprep.subr.mxu0 %v9468_v1 }
0x1641   :  { %8741 = vmatprep.subr.mxu1 %v9468_v1  ;;  %8441 = vmatpush3.msra.mxu0 %v10328_v57 }
0x1642   :  { %8742 = vmatpush3.msra.mxu1 %v10133_v48  ;;  %8442 = vmatprep.subr.mxu0 %v9468_v1  ;;  %v10415_v48 = vld [vmem:[#allocation16 + $0x10] sm:$0xff] }
0x1643   :  { %8743 = vmatprep.subr.mxu1 %v9468_v1  ;;  %8443 = vmatpush3.msra.mxu0 %v10333_v21 }
0x1644   :  { %8744 = vmatpush3.msra.mxu1 %v10140_v49  ;;  %8745 = vmatprep.mubr.msk.f32.mxu1 %vm9469_vm0, %v9468_v1  ;;  %v10422_v49 = vld [vmem:[#allocation16 + $0x8] sm:$0xff] }
0x1645   :  { %8444 = vmatprep.subr.mxu0 %v9468_v1  ;;  %8746 = vmatmul.mubr.msk.f32.vlgmr.msra.gmra.mxu1 %vm1389_vm3, %v5133_v10 }
0x1646   :  { %8445 = vmatpush3.msra.mxu0 %v10342_v34  ;;  %8448 = vmatprep.mubr.msk.f32.mxu0 %vm9469_vm0, %v9468_v1 }
0x1647   :  { %8446 = vmatprep.subr.mxu0 %v9468_v1  ;;  %8759 = vmatprep.subr.mxu1 %v9468_v1 }
0x1648   :  { %8447 = vmatpush3.msra.mxu0 %v10347_v58  ;;  %8760 = vmatpush3.msra.mxu1 %v10404_v45 }
0x1649   :  { %8449 = vmatmul.mubr.msk.f32.vlgmr.msra.gmra.mxu0 %vm1389_vm3, %v3382_v47  ;;  %8462 = vmatprep.subr.mxu0 %v9468_v1 }
0x164a   :  { %8463 = vmatpush3.msra.mxu0 %v10360_v3  ;;  %8470 = vmatprep.mubr.msk.f32.mxu0 %vm9469_vm0, %v9468_v1 }
0x164b   :  { %8464 = vmatprep.subr.mxu0 %v9468_v1  ;;  %8761 = vmatprep.subr.mxu1 %v9468_v1 }
0x164c   :  { %8465 = vmatpush3.msra.mxu0 %v10366_v6  ;;  %8762 = vmatpush3.msra.mxu1 %v10415_v48 }
0x164d   :  { %8466 = vmatprep.subr.mxu0 %v9468_v1  ;;  %8763 = vmatprep.subr.mxu1 %v9468_v1 }
0x164e   :  { %8467 = vmatpush3.msra.mxu0 %v10375_v8  ;;  %8764 = vmatpush3.msra.mxu1 %v10422_v49 }
0x164f   :  { %8468 = vmatprep.subr.mxu0 %v9468_v1  ;;  %8765 = vmatprep.subr.mxu1 %v9468_v1 }
0x1650   :  { %8469 = vmatpush3.msra.mxu0 %v10383_v12  ;;  %8766 = vmatpush3.msra.mxu1 %v10428_v23 }
0x1651   :  { %8471 = vmatmul.mubr.msk.f32.vlgmr.msra.gmra.mxu0 %vm1389_vm3, %v3382_v47  ;;  %8484 = vmatprep.subr.mxu0 %v9468_v1 }
0x1652   :  { %8485 = vmatpush3.msra.mxu0 %v10328_v57  ;;  %8492 = vmatprep.mubr.msk.f32.mxu0 %vm9469_vm0, %v9468_v1 }
0x1653   :  { %8486 = vmatprep.subr.mxu0 %v9468_v1  ;;  %8767 = vmatprep.mubr.msk.f32.mxu1 %vm9469_vm0, %v9468_v1 }
0x1654   :  { %8487 = vmatpush3.msra.mxu0 %v10333_v21  ;;  %8768 = vmatmul.mubr.f32.vlgmr.msra.gmra.mxu1 %v9468_v1 }
0x1655   :  { %8488 = vmatprep.subr.mxu0 %v9468_v1  ;;  %8781 = vmatprep.subr.mxu1 %v9468_v1 }
0x1656   :  { %8489 = vmatpush3.msra.mxu0 %v10342_v34  ;;  %8782 = vmatpush3.msra.mxu1 %v10404_v45 }
0x1657   :  { %8490 = vmatprep.subr.mxu0 %v9468_v1  ;;  %8783 = vmatprep.subr.mxu1 %v9468_v1 }
0x1658   :  { %8491 = vmatpush3.msra.mxu0 %v10347_v58  ;;  %8784 = vmatpush3.msra.mxu1 %v10415_v48 }
0x1659   :  { %8493 = vmatmul.mubr.msk.f32.vlgmr.msra.gmra.mxu0 %vm1389_vm3, %v3674_v25  ;;  %8506 = vmatprep.subr.mxu0 %v9468_v1 }
0x165a   :  { %8507 = vmatpush3.msra.mxu0 %v10360_v3  ;;  %8514 = vmatprep.mubr.msk.f32.mxu0 %vm9469_vm0, %v9468_v1 }
0x165b   :  { %8508 = vmatprep.subr.mxu0 %v9468_v1  ;;  %8785 = vmatprep.subr.mxu1 %v9468_v1 }
0x165c   :  { %8509 = vmatpush3.msra.mxu0 %v10366_v6  ;;  %8786 = vmatpush3.msra.mxu1 %v10422_v49 }
0x165d   :  { %8510 = vmatprep.subr.mxu0 %v9468_v1  ;;  %8787 = vmatprep.subr.mxu1 %v9468_v1 }
0x165e   :  { %8511 = vmatpush3.msra.mxu0 %v10375_v8  ;;  %8788 = vmatpush3.msra.mxu1 %v10428_v23 }
0x165f   :  { %8512 = vmatprep.subr.mxu0 %v9468_v1  ;;  %8789 = vmatprep.mubr.msk.f32.mxu1 %vm9469_vm0, %v9468_v1 }
0x1660   :  { %8513 = vmatpush3.msra.mxu0 %v10383_v12  ;;  %8803 = vmatprep.subr.mxu1 %v9468_v1 }
0x1661   :  { %8515 = vmatmul.mubr.msk.f32.vlgmr.msra.gmra.mxu0 %vm1389_vm3, %v3674_v25  ;;  %8528 = vmatprep.subr.mxu0 %v9468_v1 }
0x1662   :  { %8529 = vmatpush3.msra.mxu0 %v10328_v57  ;;  %8536 = vmatprep.mubr.msk.f32.mxu0 %vm9469_vm0, %v9468_v1 }
0x1663   :  { %8530 = vmatprep.subr.mxu0 %v9468_v1 }
0x1664   :  { %8531 = vmatpush3.msra.mxu0 %v10333_v21 }
0x1665   :  { %8532 = vmatprep.subr.mxu0 %v9468_v1 }
0x1666   :  { %8533 = vmatpush3.msra.mxu0 %v10342_v34 }
0x1667   :  { %8534 = vmatprep.subr.mxu0 %v9468_v1 }
0x1668   :  { %8535 = vmatpush3.msra.mxu0 %v10347_v58 }
0x1669   :  { %8537 = vmatmul.mubr.msk.f32.vlgmr.msra.gmra.mxu0 %vm1389_vm3, %v3966_v26  ;;  %8550 = vmatprep.subr.mxu0 %v9468_v1 }
0x166a   :  { %8551 = vmatpush3.msra.mxu0 %v10360_v3  ;;  %8558 = vmatprep.mubr.msk.f32.mxu0 %vm9469_vm0, %v9468_v1 }
0x166b   :  { %8552 = vmatprep.subr.mxu0 %v9468_v1 }
0x166c   :  { %8553 = vmatpush3.msra.mxu0 %v10366_v6 }
0x166d   :  { %8554 = vmatprep.subr.mxu0 %v9468_v1 }
0x166e   :  { %8555 = vmatpush3.msra.mxu0 %v10375_v8 }
0x166f   :  { %8556 = vmatprep.subr.mxu0 %v9468_v1 }
0x1670   :  { %8557 = vmatpush3.msra.mxu0 %v10383_v12 }
0x1671   :  { %8559 = vmatmul.mubr.msk.f32.vlgmr.msra.gmra.mxu0 %vm1389_vm3, %v3966_v26  ;;  %8572 = vmatprep.subr.mxu0 %v9468_v1 }
0x1672   :  { %8573 = vmatpush3.msra.mxu0 %v10328_v57  ;;  %8580 = vmatprep.mubr.msk.f32.mxu0 %vm9469_vm0, %v9468_v1 }
0x1673   :  { %8574 = vmatprep.subr.mxu0 %v9468_v1 }
0x1674   :  { %8575 = vmatpush3.msra.mxu0 %v10333_v21 }
0x1675   :  { %8576 = vmatprep.subr.mxu0 %v9468_v1 }
0x1676   :  { %8577 = vmatpush3.msra.mxu0 %v10342_v34 }
0x1677   :  { %8578 = vmatprep.subr.mxu0 %v9468_v1 }
0x1678   :  { %8579 = vmatpush3.msra.mxu0 %v10347_v58 }
0x1679   :  { %8581 = vmatmul.mubr.msk.f32.vlgmr.msra.gmra.mxu0 %vm1389_vm3, %v4258_v29  ;;  %8594 = vmatprep.subr.mxu0 %v9468_v1 }
0x167a   :  { %8595 = vmatpush3.msra.mxu0 %v10360_v3  ;;  %8602 = vmatprep.mubr.msk.f32.mxu0 %vm9469_vm0, %v9468_v1 }
0x167b   :  { %8596 = vmatprep.subr.mxu0 %v9468_v1 }
0x167c   :  { %8597 = vmatpush3.msra.mxu0 %v10366_v6 }
0x167d   :  { %8598 = vmatprep.subr.mxu0 %v9468_v1 }
0x167e   :  { %8599 = vmatpush3.msra.mxu0 %v10375_v8 }
0x167f   :  { %8600 = vmatprep.subr.mxu0 %v9468_v1 }
0x1680   :  { %8601 = vmatpush3.msra.mxu0 %v10383_v12 }
0x1681   :  { %8603 = vmatmul.mubr.msk.f32.vlgmr.msra.gmra.mxu0 %vm1389_vm3, %v4258_v29  ;;  %8616 = vmatprep.subr.mxu0 %v9468_v1 }
0x1682   :  { %8617 = vmatpush3.msra.mxu0 %v10328_v57  ;;  %8624 = vmatprep.mubr.msk.f32.mxu0 %vm9469_vm0, %v9468_v1 }
0x1683   :  { %8618 = vmatprep.subr.mxu0 %v9468_v1 }
0x1684   :  { %8619 = vmatpush3.msra.mxu0 %v10333_v21 }
0x1685   :  { %8620 = vmatprep.subr.mxu0 %v9468_v1 }
0x1686   :  { %8621 = vmatpush3.msra.mxu0 %v10342_v34 }
0x1687   :  { %8622 = vmatprep.subr.mxu0 %v9468_v1 }
0x1688   :  { %8623 = vmatpush3.msra.mxu0 %v10347_v58 }
0x1689   :  { %8625 = vmatmul.mubr.msk.f32.vlgmr.msra.gmra.mxu0 %vm1389_vm3, %v4550_v30  ;;  %8638 = vmatprep.subr.mxu0 %v9468_v1 }
0x168a   :  { %8639 = vmatpush3.msra.mxu0 %v10360_v3  ;;  %8646 = vmatprep.mubr.msk.f32.mxu0 %vm9469_vm0, %v9468_v1 }
0x168b   :  { %8640 = vmatprep.subr.mxu0 %v9468_v1 }
0x168c   :  { %8641 = vmatpush3.msra.mxu0 %v10366_v6 }
0x168d   :  { %8642 = vmatprep.subr.mxu0 %v9468_v1 }
0x168e   :  { %8643 = vmatpush3.msra.mxu0 %v10375_v8 }
0x168f   :  { %8644 = vmatprep.subr.mxu0 %v9468_v1 }
0x1690   :  { %8645 = vmatpush3.msra.mxu0 %v10383_v12 }
0x1691   :  { %8647 = vmatmul.mubr.msk.f32.vlgmr.msra.gmra.mxu0 %vm1389_vm3, %v4550_v30  ;;  %8660 = vmatprep.subr.mxu0 %v9468_v1 }
0x1692   :  { %8661 = vmatpush3.msra.mxu0 %v10328_v57  ;;  %8668 = vmatprep.mubr.msk.f32.mxu0 %vm9469_vm0, %v9468_v1 }
0x1693   :  { %8662 = vmatprep.subr.mxu0 %v9468_v1 }
0x1694   :  { %8663 = vmatpush3.msra.mxu0 %v10333_v21 }
0x1695   :  { %8664 = vmatprep.subr.mxu0 %v9468_v1 }
0x1696   :  { %8665 = vmatpush3.msra.mxu0 %v10342_v34 }
0x1697   :  { %8666 = vmatprep.subr.mxu0 %v9468_v1 }
0x1698   :  { %8667 = vmatpush3.msra.mxu0 %v10347_v58 }
0x1699   :  { %8669 = vmatmul.mubr.msk.f32.vlgmr.msra.gmra.mxu0 %vm1389_vm3, %v4842_v14  ;;  %8682 = vmatprep.subr.mxu0 %v9468_v1 }
0x169a   :  { %8683 = vmatpush3.msra.mxu0 %v10360_v3  ;;  %8690 = vmatprep.mubr.msk.f32.mxu0 %vm9469_vm0, %v9468_v1 }
0x169b   :  { %8684 = vmatprep.subr.mxu0 %v9468_v1 }
0x169c   :  { %8685 = vmatpush3.msra.mxu0 %v10366_v6 }
0x169d   :  { %8686 = vmatprep.subr.mxu0 %v9468_v1 }
0x169e   :  { %8687 = vmatpush3.msra.mxu0 %v10375_v8 }
0x169f   :  { %8688 = vmatprep.subr.mxu0 %v9468_v1 }
0x16a0   :  { %8689 = vmatpush3.msra.mxu0 %v10383_v12 }
0x16a1   :  { %8691 = vmatmul.mubr.msk.f32.vlgmr.msra.gmra.mxu0 %vm1389_vm3, %v4842_v14  ;;  %8704 = vmatprep.subr.mxu0 %v9468_v1 }
0x16a2   :  { %8705 = vmatpush3.msra.mxu0 %v10328_v57  ;;  %8712 = vmatprep.mubr.msk.f32.mxu0 %vm9469_vm0, %v9468_v1 }
0x16a3   :  { %8706 = vmatprep.subr.mxu0 %v9468_v1 }
0x16a4   :  { %8707 = vmatpush3.msra.mxu0 %v10333_v21 }
0x16a5   :  { %8708 = vmatprep.subr.mxu0 %v9468_v1 }
0x16a6   :  { %8709 = vmatpush3.msra.mxu0 %v10342_v34 }
0x16a7   :  { %8710 = vmatprep.subr.mxu0 %v9468_v1 }
0x16a8   :  { %8711 = vmatpush3.msra.mxu0 %v10347_v58 }
0x16a9   :  { %8713 = vmatmul.mubr.msk.f32.vlgmr.msra.gmra.mxu0 %vm1389_vm3, %v5134_v18  ;;  %8726 = vmatprep.subr.mxu0 %v9468_v1 }
0x16aa   :  { %8727 = vmatpush3.msra.mxu0 %v10360_v3  ;;  %8734 = vmatprep.mubr.msk.f32.mxu0 %vm9469_vm0, %v9468_v1 }
0x16ab   :  { %8728 = vmatprep.subr.mxu0 %v9468_v1 }
0x16ac   :  { %8729 = vmatpush3.msra.mxu0 %v10366_v6 }
0x16ad   :  { %8730 = vmatprep.subr.mxu0 %v9468_v1 }
0x16ae   :  { %8731 = vmatpush3.msra.mxu0 %v10375_v8 }
0x16af   :  { %8732 = vmatprep.subr.mxu0 %v9468_v1 }
0x16b0   :  { %8733 = vmatpush3.msra.mxu0 %v10383_v12 }
0x16b1   :  { %8735 = vmatmul.mubr.msk.f32.vlgmr.msra.gmra.mxu0 %vm1389_vm3, %v5134_v18  ;;  %8748 = vmatprep.subr.mxu0 %v9468_v1 }
0x16b2   :  { %8749 = vmatpush3.msra.mxu0 %v10581_v19  ;;  %8756 = vmatprep.mubr.msk.f32.mxu0 %vm9469_vm0, %v9468_v1 }
0x16b3   :  { %8750 = vmatprep.subr.mxu0 %v9468_v1 }
0x16b4   :  { %8751 = vmatpush3.msra.mxu0 %v10586_v20 }
0x16b5   :  { %8752 = vmatprep.subr.mxu0 %v9468_v1 }
0x16b6   :  { %8753 = vmatpush3.msra.mxu0 %v10592_v33 }
0x16b7   :  { %8754 = vmatprep.subr.mxu0 %v9468_v1 }
0x16b8   :  { %8755 = vmatpush3.msra.mxu0 %v10596_v16 }
0x16b9   :  { %8757 = vmatmul.mubr.f32.vlgmr.msra.gmra.mxu0 %v9468_v1  ;;  %8770 = vmatprep.subr.mxu0 %v9468_v1 }
0x16ba   :  { %8771 = vmatpush3.msra.mxu0 %v10581_v19  ;;  %8778 = vmatprep.mubr.msk.f32.mxu0 %vm9469_vm0, %v9468_v1 }
0x16bb   :  { %8772 = vmatprep.subr.mxu0 %v9468_v1 }
0x16bc   :  { %8773 = vmatpush3.msra.mxu0 %v10586_v20 }
0x16bd   :  { %8774 = vmatprep.subr.mxu0 %v9468_v1 }
0x16be   :  { %8775 = vmatpush3.msra.mxu0 %v10592_v33 }
0x16bf   :  { %8776 = vmatprep.subr.mxu0 %v9468_v1 }
0x16c0   :  { %8777 = vmatpush3.msra.mxu0 %v10596_v16 }
0x16c1   :  { %8792 = vmatprep.subr.mxu0 %v9468_v1 }
0x16f8   :  { %v3148_v36 = vpop.f32.mrf.mxu0 }
0x16f9   :  { %v3222_v37 = vadd.f32 %v10289_v0, %v3148_v36 }
0x16fa   :  { %v8406_v38 = vpop.f32.mrf.mxu0 }
0x16fb   :  { %v3231_v39 = vadd.f32 %v10616_v17, %v3222_v37 }
0x16fc   :  { %v10620_v40 = vpop.f32.mrf.mxu1 }
0x16fd   :  { %3232 = vst [vmem:[#allocation2] sm:$0x3] %v3231_v39 }
0x16fe   :  { %v8725_v41 = vpop.f32.mrf.mxu1 }
0x1700   :  { %v3299_v43 = vpop.f32.mrf.mxu0 }
0x1701   :  { %v3370_v44 = vadd.f32 %v10291_v4, %v3299_v43 }
0x1702   :  { %v8428_v46 = vpop.f32.mrf.mxu0 }
0x1703   :  { %v3379_v50 = vadd.f32 %v10625_v42, %v3370_v44 }
0x1705   :  { %3380 = vst [vmem:[#allocation3] sm:$0x3] %v3379_v50  ;;  %v10629_v0 = vpop.f32.mrf.mxu1 }
0x1707   :  { %v8747_v51 = vpop.f32.mrf.mxu1 }
0x1709   :  { %v3452_v52 = vpop.f32.mrf.mxu0 }
0x170a   :  { %v3526_v53 = vadd.f32 %v10295_v7, %v3452_v52 }
0x170b   :  { %v8450_v54 = vpop.f32.mrf.mxu0 }
0x170c   :  { %v3529_v55 = vadd.f32 %v10616_v17, %v3526_v53 }
0x170e   :  { %3530 = vst [vmem:[#allocation2 + $0x2] sm:$0x3] %v3529_v55 }
0x1711   :  { %v3597_v56 = vpop.f32.mrf.mxu0 }
0x1712   :  { %v3668_v57 = vadd.f32 %v10297_v9, %v3597_v56 }
0x1713   :  { %v8472_v21 = vpop.f32.mrf.mxu0 }
0x1714   :  { %v3671_v4 = vadd.f32 %v10625_v42, %v3668_v57  ;;  %v10635_v34 = vpop.f32.mrf.mxu1 }
0x1716   :  { %3672 = vst [vmem:[#allocation3 + $0x2] sm:$0x3] %v3671_v4  ;;  %v8769_v58 = vpop.f32.mrf.mxu1 }
0x1717   :  { %v5425_v58 = vld [vmem:[#allocation2] sm:$0x3] }
0x1719   :  { %v3744_v59 = vpop.f32.mrf.mxu0 }
0x171a   :  { %v3818_v60 = vadd.f32 %v10299_v11, %v3744_v59 }
0x171b   :  { %v8494_v61 = vpop.f32.mrf.mxu0 }
0x171c   :  { %v3821_v7 = vadd.f32 %v10616_v17, %v3818_v60 }
0x171e   :  { %3822 = vst [vmem:[#allocation2 + $0x4] sm:$0x3] %v3821_v7 }
0x1721   :  { %v3889_v62 = vpop.f32.mrf.mxu0 }
0x1722   :  { %v3960_v63 = vadd.f32 %v10301_v13, %v3889_v62 }
0x1723   :  { %v8516_v2 = vpop.f32.mrf.mxu0 }
0x1724   :  { %v3963_v9 = vadd.f32 %v10625_v42, %v3960_v63 }
0x1726   :  { %3964 = vst [vmem:[#allocation3 + $0x4] sm:$0x3] %v3963_v9 }
0x1729   :  { %v4036_v3 = vpop.f32.mrf.mxu0 }
0x172a   :  { %v4110_v5 = vadd.f32 %v10303_v24, %v4036_v3 }
0x172b   :  { %v8538_v6 = vpop.f32.mrf.mxu0 }
0x172c   :  { %v4113_v8 = vadd.f32 %v10616_v17, %v4110_v5 }
0x172e   :  { %4114 = vst [vmem:[#allocation2 + $0x6] sm:$0x3] %v4113_v8 }
0x1731   :  { %v4181_v10 = vpop.f32.mrf.mxu0 }
0x1732   :  { %v4252_v11 = vadd.f32 %v10305_v22, %v4181_v10 }
0x1733   :  { %v8560_v12 = vpop.f32.mrf.mxu0 }
0x1734   :  { %v4255_v47 = vadd.f32 %v10625_v42, %v4252_v11 }
0x1736   :  { %4256 = vst [vmem:[#allocation3 + $0x6] sm:$0x3] %v4255_v47 }
0x1739   :  { %v4328_v25 = vpop.f32.mrf.mxu0 }
0x173a   :  { %v4402_v13 = vadd.f32 %v10307_v28, %v4328_v25 }
0x173b   :  { %v8582_v26 = vpop.f32.mrf.mxu0 }
0x173c   :  { %v4405_v29 = vadd.f32 %v10616_v17, %v4402_v13 }
0x173e   :  { %4406 = vst [vmem:[#allocation2 + $0x8] sm:$0x3] %v4405_v29 }
0x1741   :  { %v4473_v30 = vpop.f32.mrf.mxu0 }
0x1742   :  { %v4544_v24 = vadd.f32 %v10309_v27, %v4473_v30 }
0x1743   :  { %v8604_v14 = vpop.f32.mrf.mxu0 }
0x1744   :  { %v4547_v18 = vadd.f32 %v10625_v42, %v4544_v24 }
0x1746   :  { %4548 = vst [vmem:[#allocation3 + $0x8] sm:$0x3] %v4547_v18 }
0x1749   :  { %v4620_v36 = vpop.f32.mrf.mxu0 }
0x174a   :  { %v4694_v22 = vadd.f32 %v10311_v31, %v4620_v36 }
0x174b   :  { %v8626_v37 = vpop.f32.mrf.mxu0 }
0x174c   :  { %v4697_v38 = vadd.f32 %v10616_v17, %v4694_v22 }
0x174e   :  { %4698 = vst [vmem:[#allocation2 + $0xa] sm:$0x3] %v4697_v38  ;;  %v5627_v38 = vld [vmem:[#allocation2 + $0x2] sm:$0x3] }
0x1751   :  { %v4765_v39 = vpop.f32.mrf.mxu0 }
0x1752   :  { %v4836_v28 = vadd.f32 %v10313_v15, %v4765_v39 }
0x1753   :  { %v8648_v41 = vpop.f32.mrf.mxu0 }
0x1754   :  { %v4839_v43 = vadd.f32 %v10625_v42, %v4836_v28 }
0x1756   :  { %4840 = vst [vmem:[#allocation3 + $0xa] sm:$0x3] %v4839_v43 }
0x1759   :  { %v4912_v44 = vpop.f32.mrf.mxu0 }
0x175a   :  { %v4986_v27 = vadd.f32 %v10315_v32, %v4912_v44 }
0x175b   :  { %v8670_v46 = vpop.f32.mrf.mxu0 }
0x175c   :  { %v4989_v50 = vadd.f32 %v10616_v17, %v4986_v27 }
0x175e   :  { %4990 = vst [vmem:[#allocation2 + $0xc] sm:$0x3] %v4989_v50 }
0x1761   :  { %v5057_v51 = vpop.f32.mrf.mxu0 }
0x1762   :  { %v5128_v31 = vadd.f32 %v10317_v35, %v5057_v51 }
0x1763   :  { %v8692_v52 = vpop.f32.mrf.mxu0 }
0x1764   :  { %v5131_v53 = vadd.f32 %v10625_v42, %v5128_v31 }
0x1766   :  { %5132 = vst [vmem:[#allocation3 + $0xc] sm:$0x3] %v5131_v53 }
0x1769   :  { %v5204_v54 = vpop.f32.mrf.mxu0 }
0x176a   :  { %v5278_v15 = vadd.f32 %v10620_v40, %v5204_v54 }
0x176b   :  { %v8714_v55 = vpop.f32.mrf.mxu0 }
0x176c   :  { %v5281_v56 = vadd.f32 %v10616_v17, %v5278_v15 }
0x176d   :  { %v5701_v43 = vld [vmem:[#allocation3 + $0xc] sm:$0x3] }
0x176e   :  { %5282 = vst [vmem:[#allocation2 + $0xe] sm:$0x3] %v5281_v56 }
0x1771   :  { %v5349_v57 = vpop.f32.mrf.mxu0 }
0x1772   :  { %v5420_v32 = vadd.f32 %v10629_v0, %v5349_v57 }
0x1773   :  { %v8736_v21 = vpop.f32.mrf.mxu0 }
0x1774   :  { %v5423_v4 = vadd.f32 %v10625_v42, %v5420_v32 }
0x1776   :  { %5424 = vst [vmem:[#allocation3 + $0xe] sm:$0x3] %v5423_v4 }
0x1779   :  { %v5492_v35 = vpop.f32.mrf.mxu0 }
0x177a   :  { %v5496_v59 = vadd.f32 %v5492_v35, %v5425_v58 }
0x177b   :  { %v8758_v60 = vpop.f32.mrf.mxu0 }
0x177c   :  { %9104 = vtanh.f32 %v5496_v59  ;;  %v7688_v0 = vmul.f32 -1.442695, %v5496_v59 }
0x177d   :  { %v5497_v61 = vld [vmem:[#allocation3 + $0xe] sm:$0x3] }
0x177e   :  { %v5568_v7 = vadd.f32 %v10635_v34, %v5497_v61 }
0x1780   :  { %9106 = vtanh.f32 %v5568_v7  ;;  %v7689_v62 = vmul.f32 -1.442695, %v5568_v7 }
0x1781   :  { %9108 = vpow2.f32 %v7688_v0 }
0x1782   :  { %9110 = vpow2.f32 %v7689_v62 }
0x1789   :  { %v9105_v40 = vpop.eup %9104 }
0x178a   :  { %5585 = vrot.lane.b32.xlu0 %v9105_v40, %s9470_s5 }
0x178d   :  { %v9107_v17 = vpop.eup %9106 }
0x178e   :  { %5596 = vrot.lane.b32.xlu1 %v9107_v17, %s9470_s5  ;;  %v9109_v42 = vpop.eup %9108 }
0x178f   :  { %v5572_v63 = vadd.f32 1.0, %v9109_v42  ;;  %v9111_v2 = vpop.eup %9110 }
0x1790   :  { %v5578_v9 = vadd.f32 1.0, %v9111_v2 }
0x1791   :  { %9112 = vrcp.f32 %v5572_v63 }
0x1792   :  { %9114 = vrcp.f32 %v5578_v9 }
0x179e   :  { %v9113_v3 = vpop.eup %9112 }
0x179f   :  { %v9115_v6 = vpop.eup %9114  ;;  %v5583_v11 = vmul.f32 0.0, %v9113_v3 }
0x17a0   :  { %v5594_v25 = vmul.f32 0.0, %v9115_v6 }
0x17fc   :  { %v5586_v5 = vpop.permute.xlu0 %5585 }
0x17fd   :  { %v5588_v34 = vmul.f32 %v9113_v3, %v5586_v5  ;;  %v5833_v5 = vld [vmem:[#allocation2 + $0x4] sm:$0x3] }
0x17ff   :  { %5590 = vrot.lane.b32.xlu0 %v5588_v34, %s9470_s5 }
0x1800   :  { %v5597_v8 = vpop.permute.xlu1 %5596 }
0x1801   :  { %v5599_v10 = vmul.f32 %v9115_v6, %v5597_v8 }
0x1803   :  { %5601 = vrot.lane.b32.xlu1 %v5599_v10, %s9470_s5  ;;  %v5907_v10 = vld [vmem:[#allocation3 + $0xa] sm:$0x3] }
0x1871   :  { %v5591_v12 = vpop.permute.xlu0 %5590 }
0x1872   :  { %v10666_v47 = vadd.f32 %v5591_v12, %v5583_v11 }
0x1874   :  { %9116 = vtanh.f32 %v10666_v47 }
0x1875   :  { %v5602_v13 = vpop.permute.xlu1 %5601 }
0x1876   :  { %v10669_v26 = vadd.f32 %v5602_v13, %v5594_v25 }
0x1878   :  { %9118 = vtanh.f32 %v10669_v26 }
0x1881   :  { %v9117_v29 = vpop.eup %9116 }
0x1882   :  { %5607 = vrot.lane.b32.xlu0 %v9117_v29, %s9470_s5 }
0x1885   :  { %v9119_v30 = vpop.eup %9118 }
0x1886   :  { %5613 = vrot.lane.b32.xlu1 %v9119_v30, %s9470_s5 }
0x18f4   :  { %v5608_v24 = vpop.permute.xlu0 %5607 }
0x18f5   :  { %v5610_v14 = vmul.f32 %v9113_v3, %v5608_v24 }
0x18f7   :  { %5618 = vrot.lane.b32.xlu0 %v5610_v14, %s9471_s6 }
0x18f8   :  { %v5614_v18 = vpop.permute.xlu1 %5613 }
0x18f9   :  { %v5616_v36 = vmul.f32 %v9115_v6, %v5614_v18 }
0x18fb   :  { %5623 = vrot.lane.b32.xlu1 %v5616_v36, %s9471_s6 }
0x1969   :  { %v5619_v22 = vpop.permute.xlu0 %5618 }
0x196a   :  { %5621 = vst.msk [vmem:[#allocation4] sm:$0x3] %vm1588_vm2, %v5619_v22  ;;  %8779 = vmatmul.mubr.msk.f32.vlgmr.msra.gmra.mxu0 %vm1389_vm3, %v5619_v22 }
0x196b   :  { %8793 = vmatpush3.msra.mxu0 %v10581_v19  ;;  %8800 = vmatprep.mubr.msk.f32.mxu0 %vm9469_vm0, %v9468_v1 }
0x196c   :  { %8794 = vmatprep.subr.mxu0 %v9468_v1 }
0x196d   :  { %v5624_v37 = vpop.permute.xlu1 %5623  ;;  %8795 = vmatpush3.msra.mxu0 %v10586_v20 }
0x196e   :  { %5626 = vst.msk [vmem:[#allocation5 + $0xe] sm:$0x3] %vm1588_vm2, %v5624_v37  ;;  %8790 = vmatmul.mubr.msk.f32.vlgmr.msra.gmra.mxu1 %vm1389_vm3, %v5624_v37  ;;  %8796 = vmatprep.subr.mxu0 %v9468_v1 }
0x196f   :  { %8797 = vmatpush3.msra.mxu0 %v10592_v33  ;;  %8804 = vmatpush3.msra.mxu1 %v10404_v45 }
0x1970   :  { %8798 = vmatprep.subr.mxu0 %v9468_v1  ;;  %8805 = vmatprep.subr.mxu1 %v9468_v1 }
0x1971   :  { %8799 = vmatpush3.msra.mxu0 %v10596_v16  ;;  %8806 = vmatpush3.msra.mxu1 %v10415_v48 }
0x1972   :  { %8807 = vmatprep.subr.mxu1 %v9468_v1  ;;  %8811 = vmatprep.mubr.msk.f32.mxu1 %vm9469_vm0, %v9468_v1 }
0x1973   :  { %8808 = vmatpush3.msra.mxu1 %v10422_v49  ;;  %8814 = vmatprep.subr.mxu0 %v9468_v1 }
0x1974   :  { %8809 = vmatprep.subr.mxu1 %v9468_v1 }
0x1975   :  { %8810 = vmatpush3.msra.mxu1 %v10428_v23 }
0x1976   :  { %8825 = vmatprep.subr.mxu1 %v9468_v1 }
0x1a2a   :  { %v5696_v39 = vpop.f32.mrf.mxu0 }
0x1a2b   :  { %v5700_v28 = vadd.f32 %v5696_v39, %v5627_v38 }
0x1a2c   :  { %v8780_v41 = vpop.f32.mrf.mxu0 }
0x1a2d   :  { %9120 = vtanh.f32 %v5700_v28  ;;  %v7692_v31 = vmul.f32 -1.442695, %v5700_v28 }
0x1a2e   :  { %v5770_v44 = vpop.f32.mrf.mxu1 }
0x1a2f   :  { %v5774_v27 = vadd.f32 %v5770_v44, %v5701_v43 }
0x1a30   :  { %v8791_v46 = vpop.f32.mrf.mxu1 }
0x1a31   :  { %9122 = vtanh.f32 %v5774_v27  ;;  %v7693_v52 = vmul.f32 -1.442695, %v5774_v27 }
0x1a32   :  { %9124 = vpow2.f32 %v7692_v31 }
0x1a33   :  { %9126 = vpow2.f32 %v7693_v52 }
0x1a3a   :  { %v9121_v50 = vpop.eup %9120 }
0x1a3b   :  { %5791 = vrot.lane.b32.xlu0 %v9121_v50, %s9470_s5 }
0x1a3e   :  { %v9123_v51 = vpop.eup %9122 }
0x1a3f   :  { %5802 = vrot.lane.b32.xlu1 %v9123_v51, %s9470_s5  ;;  %v9125_v53 = vpop.eup %9124 }
0x1a40   :  { %v5778_v54 = vadd.f32 1.0, %v9125_v53  ;;  %v9127_v15 = vpop.eup %9126 }
0x1a41   :  { %v5784_v55 = vadd.f32 1.0, %v9127_v15 }
0x1a42   :  { %9128 = vrcp.f32 %v5778_v54 }
0x1a43   :  { %9130 = vrcp.f32 %v5784_v55 }
0x1a4f   :  { %v9129_v56 = vpop.eup %9128 }
0x1a50   :  { %v9131_v21 = vpop.eup %9130  ;;  %v5789_v35 = vmul.f32 %v9129_v56, %v10666_v47 }
0x1a51   :  { %v5800_v61 = vmul.f32 %v9131_v21, %v10669_v26 }
0x1aad   :  { %v5792_v57 = vpop.permute.xlu0 %5791 }
0x1aae   :  { %v5794_v32 = vmul.f32 %v9129_v56, %v5792_v57 }
0x1ab0   :  { %5796 = vrot.lane.b32.xlu0 %v5794_v32, %s9470_s5 }
0x1ab1   :  { %v5803_v4 = vpop.permute.xlu1 %5802 }
0x1ab2   :  { %v5805_v58 = vmul.f32 %v9131_v21, %v5803_v4 }
0x1ab4   :  { %5807 = vrot.lane.b32.xlu1 %v5805_v58, %s9470_s5 }
0x1b22   :  { %v5797_v59 = vpop.permute.xlu0 %5796 }
0x1b23   :  { %v10705_v60 = vadd.f32 %v5797_v59, %v5789_v35 }
0x1b25   :  { %9132 = vtanh.f32 %v10705_v60 }
0x1b26   :  { %v5808_v7 = vpop.permute.xlu1 %5807 }
0x1b27   :  { %v10709_v40 = vadd.f32 %v5808_v7, %v5800_v61 }
0x1b29   :  { %9134 = vtanh.f32 %v10709_v40 }
0x1b32   :  { %v9133_v17 = vpop.eup %9132 }
0x1b33   :  { %5813 = vrot.lane.b32.xlu0 %v9133_v17, %s9470_s5 }
0x1b36   :  { %v9135_v0 = vpop.eup %9134 }
0x1b37   :  { %5819 = vrot.lane.b32.xlu1 %v9135_v0, %s9470_s5 }
0x1ba5   :  { %v5814_v62 = vpop.permute.xlu0 %5813 }
0x1ba6   :  { %v5816_v42 = vmul.f32 %v9129_v56, %v5814_v62 }
0x1ba8   :  { %5824 = vrot.lane.b32.xlu0 %v5816_v42, %s9471_s6 }
0x1ba9   :  { %v5820_v63 = vpop.permute.xlu1 %5819 }
0x1baa   :  { %v5822_v2 = vmul.f32 %v9131_v21, %v5820_v63 }
0x1bac   :  { %5829 = vrot.lane.b32.xlu1 %v5822_v2, %s9471_s6 }
0x1c1a   :  { %v5825_v9 = vpop.permute.xlu0 %5824 }
0x1c1b   :  { %5827 = vst.msk [vmem:[#allocation4 + $0x2] sm:$0x3] %vm1588_vm2, %v5825_v9  ;;  %8801 = vmatmul.mubr.msk.f32.vlgmr.msra.gmra.mxu0 %vm1389_vm3, %v5825_v9 }
0x1c1c   :  { %8815 = vmatpush3.msra.mxu0 %v10581_v19  ;;  %8822 = vmatprep.mubr.msk.f32.mxu0 %vm9469_vm0, %v9468_v1 }
0x1c1d   :  { %8816 = vmatprep.subr.mxu0 %v9468_v1 }
0x1c1e   :  { %v5830_v3 = vpop.permute.xlu1 %5829  ;;  %8817 = vmatpush3.msra.mxu0 %v10586_v20 }
0x1c1f   :  { %5832 = vst.msk [vmem:[#allocation5 + $0xc] sm:$0x3] %vm1588_vm2, %v5830_v3  ;;  %8812 = vmatmul.mubr.msk.f32.vlgmr.msra.gmra.mxu1 %vm1389_vm3, %v5830_v3  ;;  %8818 = vmatprep.subr.mxu0 %v9468_v1 }
0x1c20   :  { %8819 = vmatpush3.msra.mxu0 %v10592_v33  ;;  %8826 = vmatpush3.msra.mxu1 %v10404_v45 }
0x1c21   :  { %8820 = vmatprep.subr.mxu0 %v9468_v1  ;;  %8827 = vmatprep.subr.mxu1 %v9468_v1 }
0x1c22   :  { %8821 = vmatpush3.msra.mxu0 %v10596_v16  ;;  %8828 = vmatpush3.msra.mxu1 %v10415_v48 }
0x1c23   :  { %8829 = vmatprep.subr.mxu1 %v9468_v1  ;;  %8833 = vmatprep.mubr.msk.f32.mxu1 %vm9469_vm0, %v9468_v1 }
0x1c24   :  { %8830 = vmatpush3.msra.mxu1 %v10422_v49  ;;  %8836 = vmatprep.subr.mxu0 %v9468_v1 }
0x1c25   :  { %8831 = vmatprep.subr.mxu1 %v9468_v1 }
0x1c26   :  { %8832 = vmatpush3.msra.mxu1 %v10428_v23 }
0x1c27   :  { %8847 = vmatprep.subr.mxu1 %v9468_v1 }
0x1cdb   :  { %v5902_v34 = vpop.f32.mrf.mxu0 }
0x1cdc   :  { %v5906_v6 = vadd.f32 %v5902_v34, %v5833_v5 }
0x1cdd   :  { %v8802_v8 = vpop.f32.mrf.mxu0 }
0x1cde   :  { %9136 = vtanh.f32 %v5906_v6  ;;  %v7696_v26 = vmul.f32 -1.442695, %v5906_v6 }
0x1cdf   :  { %v5976_v11 = vpop.f32.mrf.mxu1 }
0x1ce0   :  { %v5980_v12 = vadd.f32 %v5976_v11, %v5907_v10 }
0x1ce1   :  { %v8813_v47 = vpop.f32.mrf.mxu1 }
0x1ce2   :  { %9138 = vtanh.f32 %v5980_v12  ;;  %v7697_v29 = vmul.f32 -1.442695, %v5980_v12 }
0x1ce3   :  { %9140 = vpow2.f32 %v7696_v26 }
0x1ce4   :  { %9142 = vpow2.f32 %v7697_v29 }
0x1ceb   :  { %v9137_v25 = vpop.eup %9136 }
0x1cec   :  { %5997 = vrot.lane.b32.xlu0 %v9137_v25, %s9470_s5 }
0x1cef   :  { %v9139_v13 = vpop.eup %9138 }
0x1cf0   :  { %6008 = vrot.lane.b32.xlu1 %v9139_v13, %s9470_s5  ;;  %v9141_v30 = vpop.eup %9140 }
0x1cf1   :  { %v5984_v24 = vadd.f32 1.0, %v9141_v30  ;;  %v9143_v14 = vpop.eup %9142 }
0x1cf2   :  { %v5990_v18 = vadd.f32 1.0, %v9143_v14  ;;  %v10813_v14 = vld [vmem:[#allocation16 + $0x10] sm:$0xff] }
0x1cf3   :  { %9144 = vrcp.f32 %v5984_v24  ;;  %v10807_v24 = vld [vmem:[#allocation16 + $0x18] sm:$0xff] }
0x1cf4   :  { %9146 = vrcp.f32 %v5990_v18  ;;  %v10819_v18 = vld [vmem:[#allocation16 + $0x8] sm:$0xff] }
0x1d00   :  { %v9145_v36 = vpop.eup %9144 }
0x1d01   :  { %v9147_v38 = vpop.eup %9146  ;;  %v5995_v41 = vmul.f32 %v9145_v36, %v10705_v60 }
0x1d02   :  { %v6006_v27 = vmul.f32 %v9147_v38, %v10709_v40 }
0x1d5e   :  { %v5998_v22 = vpop.permute.xlu0 %5997 }
0x1d5f   :  { %v6000_v37 = vmul.f32 %v9145_v36, %v5998_v22  ;;  %v6245_v22 = vld [vmem:[#allocation2 + $0x8] sm:$0x3] }
0x1d61   :  { %6002 = vrot.lane.b32.xlu0 %v6000_v37, %s9470_s5 }
0x1d62   :  { %v6009_v39 = vpop.permute.xlu1 %6008 }
0x1d63   :  { %v6011_v28 = vmul.f32 %v9147_v38, %v6009_v39 }
0x1d65   :  { %6013 = vrot.lane.b32.xlu1 %v6011_v28, %s9470_s5  ;;  %v6319_v28 = vld [vmem:[#allocation3 + $0x6] sm:$0x3] }
0x1dd3   :  { %v6003_v43 = vpop.permute.xlu0 %6002 }
0x1dd4   :  { %v10745_v44 = vadd.f32 %v6003_v43, %v5995_v41 }
0x1dd6   :  { %9148 = vtanh.f32 %v10745_v44 }
0x1dd7   :  { %v6014_v46 = vpop.permute.xlu1 %6013 }
0x1dd8   :  { %v10749_v50 = vadd.f32 %v6014_v46, %v6006_v27 }
0x1dda   :  { %9150 = vtanh.f32 %v10749_v50 }
0x1de3   :  { %v9149_v51 = vpop.eup %9148 }
0x1de4   :  { %6019 = vrot.lane.b32.xlu0 %v9149_v51, %s9470_s5 }
0x1de7   :  { %v9151_v31 = vpop.eup %9150 }
0x1de8   :  { %6025 = vrot.lane.b32.xlu1 %v9151_v31, %s9470_s5 }
0x1e56   :  { %v6020_v52 = vpop.permute.xlu0 %6019 }
0x1e57   :  { %v6022_v53 = vmul.f32 %v9145_v36, %v6020_v52  ;;  %v10824_v36 = vld [vmem:[#allocation16] sm:$0xff] }
0x1e59   :  { %6030 = vrot.lane.b32.xlu0 %v6022_v53, %s9471_s6 }
0x1e5a   :  { %v6026_v54 = vpop.permute.xlu1 %6025 }
0x1e5b   :  { %v6028_v15 = vmul.f32 %v9147_v38, %v6026_v54 }
0x1e5d   :  { %6035 = vrot.lane.b32.xlu1 %v6028_v15, %s9471_s6 }
0x1ecb   :  { %v6031_v55 = vpop.permute.xlu0 %6030 }
0x1ecc   :  { %6033 = vst.msk [vmem:[#allocation4 + $0x4] sm:$0x3] %vm1588_vm2, %v6031_v55  ;;  %8823 = vmatmul.mubr.msk.f32.vlgmr.msra.gmra.mxu0 %vm1389_vm3, %v6031_v55 }
0x1ecd   :  { %8837 = vmatpush3.msra.mxu0 %v10581_v19  ;;  %8844 = vmatprep.mubr.msk.f32.mxu0 %vm9469_vm0, %v9468_v1 }
0x1ece   :  { %8838 = vmatprep.subr.mxu0 %v9468_v1 }
0x1ecf   :  { %v6036_v56 = vpop.permute.xlu1 %6035  ;;  %8839 = vmatpush3.msra.mxu0 %v10586_v20 }
0x1ed0   :  { %6038 = vst.msk [vmem:[#allocation5 + $0xa] sm:$0x3] %vm1588_vm2, %v6036_v56  ;;  %8834 = vmatmul.mubr.msk.f32.vlgmr.msra.gmra.mxu1 %vm1389_vm3, %v6036_v56  ;;  %8840 = vmatprep.subr.mxu0 %v9468_v1 }
0x1ed1   :  { %8841 = vmatpush3.msra.mxu0 %v10592_v33  ;;  %8848 = vmatpush3.msra.mxu1 %v10404_v45  ;;  %v6039_v45 = vld [vmem:[#allocation2 + $0x6] sm:$0x3] }
0x1ed2   :  { %8842 = vmatprep.subr.mxu0 %v9468_v1  ;;  %8849 = vmatprep.subr.mxu1 %v9468_v1 }
0x1ed3   :  { %8843 = vmatpush3.msra.mxu0 %v10596_v16  ;;  %8850 = vmatpush3.msra.mxu1 %v10415_v48  ;;  %v6113_v48 = vld [vmem:[#allocation3 + $0x8] sm:$0x3] }
0x1ed4   :  { %8851 = vmatprep.subr.mxu1 %v9468_v1  ;;  %8855 = vmatprep.mubr.msk.f32.mxu1 %vm9469_vm0, %v9468_v1 }
0x1ed5   :  { %8852 = vmatpush3.msra.mxu1 %v10422_v49  ;;  %8858 = vmatprep.subr.mxu0 %v9468_v1 }
0x1ed6   :  { %8853 = vmatprep.subr.mxu1 %v9468_v1 }
0x1ed7   :  { %8854 = vmatpush3.msra.mxu1 %v10428_v23 }
0x1ed8   :  { %8869 = vmatprep.subr.mxu1 %v9468_v1 }
0x1f8c   :  { %v6108_v57 = vpop.f32.mrf.mxu0 }
0x1f8d   :  { %v6112_v32 = vadd.f32 %v6108_v57, %v6039_v45 }
0x1f8e   :  { %v8824_v21 = vpop.f32.mrf.mxu0 }
0x1f8f   :  { %9152 = vtanh.f32 %v6112_v32  ;;  %v7700_v60 = vmul.f32 -1.442695, %v6112_v32 }
0x1f90   :  { %v6182_v4 = vpop.f32.mrf.mxu1 }
0x1f91   :  { %v6186_v58 = vadd.f32 %v6182_v4, %v6113_v48 }
0x1f92   :  { %v8835_v35 = vpop.f32.mrf.mxu1 }
0x1f93   :  { %9154 = vtanh.f32 %v6186_v58  ;;  %v7701_v23 = vmul.f32 -1.442695, %v6186_v58 }
0x1f94   :  { %9156 = vpow2.f32 %v7700_v60 }
0x1f95   :  { %9158 = vpow2.f32 %v7701_v23 }
0x1f9c   :  { %v9153_v59 = vpop.eup %9152 }
0x1f9d   :  { %6203 = vrot.lane.b32.xlu0 %v9153_v59, %s9470_s5 }
0x1fa0   :  { %v9155_v49 = vpop.eup %9154 }
0x1fa1   :  { %6214 = vrot.lane.b32.xlu1 %v9155_v49, %s9470_s5  ;;  %v9157_v61 = vpop.eup %9156 }
0x1fa2   :  { %v6190_v7 = vadd.f32 1.0, %v9157_v61  ;;  %v9159_v40 = vpop.eup %9158 }
0x1fa3   :  { %v6196_v17 = vadd.f32 1.0, %v9159_v40 }
0x1fa4   :  { %9160 = vrcp.f32 %v6190_v7 }
0x1fa5   :  { %9162 = vrcp.f32 %v6196_v17 }
0x1fb1   :  { %v9161_v0 = vpop.eup %9160 }
0x1fb2   :  { %v9163_v63 = vpop.eup %9162  ;;  %v6201_v3 = vmul.f32 %v9161_v0, %v10745_v44 }
0x1fb3   :  { %v6212_v6 = vmul.f32 %v9163_v63, %v10749_v50 }
0x200f   :  { %v6204_v62 = vpop.permute.xlu0 %6203 }
0x2010   :  { %v6206_v42 = vmul.f32 %v9161_v0, %v6204_v62  ;;  %v6525_v62 = vld [vmem:[#allocation3 + $0x4] sm:$0x3] }
0x2012   :  { %6208 = vrot.lane.b32.xlu0 %v6206_v42, %s9470_s5 }
0x2013   :  { %v6215_v2 = vpop.permute.xlu1 %6214 }
0x2014   :  { %v6217_v9 = vmul.f32 %v9163_v63, %v6215_v2 }
0x2016   :  { %6219 = vrot.lane.b32.xlu1 %v6217_v9, %s9470_s5 }
0x2084   :  { %v6209_v5 = vpop.permute.xlu0 %6208 }
0x2085   :  { %v10785_v34 = vadd.f32 %v6209_v5, %v6201_v3 }
0x2087   :  { %9164 = vtanh.f32 %v10785_v34 }
0x2088   :  { %v6220_v8 = vpop.permute.xlu1 %6219 }
0x2089   :  { %v10789_v10 = vadd.f32 %v6220_v8, %v6212_v6 }
0x208b   :  { %9166 = vtanh.f32 %v10789_v10 }
0x2094   :  { %v9165_v11 = vpop.eup %9164 }
0x2095   :  { %6225 = vrot.lane.b32.xlu0 %v9165_v11, %s9470_s5 }
0x2098   :  { %v9167_v12 = vpop.eup %9166 }
0x2099   :  { %6231 = vrot.lane.b32.xlu1 %v9167_v12, %s9470_s5 }
0x2107   :  { %v6226_v47 = vpop.permute.xlu0 %6225 }
0x2108   :  { %v6228_v25 = vmul.f32 %v9161_v0, %v6226_v47 }
0x210a   :  { %6236 = vrot.lane.b32.xlu0 %v6228_v25, %s9471_s6 }
0x210b   :  { %v6232_v13 = vpop.permute.xlu1 %6231 }
0x210c   :  { %v6234_v26 = vmul.f32 %v9163_v63, %v6232_v13 }
0x210e   :  { %6241 = vrot.lane.b32.xlu1 %v6234_v26, %s9471_s6 }
0x217c   :  { %v6237_v29 = vpop.permute.xlu0 %6236 }
0x217d   :  { %6239 = vst.msk [vmem:[#allocation4 + $0x6] sm:$0x3] %vm1588_vm2, %v6237_v29  ;;  %8845 = vmatmul.mubr.msk.f32.vlgmr.msra.gmra.mxu0 %vm1389_vm3, %v6237_v29 }
0x217e   :  { %8859 = vmatpush3.msra.mxu0 %v10581_v19  ;;  %8866 = vmatprep.mubr.msk.f32.mxu0 %vm9469_vm0, %v9468_v1 }
0x217f   :  { %8860 = vmatprep.subr.mxu0 %v9468_v1 }
0x2180   :  { %v6242_v30 = vpop.permute.xlu1 %6241  ;;  %8861 = vmatpush3.msra.mxu0 %v10586_v20 }
0x2181   :  { %6244 = vst.msk [vmem:[#allocation5 + $0x8] sm:$0x3] %vm1588_vm2, %v6242_v30  ;;  %8856 = vmatmul.mubr.msk.f32.vlgmr.msra.gmra.mxu1 %vm1389_vm3, %v6242_v30  ;;  %8862 = vmatprep.subr.mxu0 %v9468_v1 }
0x2182   :  { %8863 = vmatpush3.msra.mxu0 %v10592_v33  ;;  %8870 = vmatpush3.msra.mxu1 %v10807_v24 }
0x2183   :  { %8864 = vmatprep.subr.mxu0 %v9468_v1  ;;  %8871 = vmatprep.subr.mxu1 %v9468_v1 }
0x2184   :  { %8865 = vmatpush3.msra.mxu0 %v10596_v16  ;;  %8872 = vmatpush3.msra.mxu1 %v10813_v14 }
0x2185   :  { %8873 = vmatprep.subr.mxu1 %v9468_v1  ;;  %8877 = vmatprep.mubr.msk.f32.mxu1 %vm9469_vm0, %v9468_v1 }
0x2186   :  { %8874 = vmatpush3.msra.mxu1 %v10819_v18  ;;  %8880 = vmatprep.subr.mxu0 %v9468_v1 }
0x2187   :  { %8875 = vmatprep.subr.mxu1 %v9468_v1 }
0x2188   :  { %8876 = vmatpush3.msra.mxu1 %v10824_v36 }
0x2189   :  { %8891 = vmatprep.subr.mxu1 %v9468_v1 }
0x223d   :  { %v6314_v37 = vpop.f32.mrf.mxu0 }
0x223e   :  { %v6318_v38 = vadd.f32 %v6314_v37, %v6245_v22 }
0x223f   :  { %v8846_v39 = vpop.f32.mrf.mxu0 }
0x2240   :  { %9168 = vtanh.f32 %v6318_v38  ;;  %v7704_v50 = vmul.f32 -1.442695, %v6318_v38 }
0x2241   :  { %v6388_v41 = vpop.f32.mrf.mxu1 }
0x2242   :  { %v6392_v43 = vadd.f32 %v6388_v41, %v6319_v28 }
0x2243   :  { %v8857_v44 = vpop.f32.mrf.mxu1 }
0x2244   :  { %9170 = vtanh.f32 %v6392_v43  ;;  %v7705_v51 = vmul.f32 -1.442695, %v6392_v43 }
0x2245   :  { %9172 = vpow2.f32 %v7704_v50 }
0x2246   :  { %9174 = vpow2.f32 %v7705_v51 }
0x224d   :  { %v9169_v27 = vpop.eup %9168 }
0x224e   :  { %6409 = vrot.lane.b32.xlu0 %v9169_v27, %s9470_s5 }
0x2251   :  { %v9171_v46 = vpop.eup %9170 }
0x2252   :  { %6420 = vrot.lane.b32.xlu1 %v9171_v46, %s9470_s5  ;;  %v9173_v31 = vpop.eup %9172 }
0x2253   :  { %v6396_v52 = vadd.f32 1.0, %v9173_v31  ;;  %v9175_v53 = vpop.eup %9174  ;;  %v9262_v31 = vld [vmem:[#allocation15 + $0x18] sm:$0xff] }
0x2254   :  { %v6402_v54 = vadd.f32 1.0, %v9175_v53  ;;  %v9263_v53 = vld [vmem:[#allocation15 + $0x10] sm:$0xff] }
0x2255   :  { %9176 = vrcp.f32 %v6396_v52 }
0x2256   :  { %9178 = vrcp.f32 %v6402_v54  ;;  %v9264_v54 = vld [vmem:[#allocation15 + $0x8] sm:$0xff] }
0x2262   :  { %v9177_v15 = vpop.eup %9176 }
0x2263   :  { %v9179_v45 = vpop.eup %9178  ;;  %v6407_v21 = vmul.f32 %v9177_v15, %v10785_v34 }
0x2264   :  { %v6418_v58 = vmul.f32 %v9179_v45, %v10789_v10 }
0x22c0   :  { %v6410_v55 = vpop.permute.xlu0 %6409 }
0x22c1   :  { %v6412_v56 = vmul.f32 %v9177_v15, %v6410_v55 }
0x22c3   :  { %6414 = vrot.lane.b32.xlu0 %v6412_v56, %s9470_s5 }
0x22c4   :  { %v6421_v57 = vpop.permute.xlu1 %6420 }
0x22c5   :  { %v6423_v32 = vmul.f32 %v9179_v45, %v6421_v57 }
0x22c7   :  { %6425 = vrot.lane.b32.xlu1 %v6423_v32, %s9470_s5 }
0x2335   :  { %v6415_v48 = vpop.permute.xlu0 %6414 }
0x2336   :  { %v10833_v4 = vadd.f32 %v6415_v48, %v6407_v21 }
0x2338   :  { %9180 = vtanh.f32 %v10833_v4 }
0x2339   :  { %v6426_v35 = vpop.permute.xlu1 %6425 }
0x233a   :  { %v10837_v59 = vadd.f32 %v6426_v35, %v6418_v58 }
0x233c   :  { %9182 = vtanh.f32 %v10837_v59 }
0x2345   :  { %v9181_v49 = vpop.eup %9180 }
0x2346   :  { %6431 = vrot.lane.b32.xlu0 %v9181_v49, %s9470_s5 }
0x2349   :  { %v9183_v60 = vpop.eup %9182 }
0x234a   :  { %6437 = vrot.lane.b32.xlu1 %v9183_v60, %s9470_s5 }
0x23b8   :  { %v6432_v23 = vpop.permute.xlu0 %6431 }
0x23b9   :  { %v6434_v61 = vmul.f32 %v9177_v15, %v6432_v23  ;;  %v9265_v15 = vld [vmem:[#allocation15] sm:$0xff] }
0x23bb   :  { %6442 = vrot.lane.b32.xlu0 %v6434_v61, %s9471_s6 }
0x23bc   :  { %v6438_v7 = vpop.permute.xlu1 %6437 }
0x23bd   :  { %v6440_v40 = vmul.f32 %v9179_v45, %v6438_v7 }
0x23bf   :  { %6447 = vrot.lane.b32.xlu1 %v6440_v40, %s9471_s6 }
0x242d   :  { %v6443_v17 = vpop.permute.xlu0 %6442 }
0x242e   :  { %6445 = vst.msk [vmem:[#allocation4 + $0x8] sm:$0x3] %vm1588_vm2, %v6443_v17  ;;  %8867 = vmatmul.mubr.msk.f32.vlgmr.msra.gmra.mxu0 %vm1389_vm3, %v6443_v17 }
0x242f   :  { %8881 = vmatpush3.msra.mxu0 %v10581_v19  ;;  %8888 = vmatprep.mubr.msk.f32.mxu0 %vm9469_vm0, %v9468_v1  ;;  %v6451_v19 = vld [vmem:[#allocation2 + $0xa] sm:$0x3] }
0x2430   :  { %8882 = vmatprep.subr.mxu0 %v9468_v1 }
0x2431   :  { %v6448_v0 = vpop.permute.xlu1 %6447  ;;  %8883 = vmatpush3.msra.mxu0 %v10586_v20 }
0x2432   :  { %6450 = vst.msk [vmem:[#allocation5 + $0x6] sm:$0x3] %vm1588_vm2, %v6448_v0  ;;  %8878 = vmatmul.mubr.msk.f32.vlgmr.msra.gmra.mxu1 %vm1389_vm3, %v6448_v0  ;;  %8884 = vmatprep.subr.mxu0 %v9468_v1 }
0x2433   :  { %8885 = vmatpush3.msra.mxu0 %v10592_v33  ;;  %8892 = vmatpush3.msra.mxu1 %v10807_v24 }
0x2434   :  { %8886 = vmatprep.subr.mxu0 %v9468_v1  ;;  %8893 = vmatprep.subr.mxu1 %v9468_v1 }
0x2435   :  { %8887 = vmatpush3.msra.mxu0 %v10596_v16  ;;  %8894 = vmatpush3.msra.mxu1 %v10813_v14 }
0x2436   :  { %8895 = vmatprep.subr.mxu1 %v9468_v1  ;;  %8899 = vmatprep.mubr.msk.f32.mxu1 %vm9469_vm0, %v9468_v1 }
0x2437   :  { %8896 = vmatpush3.msra.mxu1 %v10819_v18  ;;  %8902 = vmatprep.subr.mxu0 %v9468_v1 }
0x2438   :  { %8897 = vmatprep.subr.mxu1 %v9468_v1 }
0x2439   :  { %8898 = vmatpush3.msra.mxu1 %v10824_v36 }
0x243a   :  { %8913 = vmatprep.subr.mxu1 %v9468_v1 }
0x24ee   :  { %v6520_v20 = vpop.f32.mrf.mxu0 }
0x24ef   :  { %v6524_v33 = vadd.f32 %v6520_v20, %v6451_v19 }
0x24f0   :  { %v8868_v16 = vpop.f32.mrf.mxu0 }
0x24f1   :  { %9184 = vtanh.f32 %v6524_v33  ;;  %v7708_v5 = vmul.f32 -1.442695, %v6524_v33 }
0x24f2   :  { %v6594_v42 = vpop.f32.mrf.mxu1 }
0x24f3   :  { %v6598_v63 = vadd.f32 %v6594_v42, %v6525_v62 }
0x24f4   :  { %v8879_v2 = vpop.f32.mrf.mxu1 }
0x24f5   :  { %9186 = vtanh.f32 %v6598_v63  ;;  %v7709_v34 = vmul.f32 -1.442695, %v6598_v63 }
0x24f6   :  { %9188 = vpow2.f32 %v7708_v5 }
0x24f7   :  { %9190 = vpow2.f32 %v7709_v34 }
0x24fe   :  { %v9185_v9 = vpop.eup %9184 }
0x24ff   :  { %6615 = vrot.lane.b32.xlu0 %v9185_v9, %s9470_s5 }
0x2502   :  { %v9187_v3 = vpop.eup %9186 }
0x2503   :  { %6626 = vrot.lane.b32.xlu1 %v9187_v3, %s9470_s5  ;;  %v9189_v6 = vpop.eup %9188 }
0x2504   :  { %v6602_v8 = vadd.f32 1.0, %v9189_v6  ;;  %v9191_v10 = vpop.eup %9190 }
0x2505   :  { %v6608_v11 = vadd.f32 1.0, %v9191_v10 }
0x2506   :  { %9192 = vrcp.f32 %v6602_v8  ;;  %v6863_v8 = vld [vmem:[#allocation2 + $0xe] sm:$0x3] }
0x2507   :  { %9194 = vrcp.f32 %v6608_v11 }
0x2513   :  { %v9193_v12 = vpop.eup %9192 }
0x2514   :  { %v9195_v13 = vpop.eup %9194  ;;  %v6613_v30 = vmul.f32 %v9193_v12, %v10833_v4 }
0x2515   :  { %v6624_v38 = vmul.f32 %v9195_v13, %v10837_v59 }
0x2571   :  { %v6616_v47 = vpop.permute.xlu0 %6615 }
0x2572   :  { %v6618_v25 = vmul.f32 %v9193_v12, %v6616_v47  ;;  %v6937_v47 = vld [vmem:[#allocation3] sm:$0x3] }
0x2574   :  { %6620 = vrot.lane.b32.xlu0 %v6618_v25, %s9470_s5 }
0x2575   :  { %v6627_v26 = vpop.permute.xlu1 %6626 }
0x2576   :  { %v6629_v29 = vmul.f32 %v9195_v13, %v6627_v26 }
0x2578   :  { %6631 = vrot.lane.b32.xlu1 %v6629_v29, %s9470_s5 }
0x25e6   :  { %v6621_v22 = vpop.permute.xlu0 %6620 }
0x25e7   :  { %v10873_v37 = vadd.f32 %v6621_v22, %v6613_v30 }
0x25e9   :  { %9196 = vtanh.f32 %v10873_v37 }
0x25ea   :  { %v6632_v39 = vpop.permute.xlu1 %6631 }
0x25eb   :  { %v10877_v28 = vadd.f32 %v6632_v39, %v6624_v38 }
0x25ed   :  { %9198 = vtanh.f32 %v10877_v28 }
0x25f6   :  { %v9197_v41 = vpop.eup %9196 }
0x25f7   :  { %6637 = vrot.lane.b32.xlu0 %v9197_v41, %s9470_s5 }
0x25fa   :  { %v9199_v43 = vpop.eup %9198 }
0x25fb   :  { %6643 = vrot.lane.b32.xlu1 %v9199_v43, %s9470_s5 }
0x2669   :  { %v6638_v44 = vpop.permute.xlu0 %6637 }
0x266a   :  { %v6640_v27 = vmul.f32 %v9193_v12, %v6638_v44 }
0x266c   :  { %6648 = vrot.lane.b32.xlu0 %v6640_v27, %s9471_s6 }
0x266d   :  { %v6644_v46 = vpop.permute.xlu1 %6643 }
0x266e   :  { %v6646_v50 = vmul.f32 %v9195_v13, %v6644_v46 }
0x2670   :  { %6653 = vrot.lane.b32.xlu1 %v6646_v50, %s9471_s6 }
0x26de   :  { %v6649_v51 = vpop.permute.xlu0 %6648 }
0x26df   :  { %6651 = vst.msk [vmem:[#allocation4 + $0xa] sm:$0x3] %vm1588_vm2, %v6649_v51  ;;  %8889 = vmatmul.mubr.msk.f32.vlgmr.msra.gmra.mxu0 %vm1389_vm3, %v6649_v51 }
0x26e0   :  { %8903 = vmatpush3.msra.mxu0 %v9262_v31  ;;  %8910 = vmatprep.mubr.msk.f32.mxu0 %vm9469_vm0, %v9468_v1 }
0x26e1   :  { %8904 = vmatprep.subr.mxu0 %v9468_v1 }
0x26e2   :  { %v6654_v52 = vpop.permute.xlu1 %6653  ;;  %8905 = vmatpush3.msra.mxu0 %v9263_v53 }
0x26e3   :  { %6656 = vst.msk [vmem:[#allocation5 + $0x4] sm:$0x3] %vm1588_vm2, %v6654_v52  ;;  %8900 = vmatmul.mubr.msk.f32.vlgmr.msra.gmra.mxu1 %vm1389_vm3, %v6654_v52  ;;  %8906 = vmatprep.subr.mxu0 %v9468_v1 }
0x26e4   :  { %8907 = vmatpush3.msra.mxu0 %v9264_v54  ;;  %8914 = vmatpush3.msra.mxu1 %v10807_v24  ;;  %v6657_v24 = vld [vmem:[#allocation2 + $0xc] sm:$0x3] }
0x26e5   :  { %8908 = vmatprep.subr.mxu0 %v9468_v1  ;;  %8915 = vmatprep.subr.mxu1 %v9468_v1 }
0x26e6   :  { %8909 = vmatpush3.msra.mxu0 %v9265_v15  ;;  %8916 = vmatpush3.msra.mxu1 %v10813_v14  ;;  %v6731_v14 = vld [vmem:[#allocation3 + $0x2] sm:$0x3] }
0x26e7   :  { %8917 = vmatprep.subr.mxu1 %v9468_v1  ;;  %8921 = vmatprep.mubr.msk.f32.mxu1 %vm9469_vm0, %v9468_v1 }
0x26e8   :  { %8918 = vmatpush3.msra.mxu1 %v10819_v18  ;;  %8924 = vmatprep.subr.mxu0 %v9468_v1 }
0x26e9   :  { %8919 = vmatprep.subr.mxu1 %v9468_v1 }
0x26ea   :  { %8920 = vmatpush3.msra.mxu1 %v10824_v36 }
0x26eb   :  { %8935 = vmatprep.subr.mxu1 %v9468_v1 }
0x279f   :  { %v6726_v55 = vpop.f32.mrf.mxu0 }
0x27a0   :  { %v6730_v56 = vadd.f32 %v6726_v55, %v6657_v24 }
0x27a1   :  { %v8890_v45 = vpop.f32.mrf.mxu0 }
0x27a2   :  { %9200 = vtanh.f32 %v6730_v56  ;;  %v7712_v4 = vmul.f32 -1.442695, %v6730_v56 }
0x27a3   :  { %v6800_v57 = vpop.f32.mrf.mxu1 }
0x27a4   :  { %v6804_v32 = vadd.f32 %v6800_v57, %v6731_v14 }
0x27a5   :  { %v8901_v21 = vpop.f32.mrf.mxu1 }
0x27a6   :  { %9202 = vtanh.f32 %v6804_v32  ;;  %v7713_v36 = vmul.f32 -1.442695, %v6804_v32  ;;  %v7718_v21 = vld [vmem:[#allocation18] ss:$0 sm:$0xff] }
0x27a7   :  { %9204 = vpow2.f32 %v7712_v4  ;;  %v10933_v4 = vld [vmem:[#allocation4 + $0x4] sm:$0x3] }
0x27a8   :  { %9206 = vpow2.f32 %v7713_v36  ;;  %v10935_v36 = vld [vmem:[#allocation4] sm:$0x3] }
0x27af   :  { %v9201_v48 = vpop.eup %9200 }
0x27b0   :  { %6821 = vrot.lane.b32.xlu0 %v9201_v48, %s9470_s5  ;;  %v10930_v48 = vld [vmem:[#allocation4 + $0x2] sm:$0x3] }
0x27b3   :  { %v9203_v18 = vpop.eup %9202 }
0x27b4   :  { %6832 = vrot.lane.b32.xlu1 %v9203_v18, %s9470_s5  ;;  %v9205_v58 = vpop.eup %9204  ;;  %v7094_v18 = vmul.f32 %v7718_v21, %v10930_v48 }
0x27b5   :  { %v6808_v35 = vadd.f32 1.0, %v9205_v58  ;;  %v9207_v59 = vpop.eup %9206 }
0x27b6   :  { %v6814_v49 = vadd.f32 1.0, %v9207_v59  ;;  %v7104_v58 = vsel %vm1588_vm2, %v7094_v18, 0.0  ;;  %v7093_v59 = vmul.f32 %v7718_v21, %v10935_v36 }
0x27b7   :  { %9208 = vrcp.f32 %v6808_v35  ;;  %v7095_v35 = vmul.f32 %v7718_v21, %v10933_v4 }
0x27b8   :  { %9210 = vrcp.f32 %v6814_v49  ;;  %v10940_v49 = vld [vmem:[#allocation4 + $0x8] sm:$0x3] }
0x27c4   :  { %v9209_v60 = vpop.eup %9208 }
0x27c5   :  { %v9211_v7 = vpop.eup %9210  ;;  %v6819_v0 = vmul.f32 %v9209_v60, %v10873_v37 }
0x27c6   :  { %v6830_v33 = vmul.f32 %v9211_v7, %v10877_v28 }
0x2822   :  { %v6822_v23 = vpop.permute.xlu0 %6821 }
0x2823   :  { %v6824_v61 = vmul.f32 %v9209_v60, %v6822_v23  ;;  %v7107_v23 = vsel %vm1588_vm2, %v7095_v35, 0.0 }
0x2825   :  { %6826 = vrot.lane.b32.xlu0 %v6824_v61, %s9470_s5  ;;  %v7097_v61 = vmul.f32 %v7718_v21, %v10940_v49 }
0x2826   :  { %v6833_v40 = vpop.permute.xlu1 %6832 }
0x2827   :  { %v6835_v17 = vmul.f32 %v9211_v7, %v6833_v40 }
0x2829   :  { %6837 = vrot.lane.b32.xlu1 %v6835_v17, %s9470_s5 }
0x2897   :  { %v6827_v19 = vpop.permute.xlu0 %6826 }
0x2898   :  { %v6829_v20 = vadd.f32 %v6827_v19, %v6819_v0  ;;  %v10950_v0 = vld [vmem:[#allocation4 + $0xa] sm:$0x3]  ;;  %v7113_v19 = vsel %vm1588_vm2, %v7097_v61, 0.0 }
0x289a   :  { %9212 = vtanh.f32 %v6829_v20 }
0x289b   :  { %v6838_v16 = vpop.permute.xlu1 %6837 }
0x289c   :  { %v6840_v62 = vadd.f32 %v6838_v16, %v6830_v33  ;;  %v7098_v16 = vmul.f32 %v7718_v21, %v10950_v0 }
0x289e   :  { %9214 = vtanh.f32 %v6840_v62 }
0x28a7   :  { %v9213_v42 = vpop.eup %9212 }
0x28a8   :  { %6843 = vrot.lane.b32.xlu0 %v9213_v42, %s9470_s5  ;;  %v7116_v42 = vsel %vm1588_vm2, %v7098_v16, 0.0 }
0x28ab   :  { %v9215_v63 = vpop.eup %9214 }
0x28ac   :  { %6849 = vrot.lane.b32.xlu1 %v9215_v63, %s9470_s5 }
0x291a   :  { %v6844_v2 = vpop.permute.xlu0 %6843 }
0x291b   :  { %v6846_v9 = vmul.f32 %v9209_v60, %v6844_v2  ;;  %v10942_v60 = vld [vmem:[#allocation4 + $0x6] sm:$0x3] }
0x291c   :  { %v7096_v40 = vmul.f32 %v7718_v21, %v10942_v60 }
0x291d   :  { %6854 = vrot.lane.b32.xlu0 %v6846_v9, %s9471_s6 }
0x291e   :  { %v6850_v3 = vpop.permute.xlu1 %6849  ;;  %v7110_v33 = vsel %vm1588_vm2, %v7096_v40, 0.0 }
0x291f   :  { %v6852_v5 = vmul.f32 %v9211_v7, %v6850_v3  ;;  %v7101_v7 = vsel %vm1588_vm2, %v7093_v59, 0.0  ;;  %v10959_v3 = vld [vmem:[#allocation5 + $0x4] sm:$0x3] }
0x2921   :  { %6859 = vrot.lane.b32.xlu1 %v6852_v5, %s9471_s6 }
0x298f   :  { %v6855_v34 = vpop.permute.xlu0 %6854 }
0x2990   :  { %6857 = vst.msk [vmem:[#allocation4 + $0xc] sm:$0x3] %vm1588_vm2, %v6855_v34  ;;  %8911 = vmatmul.mubr.msk.f32.vlgmr.msra.gmra.mxu0 %vm1389_vm3, %v6855_v34 }
0x2991   :  { %8932 = vmatprep.mubr.msk.f32.mxu0 %vm9469_vm0, %v9468_v1 }
0x2993   :  { %v6860_v6 = vpop.permute.xlu1 %6859 }
0x2994   :  { %6862 = vst.msk [vmem:[#allocation5 + $0x2] sm:$0x3] %vm1588_vm2, %v6860_v6  ;;  %8922 = vmatmul.mubr.msk.f32.vlgmr.msra.gmra.mxu1 %vm1389_vm3, %v6860_v6 }
0x2995   :  { %8943 = vmatprep.mubr.msk.f32.mxu1 %vm9469_vm0, %v9468_v1 }
0x2997   :  { %v10948_v17 = vld [vmem:[#allocation4 + $0xc] sm:$0x3] }
0x299b   :  { %v10961_v5 = vld [vmem:[#allocation5 + $0x2] sm:$0x3] }
0x2a50   :  { %v6932_v10 = vpop.f32.mrf.mxu0 }
0x2a51   :  { %v6936_v11 = vadd.f32 %v6932_v10, %v6863_v8  ;;  %v10966_v8 = vld [vmem:[#allocation5 + $0x8] sm:$0x3]  ;;  %v10968_v10 = vld [vmem:[#allocation5 + $0x6] sm:$0x3] }
0x2a52   :  { %v8912_v12 = vpop.f32.mrf.mxu0 }
0x2a53   :  { %9216 = vtanh.f32 %v6936_v11  ;;  %v7716_v22 = vmul.f32 -1.442695, %v6936_v11 }
0x2a54   :  { %v7006_v25 = vpop.f32.mrf.mxu1 }
0x2a55   :  { %v7010_v13 = vadd.f32 %v7006_v25, %v6937_v47 }
0x2a56   :  { %v8923_v26 = vpop.f32.mrf.mxu1 }
0x2a57   :  { %9218 = vtanh.f32 %v7010_v13  ;;  %v7717_v37 = vmul.f32 -1.442695, %v7010_v13  ;;  %v10974_v13 = vld [vmem:[#allocation5 + $0xa] sm:$0x3] }
0x2a58   :  { %9220 = vpow2.f32 %v7716_v22 }
0x2a59   :  { %9222 = vpow2.f32 %v7717_v37 }
0x2a60   :  { %v9217_v29 = vpop.eup %9216 }
0x2a61   :  { %7027 = vrot.lane.b32.xlu0 %v9217_v29, %s9470_s5 }
0x2a64   :  { %v9219_v30 = vpop.eup %9218 }
0x2a65   :  { %7038 = vrot.lane.b32.xlu1 %v9219_v30, %s9470_s5  ;;  %v9221_v38 = vpop.eup %9220 }
0x2a66   :  { %v7014_v39 = vadd.f32 1.0, %v9221_v38  ;;  %v9223_v28 = vpop.eup %9222 }
0x2a67   :  { %v7020_v41 = vadd.f32 1.0, %v9223_v28 }
0x2a68   :  { %9224 = vrcp.f32 %v7014_v39  ;;  %v10984_v39 = vld [vmem:[#allocation5 + $0xc] sm:$0x3] }
0x2a69   :  { %9226 = vrcp.f32 %v7020_v41 }
0x2a75   :  { %v9225_v43 = vpop.eup %9224 }
0x2a76   :  { %v9227_v46 = vpop.eup %9226  ;;  %v7025_v31 = vmul.f32 %v9225_v43, %v6829_v20  ;;  %v7099_v20 = vmul.f32 %v7718_v21, %v10948_v17 }
0x2a77   :  { %v7036_v54 = vmul.f32 %v9227_v46, %v6840_v62 }
0x2a78   :  { %v7119_v62 = vsel %vm1588_vm2, %v7099_v20, 0.0 }
0x2ad3   :  { %v7028_v44 = vpop.permute.xlu0 %7027 }
0x2ad4   :  { %v7030_v27 = vmul.f32 %v9225_v43, %v7028_v44 }
0x2ad6   :  { %7032 = vrot.lane.b32.xlu0 %v7030_v27, %s9470_s5  ;;  %v10990_v27 = vld [vmem:[#allocation5 + $0xe] sm:$0x3] }
0x2ad7   :  { %v7039_v50 = vpop.permute.xlu1 %7038 }
0x2ad8   :  { %v7041_v51 = vmul.f32 %v9227_v46, %v7039_v50 }
0x2ada   :  { %7043 = vrot.lane.b32.xlu1 %v7041_v51, %s9470_s5 }
0x2b48   :  { %v7033_v52 = vpop.permute.xlu0 %7032 }
0x2b49   :  { %v7035_v53 = vadd.f32 %v7033_v52, %v7025_v31  ;;  %v9473_v52 = vmov 0  }
0x2b4a   :  { %8975 = vset.pattern.permute.xlu1 %v9473_v52  ;;  %8974 = vset.pattern.permute.xlu0 %v9473_v52 }
0x2b4b   :  { %9228 = vtanh.f32 %v7035_v53 }
0x2b4c   :  { %v7044_v15 = vpop.permute.xlu1 %7043 }
0x2b4d   :  { %v7046_v24 = vadd.f32 %v7044_v15, %v7036_v54 }
0x2b4f   :  { %9230 = vtanh.f32 %v7046_v24 }
0x2b58   :  { %v9229_v55 = vpop.eup %9228 }
0x2b59   :  { %7049 = vrot.lane.b32.xlu0 %v9229_v55, %s9470_s5 }
0x2b5c   :  { %v9231_v56 = vpop.eup %9230 }
0x2b5d   :  { %7055 = vrot.lane.b32.xlu1 %v9231_v56, %s9470_s5 }
0x2bcb   :  { %v7050_v45 = vpop.permute.xlu0 %7049 }
0x2bcc   :  { %v7052_v14 = vmul.f32 %v9225_v43, %v7050_v45 }
0x2bce   :  { %7060 = vrot.lane.b32.xlu0 %v7052_v14, %s9471_s6 }
0x2bcf   :  { %v7056_v57 = vpop.permute.xlu1 %7055 }
0x2bd0   :  { %v7058_v32 = vmul.f32 %v9227_v46, %v7056_v57 }
0x2bd2   :  { %7125 = vrot.lane.b32.xlu0 %v7718_v21, %s9472_s11  ;;  %7065 = vrot.lane.b32.xlu1 %v7058_v32, %s9471_s6 }
0x2bf1   :  { %7105 = vadd.xlane.f32.xlu0 %v7104_v58 }
0x2bf5   :  { %7108 = vadd.xlane.f32.xlu0 %v7107_v23 }
0x2bf6   :  { %7102 = vadd.xlane.f32.xlu1 %v7101_v7  ;;  %v7719_v7 = vld [vmem:[#allocation6] ss:$0 sm:$0xff] }
0x2bf9   :  { %7114 = vadd.xlane.f32.xlu0 %v7113_v19 }
0x2bfa   :  { %7111 = vadd.xlane.f32.xlu1 %v7110_v33 }
0x2bfd   :  { %7120 = vadd.xlane.f32.xlu0 %v7119_v62 }
0x2bfe   :  { %7117 = vadd.xlane.f32.xlu1 %v7116_v42 }
0x2c40   :  { %v7061_v63 = vpop.permute.xlu0 %7060 }
0x2c41   :  { %7063 = vst.msk [vmem:[#allocation4 + $0xe] sm:$0x3] %vm1588_vm2, %v7061_v63 }
0x2c44   :  { %v7126_v2 = vpop.permute.xlu0 %7125  ;;  %v7066_v9 = vpop.permute.xlu1 %7065 }
0x2c45   :  { %7068 = vst.msk [vmem:[#allocation5] sm:$0x3] %vm1588_vm2, %v7066_v9  ;;  %v7130_v34 = vmul.f32 %v7126_v2, %v10959_v3  ;;  %v7129_v6 = vmul.f32 %v7126_v2, %v10961_v5  ;;  %v7132_v47 = vmul.f32 %v7126_v2, %v10966_v8  ;;  %v7131_v25 = vmul.f32 %v7126_v2, %v10968_v10 }
0x2c46   :  { %v7133_v30 = vmul.f32 %v7126_v2, %v10974_v13  ;;  %v7134_v44 = vmul.f32 %v7126_v2, %v10984_v39  ;;  %v7135_v51 = vmul.f32 %v7126_v2, %v10990_v27 }
0x2c47   :  { %v7142_v11 = vsel %vm1588_vm2, %v7130_v34, 0.0  ;;  %v7139_v12 = vsel %vm1588_vm2, %v7129_v6, 0.0  ;;  %v7148_v26 = vsel %vm1588_vm2, %v7132_v47, 0.0  ;;  %v7145_v29 = vsel %vm1588_vm2, %v7131_v25, 0.0 }
0x2c48   :  { %7143 = vadd.xlane.f32.xlu0 %v7142_v11  ;;  %7140 = vadd.xlane.f32.xlu1 %v7139_v12  ;;  %v10981_v37 = vld [vmem:[#allocation4 + $0xe] sm:$0x3]  ;;  %v7151_v28 = vsel %vm1588_vm2, %v7133_v30, 0.0  ;;  %v7154_v50 = vsel %vm1588_vm2, %v7134_v44, 0.0  ;;  %v7157_v31 = vsel %vm1588_vm2, %v7135_v51, 0.0 }
0x2c49   :  { %v7100_v43 = vmul.f32 %v7718_v21, %v10981_v37 }
0x2c4b   :  { %v7122_v46 = vsel %vm1588_vm2, %v7100_v43, 0.0 }
0x2c4c   :  { %7149 = vadd.xlane.f32.xlu0 %v7148_v26  ;;  %7146 = vadd.xlane.f32.xlu1 %v7145_v29  ;;  %v10979_v22 = vld [vmem:[#allocation5] sm:$0x3] }
0x2c4d   :  { %v7128_v38 = vmul.f32 %v7126_v2, %v10979_v22 }
0x2c4f   :  { %v7136_v41 = vsel %vm1588_vm2, %v7128_v38, 0.0 }
0x2c50   :  { %7152 = vadd.xlane.f32.xlu1 %v7151_v28  ;;  %7137 = vadd.xlane.f32.xlu0 %v7136_v41 }
0x2c54   :  { %7123 = vadd.xlane.f32.xlu1 %v7122_v46  ;;  %7155 = vadd.xlane.f32.xlu0 %v7154_v50 }
0x2c58   :  { %7158 = vadd.xlane.f32.xlu1 %v7157_v31 }
0x2c7a   :  { %v7106_v53 = vpop.xlane.xlu0 %7105 }
0x2c7e   :  { %v7109_v54 = vpop.xlane.xlu0 %7108 }
0x2c7f   :  { %v7103_v15 = vpop.xlane.xlu1 %7102 }
0x2c82   :  { %v7115_v24 = vpop.xlane.xlu0 %7114 }
0x2c83   :  { %v7112_v55 = vpop.xlane.xlu1 %7111 }
0x2c86   :  { %v7121_v56 = vpop.xlane.xlu0 %7120 }
0x2c87   :  { %v7118_v45 = vpop.xlane.xlu1 %7117 }
0x2cd1   :  { %v7144_v14 = vpop.xlane.xlu0 %7143  ;;  %v7141_v57 = vpop.xlane.xlu1 %7140 }
0x2cd2   :  { %v7161_v23 = vadd.f32 %v7141_v57, %v7106_v53  ;;  %v7162_v40 = vadd.f32 %v7144_v14, %v7109_v54 }
0x2cd4   :  { %v7175_v63 = vadd.f32 %v7719_v7, %v7161_v23  ;;  %v7176_v34 = vadd.f32 %v7719_v7, %v7162_v40 }
0x2cd5   :  { %v7150_v32 = vpop.xlane.xlu0 %7149  ;;  %v7147_v21 = vpop.xlane.xlu1 %7146 }
0x2cd6   :  { %v7164_v61 = vadd.f32 %v7150_v32, %v7115_v24  ;;  %v7163_v33 = vadd.f32 %v7147_v21, %v7112_v55  ;;  %v7184_v26 = vsel %vm7182_vm4, %v7175_v63, -inf  ;;  %v7185_v43 = vsel %vm7182_vm4, %v7176_v34, -inf }
0x2cd8   :  { %v7178_v2 = vadd.f32 %v7719_v7, %v7164_v61  ;;  %v7177_v11 = vadd.f32 %v7719_v7, %v7163_v33 }
0x2cd9   :  { %v7138_v18 = vpop.xlane.xlu0 %7137  ;;  %v7153_v58 = vpop.xlane.xlu1 %7152 }
0x2cda   :  { %v7160_v35 = vadd.f32 %v7138_v18, %v7103_v15  ;;  %v7165_v59 = vadd.f32 %v7153_v58, %v7118_v45  ;;  %v7187_v29 = vsel %vm7182_vm4, %v7178_v2, -inf  ;;  %v7186_v44 = vsel %vm7182_vm4, %v7177_v11, -inf }
0x2cdc   :  { %v7174_v16 = vadd.f32 %v7719_v7, %v7160_v35  ;;  %v7179_v62 = vadd.f32 %v7719_v7, %v7165_v59 }
0x2cdd   :  { %v7156_v19 = vpop.xlane.xlu0 %7155  ;;  %v7124_v20 = vpop.xlane.xlu1 %7123 }
0x2cde   :  { %v7166_v42 = vadd.f32 %v7156_v19, %v7121_v56  ;;  %v7183_v12 = vsel %vm7182_vm4, %v7174_v16, -inf  ;;  %v7189_v47 = vsel %vm7182_vm4, %v7179_v62, -inf }
0x2cdf   :  { %v7188_v28 = vmax.f32 %v7183_v12, %v7187_v29  ;;  %v7190_v41 = vmax.f32 %v7184_v26, %v7189_v47 }
0x2ce0   :  { %v7180_v9 = vadd.f32 %v7719_v7, %v7166_v42 }
0x2ce1   :  { %v7159_v6 = vpop.xlane.xlu1 %7158  ;;  %v7195_v31 = vmax.f32 %v7188_v28, %v7190_v41 }
0x2ce2   :  { %v7167_v25 = vadd.f32 %v7159_v6, %v7124_v20  ;;  %v7191_v30 = vsel %vm7182_vm4, %v7180_v9, -inf }
0x2ce3   :  { %v7192_v50 = vmax.f32 %v7185_v43, %v7191_v30 }
0x2ce4   :  { %v7181_v38 = vadd.f32 %v7719_v7, %v7167_v25 }
0x2ce6   :  { %v7193_v46 = vsel %vm7182_vm4, %v7181_v38, -inf }
0x2ce7   :  { %v7194_v51 = vmax.f32 %v7186_v44, %v7193_v46 }
0x2ce9   :  { %v7196_v52 = vmax.f32 %v7192_v50, %v7194_v51 }
0x2ceb   :  { %v7197_v53 = vmax.f32 %v7195_v31, %v7196_v52 }
0x2ced   :  { %v7198_v54 = vsub.f32 %v7174_v16, %v7197_v53  ;;  %v7199_v15 = vsub.f32 %v7175_v63, %v7197_v53  ;;  %v7200_v24 = vsub.f32 %v7176_v34, %v7197_v53  ;;  %v7201_v55 = vsub.f32 %v7177_v11, %v7197_v53 }
0x2cee   :  { %v7202_v56 = vsub.f32 %v7178_v2, %v7197_v53  ;;  %v7203_v32 = vsub.f32 %v7179_v62, %v7197_v53  ;;  %v7204_v18 = vsub.f32 %v7180_v9, %v7197_v53  ;;  %v7205_v35 = vsub.f32 %v7181_v38, %v7197_v53 }
0x2cef   :  { %v7206_v45 = vmul.f32 1.442695, %v7198_v54  ;;  %v7208_v14 = vmul.f32 1.442695, %v7199_v15  ;;  %v7210_v57 = vmul.f32 1.442695, %v7200_v24 }
0x2cf0   :  { %v7212_v21 = vmul.f32 1.442695, %v7201_v55  ;;  %v7214_v58 = vmul.f32 1.442695, %v7202_v56  ;;  %v7216_v59 = vmul.f32 1.442695, %v7203_v32 }
0x2cf1   :  { %9232 = vpow2.f32 %v7206_v45  ;;  %v7218_v23 = vmul.f32 1.442695, %v7204_v18  ;;  %v7220_v61 = vmul.f32 1.442695, %v7205_v35  ;;  %v7339_v54 = vld [vmem:[%s11107_s15 + $0x38] sm:$0xff]  ;;  %v7338_v55 = vld [vmem:[%s11107_s15 + $0x30] sm:$0xff] }
0x2cf2   :  { %9234 = vpow2.f32 %v7208_v14  ;;  %v7335_v15 = vld [vmem:[%s11107_s15 + $0x18] sm:$0xff]  ;;  %8925 = vmatpush3.msra.mxu0 %v7339_v54  ;;  %v7334_v56 = vld [vmem:[%s11107_s15 + $0x10] sm:$0xff]  ;;  %v7337_v45 = vld [vmem:[%s11107_s15 + $0x28] sm:$0xff] }
0x2cf3   :  { %9236 = vpow2.f32 %v7210_v57  ;;  %8936 = vmatpush3.msra.mxu1 %v7335_v15  ;;  %8926 = vmatprep.subr.mxu0 %v9468_v1  ;;  %v7333_v14 = vld [vmem:[%s11107_s15 + $0x8] sm:$0xff]  ;;  %v7336_v57 = vld [vmem:[%s11107_s15 + $0x20] sm:$0xff] }
0x2cf4   :  { %9238 = vpow2.f32 %v7212_v21  ;;  %8937 = vmatprep.subr.mxu1 %v9468_v1  ;;  %8927 = vmatpush3.msra.mxu0 %v7338_v55  ;;  %v7332_v32 = vld [vmem:[%s11107_s15] sm:$0xff]  ;;  %v7497_v55 = vld [vmem:[#allocation19 + $0x10] sm:$0xff] }
0x2cf5   :  { %9240 = vpow2.f32 %v7214_v58  ;;  %8938 = vmatpush3.msra.mxu1 %v7334_v56  ;;  %8928 = vmatprep.subr.mxu0 %v9468_v1 }
0x2cf6   :  { %9242 = vpow2.f32 %v7216_v59  ;;  %8939 = vmatprep.subr.mxu1 %v9468_v1  ;;  %8929 = vmatpush3.msra.mxu0 %v7337_v45 }
0x2cf7   :  { %9244 = vpow2.f32 %v7218_v23  ;;  %8940 = vmatpush3.msra.mxu1 %v7333_v14  ;;  %8930 = vmatprep.subr.mxu0 %v9468_v1  ;;  %v7722_v14 = vld [vmem:[%s11108_s16] ss:$0 sm:$0xff] }
0x2cf8   :  { %9246 = vpow2.f32 %v7220_v61  ;;  %8941 = vmatprep.subr.mxu1 %v9468_v1  ;;  %8931 = vmatpush3.msra.mxu0 %v7336_v57 }
0x2cf9   :  { %8942 = vmatpush3.msra.mxu1 %v7332_v32  ;;  %8946 = vmatprep.subr.mxu0 %v9468_v1 }
0x2cfe   :  { %v9233_v7 = vpop.eup %9232 }
0x2cff   :  { %v9235_v40 = vpop.eup %9234  ;;  %v7222_v19 = vsel %vm7182_vm4, %v9233_v7, 0.0 }
0x2d00   :  { %v9237_v20 = vpop.eup %9236  ;;  %v7223_v33 = vsel %vm7182_vm4, %v9235_v40, 0.0 }
0x2d01   :  { %v9239_v16 = vpop.eup %9238  ;;  %v7224_v62 = vadd.f32 %v7223_v33, %v7222_v19  ;;  %v7225_v42 = vsel %vm7182_vm4, %v9237_v20, 0.0 }
0x2d02   :  { %v9241_v63 = vpop.eup %9240  ;;  %v7227_v9 = vsel %vm7182_vm4, %v9239_v16, 0.0 }
0x2d03   :  { %v7226_v2 = vadd.f32 %v7225_v42, %v7224_v62  ;;  %v9243_v34 = vpop.eup %9242  ;;  %v7229_v11 = vsel %vm7182_vm4, %v9241_v63, 0.0 }
0x2d04   :  { %v9245_v12 = vpop.eup %9244  ;;  %v7231_v25 = vsel %vm7182_vm4, %v9243_v34, 0.0 }
0x2d05   :  { %v7228_v6 = vadd.f32 %v7227_v9, %v7226_v2  ;;  %v9247_v26 = vpop.eup %9246  ;;  %v7233_v30 = vsel %vm7182_vm4, %v9245_v12, 0.0 }
0x2d06   :  { %v7235_v28 = vsel %vm7182_vm4, %v9247_v26, 0.0 }
0x2d07   :  { %v7230_v47 = vadd.f32 %v7229_v11, %v7228_v6 }
0x2d09   :  { %v7232_v29 = vadd.f32 %v7231_v25, %v7230_v47 }
0x2d0b   :  { %v7234_v38 = vadd.f32 %v7233_v30, %v7232_v29 }
0x2d0d   :  { %v7236_v41 = vadd.f32 %v7235_v28, %v7234_v38 }
0x2d0f   :  { %9248 = vrcp.f32 %v7236_v41 }
0x2d1c   :  { %v9249_v43 = vpop.eup %9248 }
0x2d1d   :  { %v7239_v44 = vmul.f32 %v9249_v43, %v9235_v40  ;;  %v7238_v46 = vmul.f32 %v9249_v43, %v9233_v7  ;;  %v7240_v50 = vmul.f32 %v9249_v43, %v9237_v20  ;;  %v7241_v51 = vmul.f32 %v9249_v43, %v9239_v16 }
0x2d1e   :  { %v7242_v31 = vmul.f32 %v9249_v43, %v9241_v63  ;;  %v7243_v52 = vmul.f32 %v9249_v43, %v9243_v34  ;;  %v7244_v53 = vmul.f32 %v9249_v43, %v9245_v12  ;;  %v7245_v24 = vmul.f32 %v9249_v43, %v9247_v26 }
0x2d1f   :  { %7253 = vperm.xlu1 %8975, %v7239_v44   ;;  %7248 = vperm.xlu0 %8974, %v7238_v46  }
0x2d23   :  { %7258 = vperm.xlu1 %8975, %v7240_v50  }
0x2d27   :  { %7263 = vperm.xlu1 %8975, %v7241_v51  }
0x2d2b   :  { %7268 = vperm.xlu1 %8975, %v7242_v31  }
0x2d2f   :  { %7273 = vperm.xlu1 %8975, %v7243_v52  }
0x2d33   :  { %7278 = vperm.xlu1 %8975, %v7244_v53  }
0x2d37   :  { %7283 = vperm.xlu1 %8975, %v7245_v24   ;;  %v7498_v24 = vld [vmem:[#allocation19 + $0x18] sm:$0xff] }
0x2d9a   :  { %v7254_v21 = vpop.permute.xlu1 %7253  ;;  %v7249_v58 = vpop.permute.xlu0 %7248 }
0x2d9b   :  { %v7287_v35 = vmul.f32 %v7254_v21, %v10930_v48  ;;  %v7310_v59 = vmul.f32 %v7254_v21, %v10961_v5  ;;  %v7286_v61 = vmul.f32 %v7249_v58, %v10935_v36  ;;  %v7309_v7 = vmul.f32 %v7249_v58, %v10979_v22 }
0x2d9d   :  { %v7295_v20 = vsel %vm1588_vm2, %v7287_v35, 0.0  ;;  %v7318_v33 = vsel %vm1588_vm2, %v7310_v59, 0.0  ;;  %v7294_v62 = vsel %vm1588_vm2, %v7286_v61, 0.0  ;;  %v7317_v48 = vsel %vm1588_vm2, %v7309_v7, 0.0  ;;  %v7723_v35 = vld [vmem:[%s11110_s18] ss:$0 sm:$0xff] }
0x2d9e   :  { %v7259_v18 = vpop.permute.xlu1 %7258  ;;  %v7296_v63 = vadd.f32 %v7295_v20, %v7294_v62  ;;  %v7319_v2 = vadd.f32 %v7318_v33, %v7317_v48 }
0x2d9f   :  { %v7288_v40 = vmul.f32 %v7259_v18, %v10933_v4  ;;  %v7311_v19 = vmul.f32 %v7259_v18, %v10959_v3 }
0x2da1   :  { %v7297_v36 = vsel %vm1588_vm2, %v7288_v40, 0.0  ;;  %v7320_v22 = vsel %vm1588_vm2, %v7311_v19, 0.0 }
0x2da2   :  { %v7264_v23 = vpop.permute.xlu1 %7263  ;;  %v7321_v12 = vadd.f32 %v7320_v22, %v7319_v2 }
0x2da3   :  { %v7289_v5 = vmul.f32 %v7264_v23, %v10942_v60  ;;  %v7312_v42 = vmul.f32 %v7264_v23, %v10968_v10  ;;  %v7298_v10 = vadd.f32 %v7297_v36, %v7296_v63 }
0x2da5   :  { %v7299_v34 = vsel %vm1588_vm2, %v7289_v5, 0.0  ;;  %v7322_v6 = vsel %vm1588_vm2, %v7312_v42, 0.0 }
0x2da6   :  { %v7269_v16 = vpop.permute.xlu1 %7268  ;;  %v7323_v26 = vadd.f32 %v7322_v6, %v7321_v12 }
0x2da7   :  { %v7290_v4 = vmul.f32 %v7269_v16, %v10940_v49  ;;  %v7313_v3 = vmul.f32 %v7269_v16, %v10966_v8  ;;  %v7300_v49 = vadd.f32 %v7299_v34, %v7298_v10 }
0x2da9   :  { %v7301_v47 = vsel %vm1588_vm2, %v7290_v4, 0.0  ;;  %v7324_v25 = vsel %vm1588_vm2, %v7313_v3, 0.0 }
0x2daa   :  { %v7274_v9 = vpop.permute.xlu1 %7273  ;;  %v7325_v41 = vadd.f32 %v7324_v25, %v7323_v26 }
0x2dab   :  { %v7291_v11 = vmul.f32 %v7274_v9, %v10950_v0  ;;  %v7314_v60 = vmul.f32 %v7274_v9, %v10974_v13  ;;  %v7302_v0 = vadd.f32 %v7301_v47, %v7300_v49 }
0x2dad   :  { %v7303_v29 = vsel %vm1588_vm2, %v7291_v11, 0.0  ;;  %v7326_v30 = vsel %vm1588_vm2, %v7314_v60, 0.0 }
0x2dae   :  { %v7279_v8 = vpop.permute.xlu1 %7278  ;;  %v7304_v44 = vadd.f32 %v7303_v29, %v7302_v0  ;;  %v7327_v46 = vadd.f32 %v7326_v30, %v7325_v41 }
0x2daf   :  { %v7292_v38 = vmul.f32 %v7279_v8, %v10948_v17  ;;  %v7315_v28 = vmul.f32 %v7279_v8, %v10984_v39 }
0x2db1   :  { %v7305_v13 = vsel %vm1588_vm2, %v7292_v38, 0.0  ;;  %v7328_v43 = vsel %vm1588_vm2, %v7315_v28, 0.0 }
0x2db2   :  { %v7284_v50 = vpop.permute.xlu1 %7283  ;;  %v7306_v52 = vadd.f32 %v7305_v13, %v7304_v44  ;;  %v7329_v53 = vadd.f32 %v7328_v43, %v7327_v46 }
0x2db3   :  { %v7293_v51 = vmul.f32 %v7284_v50, %v10981_v37  ;;  %v7316_v31 = vmul.f32 %v7284_v50, %v10990_v27  ;;  %v7496_v37 = vld [vmem:[#allocation19 + $0x8] sm:$0xff]  ;;  %v7495_v27 = vld [vmem:[#allocation19] sm:$0xff] }
0x2db5   :  { %v7307_v54 = vsel %vm1588_vm2, %v7293_v51, 0.0  ;;  %v7330_v17 = vsel %vm1588_vm2, %v7316_v31, 0.0 }
0x2db6   :  { %v7308_v39 = vadd.f32 %v7307_v54, %v7306_v52  ;;  %v7331_v15 = vadd.f32 %v7330_v17, %v7329_v53 }
0x2db8   :  { %8933 = vmatmul.mubr.msk.f32.vlgmr.msra.gmra.mxu0 %vm1389_vm3, %v7331_v15  ;;  %8944 = vmatmul.mubr.msk.f32.vlgmr.msra.gmra.mxu1 %vm1389_vm3, %v7308_v39 }
0x2db9   :  { %8954 = vmatprep.mubr.msk.f32.mxu0 %vm9469_vm0, %v9468_v1  ;;  %8947 = vmatpush3.msra.mxu0 %v7498_v24 }
0x2dba   :  { %8948 = vmatprep.subr.mxu0 %v9468_v1 }
0x2dbb   :  { %8949 = vmatpush3.msra.mxu0 %v7497_v55 }
0x2dbc   :  { %8950 = vmatprep.subr.mxu0 %v9468_v1 }
0x2dbd   :  { %8951 = vmatpush3.msra.mxu0 %v7496_v37 }
0x2dbe   :  { %8952 = vmatprep.subr.mxu0 %v9468_v1 }
0x2dbf   :  { %8953 = vmatpush3.msra.mxu0 %v7495_v27 }
0x2e78   :  { %v7409_v56 = vpop.f32.mrf.mxu0  ;;  %v7482_v45 = vpop.f32.mrf.mxu1 }
0x2e79   :  { %v7483_v57 = vadd.f32 %v7482_v45, %v7409_v56 }
0x2e7a   :  { %v8934_v32 = vpop.f32.mrf.mxu0  ;;  %v8945_v21 = vpop.f32.mrf.mxu1 }
0x2e7b   :  { %v7493_v18 = vadd.f32 %v7722_v14, %v7483_v57 }
0x2e7d   :  { %v7494_v58 = vmax.f32 %v7493_v18, 0.0 }
0x2e7f   :  { %8955 = vmatmul.mubr.msk.f32.vlgmr.msra.gmra.mxu0 %vm1389_vm3, %v7494_v58 }
0x2f3f   :  { %v7575_v1 = vpop.f32.mrf.mxu0 }
0x2f40   :  { %v7576_v59 = vadd.f32 %v7723_v35, %v7575_v1 }
0x2f41   :  { %v8956_v23 = vpop.f32.mrf.mxu0 }
0x2f42   :  { %7579 = vst [vmem:[#allocation21] sm:$0x3] %v7576_v59 }
0x2f43   :  { %9437 = shalt.err (!%p9434_p2)
}
0x2f44   :  { %7589 = dma.vmem_to_hbm [thread:$0]  %s7587_s21, 32, %s11111_s19, [#allocation9]  }
0x2f45   :  { %9456 = dma.done.wait [#allocation9], 32  }
0x2f46   :  { %9457 = vsyncadd [#allocation9], 4294967264 }
0x2f47   :  { %7593 = vsyncpa [#allocation8], 1 }
0x2f48   :  { %7594 = vsyncpa [#allocation11], 1 }
0x2f49   :  { %7595 = vsyncpa [#allocation14], 1 }
0x2f4a   :  { %7596 = vsyncpa [#allocation17], 1 }
0x2f4b   :  { %7597 = vsyncpa [#allocation20], 1 }
0x2f4c   :  { %7598 = vsyncpa [#allocation9], 1 }

</bundles_post_ra>
